<compile_context>
chip_gen: v6e
topology: v6e:2x2x1
jax: 0.10.0
libtpu: 0.0.40
codegen_flags: <defaults>
</compile_context>

<pallas_src>
import functools

import numpy as np
import jax
import jax.numpy as jnp
from jax.experimental import pallas as pl
from jax.experimental.pallas import tpu as pltpu


# ----------------------------- Pallas kernels ------------------------------


def _conv1_pool_kernel(p_ref, w_ref, t_ref, o_ref):
    """Fused conv1 (as matmul) + folded-BN shift + ReLU + 2x2 maxpool.

    p_ref: (4, tm, Kp)  pool-quadrant-major im2col patches (Kp zero-padded)
    w_ref: (Kp, 128)    conv weights, BN scale folded, Cout zero-padded to 128
    t_ref: (1, 128)     folded BN shift
    o_ref: (tm, 128)    pooled activations (lane-dense store)
    """
    nq, tm, kp = p_ref.shape
    # Leading-dim merge is layout-free (tm % 8 == 0): one matmul at 4x the MXU
    # row occupancy instead of four small ones.
    p = p_ref[...].reshape(nq * tm, kp)
    d = jnp.dot(p, w_ref[...], preferred_element_type=jnp.float32)   # (4*tm,128)
    # 2x2 max pool = elementwise max of the four quadrant row-slices
    # (sublane-aligned since tm % 8 == 0).
    m = jnp.maximum(jnp.maximum(d[0 * tm:1 * tm], d[1 * tm:2 * tm]),
                    jnp.maximum(d[2 * tm:3 * tm], d[3 * tm:4 * tm]))
    # Per-channel shift + ReLU commute with the window max.
    o_ref[...] = jnp.maximum(m + t_ref[...], 0.0).astype(o_ref.dtype)


def conv1_bn_relu_pool(patches4, w_mm, shift, *, tm_cap=256):
    """patches4: (4, M, K) quadrant-major patches -> pooled activations (M, 128)."""
    _, M, K = patches4.shape
    Kp, N = w_mm.shape
    if Kp > K:   # conv1: pad im2col K 147 -> 256 for aligned, unmasked loads
        patches4 = jnp.pad(patches4, ((0, 0), (0, 0), (0, Kp - K)))
    tm = min(tm_cap, M)
    if tm == M and M >= 16:
        tm = M // 2          # >= 2 grid steps so both v7x TensorCores get work
    tm = max(8, (tm // 8) * 8)
    pad_m = (-M) % tm
    if pad_m:
        patches4 = jnp.pad(patches4, ((0, 0), (0, pad_m), (0, 0)))
    Mp = M + pad_m

    flops = 2 * 4 * Mp * Kp * N
    bytes_acc = 4 * (4 * Mp * Kp + Kp * N + N + Mp * N)
    out = pl.pallas_call(
        _conv1_pool_kernel,
        out_shape=jax.ShapeDtypeStruct((Mp, N), jnp.float32),
        grid=(Mp // tm,),
        in_specs=[
            pl.BlockSpec((4, tm, Kp), lambda i: (0, i, 0)),
            pl.BlockSpec((Kp, N), lambda i: (0, 0)),
            pl.BlockSpec((1, N), lambda i: (0, 0)),
        ],
        out_specs=pl.BlockSpec((tm, N), lambda i: (i, 0)),
        compiler_params=pltpu.CompilerParams(
            dimension_semantics=("parallel",)),
        cost_estimate=pl.CostEstimate(
            flops=flops, transcendentals=0, bytes_accessed=bytes_acc),
    )(patches4, w_mm, shift)
    return out[:M] if pad_m else out


def _tail_kernel(x_ref, w2_ref, t2_ref, w3_ref, t3_ref,
                 fw1_ref, fb1_ref, fw2_ref, fb2_ref, o_ref, *, c2, hw3):
    """Fused conv2+BN+ReLU+maxpool2 + conv3+BN+ReLU+avgpool + fc1+ReLU+fc2+L2.

    x_ref : (tb, H1*W1*32)    flattened stage-1 activations (real channels only)
    w2_ref: (H1*W1*32, 4*c2)  conv2 folded to a dense matmul, columns
                              pool-quadrant-major (maxpool = max of lane slices)
    w3_ref: (c2, hw3*128)     conv3 folded to a dense matmul, position-major cols
    """
    x = x_ref[...]
    # conv2 + BN shift + ReLU at every conv2 output position in one matmul.
    y2 = jnp.maximum(
        jnp.dot(x, w2_ref[...], preferred_element_type=jnp.float32) + t2_ref[...],
        0.0)                                                     # (tb, 4*c2)
    # MaxPool2d(2): quadrant-major columns -> elementwise max of 4 lane slices.
    x2 = jnp.maximum(jnp.maximum(y2[:, 0 * c2:1 * c2], y2[:, 1 * c2:2 * c2]),
                     jnp.maximum(y2[:, 2 * c2:3 * c2], y2[:, 3 * c2:4 * c2]))
    # conv3 + BN shift + ReLU at every spatial position in one matmul.
    y3 = jnp.maximum(
        jnp.dot(x2, w3_ref[...], preferred_element_type=jnp.float32) + t3_ref[...],
        0.0)                                                     # (tb, hw3*128)
    # AdaptiveAvgPool2d((1,1)): mean over the hw3 position column groups.
    pooled = y3[:, 0:128]
    for q in range(1, hw3):
        pooled = pooled + y3[:, q * 128:(q + 1) * 128]
    pooled = pooled * (1.0 / hw3)                                # (tb, 128)
    h = jnp.maximum(
        jnp.dot(pooled, fw1_ref[...], preferred_element_type=jnp.float32)
        + fb1_ref[...], 0.0)
    z = jnp.dot(h, fw2_ref[...], preferred_element_type=jnp.float32) + fb2_ref[...]
    inv = jax.lax.rsqrt(jnp.sum(z * z, axis=1, keepdims=True) + 1e-12)  # EUP
    o_ref[...] = (z * inv).astype(o_ref.dtype)


def embedding_tail(x1_flat, w_eff2, t2, w_eff3, t3, fw1, fb1, fw2, fb2, *, hw3):
    B, K1 = x1_flat.shape
    assert K1 == w_eff2.shape[0]
    c2 = w_eff3.shape[0]

    # Batch tiling (review: BlockSpec over B). At B=2 this is a single block.
    tb = B if B <= 128 else 128
    pad_b = (-B) % tb
    if pad_b:
        x1_flat = jnp.pad(x1_flat, ((0, pad_b), (0, 0)))
    Bp = B + pad_b

    def const_spec(a):
        shp = a.shape
        return pl.BlockSpec(shp, lambda i: (0,) * len(shp))

    flops = 2 * Bp * (K1 * w_eff2.shape[1] + c2 * w_eff3.shape[1]
                      + 128 * 128 + 128 * 128)
    bytes_acc = 4 * (Bp * K1 + w_eff2.size + t2.size + w_eff3.size + t3.size
                     + fw1.size + fb1.size + fw2.size + fb2.size + Bp * 128)

    out = pl.pallas_call(
        functools.partial(_tail_kernel, c2=c2, hw3=hw3),
        out_shape=jax.ShapeDtypeStruct((Bp, 128), jnp.float32),
        grid=(Bp // tb,),
        in_specs=[
            pl.BlockSpec((tb, K1), lambda i: (i, 0)),
            const_spec(w_eff2), const_spec(t2),
            const_spec(w_eff3), const_spec(t3),
            const_spec(fw1), const_spec(fb1),
            const_spec(fw2), const_spec(fb2),
        ],
        out_specs=pl.BlockSpec((tb, 128), lambda i: (i, 0)),
        compiler_params=pltpu.CompilerParams(
            dimension_semantics=("parallel",),
            # ~17 MiB worst-case footprint (8 MiB conv2 weight double-buffered)
            # — above v5e's 16 MiB scoped default, well inside v7x's 64 MiB.
            vmem_limit_bytes=32 * 1024 * 1024),
        cost_estimate=pl.CostEstimate(
            flops=flops, transcendentals=Bp, bytes_accessed=bytes_acc),
    )(x1_flat, w_eff2, t2, w_eff3, t3, fw1, fb1, fw2, fb2)
    return out[:B] if pad_b else out


# --------------------------------- glue ------------------------------------


def im2col(x, k, stride, pad):
    # x: (B, H, W, C) -> patches (B, OH, OW, k*k*C) with (ki, kj, c) ordering
    B, H, W, C = x.shape
    xp = jnp.pad(x, ((0, 0), (pad, pad), (pad, pad), (0, 0)))
    OH = (H + 2 * pad - k) // stride + 1
    OW = (W + 2 * pad - k) // stride + 1
    cols = []
    for i in range(k):
        for j in range(k):
            cols.append(jax.lax.slice(
                xp,
                (0, i, j, 0),
                (B, i + stride * (OH - 1) + 1, j + stride * (OW - 1) + 1, C),
                (1, stride, stride, 1)))
    patches = jnp.stack(cols, axis=3)          # (B, OH, OW, k*k, C)
    return patches.reshape(B, OH, OW, k * k * C), OH, OW


def pool_group_patches(p, OH, OW):
    # (B, OH, OW, K) -> (4, B*(OH//2)*(OW//2), K), quadrant-major so the fused
    # kernel can maxpool with pure elementwise maxima.
    assert OH % 2 == 0 and OW % 2 == 0
    B, _, _, K = p.shape
    PH, PW = OH // 2, OW // 2
    p = p.reshape(B, PH, 2, PW, 2, K)
    p = p.transpose(2, 4, 0, 1, 3, 5)          # (2, 2, B, PH, PW, K)
    return p.reshape(4, B * PH * PW, K)


def embedding_net_forward(x_nchw, params):
    x = jnp.transpose(x_nchw, (0, 2, 3, 1)).astype(jnp.float32)   # NHWC
    B = x.shape[0]

    # Stage 1: conv(3->32,k7,s2,p3)+BN+ReLU+maxpool2 — one pallas_call.
    w1, t1 = params['conv1']
    p, OH, OW = im2col(x, 7, 2, 3)
    y1 = conv1_bn_relu_pool(pool_group_patches(p, OH, OW), w1, t1)
    PH, PW = OH // 2, OW // 2

    # Keep only the 32 real channels (drop the lane padding) before the fused
    # tail: its matmul K is the real channel count (no structurally-zero K).
    c1 = params['c1']
    x1_flat = y1[:, :c1].reshape(B, PH * PW * c1)

    # Stages 2+3 + head fused in a single pallas_call.
    return embedding_tail(x1_flat, params['w_eff2'], params['t2'],
                          params['w_eff3'], params['t3'],
                          params['fw1'], params['fb1'],
                          params['fw2'], params['fb2'], hw3=params['hw3'])


# ---------------------------- parameter setup -------------------------------


def init_raw_params(key):
    keys = iter(jax.random.split(key, 24))

    def nrm(shape, scale):
        return scale * jax.random.normal(next(keys), shape, dtype=jnp.float32)

    conv_cfg = [(3, 32, 7), (32, 64, 5), (64, 128, 3)]
    convs = []
    for cin, cout, k in conv_cfg:
        fan_in = cin * k * k
        w = nrm((cout, cin, k, k), (2.0 / fan_in) ** 0.5)   # PyTorch OIHW
        b = nrm((cout,), 0.05)
        gamma = 1.0 + 0.1 * nrm((cout,), 1.0)
        beta = 0.1 * nrm((cout,), 1.0)
        mean = 0.1 * nrm((cout,), 1.0)
        var = 1.0 + 0.5 * jnp.abs(nrm((cout,), 1.0))
        convs.append((w, b, gamma, beta, mean, var))

    fw1 = nrm((128, 128), (1.0 / 128) ** 0.5)   # PyTorch Linear: (out, in)
    fb1 = nrm((128,), 0.05)
    fw2 = nrm((128, 128), (1.0 / 128) ** 0.5)
    fb2 = nrm((128,), 0.05)
    return {'conv': convs, 'fc': (fw1, fb1, fw2, fb2)}


def build_kernel_params(raw, *, in_hw=32):
    """Host-side (numpy) fold of BN into weights and conv2/conv3 flattening."""

    def fold(w, b, g, be, m, v, eps=1e-5):
        w, b, g, be, m, v = map(np.asarray, (w, b, g, be, m, v))
        s = g / np.sqrt(v + eps)
        return ((w * s[:, None, None, None]).astype(np.float32),
                (be + (b - m) * s).astype(np.float32))

    # Spatial bookkeeping for the fixed topology.
    H0 = in_hw
    H1 = (H0 + 2 * 3 - 7) // 2 + 1            # conv1 out
    assert H1 % 2 == 0
    H1p = H1 // 2                              # after maxpool
    H2 = (H1p + 2 * 2 - 5) // 2 + 1            # conv2 out
    assert H2 % 2 == 0
    H2p = H2 // 2                              # after maxpool
    H3 = H2p                                   # conv3 (k3, s1, p1)
    C1, C2, C3 = 32, 64, 128

    # conv1: im2col matmul weight; Cout zero-padded to 128 (lane-dense store),
    # K (7*7*3 = 147) zero-padded to 256 for aligned loads.
    w1s, t1 = fold(*raw['conv'][0])
    w1_mm = np.zeros((256, 128), np.float32)
    w1_mm[:7 * 7 * 3, :C1] = np.transpose(w1s, (2, 3, 1, 0)).reshape(7 * 7 * 3, C1)
    t1_pad = np.zeros((1, 128), np.float32)
    t1_pad[0, :C1] = t1

    # conv2 folded to one dense matmul over the flattened H1p x H1p x 32 input.
    # Columns ordered (dh, dw, ph, pw, cout): quadrant-major for the fused maxpool.
    w2s, t2 = fold(*raw['conv'][1])
    W_eff2 = np.zeros((H1p, H1p, C1, 2, 2, H2p, H2p, C2), np.float32)
    for dh in range(2):
        for dw in range(2):
            for ph in range(H2p):
                for pw in range(H2p):
                    h2, w2_ = 2 * ph + dh, 2 * pw + dw
                    for ki in range(5):
                        for kj in range(5):
                            h1, w1_ = 2 * h2 + ki - 2, 2 * w2_ + kj - 2
                            if 0 <= h1 < H1p and 0 <= w1_ < H1p:
                                W_eff2[h1, w1_, :, dh, dw, ph, pw, :] += \
                                    w2s[:, :, ki, kj].T
    W_eff2 = W_eff2.reshape(H1p * H1p * C1, 4 * H2p * H2p * C2)
    t2_tiled = np.tile(t2, 4 * H2p * H2p).reshape(1, -1)

    # conv3 folded to one dense matmul over the pooled H2p x H2p x 64 input.
    # Columns ordered (oh, ow, cout): position-major for the fused avgpool.
    w3s, t3 = fold(*raw['conv'][2])
    W_eff3 = np.zeros((H2p, H2p, C2, H3, H3, C3), np.float32)
    for oh in range(H3):
        for ow in range(H3):
            for ki in range(3):
                for kj in range(3):
                    ih, iw = oh + ki - 1, ow + kj - 1
                    if 0 <= ih < H2p and 0 <= iw < H2p:
                        W_eff3[ih, iw, :, oh, ow, :] += w3s[:, :, ki, kj].T
    W_eff3 = W_eff3.reshape(H2p * H2p * C2, H3 * H3 * C3)
    t3_tiled = np.tile(t3, H3 * H3).reshape(1, -1)

    fw1, fb1, fw2, fb2 = (np.asarray(a) for a in raw['fc'])
    return {
        'conv1': (jnp.asarray(w1_mm), jnp.asarray(t1_pad)),
        'w_eff2': jnp.asarray(W_eff2), 't2': jnp.asarray(t2_tiled),
        'w_eff3': jnp.asarray(W_eff3), 't3': jnp.asarray(t3_tiled),
        'fw1': jnp.asarray(fw1.T), 'fb1': jnp.asarray(fb1.reshape(1, -1)),
        'fw2': jnp.asarray(fw2.T), 'fb2': jnp.asarray(fb2.reshape(1, -1)),
        'hw3': H3 * H3, 'c1': C1,
    }


# ---------------------------- pure-JAX reference ----------------------------


def reference_forward(x_nchw, raw):
    x = x_nchw.astype(jnp.float32)

    def conv(x, w, b, stride, pad):
        y = jax.lax.conv_general_dilated(
            x, w, (stride, stride), [(pad, pad), (pad, pad)],
            dimension_numbers=('NCHW', 'OIHW', 'NCHW'))
        return y + b[None, :, None, None]

    def bn(x, g, be, m, v, eps=1e-5):
        return ((x - m[None, :, None, None])
                / jnp.sqrt(v[None, :, None, None] + eps)
                * g[None, :, None, None] + be[None, :, None, None])

    def maxpool(x):
        B, C, H, W = x.shape
        return jnp.max(x.reshape(B, C, H // 2, 2, W // 2, 2), axis=(3, 5))

    for i, (k, s, p) in enumerate([(7, 2, 3), (5, 2, 2), (3, 1, 1)]):
        w, b, g, be, m, v = raw['conv'][i]
        x = jnp.maximum(bn(conv(x, w, b, s, p), g, be, m, v), 0.0)
        if i < 2:
            x = maxpool(x)
    x = jnp.mean(x, axis=(2, 3))
    fw1, fb1, fw2, fb2 = raw['fc']
    x = jnp.maximum(x @ fw1.T + fb1, 0.0)
    x = x @ fw2.T + fb2
    return x / jnp.linalg.norm(x, axis=1, keepdims=True)


# --------------------------------- main -------------------------------------


if __name__ == "__main__":
    key = jax.random.PRNGKey(0)
    pkey, xkey = jax.random.split(key)
    raw = init_raw_params(pkey)
    params = build_kernel_params(raw, in_hw=32)

    x = jax.random.normal(xkey, (2, 3, 32, 32), dtype=jnp.float32)  # NCHW

    fwd = jax.jit(lambda inp: embedding_net_forward(inp, params))
    out = jax.block_until_ready(fwd(x))
    assert out.shape == (2, 128), out.shape

    ref = reference_forward(x, raw)
    if not jnp.allclose(out, ref, atol=2e-3, rtol=2e-3):
        raise AssertionError(
            f"mismatch vs reference, max abs err {jnp.max(jnp.abs(out - ref))}")

    print("KERNEL_OK")
</pallas_src>

<mosaic_0001>
module attributes {stable_mosaic.version = 11 : i64} {
  func.func @_conv1_pool_kernel(%arg0: i32, %arg1: memref<4x64x256xf32, #tpu.memory_space<vmem>>, %arg2: memref<256x128xf32, #tpu.memory_space<vmem>>, %arg3: memref<1x128xf32, #tpu.memory_space<vmem>>, %arg4: memref<64x128xf32, #tpu.memory_space<vmem>>) attributes {dimension_semantics = [#tpu.dimension_semantics<parallel>], iteration_bounds = array<i64: 2>, scalar_prefetch = 0 : i64, scratch_operands = 0 : i64, tpu.core_type = #tpu.core_type<tc>, window_params = [{transform_indices = @transform_0, window_bounds = array<i64: 4, 64, 256>}, {pipeline_mode = #tpu.pipeline_mode<synchronous>, transform_indices = @transform_1, window_bounds = array<i64: 256, 128>}, {pipeline_mode = #tpu.pipeline_mode<synchronous>, transform_indices = @transform_2, window_bounds = array<i64: 1, 128>}, {transform_indices = @transform_3, window_bounds = array<i64: 64, 128>}]} {
    %c0 = arith.constant 0 : index
    %c0_0 = arith.constant 0 : index
    %c0_1 = arith.constant 0 : index
    %0 = vector.load %arg1[%c0, %c0_0, %c0_1] : memref<4x64x256xf32, #tpu.memory_space<vmem>>, vector<4x64x256xf32>
    %1 = vector.shape_cast %0 : vector<4x64x256xf32> to vector<256x256xf32>
    %c0_2 = arith.constant 0 : index
    %c0_3 = arith.constant 0 : index
    %2 = vector.load %arg2[%c0_2, %c0_3] : memref<256x128xf32, #tpu.memory_space<vmem>>, vector<256x128xf32>
    %cst = arith.constant dense<0.000000e+00> : vector<256x128xf32>
    %3 = tpu.matmul %1, %2, %cst {dimension_numbers = #tpu.dot_dimension_numbers<[1], [0], [0], [1], [0, 0, 1, 1], [], []>} : vector<256x256xf32>, vector<256x128xf32>, vector<256x128xf32> -> vector<256x128xf32>
    %4 = vector.extract_strided_slice %3 {offsets = [0, 0], sizes = [64, 128], strides = [1, 1]} : vector<256x128xf32> to vector<64x128xf32>
    %5 = vector.extract_strided_slice %3 {offsets = [64, 0], sizes = [64, 128], strides = [1, 1]} : vector<256x128xf32> to vector<64x128xf32>
    %6 = arith.maximumf %4, %5 : vector<64x128xf32>
    %7 = vector.extract_strided_slice %3 {offsets = [128, 0], sizes = [64, 128], strides = [1, 1]} : vector<256x128xf32> to vector<64x128xf32>
    %8 = vector.extract_strided_slice %3 {offsets = [192, 0], sizes = [64, 128], strides = [1, 1]} : vector<256x128xf32> to vector<64x128xf32>
    %9 = arith.maximumf %7, %8 : vector<64x128xf32>
    %10 = arith.maximumf %6, %9 : vector<64x128xf32>
    %c0_4 = arith.constant 0 : index
    %c0_5 = arith.constant 0 : index
    %11 = vector.load %arg3[%c0_4, %c0_5] : memref<1x128xf32, #tpu.memory_space<vmem>>, vector<1x128xf32>
    %12 = vector.broadcast %11 : vector<1x128xf32> to vector<64x128xf32>
    %13 = arith.addf %10, %12 : vector<64x128xf32>
    %cst_6 = arith.constant 0.000000e+00 : f32
    %14 = vector.broadcast %cst_6 : f32 to vector<64x128xf32>
    %15 = arith.maximumf %13, %14 : vector<64x128xf32>
    %c0_7 = arith.constant 0 : index
    %c0_8 = arith.constant 0 : index
    %16 = vector.load %arg4[%c0_7, %c0_8] : memref<64x128xf32, #tpu.memory_space<vmem>>, vector<64x128xf32>
    tpu.vector_store %arg4[%c0_7, %c0_8], %15 {strides = array<i32>} : memref<64x128xf32, #tpu.memory_space<vmem>>, vector<64x128xf32>,
    return
  }
  func.func @transform_0(%arg0: i32) -> (i32, i32, i32) {
    %c0_i32 = arith.constant 0 : i32
    %c0_i32_0 = arith.constant 0 : i32
    %c0_i32_1 = arith.constant 0 : i32
    return %c0_i32, %arg0, %c0_i32_0 : i32, i32, i32
  }
  func.func @transform_1(%arg0: i32) -> (i32, i32) {
    %c0_i32 = arith.constant 0 : i32
    %c0_i32_0 = arith.constant 0 : i32
    %c0_i32_1 = arith.constant 0 : i32
    return %c0_i32, %c0_i32_0 : i32, i32
  }
  func.func @transform_2(%arg0: i32) -> (i32, i32) {
    %c0_i32 = arith.constant 0 : i32
    %c0_i32_0 = arith.constant 0 : i32
    %c0_i32_1 = arith.constant 0 : i32
    return %c0_i32, %c0_i32_0 : i32, i32
  }
  func.func @transform_3(%arg0: i32) -> (i32, i32) {
    %c0_i32 = arith.constant 0 : i32
    %c0_i32_0 = arith.constant 0 : i32
    return %arg0, %c0_i32 : i32, i32
  }
}

module attributes {stable_mosaic.version = 11 : i64} {
  func.func @_tail_kernel(%arg0: i32, %arg1: memref<2x2048xf32, #tpu.memory_space<vmem>>, %arg2: memref<2048x1024xf32, #tpu.memory_space<vmem>>, %arg3: memref<1x1024xf32, #tpu.memory_space<vmem>>, %arg4: memref<256x512xf32, #tpu.memory_space<vmem>>, %arg5: memref<1x512xf32, #tpu.memory_space<vmem>>, %arg6: memref<128x128xf32, #tpu.memory_space<vmem>>, %arg7: memref<1x128xf32, #tpu.memory_space<vmem>>, %arg8: memref<128x128xf32, #tpu.memory_space<vmem>>, %arg9: memref<1x128xf32, #tpu.memory_space<vmem>>, %arg10: memref<2x128xf32, #tpu.memory_space<vmem>>) attributes {dimension_semantics = [#tpu.dimension_semantics<parallel>], iteration_bounds = array<i64: 1>, scalar_prefetch = 0 : i64, scratch_operands = 0 : i64, tpu.core_type = #tpu.core_type<tc>, window_params = [{transform_indices = @transform_0, window_bounds = array<i64: 2, 2048>}, {pipeline_mode = #tpu.pipeline_mode<synchronous>, transform_indices = @transform_1, window_bounds = array<i64: 2048, 1024>}, {pipeline_mode = #tpu.pipeline_mode<synchronous>, transform_indices = @transform_2, window_bounds = array<i64: 1, 1024>}, {pipeline_mode = #tpu.pipeline_mode<synchronous>, transform_indices = @transform_3, window_bounds = array<i64: 256, 512>}, {pipeline_mode = #tpu.pipeline_mode<synchronous>, transform_indices = @transform_4, window_bounds = array<i64: 1, 512>}, {pipeline_mode = #tpu.pipeline_mode<synchronous>, transform_indices = @transform_5, window_bounds = array<i64: 128, 128>}, {pipeline_mode = #tpu.pipeline_mode<synchronous>, transform_indices = @transform_6, window_bounds = array<i64: 1, 128>}, {pipeline_mode = #tpu.pipeline_mode<synchronous>, transform_indices = @transform_7, window_bounds = array<i64: 128, 128>}, {pipeline_mode = #tpu.pipeline_mode<synchronous>, transform_indices = @transform_8, window_bounds = array<i64: 1, 128>}, {transform_indices = @transform_9, window_bounds = array<i64: 2, 128>}]} {
    %c0 = arith.constant 0 : index
    %c0_0 = arith.constant 0 : index
    %0 = vector.load %arg1[%c0, %c0_0] : memref<2x2048xf32, #tpu.memory_space<vmem>>, vector<2x2048xf32>
    %c0_1 = arith.constant 0 : index
    %c0_2 = arith.constant 0 : index
    %1 = vector.load %arg2[%c0_1, %c0_2] : memref<2048x1024xf32, #tpu.memory_space<vmem>>, vector<2048x1024xf32>
    %cst = arith.constant dense<0.000000e+00> : vector<2x1024xf32>
    %2 = tpu.matmul %0, %1, %cst {dimension_numbers = #tpu.dot_dimension_numbers<[1], [0], [0], [1], [0, 0, 1, 1], [], []>} : vector<2x2048xf32>, vector<2048x1024xf32>, vector<2x1024xf32> -> vector<2x1024xf32>
    %c0_3 = arith.constant 0 : index
    %c0_4 = arith.constant 0 : index
    %3 = vector.load %arg3[%c0_3, %c0_4] : memref<1x1024xf32, #tpu.memory_space<vmem>>, vector<1x1024xf32>
    %4 = vector.broadcast %3 : vector<1x1024xf32> to vector<2x1024xf32>
    %5 = arith.addf %2, %4 : vector<2x1024xf32>
    %cst_5 = arith.constant 0.000000e+00 : f32
    %6 = vector.broadcast %cst_5 : f32 to vector<2x1024xf32>
    %7 = arith.maximumf %5, %6 : vector<2x1024xf32>
    %8 = vector.extract_strided_slice %7 {offsets = [0, 0], sizes = [2, 256], strides = [1, 1]} : vector<2x1024xf32> to vector<2x256xf32>
    %9 = vector.extract_strided_slice %7 {offsets = [0, 256], sizes = [2, 256], strides = [1, 1]} : vector<2x1024xf32> to vector<2x256xf32>
    %10 = arith.maximumf %8, %9 : vector<2x256xf32>
    %11 = vector.extract_strided_slice %7 {offsets = [0, 512], sizes = [2, 256], strides = [1, 1]} : vector<2x1024xf32> to vector<2x256xf32>
    %12 = vector.extract_strided_slice %7 {offsets = [0, 768], sizes = [2, 256], strides = [1, 1]} : vector<2x1024xf32> to vector<2x256xf32>
    %13 = arith.maximumf %11, %12 : vector<2x256xf32>
    %14 = arith.maximumf %10, %13 : vector<2x256xf32>
    %c0_6 = arith.constant 0 : index
    %c0_7 = arith.constant 0 : index
    %15 = vector.load %arg4[%c0_6, %c0_7] : memref<256x512xf32, #tpu.memory_space<vmem>>, vector<256x512xf32>
    %cst_8 = arith.constant dense<0.000000e+00> : vector<2x512xf32>
    %16 = tpu.matmul %14, %15, %cst_8 {dimension_numbers = #tpu.dot_dimension_numbers<[1], [0], [0], [1], [0, 0, 1, 1], [], []>} : vector<2x256xf32>, vector<256x512xf32>, vector<2x512xf32> -> vector<2x512xf32>
    %c0_9 = arith.constant 0 : index
    %c0_10 = arith.constant 0 : index
    %17 = vector.load %arg5[%c0_9, %c0_10] : memref<1x512xf32, #tpu.memory_space<vmem>>, vector<1x512xf32>
    %18 = vector.broadcast %17 : vector<1x512xf32> to vector<2x512xf32>
    %19 = arith.addf %16, %18 : vector<2x512xf32>
    %cst_11 = arith.constant 0.000000e+00 : f32
    %20 = vector.broadcast %cst_11 : f32 to vector<2x512xf32>
    %21 = arith.maximumf %19, %20 : vector<2x512xf32>
    %22 = vector.extract_strided_slice %21 {offsets = [0, 0], sizes = [2, 128], strides = [1, 1]} : vector<2x512xf32> to vector<2x128xf32>
    %23 = vector.extract_strided_slice %21 {offsets = [0, 128], sizes = [2, 128], strides = [1, 1]} : vector<2x512xf32> to vector<2x128xf32>
    %24 = arith.addf %22, %23 : vector<2x128xf32>
    %25 = vector.extract_strided_slice %21 {offsets = [0, 256], sizes = [2, 128], strides = [1, 1]} : vector<2x512xf32> to vector<2x128xf32>
    %26 = arith.addf %24, %25 : vector<2x128xf32>
    %27 = vector.extract_strided_slice %21 {offsets = [0, 384], sizes = [2, 128], strides = [1, 1]} : vector<2x512xf32> to vector<2x128xf32>
    %28 = arith.addf %26, %27 : vector<2x128xf32>
    %cst_12 = arith.constant 2.500000e-01 : f32
    %29 = vector.broadcast %cst_12 : f32 to vector<2x128xf32>
    %30 = arith.mulf %28, %29 : vector<2x128xf32>
    %c0_13 = arith.constant 0 : index
    %c0_14 = arith.constant 0 : index
    %31 = vector.load %arg6[%c0_13, %c0_14] : memref<128x128xf32, #tpu.memory_space<vmem>>, vector<128x128xf32>
    %cst_15 = arith.constant dense<0.000000e+00> : vector<2x128xf32>
    %32 = tpu.matmul %30, %31, %cst_15 {dimension_numbers = #tpu.dot_dimension_numbers<[1], [0], [0], [1], [0, 0, 1, 1], [], []>} : vector<2x128xf32>, vector<128x128xf32>, vector<2x128xf32> -> vector<2x128xf32>
    %c0_16 = arith.constant 0 : index
    %c0_17 = arith.constant 0 : index
    %33 = vector.load %arg7[%c0_16, %c0_17] : memref<1x128xf32, #tpu.memory_space<vmem>>, vector<1x128xf32>
    %34 = vector.broadcast %33 : vector<1x128xf32> to vector<2x128xf32>
    %35 = arith.addf %32, %34 : vector<2x128xf32>
    %cst_18 = arith.constant 0.000000e+00 : f32
    %36 = vector.broadcast %cst_18 : f32 to vector<2x128xf32>
    %37 = arith.maximumf %35, %36 : vector<2x128xf32>
    %c0_19 = arith.constant 0 : index
    %c0_20 = arith.constant 0 : index
    %38 = vector.load %arg8[%c0_19, %c0_20] : memref<128x128xf32, #tpu.memory_space<vmem>>, vector<128x128xf32>
    %cst_21 = arith.constant dense<0.000000e+00> : vector<2x128xf32>
    %39 = tpu.matmul %37, %38, %cst_21 {dimension_numbers = #tpu.dot_dimension_numbers<[1], [0], [0], [1], [0, 0, 1, 1], [], []>} : vector<2x128xf32>, vector<128x128xf32>, vector<2x128xf32> -> vector<2x128xf32>
    %c0_22 = arith.constant 0 : index
    %c0_23 = arith.constant 0 : index
    %40 = vector.load %arg9[%c0_22, %c0_23] : memref<1x128xf32, #tpu.memory_space<vmem>>, vector<1x128xf32>
    %41 = vector.broadcast %40 : vector<1x128xf32> to vector<2x128xf32>
    %42 = arith.addf %39, %41 : vector<2x128xf32>
    %43 = arith.mulf %42, %42 : vector<2x128xf32>
    %cst_24 = arith.constant dense<0.000000e+00> : vector<2xf32>
    %44 = vector.multi_reduction <add>, %43, %cst_24 [1] : vector<2x128xf32> to vector<2xf32>
    %45 = vector.shape_cast %44 : vector<2xf32> to vector<2x1xf32>
    %cst_25 = arith.constant 9.99999996E-13 : f32
    %46 = vector.broadcast %cst_25 : f32 to vector<2x1xf32>
    %47 = arith.addf %45, %46 : vector<2x1xf32>
    %48 = math.rsqrt %47 : vector<2x1xf32>
    %49 = vector.broadcast %48 : vector<2x1xf32> to vector<2x128xf32>
    %50 = arith.mulf %42, %49 : vector<2x128xf32>
    %c0_26 = arith.constant 0 : index
    %c0_27 = arith.constant 0 : index
    %51 = vector.load %arg10[%c0_26, %c0_27] : memref<2x128xf32, #tpu.memory_space<vmem>>, vector<2x128xf32>
    tpu.vector_store %arg10[%c0_26, %c0_27], %50 {strides = array<i32>} : memref<2x128xf32, #tpu.memory_space<vmem>>, vector<2x128xf32>,
    return
  }
  func.func @transform_0(%arg0: i32) -> (i32, i32) {
    %c0_i32 = arith.constant 0 : i32
    %c0_i32_0 = arith.constant 0 : i32
    return %arg0, %c0_i32 : i32, i32
  }
  func.func @transform_1(%arg0: i32) -> (i32, i32) {
    %c0_i32 = arith.constant 0 : i32
    %c0_i32_0 = arith.constant 0 : i32
    %c0_i32_1 = arith.constant 0 : i32
    return %c0_i32, %c0_i32_0 : i32, i32
  }
  func.func @transform_2(%arg0: i32) -> (i32, i32) {
    %c0_i32 = arith.constant 0 : i32
    %c0_i32_0 = arith.constant 0 : i32
    %c0_i32_1 = arith.constant 0 : i32
    return %c0_i32, %c0_i32_0 : i32, i32
  }
  func.func @transform_3(%arg0: i32) -> (i32, i32) {
    %c0_i32 = arith.constant 0 : i32
    %c0_i32_0 = arith.constant 0 : i32
    %c0_i32_1 = arith.constant 0 : i32
    return %c0_i32, %c0_i32_0 : i32, i32
  }
  func.func @transform_4(%arg0: i32) -> (i32, i32) {
    %c0_i32 = arith.constant 0 : i32
    %c0_i32_0 = arith.constant 0 : i32
    %c0_i32_1 = arith.constant 0 : i32
    return %c0_i32, %c0_i32_0 : i32, i32
  }
  func.func @transform_5(%arg0: i32) -> (i32, i32) {
    %c0_i32 = arith.constant 0 : i32
    %c0_i32_0 = arith.constant 0 : i32
    %c0_i32_1 = arith.constant 0 : i32
    return %c0_i32, %c0_i32_0 : i32, i32
  }
  func.func @transform_6(%arg0: i32) -> (i32, i32) {
    %c0_i32 = arith.constant 0 : i32
    %c0_i32_0 = arith.constant 0 : i32
    %c0_i32_1 = arith.constant 0 : i32
    return %c0_i32, %c0_i32_0 : i32, i32
  }
  func.func @transform_7(%arg0: i32) -> (i32, i32) {
    %c0_i32 = arith.constant 0 : i32
    %c0_i32_0 = arith.constant 0 : i32
    %c0_i32_1 = arith.constant 0 : i32
    return %c0_i32, %c0_i32_0 : i32, i32
  }
  func.func @transform_8(%arg0: i32) -> (i32, i32) {
    %c0_i32 = arith.constant 0 : i32
    %c0_i32_0 = arith.constant 0 : i32
    %c0_i32_1 = arith.constant 0 : i32
    return %c0_i32, %c0_i32_0 : i32, i32
  }
  func.func @transform_9(%arg0: i32) -> (i32, i32) {
    %c0_i32 = arith.constant 0 : i32
    %c0_i32_0 = arith.constant 0 : i32
    return %arg0, %c0_i32 : i32, i32
  }
}

</mosaic_0001>

<bundles_post_ra>
// kernel: _lambda_.2
= control target key start
LH: loop header
LB: loop body
LE: loop exit
PB: predicated region body
PF: predicated region fallthrough
CT: control target
= control target key end

     0   :  { %s909_s12 = smov 0   ;;  %s911_s13 = smov 0   ;;  %s1366_s0 = inlined_call_operand.vmem [shape: f32[4,128,256], index: 0, kind: input, shape index: {}]   ;;  %s1367_s1 = inlined_call_operand.vmem [shape: f32[256,128], index: 1, kind: input, shape index: {}]   ;;  %s1368_s2 = inlined_call_operand.vmem [shape: f32[1,128], index: 2, kind: input, shape index: {}]   ;;  %s1369_s3 = inlined_call_operand.vmem [shape: f32[128,128], index: 3, kind: output, shape index: {}]  }
   0x1   :  { %s913_s14 = smov 0  }
   0x2 LB: > { %s758_s15 = sadd.s32 4294967295, %s886_s14   ;;  %s926_s16 = sadd.s32 1, %s886_s14   ;;  %s886_s14 = sphi %s913_s14, %s1372_s14   ;;  %s882_s13 = sphi %s911_s13, %s1371_s13   ;;  %s878_s12 = sphi %s909_s12, %s1370_s12  }
   0x3   : > { %s17_s17 = ssub.s32 %s886_s14, %s926_s16  ;;  %s20_s18 = sadd.s32 1, %s882_s13 }
   0x4   : > { %p18_p0 = scmp.eq.s32.totalorder %s17_s17, 0  ;;  %p27_p1 = scmp.ne.s32.totalorder %s882_s13, %s878_s12 }
   0x5   : > { %p28_p2 = scmp.eq.s32.totalorder %s886_s14, 0  ;;  %p761_p4 = scmp.ge.s32.totalorder %s886_s14, 2 }
   0x6   : > { %s935_s19 = scalar_select %p18_p0, %s882_s13, %s20_s18  }
   0x7   : > { %p29_p3 = por %p28_p2, %p27_p1  ;;  %127 = sbr.rel (%p761_p4) target bundleno = 48 (0x30), region = 24 }
   0xc   : > { %130 = sbr.rel (!%p29_p3) target bundleno = 48 (0x30), region = 28  ;;  %s132_s20 = sand.u32 (%p29_p3), 1, %s882_s13  }
   0xd   : > { %s774_s21 = sshll.u32 (%p29_p3), %s886_s14, 7  ;;  %s762_s22 = sshll.u32 (%p29_p3), %s132_s20, 9 }
   0xe   : > { %s943_s25 = scalar_lea.vmem (%p29_p3), %s1366_s0, %s774_s21  ;;  %s948_s26 = scalar_lea.vmem (%p29_p3), [#allocation2], %s762_s22 }
   0xf   : > { %v151_v0 = vld [vmem:[%s943_s25] sm:$0xff] (%p29_p3)  ;;  %v153_v1 = vld [vmem:[%s943_s25 + $0x8] sm:$0xff] (%p29_p3)  ;;  %v155_v2 = vld [vmem:[%s943_s25 + $0x10] sm:$0xff] (%p29_p3) }
  0x10   : > { %152 = vst [vmem:[%s948_s26] sm:$0xff] (%p29_p3), %v151_v0  ;;  %154 = vst [vmem:[%s948_s26 + $0x8] sm:$0xff] (%p29_p3), %v153_v1  ;;  %v157_v3 = vld [vmem:[%s943_s25 + $0x18] sm:$0xff] (%p29_p3)  ;;  %v159_v4 = vld [vmem:[%s943_s25 + $0x20] sm:$0xff] (%p29_p3) }
  0x11   : > { %156 = vst [vmem:[%s948_s26 + $0x10] sm:$0xff] %v155_v2  ;;  %v161_v5 = vld [vmem:[%s943_s25 + $0x28] sm:$0xff]  ;;  %158 = vst [vmem:[%s948_s26 + $0x18] sm:$0xff] %v157_v3  ;;  %v163_v6 = vld [vmem:[%s943_s25 + $0x30] sm:$0xff] }
  0x12   : > { %160 = vst [vmem:[%s948_s26 + $0x20] sm:$0xff] %v159_v4  ;;  %162 = vst [vmem:[%s948_s26 + $0x28] sm:$0xff] %v161_v5  ;;  %v165_v7 = vld [vmem:[%s943_s25 + $0x38] sm:$0xff]  ;;  %v167_v8 = vld [vmem:[%s943_s25 + $0x40] sm:$0xff] }
  0x13   : > { %164 = vst [vmem:[%s948_s26 + $0x30] sm:$0xff] %v163_v6  ;;  %166 = vst [vmem:[%s948_s26 + $0x38] sm:$0xff] %v165_v7  ;;  %v169_v9 = vld [vmem:[%s943_s25 + $0x48] sm:$0xff]  ;;  %v171_v10 = vld [vmem:[%s943_s25 + $0x50] sm:$0xff] }
  0x14   : > { %168 = vst [vmem:[%s948_s26 + $0x40] sm:$0xff] %v167_v8  ;;  %v173_v11 = vld [vmem:[%s943_s25 + $0x58] sm:$0xff]  ;;  %170 = vst [vmem:[%s948_s26 + $0x48] sm:$0xff] %v169_v9  ;;  %v175_v12 = vld [vmem:[%s943_s25 + $0x60] sm:$0xff] }
  0x15   : > { %172 = vst [vmem:[%s948_s26 + $0x50] sm:$0xff] %v171_v10  ;;  %174 = vst [vmem:[%s948_s26 + $0x58] sm:$0xff] %v173_v11  ;;  %v177_v13 = vld [vmem:[%s943_s25 + $0x68] sm:$0xff]  ;;  %v179_v14 = vld [vmem:[%s943_s25 + $0x70] sm:$0xff] }
  0x16   : > { %176 = vst [vmem:[%s948_s26 + $0x60] sm:$0xff] %v175_v12  ;;  %178 = vst [vmem:[%s948_s26 + $0x68] sm:$0xff] %v177_v13  ;;  %v181_v15 = vld [vmem:[%s943_s25 + $0x78] sm:$0xff]  ;;  %v183_v16 = vld [vmem:[%s943_s25 + $0x100] sm:$0xff] }
  0x17   : > { %180 = vst [vmem:[%s948_s26 + $0x70] sm:$0xff] %v179_v14  ;;  %v185_v17 = vld [vmem:[%s943_s25 + $0x108] sm:$0xff]  ;;  %182 = vst [vmem:[%s948_s26 + $0x78] sm:$0xff] %v181_v15  ;;  %v187_v18 = vld [vmem:[%s943_s25 + $0x110] sm:$0xff] }
  0x18   : > { %184 = vst [vmem:[%s948_s26 + $0x80] sm:$0xff] %v183_v16  ;;  %186 = vst [vmem:[%s948_s26 + $0x88] sm:$0xff] %v185_v17  ;;  %v189_v19 = vld [vmem:[%s943_s25 + $0x118] sm:$0xff]  ;;  %v191_v20 = vld [vmem:[%s943_s25 + $0x120] sm:$0xff] }
  0x19   : > { %188 = vst [vmem:[%s948_s26 + $0x90] sm:$0xff] %v187_v18  ;;  %190 = vst [vmem:[%s948_s26 + $0x98] sm:$0xff] %v189_v19  ;;  %v193_v21 = vld [vmem:[%s943_s25 + $0x128] sm:$0xff]  ;;  %v195_v22 = vld [vmem:[%s943_s25 + $0x130] sm:$0xff] }
  0x1a   : > { %192 = vst [vmem:[%s948_s26 + $0xa0] sm:$0xff] %v191_v20  ;;  %v197_v23 = vld [vmem:[%s943_s25 + $0x138] sm:$0xff]  ;;  %194 = vst [vmem:[%s948_s26 + $0xa8] sm:$0xff] %v193_v21  ;;  %v199_v24 = vld [vmem:[%s943_s25 + $0x140] sm:$0xff] }
  0x1b   : > { %196 = vst [vmem:[%s948_s26 + $0xb0] sm:$0xff] %v195_v22  ;;  %198 = vst [vmem:[%s948_s26 + $0xb8] sm:$0xff] %v197_v23  ;;  %v201_v25 = vld [vmem:[%s943_s25 + $0x148] sm:$0xff]  ;;  %v203_v26 = vld [vmem:[%s943_s25 + $0x150] sm:$0xff] }
  0x1c   : > { %200 = vst [vmem:[%s948_s26 + $0xc0] sm:$0xff] %v199_v24  ;;  %202 = vst [vmem:[%s948_s26 + $0xc8] sm:$0xff] %v201_v25  ;;  %v205_v27 = vld [vmem:[%s943_s25 + $0x158] sm:$0xff]  ;;  %v207_v28 = vld [vmem:[%s943_s25 + $0x160] sm:$0xff] }
  0x1d   : > { %204 = vst [vmem:[%s948_s26 + $0xd0] sm:$0xff] %v203_v26  ;;  %v209_v29 = vld [vmem:[%s943_s25 + $0x168] sm:$0xff]  ;;  %206 = vst [vmem:[%s948_s26 + $0xd8] sm:$0xff] %v205_v27  ;;  %v211_v30 = vld [vmem:[%s943_s25 + $0x170] sm:$0xff] }
  0x1e   : > { %208 = vst [vmem:[%s948_s26 + $0xe0] sm:$0xff] %v207_v28  ;;  %210 = vst [vmem:[%s948_s26 + $0xe8] sm:$0xff] %v209_v29  ;;  %v213_v31 = vld [vmem:[%s943_s25 + $0x178] sm:$0xff]  ;;  %v215_v32 = vld [vmem:[%s943_s25 + $0x200] sm:$0xff] }
  0x1f   : > { %212 = vst [vmem:[%s948_s26 + $0xf0] sm:$0xff] %v211_v30  ;;  %214 = vst [vmem:[%s948_s26 + $0xf8] sm:$0xff] %v213_v31  ;;  %v217_v33 = vld [vmem:[%s943_s25 + $0x208] sm:$0xff]  ;;  %v219_v34 = vld [vmem:[%s943_s25 + $0x210] sm:$0xff] }
  0x20   : > { %216 = vst [vmem:[%s948_s26 + $0x100] sm:$0xff] %v215_v32  ;;  %v221_v35 = vld [vmem:[%s943_s25 + $0x218] sm:$0xff]  ;;  %218 = vst [vmem:[%s948_s26 + $0x108] sm:$0xff] %v217_v33  ;;  %v223_v36 = vld [vmem:[%s943_s25 + $0x220] sm:$0xff] }
  0x21   : > { %220 = vst [vmem:[%s948_s26 + $0x110] sm:$0xff] %v219_v34  ;;  %222 = vst [vmem:[%s948_s26 + $0x118] sm:$0xff] %v221_v35  ;;  %v225_v37 = vld [vmem:[%s943_s25 + $0x228] sm:$0xff]  ;;  %v227_v38 = vld [vmem:[%s943_s25 + $0x230] sm:$0xff] }
  0x22   : > { %224 = vst [vmem:[%s948_s26 + $0x120] sm:$0xff] %v223_v36  ;;  %226 = vst [vmem:[%s948_s26 + $0x128] sm:$0xff] %v225_v37  ;;  %v229_v39 = vld [vmem:[%s943_s25 + $0x238] sm:$0xff]  ;;  %v231_v40 = vld [vmem:[%s943_s25 + $0x240] sm:$0xff] }
  0x23   : > { %228 = vst [vmem:[%s948_s26 + $0x130] sm:$0xff] %v227_v38  ;;  %v233_v41 = vld [vmem:[%s943_s25 + $0x248] sm:$0xff]  ;;  %230 = vst [vmem:[%s948_s26 + $0x138] sm:$0xff] %v229_v39  ;;  %v235_v42 = vld [vmem:[%s943_s25 + $0x250] sm:$0xff] }
  0x24   : > { %232 = vst [vmem:[%s948_s26 + $0x140] sm:$0xff] %v231_v40  ;;  %234 = vst [vmem:[%s948_s26 + $0x148] sm:$0xff] %v233_v41  ;;  %v237_v43 = vld [vmem:[%s943_s25 + $0x258] sm:$0xff]  ;;  %v239_v44 = vld [vmem:[%s943_s25 + $0x260] sm:$0xff] }
  0x25   : > { %236 = vst [vmem:[%s948_s26 + $0x150] sm:$0xff] %v235_v42  ;;  %238 = vst [vmem:[%s948_s26 + $0x158] sm:$0xff] %v237_v43  ;;  %v241_v45 = vld [vmem:[%s943_s25 + $0x268] sm:$0xff]  ;;  %v243_v46 = vld [vmem:[%s943_s25 + $0x270] sm:$0xff] }
  0x26   : > { %240 = vst [vmem:[%s948_s26 + $0x160] sm:$0xff] %v239_v44  ;;  %v245_v47 = vld [vmem:[%s943_s25 + $0x278] sm:$0xff]  ;;  %242 = vst [vmem:[%s948_s26 + $0x168] sm:$0xff] %v241_v45  ;;  %v247_v48 = vld [vmem:[%s943_s25 + $0x300] sm:$0xff] }
  0x27   : > { %244 = vst [vmem:[%s948_s26 + $0x170] sm:$0xff] %v243_v46  ;;  %246 = vst [vmem:[%s948_s26 + $0x178] sm:$0xff] %v245_v47  ;;  %v249_v49 = vld [vmem:[%s943_s25 + $0x308] sm:$0xff]  ;;  %v251_v50 = vld [vmem:[%s943_s25 + $0x310] sm:$0xff] }
  0x28   : > { %248 = vst [vmem:[%s948_s26 + $0x180] sm:$0xff] %v247_v48  ;;  %250 = vst [vmem:[%s948_s26 + $0x188] sm:$0xff] %v249_v49  ;;  %v253_v51 = vld [vmem:[%s943_s25 + $0x318] sm:$0xff]  ;;  %v255_v52 = vld [vmem:[%s943_s25 + $0x320] sm:$0xff] }
  0x29   : > { %252 = vst [vmem:[%s948_s26 + $0x190] sm:$0xff] %v251_v50  ;;  %v257_v53 = vld [vmem:[%s943_s25 + $0x328] sm:$0xff]  ;;  %254 = vst [vmem:[%s948_s26 + $0x198] sm:$0xff] %v253_v51  ;;  %v259_v54 = vld [vmem:[%s943_s25 + $0x330] sm:$0xff] }
  0x2a   : > { %256 = vst [vmem:[%s948_s26 + $0x1a0] sm:$0xff] %v255_v52  ;;  %258 = vst [vmem:[%s948_s26 + $0x1a8] sm:$0xff] %v257_v53  ;;  %v261_v55 = vld [vmem:[%s943_s25 + $0x338] sm:$0xff]  ;;  %v263_v56 = vld [vmem:[%s943_s25 + $0x340] sm:$0xff] }
  0x2b   : > { %260 = vst [vmem:[%s948_s26 + $0x1b0] sm:$0xff] %v259_v54  ;;  %262 = vst [vmem:[%s948_s26 + $0x1b8] sm:$0xff] %v261_v55  ;;  %v265_v57 = vld [vmem:[%s943_s25 + $0x348] sm:$0xff]  ;;  %v267_v58 = vld [vmem:[%s943_s25 + $0x350] sm:$0xff] }
  0x2c   : > { %264 = vst [vmem:[%s948_s26 + $0x1c0] sm:$0xff] %v263_v56  ;;  %v269_v59 = vld [vmem:[%s943_s25 + $0x358] sm:$0xff]  ;;  %266 = vst [vmem:[%s948_s26 + $0x1c8] sm:$0xff] %v265_v57  ;;  %v271_v60 = vld [vmem:[%s943_s25 + $0x360] sm:$0xff] }
  0x2d   : > { %268 = vst [vmem:[%s948_s26 + $0x1d0] sm:$0xff] %v267_v58  ;;  %270 = vst [vmem:[%s948_s26 + $0x1d8] sm:$0xff] %v269_v59  ;;  %v273_v61 = vld [vmem:[%s943_s25 + $0x368] sm:$0xff]  ;;  %v275_v62 = vld [vmem:[%s943_s25 + $0x370] sm:$0xff] }
  0x2e   : > { %272 = vst [vmem:[%s948_s26 + $0x1e0] sm:$0xff] %v271_v60  ;;  %274 = vst [vmem:[%s948_s26 + $0x1e8] sm:$0xff] %v273_v61  ;;  %v277_v63 = vld [vmem:[%s943_s25 + $0x378] sm:$0xff] }
  0x2f   : > { %276 = vst [vmem:[%s948_s26 + $0x1f0] sm:$0xff] %v275_v62  ;;  %278 = vst [vmem:[%s948_s26 + $0x1f8] sm:$0xff] %v277_v63 }
  0x30 PF: > { %p766_p5 = scmp.ge.s32.totalorder %s886_s14, 1  ;;  %p283_p6 = scmp.lt.s32.totalorder %s886_s14, 3 }
  0x32   : > { %p284_p7 = pnand %p766_p5, %p283_p6 }
  0x33   : > { %s290_s20 = sand.u32 (!%p284_p7), 1, %s878_s12   ;;  %s768_s30 = sshll.u32 (!%p284_p7), %s758_s15, 3 }
  0x34   : > { %287 = sbr.rel (%p284_p7) target bundleno = 385 (0x181), region = 51  ;;  %s767_s23 = sshll.u32 (!%p284_p7), %s290_s20, 9 }
  0x35   : > { %s1236_s29 = scalar_lea.vmem (!%p284_p7), [#allocation2], %s767_s23  ;;  %p315_p8 = scmp.lt.s32.totalorder (!%p284_p7), %s768_s30, 15 }
  0x39   : > { %v399_v0 = vld [vmem:[%s1367_s1 + $0x78] sm:$0xff]  ;;  %v888_v1 = vmov 0.0   ;;  %v398_v2 = vld [vmem:[%s1367_s1 + $0x70] sm:$0xff]  ;;  %v397_v3 = vld [vmem:[%s1367_s1 + $0x68] sm:$0xff]  ;;  %s1374_s30 = smov (!%p315_p8, %s768_s30), 15 }
  0x3a   : > { %416 = vmatprep.subr.mxu0 %v888_v1  ;;  %775 = vmatprep.subr.mxu1 %v888_v1  ;;  %v396_v4 = vld [vmem:[%s1367_s1 + $0x60] sm:$0xff]  ;;  %v395_v5 = vld [vmem:[%s1367_s1 + $0x58] sm:$0xff]  ;;  %v394_v6 = vld [vmem:[%s1367_s1 + $0x50] sm:$0xff]  ;;  %s769_s14 = sshll.u32 %s1374_s30, 3 }
  0x3b   : > { %417 = vmatpush1.msra.mxu0 %v399_v0  ;;  %807 = vmatpush1.msra.mxu1 %v399_v0  ;;  %v393_v7 = vld [vmem:[%s1367_s1 + $0x48] sm:$0xff]  ;;  %v392_v8 = vld [vmem:[%s1367_s1 + $0x40] sm:$0xff]  ;;  %v391_v9 = vld [vmem:[%s1367_s1 + $0x38] sm:$0xff]  ;;  %s1331_s7 = scalar_lea.vmem %s1369_s3, %s769_s14 }
  0x3c   : > { %418 = vmatprep.subr.mxu0 %v888_v1  ;;  %776 = vmatprep.subr.mxu1 %v888_v1  ;;  %v390_v10 = vld [vmem:[%s1367_s1 + $0x30] sm:$0xff]  ;;  %v389_v11 = vld [vmem:[%s1367_s1 + $0x28] sm:$0xff]  ;;  %v388_v12 = vld [vmem:[%s1367_s1 + $0x20] sm:$0xff] }
  0x3d   : > { %419 = vmatpush1.msra.mxu0 %v398_v2  ;;  %808 = vmatpush1.msra.mxu1 %v398_v2  ;;  %v387_v13 = vld [vmem:[%s1367_s1 + $0x18] sm:$0xff]  ;;  %v386_v14 = vld [vmem:[%s1367_s1 + $0x10] sm:$0xff]  ;;  %v385_v15 = vld [vmem:[%s1367_s1 + $0x8] sm:$0xff] }
  0x3e   : > { %420 = vmatprep.subr.mxu0 %v888_v1  ;;  %777 = vmatprep.subr.mxu1 %v888_v1  ;;  %v384_v16 = vld [vmem:[%s1367_s1] sm:$0xff]  ;;  %v415_v17 = vld [vmem:[%s1367_s1 + $0xf8] sm:$0xff]  ;;  %v414_v18 = vld [vmem:[%s1367_s1 + $0xf0] sm:$0xff] }
  0x3f   : > { %421 = vmatpush1.msra.mxu0 %v397_v3  ;;  %809 = vmatpush1.msra.mxu1 %v397_v3  ;;  %v413_v19 = vld [vmem:[%s1367_s1 + $0xe8] sm:$0xff]  ;;  %v412_v20 = vld [vmem:[%s1367_s1 + $0xe0] sm:$0xff]  ;;  %v411_v21 = vld [vmem:[%s1367_s1 + $0xd8] sm:$0xff] }
  0x40   : > { %422 = vmatprep.subr.mxu0 %v888_v1  ;;  %778 = vmatprep.subr.mxu1 %v888_v1  ;;  %v410_v22 = vld [vmem:[%s1367_s1 + $0xd0] sm:$0xff]  ;;  %v409_v23 = vld [vmem:[%s1367_s1 + $0xc8] sm:$0xff]  ;;  %v408_v24 = vld [vmem:[%s1367_s1 + $0xc0] sm:$0xff] }
  0x41   : > { %423 = vmatpush1.msra.mxu0 %v396_v4  ;;  %810 = vmatpush1.msra.mxu1 %v396_v4  ;;  %v407_v25 = vld [vmem:[%s1367_s1 + $0xb8] sm:$0xff]  ;;  %v406_v26 = vld [vmem:[%s1367_s1 + $0xb0] sm:$0xff]  ;;  %v405_v27 = vld [vmem:[%s1367_s1 + $0xa8] sm:$0xff] }
  0x42   : > { %424 = vmatprep.subr.mxu0 %v888_v1  ;;  %779 = vmatprep.subr.mxu1 %v888_v1  ;;  %v404_v28 = vld [vmem:[%s1367_s1 + $0xa0] sm:$0xff]  ;;  %v403_v29 = vld [vmem:[%s1367_s1 + $0x98] sm:$0xff]  ;;  %v402_v30 = vld [vmem:[%s1367_s1 + $0x90] sm:$0xff] }
  0x43   : > { %425 = vmatpush1.msra.mxu0 %v395_v5  ;;  %811 = vmatpush1.msra.mxu1 %v395_v5  ;;  %v401_v31 = vld [vmem:[%s1367_s1 + $0x88] sm:$0xff]  ;;  %v400_v32 = vld [vmem:[%s1367_s1 + $0x80] sm:$0xff]  ;;  %v323_v37 = vld [vmem:[%s1236_s29 + $0x18] sm:$0xff] }
  0x44   : > { %426 = vmatprep.subr.mxu0 %v888_v1  ;;  %780 = vmatprep.subr.mxu1 %v888_v1  ;;  %v321_v33 = vld [vmem:[%s1236_s29 + $0x8] sm:$0xff]  ;;  %v320_v35 = vld [vmem:[%s1236_s29] sm:$0xff]  ;;  %v355_v38 = vld [vmem:[%s1236_s29 + $0x118] sm:$0xff] }
  0x45   : > { %427 = vmatpush1.msra.mxu0 %v394_v6  ;;  %812 = vmatpush1.msra.mxu1 %v394_v6  ;;  %v353_v34 = vld [vmem:[%s1236_s29 + $0x108] sm:$0xff]  ;;  %v352_v36 = vld [vmem:[%s1236_s29 + $0x100] sm:$0xff]  ;;  %v322_v39 = vld [vmem:[%s1236_s29 + $0x10] sm:$0xff] }
  0x46   : > { %428 = vmatprep.subr.mxu0 %v888_v1  ;;  %781 = vmatprep.subr.mxu1 %v888_v1  ;;  %v354_v40 = vld [vmem:[%s1236_s29 + $0x110] sm:$0xff]  ;;  %v325_v41 = vld [vmem:[%s1236_s29 + $0x28] sm:$0xff]  ;;  %v324_v43 = vld [vmem:[%s1236_s29 + $0x20] sm:$0xff] }
  0x47   : > { %429 = vmatpush1.msra.mxu0 %v393_v7  ;;  %813 = vmatpush1.msra.mxu1 %v393_v7  ;;  %v357_v42 = vld [vmem:[%s1236_s29 + $0x128] sm:$0xff]  ;;  %v356_v44 = vld [vmem:[%s1236_s29 + $0x120] sm:$0xff]  ;;  %v327_v45 = vld [vmem:[%s1236_s29 + $0x38] sm:$0xff] }
  0x48   : > { %430 = vmatprep.subr.mxu0 %v888_v1  ;;  %782 = vmatprep.subr.mxu1 %v888_v1  ;;  %v359_v46 = vld [vmem:[%s1236_s29 + $0x138] sm:$0xff]  ;;  %v326_v47 = vld [vmem:[%s1236_s29 + $0x30] sm:$0xff]  ;;  %v329_v49 = vld [vmem:[%s1236_s29 + $0x48] sm:$0xff] }
  0x49   : > { %431 = vmatpush1.msra.mxu0 %v392_v8  ;;  %814 = vmatpush1.msra.mxu1 %v392_v8  ;;  %v358_v48 = vld [vmem:[%s1236_s29 + $0x130] sm:$0xff]  ;;  %v361_v50 = vld [vmem:[%s1236_s29 + $0x148] sm:$0xff]  ;;  %v328_v51 = vld [vmem:[%s1236_s29 + $0x40] sm:$0xff] }
  0x4a   : > { %432 = vmatprep.subr.mxu0 %v888_v1  ;;  %783 = vmatprep.subr.mxu1 %v888_v1  ;;  %v360_v52 = vld [vmem:[%s1236_s29 + $0x140] sm:$0xff]  ;;  %v331_v53 = vld [vmem:[%s1236_s29 + $0x58] sm:$0xff]  ;;  %v330_v55 = vld [vmem:[%s1236_s29 + $0x50] sm:$0xff] }
  0x4b   : > { %433 = vmatpush1.msra.mxu0 %v391_v9  ;;  %815 = vmatpush1.msra.mxu1 %v391_v9  ;;  %v363_v54 = vld [vmem:[%s1236_s29 + $0x158] sm:$0xff]  ;;  %v362_v56 = vld [vmem:[%s1236_s29 + $0x150] sm:$0xff]  ;;  %v333_v57 = vld [vmem:[%s1236_s29 + $0x68] sm:$0xff] }
  0x4c   : > { %434 = vmatprep.subr.mxu0 %v888_v1  ;;  %784 = vmatprep.subr.mxu1 %v888_v1  ;;  %v365_v58 = vld [vmem:[%s1236_s29 + $0x168] sm:$0xff]  ;;  %v332_v59 = vld [vmem:[%s1236_s29 + $0x60] sm:$0xff]  ;;  %v335_v61 = vld [vmem:[%s1236_s29 + $0x78] sm:$0xff] }
  0x4d   : > { %435 = vmatpush1.msra.mxu0 %v390_v10  ;;  %816 = vmatpush1.msra.mxu1 %v390_v10  ;;  %v364_v60 = vld [vmem:[%s1236_s29 + $0x160] sm:$0xff]  ;;  %v367_v62 = vld [vmem:[%s1236_s29 + $0x178] sm:$0xff]  ;;  %v334_v63 = vld [vmem:[%s1236_s29 + $0x70] sm:$0xff] }
  0x4e   : > { %436 = vmatprep.subr.mxu0 %v888_v1  ;;  %785 = vmatprep.subr.mxu1 %v888_v1  ;;  %v366_v0 = vld [vmem:[%s1236_s29 + $0x170] sm:$0xff]  ;;  %v369_v2 = vld [vmem:[%s1236_s29 + $0x188] sm:$0xff]  ;;  %v336_v3 = vld [vmem:[%s1236_s29 + $0x80] sm:$0xff] }
  0x4f   : > { %437 = vmatpush1.msra.mxu0 %v389_v11  ;;  %817 = vmatpush1.msra.mxu1 %v389_v11  ;;  %v368_v4 = vld [vmem:[%s1236_s29 + $0x180] sm:$0xff]  ;;  %v339_v5 = vld [vmem:[%s1236_s29 + $0x98] sm:$0xff]  ;;  %v338_v7 = vld [vmem:[%s1236_s29 + $0x90] sm:$0xff] }
  0x50   : > { %438 = vmatprep.subr.mxu0 %v888_v1  ;;  %786 = vmatprep.subr.mxu1 %v888_v1  ;;  %v371_v6 = vld [vmem:[%s1236_s29 + $0x198] sm:$0xff]  ;;  %v370_v8 = vld [vmem:[%s1236_s29 + $0x190] sm:$0xff]  ;;  %v341_v9 = vld [vmem:[%s1236_s29 + $0xa8] sm:$0xff] }
  0x51   : > { %439 = vmatpush1.msra.mxu0 %v388_v12  ;;  %818 = vmatpush1.msra.mxu1 %v388_v12  ;;  %v373_v10 = vld [vmem:[%s1236_s29 + $0x1a8] sm:$0xff]  ;;  %v340_v11 = vld [vmem:[%s1236_s29 + $0xa0] sm:$0xff] }
  0x52   : > { %440 = vmatprep.subr.mxu0 %v888_v1  ;;  %787 = vmatprep.subr.mxu1 %v888_v1  ;;  %v372_v12 = vld [vmem:[%s1236_s29 + $0x1a0] sm:$0xff] }
  0x53   : > { %441 = vmatpush1.msra.mxu0 %v387_v13  ;;  %819 = vmatpush1.msra.mxu1 %v387_v13  ;;  %v343_v13 = vld [vmem:[%s1236_s29 + $0xb8] sm:$0xff] }
  0x54   : > { %442 = vmatprep.subr.mxu0 %v888_v1  ;;  %788 = vmatprep.subr.mxu1 %v888_v1 }
  0x55   : > { %443 = vmatpush1.msra.mxu0 %v386_v14  ;;  %820 = vmatpush1.msra.mxu1 %v386_v14  ;;  %v375_v14 = vld [vmem:[%s1236_s29 + $0x1b8] sm:$0xff] }
  0x56   : > { %444 = vmatprep.subr.mxu0 %v888_v1  ;;  %789 = vmatprep.subr.mxu1 %v888_v1 }
  0x57   : > { %445 = vmatpush1.msra.mxu0 %v385_v15  ;;  %821 = vmatpush1.msra.mxu1 %v385_v15  ;;  %v342_v15 = vld [vmem:[%s1236_s29 + $0xb0] sm:$0xff] }
  0x58   : > { %446 = vmatprep.subr.mxu0 %v888_v1  ;;  %790 = vmatprep.subr.mxu1 %v888_v1 }
  0x59   : > { %447 = vmatpush1.msra.mxu0 %v384_v16  ;;  %822 = vmatpush1.msra.mxu1 %v384_v16  ;;  %v374_v16 = vld [vmem:[%s1236_s29 + $0x1b0] sm:$0xff] }
  0x5a   : > { %448 = vmatprep.subr.mxu0 %v888_v1  ;;  %791 = vmatprep.subr.mxu1 %v888_v1 }
  0x5b   : > { %449 = vmatpush2.msra.mxu0 %v415_v17  ;;  %823 = vmatpush2.msra.mxu1 %v415_v17  ;;  %v345_v17 = vld [vmem:[%s1236_s29 + $0xc8] sm:$0xff] }
  0x5c   : > { %450 = vmatprep.subr.mxu0 %v888_v1  ;;  %792 = vmatprep.subr.mxu1 %v888_v1 }
  0x5d   : > { %451 = vmatpush2.msra.mxu0 %v414_v18  ;;  %824 = vmatpush2.msra.mxu1 %v414_v18  ;;  %v377_v18 = vld [vmem:[%s1236_s29 + $0x1c8] sm:$0xff] }
  0x5e   : > { %452 = vmatprep.subr.mxu0 %v888_v1  ;;  %793 = vmatprep.subr.mxu1 %v888_v1 }
  0x5f   : > { %453 = vmatpush2.msra.mxu0 %v413_v19  ;;  %825 = vmatpush2.msra.mxu1 %v413_v19  ;;  %v344_v19 = vld [vmem:[%s1236_s29 + $0xc0] sm:$0xff] }
  0x60   : > { %454 = vmatprep.subr.mxu0 %v888_v1  ;;  %794 = vmatprep.subr.mxu1 %v888_v1 }
  0x61   : > { %455 = vmatpush2.msra.mxu0 %v412_v20  ;;  %826 = vmatpush2.msra.mxu1 %v412_v20  ;;  %v376_v20 = vld [vmem:[%s1236_s29 + $0x1c0] sm:$0xff] }
  0x62   : > { %456 = vmatprep.subr.mxu0 %v888_v1  ;;  %795 = vmatprep.subr.mxu1 %v888_v1 }
  0x63   : > { %457 = vmatpush2.msra.mxu0 %v411_v21  ;;  %827 = vmatpush2.msra.mxu1 %v411_v21  ;;  %v347_v21 = vld [vmem:[%s1236_s29 + $0xd8] sm:$0xff] }
  0x64   : > { %458 = vmatprep.subr.mxu0 %v888_v1  ;;  %796 = vmatprep.subr.mxu1 %v888_v1 }
  0x65   : > { %459 = vmatpush2.msra.mxu0 %v410_v22  ;;  %828 = vmatpush2.msra.mxu1 %v410_v22  ;;  %v379_v22 = vld [vmem:[%s1236_s29 + $0x1d8] sm:$0xff] }
  0x66   : > { %460 = vmatprep.subr.mxu0 %v888_v1  ;;  %797 = vmatprep.subr.mxu1 %v888_v1 }
  0x67   : > { %461 = vmatpush2.msra.mxu0 %v409_v23  ;;  %829 = vmatpush2.msra.mxu1 %v409_v23  ;;  %v346_v23 = vld [vmem:[%s1236_s29 + $0xd0] sm:$0xff] }
  0x68   : > { %462 = vmatprep.subr.mxu0 %v888_v1  ;;  %798 = vmatprep.subr.mxu1 %v888_v1 }
  0x69   : > { %463 = vmatpush2.msra.mxu0 %v408_v24  ;;  %830 = vmatpush2.msra.mxu1 %v408_v24  ;;  %v378_v24 = vld [vmem:[%s1236_s29 + $0x1d0] sm:$0xff] }
  0x6a   : > { %464 = vmatprep.subr.mxu0 %v888_v1  ;;  %799 = vmatprep.subr.mxu1 %v888_v1 }
  0x6b   : > { %465 = vmatpush2.msra.mxu0 %v407_v25  ;;  %831 = vmatpush2.msra.mxu1 %v407_v25  ;;  %v349_v25 = vld [vmem:[%s1236_s29 + $0xe8] sm:$0xff] }
  0x6c   : > { %466 = vmatprep.subr.mxu0 %v888_v1  ;;  %800 = vmatprep.subr.mxu1 %v888_v1 }
  0x6d   : > { %467 = vmatpush2.msra.mxu0 %v406_v26  ;;  %832 = vmatpush2.msra.mxu1 %v406_v26  ;;  %v381_v26 = vld [vmem:[%s1236_s29 + $0x1e8] sm:$0xff] }
  0x6e   : > { %468 = vmatprep.subr.mxu0 %v888_v1  ;;  %801 = vmatprep.subr.mxu1 %v888_v1 }
  0x6f   : > { %469 = vmatpush2.msra.mxu0 %v405_v27  ;;  %833 = vmatpush2.msra.mxu1 %v405_v27  ;;  %v348_v27 = vld [vmem:[%s1236_s29 + $0xe0] sm:$0xff] }
  0x70   : > { %470 = vmatprep.subr.mxu0 %v888_v1  ;;  %802 = vmatprep.subr.mxu1 %v888_v1 }
  0x71   : > { %471 = vmatpush2.msra.mxu0 %v404_v28  ;;  %834 = vmatpush2.msra.mxu1 %v404_v28  ;;  %v380_v28 = vld [vmem:[%s1236_s29 + $0x1e0] sm:$0xff] }
  0x72   : > { %472 = vmatprep.subr.mxu0 %v888_v1  ;;  %803 = vmatprep.subr.mxu1 %v888_v1 }
  0x73   : > { %473 = vmatpush2.msra.mxu0 %v403_v29  ;;  %835 = vmatpush2.msra.mxu1 %v403_v29  ;;  %v351_v29 = vld [vmem:[%s1236_s29 + $0xf8] sm:$0xff] }
  0x74   : > { %474 = vmatprep.subr.mxu0 %v888_v1  ;;  %804 = vmatprep.subr.mxu1 %v888_v1 }
  0x75   : > { %475 = vmatpush2.msra.mxu0 %v402_v30  ;;  %836 = vmatpush2.msra.mxu1 %v402_v30  ;;  %v383_v30 = vld [vmem:[%s1236_s29 + $0x1f8] sm:$0xff] }
  0x76   : > { %476 = vmatprep.subr.mxu0 %v888_v1  ;;  %805 = vmatprep.subr.mxu1 %v888_v1 }
  0x77   : > { %477 = vmatpush2.msra.mxu0 %v401_v31  ;;  %837 = vmatpush2.msra.mxu1 %v401_v31  ;;  %v350_v31 = vld [vmem:[%s1236_s29 + $0xf0] sm:$0xff] }
  0x78   : > { %478 = vmatprep.subr.mxu0 %v888_v1  ;;  %806 = vmatprep.subr.mxu1 %v888_v1  ;;  %v337_v1 = vld [vmem:[%s1236_s29 + $0x88] sm:$0xff] }
  0x79   : > { %479 = vmatpush2.msra.mxu0 %v400_v32  ;;  %838 = vmatpush2.msra.mxu1 %v400_v32  ;;  %v382_v32 = vld [vmem:[%s1236_s29 + $0x1f0] sm:$0xff] }
  0x7a   : > { %480 = vmatprep.mubr.f32.mxu0 %v321_v33  ;;  %560 = vmatprep.mubr.f32.mxu1 %v353_v34 }
  0x7b   : > { %481 = vmatmul.mubr.f32.vlgmr.msra.gmra.mxu0 %v320_v35  ;;  %561 = vmatmul.mubr.f32.vlgmr.msra.gmra.mxu1 %v352_v36 }
  0x7c   : > { %485 = vmatprep.mubr.f32.mxu0 %v323_v37  ;;  %565 = vmatprep.mubr.f32.mxu1 %v355_v38 }
  0x7f   : > { %486 = vmatmul.mubr.f32.gmra.mxu0 %v322_v39  ;;  %566 = vmatmul.mubr.f32.gmra.mxu1 %v354_v40 }
  0x80   : > { %490 = vmatprep.mubr.f32.mxu0 %v325_v41  ;;  %570 = vmatprep.mubr.f32.mxu1 %v357_v42 }
  0x83   : > { %491 = vmatmul.mubr.f32.gmra.mxu0 %v324_v43  ;;  %571 = vmatmul.mubr.f32.gmra.mxu1 %v356_v44 }
  0x84   : > { %495 = vmatprep.mubr.f32.mxu0 %v327_v45  ;;  %575 = vmatprep.mubr.f32.mxu1 %v359_v46 }
  0x87   : > { %496 = vmatmul.mubr.f32.gmra.mxu0 %v326_v47  ;;  %576 = vmatmul.mubr.f32.gmra.mxu1 %v358_v48 }
  0x88   : > { %500 = vmatprep.mubr.f32.mxu0 %v329_v49  ;;  %580 = vmatprep.mubr.f32.mxu1 %v361_v50 }
  0x8b   : > { %501 = vmatmul.mubr.f32.gmra.mxu0 %v328_v51  ;;  %581 = vmatmul.mubr.f32.gmra.mxu1 %v360_v52 }
  0x8c   : > { %505 = vmatprep.mubr.f32.mxu0 %v331_v53  ;;  %585 = vmatprep.mubr.f32.mxu1 %v363_v54 }
  0x8f   : > { %506 = vmatmul.mubr.f32.gmra.mxu0 %v330_v55  ;;  %586 = vmatmul.mubr.f32.gmra.mxu1 %v362_v56 }
  0x90   : > { %510 = vmatprep.mubr.f32.mxu0 %v333_v57  ;;  %590 = vmatprep.mubr.f32.mxu1 %v365_v58 }
  0x93   : > { %511 = vmatmul.mubr.f32.gmra.mxu0 %v332_v59  ;;  %591 = vmatmul.mubr.f32.gmra.mxu1 %v364_v60 }
  0x94   : > { %515 = vmatprep.mubr.f32.mxu0 %v335_v61  ;;  %595 = vmatprep.mubr.f32.mxu1 %v367_v62 }
  0x97   : > { %516 = vmatmul.mubr.f32.gmra.mxu0 %v334_v63  ;;  %596 = vmatmul.mubr.f32.gmra.mxu1 %v366_v0 }
  0x98   : > { %520 = vmatprep.mubr.f32.mxu0 %v337_v1  ;;  %600 = vmatprep.mubr.f32.mxu1 %v369_v2 }
  0x9b   : > { %521 = vmatmul.mubr.f32.gmra.mxu0 %v336_v3  ;;  %601 = vmatmul.mubr.f32.gmra.mxu1 %v368_v4 }
  0x9c   : > { %525 = vmatprep.mubr.f32.mxu0 %v339_v5  ;;  %605 = vmatprep.mubr.f32.mxu1 %v371_v6  ;;  %v1325_v5 = vld [vmem:[%s1368_s2] ss:$0 sm:$0xff] }
  0x9f   : > { %526 = vmatmul.mubr.f32.gmra.mxu0 %v338_v7  ;;  %606 = vmatmul.mubr.f32.gmra.mxu1 %v370_v8 }
  0xa0   : > { %530 = vmatprep.mubr.f32.mxu0 %v341_v9  ;;  %610 = vmatprep.mubr.f32.mxu1 %v373_v10 }
  0xa3   : > { %531 = vmatmul.mubr.f32.gmra.mxu0 %v340_v11  ;;  %611 = vmatmul.mubr.f32.gmra.mxu1 %v372_v12 }
  0xa4   : > { %535 = vmatprep.mubr.f32.mxu0 %v343_v13  ;;  %615 = vmatprep.mubr.f32.mxu1 %v375_v14 }
  0xa7   : > { %536 = vmatmul.mubr.f32.gmra.mxu0 %v342_v15  ;;  %616 = vmatmul.mubr.f32.gmra.mxu1 %v374_v16 }
  0xa8   : > { %540 = vmatprep.mubr.f32.mxu0 %v345_v17  ;;  %620 = vmatprep.mubr.f32.mxu1 %v377_v18 }
  0xab   : > { %541 = vmatmul.mubr.f32.gmra.mxu0 %v344_v19  ;;  %621 = vmatmul.mubr.f32.gmra.mxu1 %v376_v20 }
  0xac   : > { %545 = vmatprep.mubr.f32.mxu0 %v347_v21  ;;  %625 = vmatprep.mubr.f32.mxu1 %v379_v22 }
  0xaf   : > { %546 = vmatmul.mubr.f32.gmra.mxu0 %v346_v23  ;;  %626 = vmatmul.mubr.f32.gmra.mxu1 %v378_v24 }
  0xb0   : > { %550 = vmatprep.mubr.f32.mxu0 %v349_v25  ;;  %630 = vmatprep.mubr.f32.mxu1 %v381_v26 }
  0xb3   : > { %551 = vmatmul.mubr.f32.gmra.mxu0 %v348_v27  ;;  %631 = vmatmul.mubr.f32.gmra.mxu1 %v380_v28 }
  0xb4   : > { %555 = vmatprep.mubr.f32.mxu0 %v351_v29  ;;  %635 = vmatprep.mubr.f32.mxu1 %v383_v30 }
  0xb7   : > { %556 = vmatmul.mubr.f32.gmra.mxu0 %v350_v31  ;;  %636 = vmatmul.mubr.f32.gmra.mxu1 %v382_v32 }
 0x13b   : > { %v482_v33 = vpop.f32.mrf.mxu0  ;;  %v562_v34 = vpop.f32.mrf.mxu1 }
 0x13d   : > { %v484_v35 = vpop.f32.mrf.mxu0  ;;  %v564_v36 = vpop.f32.mrf.mxu1 }
 0x13f   : > { %v487_v37 = vpop.f32.mrf.mxu0  ;;  %v567_v38 = vpop.f32.mrf.mxu1 }
 0x141   : > { %v489_v39 = vpop.f32.mrf.mxu0  ;;  %v569_v40 = vpop.f32.mrf.mxu1 }
 0x143   : > { %v492_v41 = vpop.f32.mrf.mxu0  ;;  %v572_v42 = vpop.f32.mrf.mxu1 }
 0x145   : > { %v494_v43 = vpop.f32.mrf.mxu0  ;;  %v574_v44 = vpop.f32.mrf.mxu1 }
 0x147   : > { %v497_v45 = vpop.f32.mrf.mxu0  ;;  %v577_v46 = vpop.f32.mrf.mxu1 }
 0x149   : > { %v499_v47 = vpop.f32.mrf.mxu0  ;;  %v579_v48 = vpop.f32.mrf.mxu1 }
 0x14b   : > { %v1304_v49 = vpop.f32.mrf.mxu0  ;;  %v1306_v50 = vpop.f32.mrf.mxu1 }
 0x14d   : > { %v504_v51 = vpop.f32.mrf.mxu0  ;;  %v584_v52 = vpop.f32.mrf.mxu1 }
 0x14f   : > { %v1308_v53 = vpop.f32.mrf.mxu0  ;;  %v1310_v54 = vpop.f32.mrf.mxu1 }
 0x151   : > { %v509_v55 = vpop.f32.mrf.mxu0  ;;  %v589_v56 = vpop.f32.mrf.mxu1 }
 0x153   : > { %v1312_v57 = vpop.f32.mrf.mxu0  ;;  %v1314_v58 = vpop.f32.mrf.mxu1 }
 0x155   : > { %v514_v59 = vpop.f32.mrf.mxu0  ;;  %v594_v60 = vpop.f32.mrf.mxu1 }
 0x157   : > { %v1318_v61 = vpop.f32.mrf.mxu0  ;;  %v1320_v62 = vpop.f32.mrf.mxu1 }
 0x159   : > { %v519_v63 = vpop.f32.mrf.mxu0  ;;  %v599_v0 = vpop.f32.mrf.mxu1 }
 0x15b   : > { %v522_v1 = vpop.f32.mrf.mxu0  ;;  %v602_v2 = vpop.f32.mrf.mxu1 }
 0x15c   : > { %v641_v3 = vmax.f32 %v482_v33, %v522_v1  ;;  %v649_v4 = vmax.f32 %v562_v34, %v602_v2 }
 0x15d   : > { %v524_v6 = vpop.f32.mrf.mxu0  ;;  %v604_v7 = vpop.f32.mrf.mxu1 }
 0x15e   : > { %v657_v8 = vmax.f32 %v641_v3, %v649_v4 }
 0x15f   : > { %v527_v9 = vpop.f32.mrf.mxu0  ;;  %v607_v10 = vpop.f32.mrf.mxu1 }
 0x160   : > { %v672_v11 = vadd.f32 %v1325_v5, %v657_v8  ;;  %v642_v12 = vmax.f32 %v487_v37, %v527_v9  ;;  %v650_v13 = vmax.f32 %v567_v38, %v607_v10 }
 0x161   : > { %v529_v14 = vpop.f32.mrf.mxu0  ;;  %v609_v15 = vpop.f32.mrf.mxu1 }
 0x162   : > { %v680_v16 = vmax.f32 %v672_v11, 0.0  ;;  %v658_v17 = vmax.f32 %v642_v12, %v650_v13 }
 0x163   : > { %v532_v18 = vpop.f32.mrf.mxu0  ;;  %v612_v19 = vpop.f32.mrf.mxu1 }
 0x164   : > { %688 = vst [vmem:[%s1331_s7] sm:$0xff] %v680_v16  ;;  %v673_v20 = vadd.f32 %v1325_v5, %v658_v17  ;;  %v643_v21 = vmax.f32 %v492_v41, %v532_v18  ;;  %v651_v22 = vmax.f32 %v572_v42, %v612_v19 }
 0x165   : > { %v534_v23 = vpop.f32.mrf.mxu0  ;;  %v614_v24 = vpop.f32.mrf.mxu1 }
 0x166   : > { %v681_v25 = vmax.f32 %v673_v20, 0.0  ;;  %v659_v26 = vmax.f32 %v643_v21, %v651_v22 }
 0x167   : > { %v537_v27 = vpop.f32.mrf.mxu0  ;;  %v617_v28 = vpop.f32.mrf.mxu1 }
 0x168   : > { %689 = vst [vmem:[%s1331_s7 + $0x8] sm:$0xff] %v681_v25  ;;  %v674_v29 = vadd.f32 %v1325_v5, %v659_v26  ;;  %v644_v30 = vmax.f32 %v497_v45, %v537_v27  ;;  %v652_v31 = vmax.f32 %v577_v46, %v617_v28 }
 0x169   : > { %v539_v32 = vpop.f32.mrf.mxu0  ;;  %v619_v33 = vpop.f32.mrf.mxu1 }
 0x16a   : > { %v682_v34 = vmax.f32 %v674_v29, 0.0  ;;  %v660_v35 = vmax.f32 %v644_v30, %v652_v31 }
 0x16b   : > { %v542_v36 = vpop.f32.mrf.mxu0  ;;  %v622_v37 = vpop.f32.mrf.mxu1 }
 0x16c   : > { %690 = vst [vmem:[%s1331_s7 + $0x10] sm:$0xff] %v682_v34  ;;  %v675_v38 = vadd.f32 %v1325_v5, %v660_v35  ;;  %v645_v39 = vmax.f32 %v1304_v49, %v542_v36  ;;  %v653_v40 = vmax.f32 %v1306_v50, %v622_v37 }
 0x16d   : > { %v544_v41 = vpop.f32.mrf.mxu0  ;;  %v624_v42 = vpop.f32.mrf.mxu1 }
 0x16e   : > { %v683_v43 = vmax.f32 %v675_v38, 0.0  ;;  %v661_v44 = vmax.f32 %v645_v39, %v653_v40 }
 0x16f   : > { %v547_v45 = vpop.f32.mrf.mxu0  ;;  %v627_v46 = vpop.f32.mrf.mxu1 }
 0x170   : > { %691 = vst [vmem:[%s1331_s7 + $0x18] sm:$0xff] %v683_v43  ;;  %v676_v47 = vadd.f32 %v1325_v5, %v661_v44  ;;  %v646_v48 = vmax.f32 %v1308_v53, %v547_v45  ;;  %v654_v51 = vmax.f32 %v1310_v54, %v627_v46 }
 0x171   : > { %v549_v52 = vpop.f32.mrf.mxu0  ;;  %v629_v55 = vpop.f32.mrf.mxu1 }
 0x172   : > { %v684_v49 = vmax.f32 %v676_v47, 0.0  ;;  %v662_v56 = vmax.f32 %v646_v48, %v654_v51 }
 0x173   : > { %v552_v50 = vpop.f32.mrf.mxu0  ;;  %v632_v59 = vpop.f32.mrf.mxu1 }
 0x174   : > { %692 = vst [vmem:[%s1331_s7 + $0x20] sm:$0xff] %v684_v49  ;;  %v677_v60 = vadd.f32 %v1325_v5, %v662_v56  ;;  %v647_v63 = vmax.f32 %v1312_v57, %v552_v50  ;;  %v655_v0 = vmax.f32 %v1314_v58, %v632_v59 }
 0x175   : > { %v554_v1 = vpop.f32.mrf.mxu0  ;;  %v634_v2 = vpop.f32.mrf.mxu1 }
 0x176   : > { %v685_v53 = vmax.f32 %v677_v60, 0.0  ;;  %v663_v54 = vmax.f32 %v647_v63, %v655_v0 }
 0x177   : > { %v557_v3 = vpop.f32.mrf.mxu0  ;;  %v637_v4 = vpop.f32.mrf.mxu1 }
 0x178   : > { %693 = vst [vmem:[%s1331_s7 + $0x28] sm:$0xff] %v685_v53  ;;  %v678_v6 = vadd.f32 %v1325_v5, %v663_v54  ;;  %v648_v7 = vmax.f32 %v1318_v61, %v557_v3  ;;  %v656_v8 = vmax.f32 %v1320_v62, %v637_v4 }
 0x179   : > { %v559_v9 = vpop.f32.mrf.mxu0  ;;  %v639_v10 = vpop.f32.mrf.mxu1 }
 0x17a   : > { %v686_v57 = vmax.f32 %v678_v6, 0.0  ;;  %v664_v11 = vmax.f32 %v648_v7, %v656_v8 }
 0x17c   : > { %694 = vst [vmem:[%s1331_s7 + $0x30] sm:$0xff] %v686_v57  ;;  %v679_v58 = vadd.f32 %v1325_v5, %v664_v11 }
 0x17e   : > { %v687_v12 = vmax.f32 %v679_v58, 0.0 }
 0x180   : > { %695 = vst [vmem:[%s1331_s7 + $0x38] sm:$0xff] %v687_v12 }
 0x181 PF: > { %p10_p9 = scmp.ge.s32.totalorder %s926_s16, 4   ;;  %s1370_s12 = smov %s882_s13 }
 0x182   : > { %s1371_s13 = smov %s935_s19  ;;  %s1372_s14 = smov %s926_s16 }
 0x183   :  { %12 = sbr.rel (!%p10_p9) target bundleno = 2 (0x2), region = 90 }

// kernel: _lambda_.3
= control target key start
LH: loop header
LB: loop body
LE: loop exit
PB: predicated region body
PF: predicated region fallthrough
CT: control target
= control target key end

     0   :  { %s12142_s0 = inlined_call_operand.vmem [shape: f32[2,2048], index: 0, kind: input, shape index: {}]   ;;  %s12143_s1 = inlined_call_operand.vmem [shape: f32[2048,1024], index: 1, kind: input, shape index: {}]   ;;  %s12144_s2 = inlined_call_operand.vmem [shape: f32[1,1024], index: 2, kind: input, shape index: {}]   ;;  %s12145_s3 = inlined_call_operand.vmem [shape: f32[256,512], index: 3, kind: input, shape index: {}]   ;;  %s12146_s4 = inlined_call_operand.vmem [shape: f32[1,512], index: 4, kind: input, shape index: {}]   ;;  %s12147_s5 = inlined_call_operand.vmem [shape: f32[128,128], index: 5, kind: input, shape index: {}]   ;;  %s12148_s6 = inlined_call_operand.vmem [shape: f32[1,128], index: 6, kind: input, shape index: {}]   ;;  %s12149_s7 = inlined_call_operand.vmem [shape: f32[128,128], index: 7, kind: input, shape index: {}]   ;;  %s12150_s8 = inlined_call_operand.vmem [shape: f32[1,128], index: 8, kind: input, shape index: {}]   ;;  %s12151_s9 = inlined_call_operand.hbm [shape: f32[2,128], index: 9, kind: output, shape index: {}]  }
   0x1   :  { %v158_v0 = vld [vmem:[%s12143_s1 + $0x3c8] sm:$0xff]  ;;  %v157_v2 = vld [vmem:[%s12143_s1 + $0x3c0] sm:$0xff] }
   0x2   :  { %v414_v1 = vld [vmem:[%s12143_s1 + $0xbc8] sm:$0xff]  ;;  %2215 = vmatprep.subr.mxu0 %v158_v0  ;;  %v413_v3 = vld [vmem:[%s12143_s1 + $0xbc0] sm:$0xff] }
   0x3   :  { %2286 = vmatprep.subr.mxu1 %v414_v1  ;;  %v150_v4 = vld [vmem:[%s12143_s1 + $0x388] sm:$0xff]  ;;  %2216 = vmatpush1.msra.mxu0 %v157_v2  ;;  %v149_v6 = vld [vmem:[%s12143_s1 + $0x380] sm:$0xff] }
   0x4   :  { %v406_v5 = vld [vmem:[%s12143_s1 + $0xb88] sm:$0xff]  ;;  %2287 = vmatpush1.msra.mxu1 %v413_v3  ;;  %v405_v7 = vld [vmem:[%s12143_s1 + $0xb80] sm:$0xff]  ;;  %2217 = vmatprep.subr.mxu0 %v150_v4 }
   0x5   :  { %v142_v8 = vld [vmem:[%s12143_s1 + $0x348] sm:$0xff]  ;;  %2288 = vmatprep.subr.mxu1 %v406_v5  ;;  %v141_v10 = vld [vmem:[%s12143_s1 + $0x340] sm:$0xff]  ;;  %2218 = vmatpush1.msra.mxu0 %v149_v6 }
   0x6   :  { %v398_v9 = vld [vmem:[%s12143_s1 + $0xb48] sm:$0xff]  ;;  %v397_v11 = vld [vmem:[%s12143_s1 + $0xb40] sm:$0xff]  ;;  %2289 = vmatpush1.msra.mxu1 %v405_v7  ;;  %2219 = vmatprep.subr.mxu0 %v142_v8 }
   0x7   :  { %v134_v12 = vld [vmem:[%s12143_s1 + $0x308] sm:$0xff]  ;;  %2290 = vmatprep.subr.mxu1 %v398_v9  ;;  %v133_v14 = vld [vmem:[%s12143_s1 + $0x300] sm:$0xff]  ;;  %2220 = vmatpush1.msra.mxu0 %v141_v10 }
   0x8   :  { %v390_v13 = vld [vmem:[%s12143_s1 + $0xb08] sm:$0xff]  ;;  %v389_v15 = vld [vmem:[%s12143_s1 + $0xb00] sm:$0xff]  ;;  %2291 = vmatpush1.msra.mxu1 %v397_v11  ;;  %2221 = vmatprep.subr.mxu0 %v134_v12 }
   0x9   :  { %v126_v16 = vld [vmem:[%s12143_s1 + $0x2c8] sm:$0xff]  ;;  %2292 = vmatprep.subr.mxu1 %v390_v13  ;;  %v125_v18 = vld [vmem:[%s12143_s1 + $0x2c0] sm:$0xff]  ;;  %2222 = vmatpush1.msra.mxu0 %v133_v14 }
   0xa   :  { %v382_v17 = vld [vmem:[%s12143_s1 + $0xac8] sm:$0xff]  ;;  %v381_v19 = vld [vmem:[%s12143_s1 + $0xac0] sm:$0xff]  ;;  %2293 = vmatpush1.msra.mxu1 %v389_v15  ;;  %2223 = vmatprep.subr.mxu0 %v126_v16 }
   0xb   :  { %v118_v20 = vld [vmem:[%s12143_s1 + $0x288] sm:$0xff]  ;;  %2294 = vmatprep.subr.mxu1 %v382_v17  ;;  %v117_v22 = vld [vmem:[%s12143_s1 + $0x280] sm:$0xff]  ;;  %2224 = vmatpush1.msra.mxu0 %v125_v18 }
   0xc   :  { %v374_v21 = vld [vmem:[%s12143_s1 + $0xa88] sm:$0xff]  ;;  %v373_v23 = vld [vmem:[%s12143_s1 + $0xa80] sm:$0xff]  ;;  %2295 = vmatpush1.msra.mxu1 %v381_v19  ;;  %2225 = vmatprep.subr.mxu0 %v118_v20 }
   0xd   :  { %v110_v24 = vld [vmem:[%s12143_s1 + $0x248] sm:$0xff]  ;;  %2296 = vmatprep.subr.mxu1 %v374_v21  ;;  %v109_v26 = vld [vmem:[%s12143_s1 + $0x240] sm:$0xff]  ;;  %2226 = vmatpush1.msra.mxu0 %v117_v22 }
   0xe   :  { %v366_v25 = vld [vmem:[%s12143_s1 + $0xa48] sm:$0xff]  ;;  %v365_v27 = vld [vmem:[%s12143_s1 + $0xa40] sm:$0xff]  ;;  %2297 = vmatpush1.msra.mxu1 %v373_v23  ;;  %2227 = vmatprep.subr.mxu0 %v110_v24 }
   0xf   :  { %v102_v28 = vld [vmem:[%s12143_s1 + $0x208] sm:$0xff]  ;;  %2298 = vmatprep.subr.mxu1 %v366_v25  ;;  %v101_v30 = vld [vmem:[%s12143_s1 + $0x200] sm:$0xff]  ;;  %2228 = vmatpush1.msra.mxu0 %v109_v26 }
  0x10   :  { %v358_v29 = vld [vmem:[%s12143_s1 + $0xa08] sm:$0xff]  ;;  %v357_v31 = vld [vmem:[%s12143_s1 + $0xa00] sm:$0xff]  ;;  %2299 = vmatpush1.msra.mxu1 %v365_v27  ;;  %2229 = vmatprep.subr.mxu0 %v102_v28 }
  0x11   :  { %v94_v32 = vld [vmem:[%s12143_s1 + $0x1c8] sm:$0xff]  ;;  %2300 = vmatprep.subr.mxu1 %v358_v29  ;;  %v93_v34 = vld [vmem:[%s12143_s1 + $0x1c0] sm:$0xff]  ;;  %2230 = vmatpush1.msra.mxu0 %v101_v30  ;;  %v2087_v30 = vlaneseq }
  0x12   :  { %v350_v33 = vld [vmem:[%s12143_s1 + $0x9c8] sm:$0xff]  ;;  %v349_v35 = vld [vmem:[%s12143_s1 + $0x9c0] sm:$0xff]  ;;  %2301 = vmatpush1.msra.mxu1 %v357_v31  ;;  %2231 = vmatprep.subr.mxu0 %v94_v32  ;;  %v5149_v31 = vmov 1983009808  }
  0x13   :  { %v86_v36 = vld [vmem:[%s12143_s1 + $0x188] sm:$0xff]  ;;  %2302 = vmatprep.subr.mxu1 %v350_v33  ;;  %v85_v38 = vld [vmem:[%s12143_s1 + $0x180] sm:$0xff]  ;;  %2232 = vmatpush1.msra.mxu0 %v93_v34  ;;  %v2133_v32 = vunpack.c.l.s4 %v5149_v31 }
  0x14   :  { %v342_v37 = vld [vmem:[%s12143_s1 + $0x988] sm:$0xff]  ;;  %v341_v39 = vld [vmem:[%s12143_s1 + $0x980] sm:$0xff]  ;;  %2303 = vmatpush1.msra.mxu1 %v349_v35  ;;  %2233 = vmatprep.subr.mxu0 %v86_v36 }
  0x15   :  { %v78_v40 = vld [vmem:[%s12143_s1 + $0x148] sm:$0xff]  ;;  %2304 = vmatprep.subr.mxu1 %v342_v37  ;;  %v77_v42 = vld [vmem:[%s12143_s1 + $0x140] sm:$0xff]  ;;  %2234 = vmatpush1.msra.mxu0 %v85_v38 }
  0x16   :  { %v334_v41 = vld [vmem:[%s12143_s1 + $0x948] sm:$0xff]  ;;  %v333_v43 = vld [vmem:[%s12143_s1 + $0x940] sm:$0xff]  ;;  %2305 = vmatpush1.msra.mxu1 %v341_v39  ;;  %2235 = vmatprep.subr.mxu0 %v78_v40 }
  0x17   :  { %v70_v44 = vld [vmem:[%s12143_s1 + $0x108] sm:$0xff]  ;;  %2306 = vmatprep.subr.mxu1 %v334_v41  ;;  %v69_v46 = vld [vmem:[%s12143_s1 + $0x100] sm:$0xff]  ;;  %2236 = vmatpush1.msra.mxu0 %v77_v42  ;;  %v5509_v41 = vshrl.u32 %v2087_v30, 7  ;;  %v2134_v42 = vunpack.c.0.s8 %v2133_v32 }
  0x18   :  { %v326_v45 = vld [vmem:[%s12143_s1 + $0x908] sm:$0xff]  ;;  %v325_v47 = vld [vmem:[%s12143_s1 + $0x900] sm:$0xff]  ;;  %2307 = vmatpush1.msra.mxu1 %v333_v43  ;;  %2237 = vmatprep.subr.mxu0 %v70_v44 }
  0x19   :  { %v62_v48 = vld [vmem:[%s12143_s1 + $0xc8] sm:$0xff]  ;;  %2308 = vmatprep.subr.mxu1 %v326_v45  ;;  %v61_v50 = vld [vmem:[%s12143_s1 + $0xc0] sm:$0xff]  ;;  %2238 = vmatpush1.msra.mxu0 %v69_v46  ;;  %12160 = vst [vmem:[#allocation5_spill] sm:$0xff] %v5509_v41 }
  0x1a   :  { %v318_v49 = vld [vmem:[%s12143_s1 + $0x8c8] sm:$0xff]  ;;  %v317_v51 = vld [vmem:[%s12143_s1 + $0x8c0] sm:$0xff]  ;;  %2309 = vmatpush1.msra.mxu1 %v325_v47  ;;  %2239 = vmatprep.subr.mxu0 %v62_v48 }
  0x1b   :  { %v54_v52 = vld [vmem:[%s12143_s1 + $0x88] sm:$0xff]  ;;  %2310 = vmatprep.subr.mxu1 %v318_v49  ;;  %v53_v54 = vld [vmem:[%s12143_s1 + $0x80] sm:$0xff]  ;;  %2240 = vmatpush1.msra.mxu0 %v61_v50 }
  0x1c   :  { %v310_v53 = vld [vmem:[%s12143_s1 + $0x888] sm:$0xff]  ;;  %v309_v55 = vld [vmem:[%s12143_s1 + $0x880] sm:$0xff]  ;;  %2311 = vmatpush1.msra.mxu1 %v317_v51  ;;  %2241 = vmatprep.subr.mxu0 %v54_v52  ;;  %v5539_v52 = vsub.s32 %v2134_v42, %v5509_v41 }
  0x1d   :  { %v46_v56 = vld [vmem:[%s12143_s1 + $0x48] sm:$0xff]  ;;  %2312 = vmatprep.subr.mxu1 %v310_v53  ;;  %v45_v58 = vld [vmem:[%s12143_s1 + $0x40] sm:$0xff]  ;;  %2242 = vmatpush1.msra.mxu0 %v53_v54 }
  0x1e   :  { %v302_v57 = vld [vmem:[%s12143_s1 + $0x848] sm:$0xff]  ;;  %v301_v59 = vld [vmem:[%s12143_s1 + $0x840] sm:$0xff]  ;;  %2313 = vmatpush1.msra.mxu1 %v309_v55  ;;  %2243 = vmatprep.subr.mxu0 %v46_v56 }
  0x1f   :  { %v38_v60 = vld [vmem:[%s12143_s1 + $0x8] sm:$0xff]  ;;  %2314 = vmatprep.subr.mxu1 %v302_v57  ;;  %v37_v62 = vld [vmem:[%s12143_s1] sm:$0xff]  ;;  %2244 = vmatpush1.msra.mxu0 %v45_v58 }
  0x20   :  { %v294_v61 = vld [vmem:[%s12143_s1 + $0x808] sm:$0xff]  ;;  %v293_v63 = vld [vmem:[%s12143_s1 + $0x800] sm:$0xff]  ;;  %2315 = vmatpush1.msra.mxu1 %v301_v59  ;;  %2245 = vmatprep.subr.mxu0 %v38_v60 }
  0x21   :  { %v286_v0 = vld [vmem:[%s12143_s1 + $0x7c8] sm:$0xff]  ;;  %2316 = vmatprep.subr.mxu1 %v294_v61  ;;  %v285_v2 = vld [vmem:[%s12143_s1 + $0x7c0] sm:$0xff]  ;;  %2246 = vmatpush1.msra.mxu0 %v37_v62 }
  0x22   :  { %v542_v1 = vld [vmem:[%s12143_s1 + $0xfc8] sm:$0xff]  ;;  %v541_v3 = vld [vmem:[%s12143_s1 + $0xfc0] sm:$0xff]  ;;  %2317 = vmatpush1.msra.mxu1 %v293_v63  ;;  %2247 = vmatprep.subr.mxu0 %v286_v0 }
  0x23   :  { %v278_v4 = vld [vmem:[%s12143_s1 + $0x788] sm:$0xff]  ;;  %2318 = vmatprep.subr.mxu1 %v542_v1  ;;  %v277_v6 = vld [vmem:[%s12143_s1 + $0x780] sm:$0xff]  ;;  %2248 = vmatpush2.msra.mxu0 %v285_v2 }
  0x24   :  { %v534_v5 = vld [vmem:[%s12143_s1 + $0xf88] sm:$0xff]  ;;  %v533_v7 = vld [vmem:[%s12143_s1 + $0xf80] sm:$0xff]  ;;  %2319 = vmatpush2.msra.mxu1 %v541_v3  ;;  %2249 = vmatprep.subr.mxu0 %v278_v4 }
  0x25   :  { %v270_v8 = vld [vmem:[%s12143_s1 + $0x748] sm:$0xff]  ;;  %2320 = vmatprep.subr.mxu1 %v534_v5  ;;  %v269_v10 = vld [vmem:[%s12143_s1 + $0x740] sm:$0xff]  ;;  %2250 = vmatpush2.msra.mxu0 %v277_v6 }
  0x26   :  { %v526_v9 = vld [vmem:[%s12143_s1 + $0xf48] sm:$0xff]  ;;  %v525_v11 = vld [vmem:[%s12143_s1 + $0xf40] sm:$0xff]  ;;  %2321 = vmatpush2.msra.mxu1 %v533_v7  ;;  %2251 = vmatprep.subr.mxu0 %v270_v8 }
  0x27   :  { %v262_v12 = vld [vmem:[%s12143_s1 + $0x708] sm:$0xff]  ;;  %2322 = vmatprep.subr.mxu1 %v526_v9  ;;  %v261_v14 = vld [vmem:[%s12143_s1 + $0x700] sm:$0xff]  ;;  %2252 = vmatpush2.msra.mxu0 %v269_v10 }
  0x28   :  { %v518_v13 = vld [vmem:[%s12143_s1 + $0xf08] sm:$0xff]  ;;  %v517_v15 = vld [vmem:[%s12143_s1 + $0xf00] sm:$0xff]  ;;  %2323 = vmatpush2.msra.mxu1 %v525_v11  ;;  %2253 = vmatprep.subr.mxu0 %v262_v12 }
  0x29   :  { %v254_v16 = vld [vmem:[%s12143_s1 + $0x6c8] sm:$0xff]  ;;  %2324 = vmatprep.subr.mxu1 %v518_v13  ;;  %v253_v18 = vld [vmem:[%s12143_s1 + $0x6c0] sm:$0xff]  ;;  %2254 = vmatpush2.msra.mxu0 %v261_v14 }
  0x2a   :  { %v510_v17 = vld [vmem:[%s12143_s1 + $0xec8] sm:$0xff]  ;;  %v509_v19 = vld [vmem:[%s12143_s1 + $0xec0] sm:$0xff]  ;;  %2325 = vmatpush2.msra.mxu1 %v517_v15  ;;  %2255 = vmatprep.subr.mxu0 %v254_v16 }
  0x2b   :  { %v246_v20 = vld [vmem:[%s12143_s1 + $0x688] sm:$0xff]  ;;  %2326 = vmatprep.subr.mxu1 %v510_v17  ;;  %v245_v22 = vld [vmem:[%s12143_s1 + $0x680] sm:$0xff]  ;;  %2256 = vmatpush2.msra.mxu0 %v253_v18 }
  0x2c   :  { %v502_v21 = vld [vmem:[%s12143_s1 + $0xe88] sm:$0xff]  ;;  %v501_v23 = vld [vmem:[%s12143_s1 + $0xe80] sm:$0xff]  ;;  %2327 = vmatpush2.msra.mxu1 %v509_v19  ;;  %2257 = vmatprep.subr.mxu0 %v246_v20 }
  0x2d   :  { %v238_v24 = vld [vmem:[%s12143_s1 + $0x648] sm:$0xff]  ;;  %2328 = vmatprep.subr.mxu1 %v502_v21  ;;  %v237_v26 = vld [vmem:[%s12143_s1 + $0x640] sm:$0xff]  ;;  %2258 = vmatpush2.msra.mxu0 %v245_v22 }
  0x2e   :  { %v494_v25 = vld [vmem:[%s12143_s1 + $0xe48] sm:$0xff]  ;;  %v493_v27 = vld [vmem:[%s12143_s1 + $0xe40] sm:$0xff]  ;;  %2329 = vmatpush2.msra.mxu1 %v501_v23  ;;  %2259 = vmatprep.subr.mxu0 %v238_v24 }
  0x2f   :  { %v230_v28 = vld [vmem:[%s12143_s1 + $0x608] sm:$0xff]  ;;  %2330 = vmatprep.subr.mxu1 %v494_v25  ;;  %v229_v33 = vld [vmem:[%s12143_s1 + $0x600] sm:$0xff]  ;;  %2260 = vmatpush2.msra.mxu0 %v237_v26 }
  0x30   :  { %v486_v29 = vld [vmem:[%s12143_s1 + $0xe08] sm:$0xff]  ;;  %v485_v34 = vld [vmem:[%s12143_s1 + $0xe00] sm:$0xff]  ;;  %2331 = vmatpush2.msra.mxu1 %v493_v27  ;;  %2261 = vmatprep.subr.mxu0 %v230_v28 }
  0x31   :  { %v222_v35 = vld [vmem:[%s12143_s1 + $0x5c8] sm:$0xff]  ;;  %2332 = vmatprep.subr.mxu1 %v486_v29  ;;  %v221_v37 = vld [vmem:[%s12143_s1 + $0x5c0] sm:$0xff]  ;;  %2262 = vmatpush2.msra.mxu0 %v229_v33 }
  0x32   :  { %v478_v36 = vld [vmem:[%s12143_s1 + $0xdc8] sm:$0xff]  ;;  %v477_v38 = vld [vmem:[%s12143_s1 + $0xdc0] sm:$0xff]  ;;  %2333 = vmatpush2.msra.mxu1 %v485_v34  ;;  %2263 = vmatprep.subr.mxu0 %v222_v35 }
  0x33   :  { %v214_v39 = vld [vmem:[%s12143_s1 + $0x588] sm:$0xff]  ;;  %2334 = vmatprep.subr.mxu1 %v478_v36  ;;  %v213_v43 = vld [vmem:[%s12143_s1 + $0x580] sm:$0xff]  ;;  %2264 = vmatpush2.msra.mxu0 %v221_v37 }
  0x34   :  { %v470_v40 = vld [vmem:[%s12143_s1 + $0xd88] sm:$0xff]  ;;  %v469_v44 = vld [vmem:[%s12143_s1 + $0xd80] sm:$0xff]  ;;  %2335 = vmatpush2.msra.mxu1 %v477_v38  ;;  %2265 = vmatprep.subr.mxu0 %v214_v39 }
  0x35   :  { %v206_v45 = vld [vmem:[%s12143_s1 + $0x548] sm:$0xff]  ;;  %2336 = vmatprep.subr.mxu1 %v470_v40  ;;  %v205_v47 = vld [vmem:[%s12143_s1 + $0x540] sm:$0xff]  ;;  %2266 = vmatpush2.msra.mxu0 %v213_v43 }
  0x36   :  { %v462_v46 = vld [vmem:[%s12143_s1 + $0xd48] sm:$0xff]  ;;  %v461_v48 = vld [vmem:[%s12143_s1 + $0xd40] sm:$0xff]  ;;  %2337 = vmatpush2.msra.mxu1 %v469_v44  ;;  %2267 = vmatprep.subr.mxu0 %v206_v45 }
  0x37   :  { %v33_v49 = vld [vmem:[%s12142_s0] sm:$0xff]  ;;  %v198_v50 = vld [vmem:[%s12143_s1 + $0x508] sm:$0xff]  ;;  %2338 = vmatprep.subr.mxu1 %v462_v46  ;;  %2268 = vmatpush2.msra.mxu0 %v205_v47 }
  0x38   :  { %v454_v51 = vld [vmem:[%s12143_s1 + $0xd08] sm:$0xff]  ;;  %v197_v53 = vld [vmem:[%s12143_s1 + $0x500] sm:$0xff]  ;;  %2339 = vmatpush2.msra.mxu1 %v461_v48  ;;  %v2131_v57 = vcombine.high %v33_v49, %v33_v49  ;;  %2269 = vmatprep.subr.mxu0 %v198_v50  ;;  %v5566_v62 = vrot.slane %v33_v49, %v5539_v52 }
  0x39   :  { %v453_v54 = vld [vmem:[%s12143_s1 + $0xd00] sm:$0xff]  ;;  %v190_v55 = vld [vmem:[%s12143_s1 + $0x4c8] sm:$0xff]  ;;  %2340 = vmatprep.subr.mxu1 %v454_v51  ;;  %2270 = vmatpush2.msra.mxu0 %v197_v53 }
  0x3a   :  { %v446_v56 = vld [vmem:[%s12143_s1 + $0xcc8] sm:$0xff]  ;;  %v189_v58 = vld [vmem:[%s12143_s1 + $0x4c0] sm:$0xff]  ;;  %2341 = vmatpush2.msra.mxu1 %v453_v54  ;;  %2271 = vmatprep.subr.mxu0 %v190_v55  ;;  %v5581_v3 = vrot.slane %v2131_v57, %v5539_v52  ;;  %v5597_v8 = vcombine.high %v5566_v62, %v5566_v62 }
  0x3b   :  { %v445_v59 = vld [vmem:[%s12143_s1 + $0xcc0] sm:$0xff]  ;;  %v182_v60 = vld [vmem:[%s12143_s1 + $0x488] sm:$0xff]  ;;  %2342 = vmatprep.subr.mxu1 %v446_v56  ;;  %2272 = vmatpush2.msra.mxu0 %v189_v58 }
  0x3c   :  { %v438_v61 = vld [vmem:[%s12143_s1 + $0xc88] sm:$0xff]  ;;  %v181_v63 = vld [vmem:[%s12143_s1 + $0x480] sm:$0xff]  ;;  %2343 = vmatpush2.msra.mxu1 %v445_v59  ;;  %2273 = vmatprep.subr.mxu0 %v182_v60  ;;  %v5607_v11 = vcombine.high %v5581_v3, %v5581_v3 }
  0x3d   :  { %v437_v0 = vld [vmem:[%s12143_s1 + $0xc80] sm:$0xff]  ;;  %v174_v1 = vld [vmem:[%s12143_s1 + $0x448] sm:$0xff]  ;;  %2344 = vmatprep.subr.mxu1 %v438_v61  ;;  %2274 = vmatpush2.msra.mxu0 %v181_v63 }
  0x3e   :  { %v430_v2 = vld [vmem:[%s12143_s1 + $0xc48] sm:$0xff]  ;;  %v173_v4 = vld [vmem:[%s12143_s1 + $0x440] sm:$0xff]  ;;  %2345 = vmatpush2.msra.mxu1 %v437_v0  ;;  %2275 = vmatprep.subr.mxu0 %v174_v1 }
  0x3f   :  { %v429_v5 = vld [vmem:[%s12143_s1 + $0xc40] sm:$0xff]  ;;  %v166_v6 = vld [vmem:[%s12143_s1 + $0x408] sm:$0xff]  ;;  %2346 = vmatprep.subr.mxu1 %v430_v2  ;;  %2276 = vmatpush2.msra.mxu0 %v173_v4 }
  0x40   :  { %v422_v7 = vld [vmem:[%s12143_s1 + $0xc08] sm:$0xff]  ;;  %v165_v9 = vld [vmem:[%s12143_s1 + $0x400] sm:$0xff]  ;;  %2347 = vmatpush2.msra.mxu1 %v429_v5  ;;  %2277 = vmatprep.subr.mxu0 %v166_v6 }
  0x41   :  { %v421_v10 = vld [vmem:[%s12143_s1 + $0xc00] sm:$0xff]  ;;  %2348 = vmatprep.subr.mxu1 %v422_v7  ;;  %v670_v12 = vld [vmem:[%s12143_s1 + $0x13c8] sm:$0xff]  ;;  %2278 = vmatpush2.msra.mxu0 %v165_v9 }
  0x42   :  { %2279 = vmatprep.mubr.f32.mxu0 %v5597_v8  ;;  %v926_v13 = vld [vmem:[%s12143_s1 + $0x1bc8] sm:$0xff]  ;;  %2349 = vmatpush2.msra.mxu1 %v421_v10  ;;  %v669_v14 = vld [vmem:[%s12143_s1 + $0x13c0] sm:$0xff] }
  0x43   :  { %2280 = vmatmul.mubr.f32.vlgmr.msra.gmra.mxu0 %v5566_v62  ;;  %v925_v15 = vld [vmem:[%s12143_s1 + $0x1bc0] sm:$0xff]  ;;  %2350 = vmatprep.mubr.f32.mxu1 %v5607_v11  ;;  %v662_v16 = vld [vmem:[%s12143_s1 + $0x1388] sm:$0xff] }
  0x44   :  { %2357 = vmatprep.subr.mxu0 %v670_v12  ;;  %v918_v17 = vld [vmem:[%s12143_s1 + $0x1b88] sm:$0xff]  ;;  %2428 = vmatprep.subr.mxu1 %v926_v13  ;;  %v661_v18 = vld [vmem:[%s12143_s1 + $0x1380] sm:$0xff] }
  0x45   :  { %2351 = vmatmul.mubr.f32.vlgmr.msra.gmra.mxu1 %v5581_v3  ;;  %v917_v19 = vld [vmem:[%s12143_s1 + $0x1b80] sm:$0xff]  ;;  %2358 = vmatpush1.msra.mxu0 %v669_v14  ;;  %v654_v20 = vld [vmem:[%s12143_s1 + $0x1348] sm:$0xff] }
  0x46   :  { %2429 = vmatpush1.msra.mxu1 %v925_v15  ;;  %v910_v21 = vld [vmem:[%s12143_s1 + $0x1b48] sm:$0xff]  ;;  %2359 = vmatprep.subr.mxu0 %v662_v16  ;;  %v653_v22 = vld [vmem:[%s12143_s1 + $0x1340] sm:$0xff] }
  0x47   :  { %2430 = vmatprep.subr.mxu1 %v918_v17  ;;  %v909_v23 = vld [vmem:[%s12143_s1 + $0x1b40] sm:$0xff]  ;;  %2360 = vmatpush1.msra.mxu0 %v661_v18  ;;  %v646_v24 = vld [vmem:[%s12143_s1 + $0x1308] sm:$0xff] }
  0x48   :  { %2431 = vmatpush1.msra.mxu1 %v917_v19  ;;  %v902_v25 = vld [vmem:[%s12143_s1 + $0x1b08] sm:$0xff]  ;;  %2361 = vmatprep.subr.mxu0 %v654_v20  ;;  %v645_v26 = vld [vmem:[%s12143_s1 + $0x1300] sm:$0xff] }
  0x49   :  { %2432 = vmatprep.subr.mxu1 %v910_v21  ;;  %v901_v27 = vld [vmem:[%s12143_s1 + $0x1b00] sm:$0xff]  ;;  %2362 = vmatpush1.msra.mxu0 %v653_v22  ;;  %v638_v28 = vld [vmem:[%s12143_s1 + $0x12c8] sm:$0xff] }
  0x4a   :  { %2433 = vmatpush1.msra.mxu1 %v909_v23  ;;  %v894_v29 = vld [vmem:[%s12143_s1 + $0x1ac8] sm:$0xff]  ;;  %2363 = vmatprep.subr.mxu0 %v646_v24  ;;  %v637_v30 = vld [vmem:[%s12143_s1 + $0x12c0] sm:$0xff] }
  0x4b   :  { %2434 = vmatprep.subr.mxu1 %v902_v25  ;;  %v893_v31 = vld [vmem:[%s12143_s1 + $0x1ac0] sm:$0xff]  ;;  %2364 = vmatpush1.msra.mxu0 %v645_v26  ;;  %v630_v32 = vld [vmem:[%s12143_s1 + $0x1288] sm:$0xff] }
  0x4c   :  { %2435 = vmatpush1.msra.mxu1 %v901_v27  ;;  %v886_v33 = vld [vmem:[%s12143_s1 + $0x1a88] sm:$0xff]  ;;  %2365 = vmatprep.subr.mxu0 %v638_v28  ;;  %v629_v34 = vld [vmem:[%s12143_s1 + $0x1280] sm:$0xff] }
  0x4d   :  { %2436 = vmatprep.subr.mxu1 %v894_v29  ;;  %v885_v35 = vld [vmem:[%s12143_s1 + $0x1a80] sm:$0xff]  ;;  %2366 = vmatpush1.msra.mxu0 %v637_v30  ;;  %v622_v36 = vld [vmem:[%s12143_s1 + $0x1248] sm:$0xff] }
  0x4e   :  { %2437 = vmatpush1.msra.mxu1 %v893_v31  ;;  %v878_v37 = vld [vmem:[%s12143_s1 + $0x1a48] sm:$0xff]  ;;  %2367 = vmatprep.subr.mxu0 %v630_v32  ;;  %v621_v38 = vld [vmem:[%s12143_s1 + $0x1240] sm:$0xff] }
  0x4f   :  { %2438 = vmatprep.subr.mxu1 %v886_v33  ;;  %v877_v39 = vld [vmem:[%s12143_s1 + $0x1a40] sm:$0xff]  ;;  %2368 = vmatpush1.msra.mxu0 %v629_v34  ;;  %v614_v40 = vld [vmem:[%s12143_s1 + $0x1208] sm:$0xff] }
  0x50   :  { %2439 = vmatpush1.msra.mxu1 %v885_v35  ;;  %v870_v42 = vld [vmem:[%s12143_s1 + $0x1a08] sm:$0xff]  ;;  %2369 = vmatprep.subr.mxu0 %v622_v36  ;;  %v613_v43 = vld [vmem:[%s12143_s1 + $0x1200] sm:$0xff] }
  0x51   :  { %2440 = vmatprep.subr.mxu1 %v878_v37  ;;  %v869_v44 = vld [vmem:[%s12143_s1 + $0x1a00] sm:$0xff]  ;;  %2370 = vmatpush1.msra.mxu0 %v621_v38  ;;  %v606_v45 = vld [vmem:[%s12143_s1 + $0x11c8] sm:$0xff] }
  0x52   :  { %2441 = vmatpush1.msra.mxu1 %v877_v39  ;;  %v862_v46 = vld [vmem:[%s12143_s1 + $0x19c8] sm:$0xff]  ;;  %2371 = vmatprep.subr.mxu0 %v614_v40  ;;  %v605_v47 = vld [vmem:[%s12143_s1 + $0x11c0] sm:$0xff] }
  0x53   :  { %2442 = vmatprep.subr.mxu1 %v870_v42  ;;  %v861_v48 = vld [vmem:[%s12143_s1 + $0x19c0] sm:$0xff]  ;;  %2372 = vmatpush1.msra.mxu0 %v613_v43  ;;  %v598_v49 = vld [vmem:[%s12143_s1 + $0x1188] sm:$0xff] }
  0x54   :  { %2443 = vmatpush1.msra.mxu1 %v869_v44  ;;  %v854_v50 = vld [vmem:[%s12143_s1 + $0x1988] sm:$0xff]  ;;  %2373 = vmatprep.subr.mxu0 %v606_v45  ;;  %v597_v51 = vld [vmem:[%s12143_s1 + $0x1180] sm:$0xff] }
  0x55   :  { %2444 = vmatprep.subr.mxu1 %v862_v46  ;;  %v853_v53 = vld [vmem:[%s12143_s1 + $0x1980] sm:$0xff]  ;;  %2374 = vmatpush1.msra.mxu0 %v605_v47  ;;  %v590_v54 = vld [vmem:[%s12143_s1 + $0x1148] sm:$0xff] }
  0x56   :  { %2445 = vmatpush1.msra.mxu1 %v861_v48  ;;  %v846_v55 = vld [vmem:[%s12143_s1 + $0x1948] sm:$0xff]  ;;  %2375 = vmatprep.subr.mxu0 %v598_v49  ;;  %v589_v56 = vld [vmem:[%s12143_s1 + $0x1140] sm:$0xff] }
  0x57   :  { %2446 = vmatprep.subr.mxu1 %v854_v50  ;;  %v845_v57 = vld [vmem:[%s12143_s1 + $0x1940] sm:$0xff]  ;;  %2376 = vmatpush1.msra.mxu0 %v597_v51  ;;  %v582_v58 = vld [vmem:[%s12143_s1 + $0x1108] sm:$0xff] }
  0x58   :  { %2447 = vmatpush1.msra.mxu1 %v853_v53  ;;  %v838_v59 = vld [vmem:[%s12143_s1 + $0x1908] sm:$0xff]  ;;  %2377 = vmatprep.subr.mxu0 %v590_v54  ;;  %v581_v60 = vld [vmem:[%s12143_s1 + $0x1100] sm:$0xff] }
  0x59   :  { %2448 = vmatprep.subr.mxu1 %v846_v55  ;;  %v837_v61 = vld [vmem:[%s12143_s1 + $0x1900] sm:$0xff]  ;;  %2378 = vmatpush1.msra.mxu0 %v589_v56  ;;  %v574_v63 = vld [vmem:[%s12143_s1 + $0x10c8] sm:$0xff] }
  0x5a   :  { %2449 = vmatpush1.msra.mxu1 %v845_v57  ;;  %v830_v0 = vld [vmem:[%s12143_s1 + $0x18c8] sm:$0xff]  ;;  %2379 = vmatprep.subr.mxu0 %v582_v58  ;;  %v573_v1 = vld [vmem:[%s12143_s1 + $0x10c0] sm:$0xff] }
  0x5b   :  { %2450 = vmatprep.subr.mxu1 %v838_v59  ;;  %v829_v2 = vld [vmem:[%s12143_s1 + $0x18c0] sm:$0xff]  ;;  %2380 = vmatpush1.msra.mxu0 %v581_v60  ;;  %v566_v4 = vld [vmem:[%s12143_s1 + $0x1088] sm:$0xff] }
  0x5c   :  { %2451 = vmatpush1.msra.mxu1 %v837_v61  ;;  %v822_v5 = vld [vmem:[%s12143_s1 + $0x1888] sm:$0xff]  ;;  %2381 = vmatprep.subr.mxu0 %v574_v63  ;;  %v565_v6 = vld [vmem:[%s12143_s1 + $0x1080] sm:$0xff] }
  0x5d   :  { %2452 = vmatprep.subr.mxu1 %v830_v0  ;;  %v821_v7 = vld [vmem:[%s12143_s1 + $0x1880] sm:$0xff]  ;;  %2382 = vmatpush1.msra.mxu0 %v573_v1  ;;  %v558_v9 = vld [vmem:[%s12143_s1 + $0x1048] sm:$0xff] }
  0x5e   :  { %2453 = vmatpush1.msra.mxu1 %v829_v2  ;;  %v814_v10 = vld [vmem:[%s12143_s1 + $0x1848] sm:$0xff]  ;;  %2383 = vmatprep.subr.mxu0 %v566_v4  ;;  %v557_v12 = vld [vmem:[%s12143_s1 + $0x1040] sm:$0xff] }
  0x5f   :  { %2454 = vmatprep.subr.mxu1 %v822_v5  ;;  %v813_v13 = vld [vmem:[%s12143_s1 + $0x1840] sm:$0xff]  ;;  %2384 = vmatpush1.msra.mxu0 %v565_v6  ;;  %v550_v14 = vld [vmem:[%s12143_s1 + $0x1008] sm:$0xff] }
  0x60   :  { %2455 = vmatpush1.msra.mxu1 %v821_v7  ;;  %v806_v15 = vld [vmem:[%s12143_s1 + $0x1808] sm:$0xff]  ;;  %2385 = vmatprep.subr.mxu0 %v558_v9  ;;  %v549_v16 = vld [vmem:[%s12143_s1 + $0x1000] sm:$0xff] }
  0x61   :  { %2456 = vmatprep.subr.mxu1 %v814_v10  ;;  %v805_v17 = vld [vmem:[%s12143_s1 + $0x1800] sm:$0xff]  ;;  %2386 = vmatpush1.msra.mxu0 %v557_v12  ;;  %v798_v18 = vld [vmem:[%s12143_s1 + $0x17c8] sm:$0xff] }
  0x62   :  { %2457 = vmatpush1.msra.mxu1 %v813_v13  ;;  %v1054_v19 = vld [vmem:[%s12143_s1 + $0x1fc8] sm:$0xff]  ;;  %2387 = vmatprep.subr.mxu0 %v550_v14  ;;  %v797_v20 = vld [vmem:[%s12143_s1 + $0x17c0] sm:$0xff] }
  0x63   :  { %2458 = vmatprep.subr.mxu1 %v806_v15  ;;  %v1053_v21 = vld [vmem:[%s12143_s1 + $0x1fc0] sm:$0xff]  ;;  %2388 = vmatpush1.msra.mxu0 %v549_v16  ;;  %v790_v22 = vld [vmem:[%s12143_s1 + $0x1788] sm:$0xff] }
  0x64   :  { %2459 = vmatpush1.msra.mxu1 %v805_v17  ;;  %v1046_v23 = vld [vmem:[%s12143_s1 + $0x1f88] sm:$0xff]  ;;  %2389 = vmatprep.subr.mxu0 %v798_v18  ;;  %v789_v24 = vld [vmem:[%s12143_s1 + $0x1780] sm:$0xff] }
  0x65   :  { %2460 = vmatprep.subr.mxu1 %v1054_v19  ;;  %v1045_v25 = vld [vmem:[%s12143_s1 + $0x1f80] sm:$0xff]  ;;  %2390 = vmatpush2.msra.mxu0 %v797_v20  ;;  %v782_v26 = vld [vmem:[%s12143_s1 + $0x1748] sm:$0xff] }
  0x66   :  { %2461 = vmatpush2.msra.mxu1 %v1053_v21  ;;  %v1038_v27 = vld [vmem:[%s12143_s1 + $0x1f48] sm:$0xff]  ;;  %2391 = vmatprep.subr.mxu0 %v790_v22  ;;  %v781_v28 = vld [vmem:[%s12143_s1 + $0x1740] sm:$0xff] }
  0x67   :  { %2462 = vmatprep.subr.mxu1 %v1046_v23  ;;  %v1037_v29 = vld [vmem:[%s12143_s1 + $0x1f40] sm:$0xff]  ;;  %2392 = vmatpush2.msra.mxu0 %v789_v24  ;;  %v774_v30 = vld [vmem:[%s12143_s1 + $0x1708] sm:$0xff] }
  0x68   :  { %2463 = vmatpush2.msra.mxu1 %v1045_v25  ;;  %v1030_v31 = vld [vmem:[%s12143_s1 + $0x1f08] sm:$0xff]  ;;  %2393 = vmatprep.subr.mxu0 %v782_v26  ;;  %v773_v32 = vld [vmem:[%s12143_s1 + $0x1700] sm:$0xff] }
  0x69   :  { %2464 = vmatprep.subr.mxu1 %v1038_v27  ;;  %v1029_v33 = vld [vmem:[%s12143_s1 + $0x1f00] sm:$0xff]  ;;  %2394 = vmatpush2.msra.mxu0 %v781_v28  ;;  %v766_v34 = vld [vmem:[%s12143_s1 + $0x16c8] sm:$0xff] }
  0x6a   :  { %2465 = vmatpush2.msra.mxu1 %v1037_v29  ;;  %v1022_v35 = vld [vmem:[%s12143_s1 + $0x1ec8] sm:$0xff]  ;;  %2395 = vmatprep.subr.mxu0 %v774_v30  ;;  %v765_v36 = vld [vmem:[%s12143_s1 + $0x16c0] sm:$0xff] }
  0x6b   :  { %2466 = vmatprep.subr.mxu1 %v1030_v31  ;;  %v1021_v37 = vld [vmem:[%s12143_s1 + $0x1ec0] sm:$0xff]  ;;  %2396 = vmatpush2.msra.mxu0 %v773_v32  ;;  %v758_v38 = vld [vmem:[%s12143_s1 + $0x1688] sm:$0xff] }
  0x6c   :  { %2467 = vmatpush2.msra.mxu1 %v1029_v33  ;;  %v1014_v39 = vld [vmem:[%s12143_s1 + $0x1e88] sm:$0xff]  ;;  %2397 = vmatprep.subr.mxu0 %v766_v34  ;;  %v757_v40 = vld [vmem:[%s12143_s1 + $0x1680] sm:$0xff] }
  0x6d   :  { %2468 = vmatprep.subr.mxu1 %v1022_v35  ;;  %v1013_v42 = vld [vmem:[%s12143_s1 + $0x1e80] sm:$0xff]  ;;  %2398 = vmatpush2.msra.mxu0 %v765_v36  ;;  %v750_v43 = vld [vmem:[%s12143_s1 + $0x1648] sm:$0xff] }
  0x6e   :  { %2469 = vmatpush2.msra.mxu1 %v1021_v37  ;;  %v1006_v44 = vld [vmem:[%s12143_s1 + $0x1e48] sm:$0xff]  ;;  %2399 = vmatprep.subr.mxu0 %v758_v38  ;;  %v749_v45 = vld [vmem:[%s12143_s1 + $0x1640] sm:$0xff] }
  0x6f   :  { %2470 = vmatprep.subr.mxu1 %v1014_v39  ;;  %v1005_v46 = vld [vmem:[%s12143_s1 + $0x1e40] sm:$0xff]  ;;  %2400 = vmatpush2.msra.mxu0 %v757_v40  ;;  %v742_v47 = vld [vmem:[%s12143_s1 + $0x1608] sm:$0xff] }
  0x70   :  { %2471 = vmatpush2.msra.mxu1 %v1013_v42  ;;  %v998_v48 = vld [vmem:[%s12143_s1 + $0x1e08] sm:$0xff]  ;;  %2401 = vmatprep.subr.mxu0 %v750_v43  ;;  %v741_v49 = vld [vmem:[%s12143_s1 + $0x1600] sm:$0xff] }
  0x71   :  { %2472 = vmatprep.subr.mxu1 %v1006_v44  ;;  %v997_v50 = vld [vmem:[%s12143_s1 + $0x1e00] sm:$0xff]  ;;  %2402 = vmatpush2.msra.mxu0 %v749_v45  ;;  %v734_v51 = vld [vmem:[%s12143_s1 + $0x15c8] sm:$0xff] }
  0x72   :  { %2473 = vmatpush2.msra.mxu1 %v1005_v46  ;;  %v990_v53 = vld [vmem:[%s12143_s1 + $0x1dc8] sm:$0xff]  ;;  %2403 = vmatprep.subr.mxu0 %v742_v47  ;;  %v733_v54 = vld [vmem:[%s12143_s1 + $0x15c0] sm:$0xff] }
  0x73   :  { %2474 = vmatprep.subr.mxu1 %v998_v48  ;;  %v989_v55 = vld [vmem:[%s12143_s1 + $0x1dc0] sm:$0xff]  ;;  %2404 = vmatpush2.msra.mxu0 %v741_v49  ;;  %v726_v56 = vld [vmem:[%s12143_s1 + $0x1588] sm:$0xff] }
  0x74   :  { %2475 = vmatpush2.msra.mxu1 %v997_v50  ;;  %v982_v57 = vld [vmem:[%s12143_s1 + $0x1d88] sm:$0xff]  ;;  %2405 = vmatprep.subr.mxu0 %v734_v51  ;;  %v725_v58 = vld [vmem:[%s12143_s1 + $0x1580] sm:$0xff] }
  0x75   :  { %2476 = vmatprep.subr.mxu1 %v990_v53  ;;  %v981_v59 = vld [vmem:[%s12143_s1 + $0x1d80] sm:$0xff]  ;;  %2406 = vmatpush2.msra.mxu0 %v733_v54  ;;  %v718_v60 = vld [vmem:[%s12143_s1 + $0x1548] sm:$0xff] }
  0x76   :  { %2477 = vmatpush2.msra.mxu1 %v989_v55  ;;  %v974_v61 = vld [vmem:[%s12143_s1 + $0x1d48] sm:$0xff]  ;;  %2407 = vmatprep.subr.mxu0 %v726_v56  ;;  %v717_v63 = vld [vmem:[%s12143_s1 + $0x1540] sm:$0xff] }
  0x77   :  { %2478 = vmatprep.subr.mxu1 %v982_v57  ;;  %v973_v0 = vld [vmem:[%s12143_s1 + $0x1d40] sm:$0xff]  ;;  %v34_v1 = vld [vmem:[%s12142_s0 + $0x8] sm:$0xff]  ;;  %2408 = vmatpush2.msra.mxu0 %v725_v58 }
  0x78   :  { %2479 = vmatpush2.msra.mxu1 %v981_v59  ;;  %v710_v2 = vld [vmem:[%s12143_s1 + $0x1508] sm:$0xff]  ;;  %2409 = vmatprep.subr.mxu0 %v718_v60  ;;  %v709_v5 = vld [vmem:[%s12143_s1 + $0x1500] sm:$0xff]  ;;  %v2148_v10 = vcombine.high %v34_v1, %v34_v1  ;;  %v5971_v16 = vrot.slane %v34_v1, %v5539_v52 }
  0x79   :  { %v966_v4 = vld [vmem:[%s12143_s1 + $0x1d08] sm:$0xff]  ;;  %2480 = vmatprep.subr.mxu1 %v974_v61  ;;  %v965_v6 = vld [vmem:[%s12143_s1 + $0x1d00] sm:$0xff]  ;;  %2410 = vmatpush2.msra.mxu0 %v717_v63 }
  0x7a   :  { %2481 = vmatpush2.msra.mxu1 %v973_v0  ;;  %v702_v7 = vld [vmem:[%s12143_s1 + $0x14c8] sm:$0xff]  ;;  %2411 = vmatprep.subr.mxu0 %v710_v2  ;;  %v701_v12 = vld [vmem:[%s12143_s1 + $0x14c0] sm:$0xff]  ;;  %v5986_v21 = vrot.slane %v2148_v10, %v5539_v52  ;;  %v6002_v26 = vcombine.high %v5971_v16, %v5971_v16 }
  0x7b   :  { %v958_v9 = vld [vmem:[%s12143_s1 + $0x1cc8] sm:$0xff]  ;;  %2482 = vmatprep.subr.mxu1 %v966_v4  ;;  %v957_v13 = vld [vmem:[%s12143_s1 + $0x1cc0] sm:$0xff]  ;;  %2412 = vmatpush2.msra.mxu0 %v709_v5 }
  0x7c   :  { %2483 = vmatpush2.msra.mxu1 %v965_v6  ;;  %v694_v14 = vld [vmem:[%s12143_s1 + $0x1488] sm:$0xff]  ;;  %2413 = vmatprep.subr.mxu0 %v702_v7  ;;  %v693_v17 = vld [vmem:[%s12143_s1 + $0x1480] sm:$0xff]  ;;  %v6012_v29 = vcombine.high %v5986_v21, %v5986_v21 }
  0x7d   :  { %v950_v15 = vld [vmem:[%s12143_s1 + $0x1c88] sm:$0xff]  ;;  %2484 = vmatprep.subr.mxu1 %v958_v9  ;;  %v949_v18 = vld [vmem:[%s12143_s1 + $0x1c80] sm:$0xff]  ;;  %2414 = vmatpush2.msra.mxu0 %v701_v12 }
  0x7e   :  { %2485 = vmatpush2.msra.mxu1 %v957_v13  ;;  %v686_v19 = vld [vmem:[%s12143_s1 + $0x1448] sm:$0xff]  ;;  %2415 = vmatprep.subr.mxu0 %v694_v14  ;;  %v685_v22 = vld [vmem:[%s12143_s1 + $0x1440] sm:$0xff] }
  0x7f   :  { %v942_v20 = vld [vmem:[%s12143_s1 + $0x1c48] sm:$0xff]  ;;  %2486 = vmatprep.subr.mxu1 %v950_v15  ;;  %v941_v23 = vld [vmem:[%s12143_s1 + $0x1c40] sm:$0xff]  ;;  %2416 = vmatpush2.msra.mxu0 %v693_v17 }
  0x80   :  { %2487 = vmatpush2.msra.mxu1 %v949_v18  ;;  %v678_v24 = vld [vmem:[%s12143_s1 + $0x1408] sm:$0xff]  ;;  %2417 = vmatprep.subr.mxu0 %v686_v19  ;;  %v677_v27 = vld [vmem:[%s12143_s1 + $0x1400] sm:$0xff] }
  0x81   :  { %v934_v25 = vld [vmem:[%s12143_s1 + $0x1c08] sm:$0xff]  ;;  %2488 = vmatprep.subr.mxu1 %v942_v20  ;;  %2418 = vmatpush2.msra.mxu0 %v685_v22  ;;  %v933_v28 = vld [vmem:[%s12143_s1 + $0x1c00] sm:$0xff] }
  0x82   :  { %2489 = vmatpush2.msra.mxu1 %v941_v23  ;;  %2419 = vmatprep.subr.mxu0 %v678_v24  ;;  %v1182_v30 = vld [vmem:[%s12143_s1 + $0x23c8] sm:$0xff]  ;;  %v1181_v32 = vld [vmem:[%s12143_s1 + $0x23c0] sm:$0xff] }
  0x83   :  { %2490 = vmatprep.subr.mxu1 %v934_v25  ;;  %2420 = vmatpush2.msra.mxu0 %v677_v27  ;;  %v1438_v31 = vld [vmem:[%s12143_s1 + $0x2bc8] sm:$0xff]  ;;  %v1437_v33 = vld [vmem:[%s12143_s1 + $0x2bc0] sm:$0xff] }
  0x84   :  { %2421 = vmatprep.mubr.f32.mxu0 %v6002_v26  ;;  %2491 = vmatpush2.msra.mxu1 %v933_v28  ;;  %v1174_v34 = vld [vmem:[%s12143_s1 + $0x2388] sm:$0xff]  ;;  %v1173_v36 = vld [vmem:[%s12143_s1 + $0x2380] sm:$0xff] }
  0x85   :  { %2422 = vmatmul.mubr.f32.vlgmr.msra.gmra.mxu0 %v5971_v16  ;;  %2492 = vmatprep.mubr.f32.mxu1 %v6012_v29  ;;  %v1430_v35 = vld [vmem:[%s12143_s1 + $0x2b88] sm:$0xff]  ;;  %v1429_v37 = vld [vmem:[%s12143_s1 + $0x2b80] sm:$0xff] }
  0x86   :  { %2499 = vmatprep.subr.mxu0 %v1182_v30  ;;  %2570 = vmatprep.subr.mxu1 %v1438_v31  ;;  %v1166_v38 = vld [vmem:[%s12143_s1 + $0x2348] sm:$0xff]  ;;  %v1165_v40 = vld [vmem:[%s12143_s1 + $0x2340] sm:$0xff] }
  0x87   :  { %2493 = vmatmul.mubr.f32.vlgmr.msra.gmra.mxu1 %v5986_v21  ;;  %2500 = vmatpush1.msra.mxu0 %v1181_v32  ;;  %v1422_v39 = vld [vmem:[%s12143_s1 + $0x2b48] sm:$0xff]  ;;  %v1421_v42 = vld [vmem:[%s12143_s1 + $0x2b40] sm:$0xff] }
  0x88   :  { %2571 = vmatpush1.msra.mxu1 %v1437_v33  ;;  %2501 = vmatprep.subr.mxu0 %v1174_v34  ;;  %v1158_v43 = vld [vmem:[%s12143_s1 + $0x2308] sm:$0xff]  ;;  %v1157_v45 = vld [vmem:[%s12143_s1 + $0x2300] sm:$0xff] }
  0x89   :  { %2572 = vmatprep.subr.mxu1 %v1430_v35  ;;  %2502 = vmatpush1.msra.mxu0 %v1173_v36  ;;  %v1414_v44 = vld [vmem:[%s12143_s1 + $0x2b08] sm:$0xff]  ;;  %v1413_v46 = vld [vmem:[%s12143_s1 + $0x2b00] sm:$0xff] }
  0x8a   :  { %2573 = vmatpush1.msra.mxu1 %v1429_v37  ;;  %2503 = vmatprep.subr.mxu0 %v1166_v38  ;;  %v1150_v47 = vld [vmem:[%s12143_s1 + $0x22c8] sm:$0xff]  ;;  %v1149_v49 = vld [vmem:[%s12143_s1 + $0x22c0] sm:$0xff] }
  0x8b   :  { %2574 = vmatprep.subr.mxu1 %v1422_v39  ;;  %2504 = vmatpush1.msra.mxu0 %v1165_v40  ;;  %v1406_v48 = vld [vmem:[%s12143_s1 + $0x2ac8] sm:$0xff]  ;;  %v1405_v50 = vld [vmem:[%s12143_s1 + $0x2ac0] sm:$0xff] }
  0x8c   :  { %2575 = vmatpush1.msra.mxu1 %v1421_v42  ;;  %2505 = vmatprep.subr.mxu0 %v1158_v43  ;;  %v1142_v51 = vld [vmem:[%s12143_s1 + $0x2288] sm:$0xff]  ;;  %v1141_v54 = vld [vmem:[%s12143_s1 + $0x2280] sm:$0xff] }
  0x8d   :  { %2576 = vmatprep.subr.mxu1 %v1414_v44  ;;  %2506 = vmatpush1.msra.mxu0 %v1157_v45  ;;  %v1398_v53 = vld [vmem:[%s12143_s1 + $0x2a88] sm:$0xff]  ;;  %v1397_v55 = vld [vmem:[%s12143_s1 + $0x2a80] sm:$0xff] }
  0x8e   :  { %2577 = vmatpush1.msra.mxu1 %v1413_v46  ;;  %2507 = vmatprep.subr.mxu0 %v1150_v47  ;;  %v1134_v56 = vld [vmem:[%s12143_s1 + $0x2248] sm:$0xff]  ;;  %v1133_v58 = vld [vmem:[%s12143_s1 + $0x2240] sm:$0xff] }
  0x8f   :  { %2578 = vmatprep.subr.mxu1 %v1406_v48  ;;  %2508 = vmatpush1.msra.mxu0 %v1149_v49  ;;  %v1390_v57 = vld [vmem:[%s12143_s1 + $0x2a48] sm:$0xff]  ;;  %v1389_v59 = vld [vmem:[%s12143_s1 + $0x2a40] sm:$0xff] }
  0x90   :  { %2579 = vmatpush1.msra.mxu1 %v1405_v50  ;;  %2509 = vmatprep.subr.mxu0 %v1142_v51  ;;  %v1126_v60 = vld [vmem:[%s12143_s1 + $0x2208] sm:$0xff]  ;;  %v1125_v63 = vld [vmem:[%s12143_s1 + $0x2200] sm:$0xff] }
  0x91   :  { %2580 = vmatprep.subr.mxu1 %v1398_v53  ;;  %2510 = vmatpush1.msra.mxu0 %v1141_v54  ;;  %v1382_v61 = vld [vmem:[%s12143_s1 + $0x2a08] sm:$0xff]  ;;  %v1381_v0 = vld [vmem:[%s12143_s1 + $0x2a00] sm:$0xff] }
  0x92   :  { %2581 = vmatpush1.msra.mxu1 %v1397_v55  ;;  %2511 = vmatprep.subr.mxu0 %v1134_v56  ;;  %v1118_v1 = vld [vmem:[%s12143_s1 + $0x21c8] sm:$0xff]  ;;  %v1117_v4 = vld [vmem:[%s12143_s1 + $0x21c0] sm:$0xff] }
  0x93   :  { %2582 = vmatprep.subr.mxu1 %v1390_v57  ;;  %2512 = vmatpush1.msra.mxu0 %v1133_v58  ;;  %v1374_v2 = vld [vmem:[%s12143_s1 + $0x29c8] sm:$0xff]  ;;  %v1373_v5 = vld [vmem:[%s12143_s1 + $0x29c0] sm:$0xff] }
  0x94   :  { %2583 = vmatpush1.msra.mxu1 %v1389_v59  ;;  %2513 = vmatprep.subr.mxu0 %v1126_v60  ;;  %v1110_v6 = vld [vmem:[%s12143_s1 + $0x2188] sm:$0xff]  ;;  %v1109_v9 = vld [vmem:[%s12143_s1 + $0x2180] sm:$0xff] }
  0x95   :  { %2584 = vmatprep.subr.mxu1 %v1382_v61  ;;  %2514 = vmatpush1.msra.mxu0 %v1125_v63  ;;  %v1366_v7 = vld [vmem:[%s12143_s1 + $0x2988] sm:$0xff]  ;;  %v1365_v10 = vld [vmem:[%s12143_s1 + $0x2980] sm:$0xff] }
  0x96   :  { %2585 = vmatpush1.msra.mxu1 %v1381_v0  ;;  %2515 = vmatprep.subr.mxu0 %v1118_v1  ;;  %v1102_v12 = vld [vmem:[%s12143_s1 + $0x2148] sm:$0xff]  ;;  %v1101_v14 = vld [vmem:[%s12143_s1 + $0x2140] sm:$0xff] }
  0x97   :  { %2586 = vmatprep.subr.mxu1 %v1374_v2  ;;  %2516 = vmatpush1.msra.mxu0 %v1117_v4  ;;  %v1358_v13 = vld [vmem:[%s12143_s1 + $0x2948] sm:$0xff]  ;;  %v1357_v15 = vld [vmem:[%s12143_s1 + $0x2940] sm:$0xff] }
  0x98   :  { %2587 = vmatpush1.msra.mxu1 %v1373_v5  ;;  %2517 = vmatprep.subr.mxu0 %v1110_v6  ;;  %v1094_v17 = vld [vmem:[%s12143_s1 + $0x2108] sm:$0xff]  ;;  %v1093_v19 = vld [vmem:[%s12143_s1 + $0x2100] sm:$0xff] }
  0x99   :  { %2588 = vmatprep.subr.mxu1 %v1366_v7  ;;  %2518 = vmatpush1.msra.mxu0 %v1109_v9  ;;  %v1350_v18 = vld [vmem:[%s12143_s1 + $0x2908] sm:$0xff]  ;;  %v1349_v20 = vld [vmem:[%s12143_s1 + $0x2900] sm:$0xff] }
  0x9a   :  { %2589 = vmatpush1.msra.mxu1 %v1365_v10  ;;  %2519 = vmatprep.subr.mxu0 %v1102_v12  ;;  %v1086_v22 = vld [vmem:[%s12143_s1 + $0x20c8] sm:$0xff]  ;;  %v1085_v24 = vld [vmem:[%s12143_s1 + $0x20c0] sm:$0xff] }
  0x9b   :  { %2590 = vmatprep.subr.mxu1 %v1358_v13  ;;  %2520 = vmatpush1.msra.mxu0 %v1101_v14  ;;  %v1342_v23 = vld [vmem:[%s12143_s1 + $0x28c8] sm:$0xff]  ;;  %v1341_v25 = vld [vmem:[%s12143_s1 + $0x28c0] sm:$0xff] }
  0x9c   :  { %2591 = vmatpush1.msra.mxu1 %v1357_v15  ;;  %2521 = vmatprep.subr.mxu0 %v1094_v17  ;;  %v1078_v27 = vld [vmem:[%s12143_s1 + $0x2088] sm:$0xff]  ;;  %v1077_v30 = vld [vmem:[%s12143_s1 + $0x2080] sm:$0xff] }
  0x9d   :  { %2592 = vmatprep.subr.mxu1 %v1350_v18  ;;  %2522 = vmatpush1.msra.mxu0 %v1093_v19  ;;  %v1334_v28 = vld [vmem:[%s12143_s1 + $0x2888] sm:$0xff]  ;;  %v1333_v31 = vld [vmem:[%s12143_s1 + $0x2880] sm:$0xff] }
  0x9e   :  { %2593 = vmatpush1.msra.mxu1 %v1349_v20  ;;  %2523 = vmatprep.subr.mxu0 %v1086_v22  ;;  %v1070_v32 = vld [vmem:[%s12143_s1 + $0x2048] sm:$0xff]  ;;  %v1069_v34 = vld [vmem:[%s12143_s1 + $0x2040] sm:$0xff] }
  0x9f   :  { %2594 = vmatprep.subr.mxu1 %v1342_v23  ;;  %2524 = vmatpush1.msra.mxu0 %v1085_v24  ;;  %v1326_v33 = vld [vmem:[%s12143_s1 + $0x2848] sm:$0xff]  ;;  %v1325_v35 = vld [vmem:[%s12143_s1 + $0x2840] sm:$0xff] }
  0xa0   :  { %2595 = vmatpush1.msra.mxu1 %v1341_v25  ;;  %2525 = vmatprep.subr.mxu0 %v1078_v27  ;;  %v1062_v36 = vld [vmem:[%s12143_s1 + $0x2008] sm:$0xff]  ;;  %v1061_v38 = vld [vmem:[%s12143_s1 + $0x2000] sm:$0xff] }
  0xa1   :  { %2596 = vmatprep.subr.mxu1 %v1334_v28  ;;  %2526 = vmatpush1.msra.mxu0 %v1077_v30  ;;  %v1318_v37 = vld [vmem:[%s12143_s1 + $0x2808] sm:$0xff]  ;;  %v1317_v39 = vld [vmem:[%s12143_s1 + $0x2800] sm:$0xff]  ;;  %v35_v30 = vld [vmem:[%s12142_s0 + $0x10] sm:$0xff] }
  0xa2   :  { %2597 = vmatpush1.msra.mxu1 %v1333_v31  ;;  %2527 = vmatprep.subr.mxu0 %v1070_v32  ;;  %v1310_v40 = vld [vmem:[%s12143_s1 + $0x27c8] sm:$0xff]  ;;  %v1309_v43 = vld [vmem:[%s12143_s1 + $0x27c0] sm:$0xff] }
  0xa3   :  { %2598 = vmatprep.subr.mxu1 %v1326_v33  ;;  %2528 = vmatpush1.msra.mxu0 %v1069_v34  ;;  %v1566_v42 = vld [vmem:[%s12143_s1 + $0x2fc8] sm:$0xff]  ;;  %v1565_v44 = vld [vmem:[%s12143_s1 + $0x2fc0] sm:$0xff] }
  0xa4   :  { %2599 = vmatpush1.msra.mxu1 %v1325_v35  ;;  %2529 = vmatprep.subr.mxu0 %v1062_v36  ;;  %v1302_v45 = vld [vmem:[%s12143_s1 + $0x2788] sm:$0xff]  ;;  %v1301_v47 = vld [vmem:[%s12143_s1 + $0x2780] sm:$0xff] }
  0xa5   :  { %2600 = vmatprep.subr.mxu1 %v1318_v37  ;;  %2530 = vmatpush1.msra.mxu0 %v1061_v38  ;;  %v1558_v46 = vld [vmem:[%s12143_s1 + $0x2f88] sm:$0xff]  ;;  %v1557_v48 = vld [vmem:[%s12143_s1 + $0x2f80] sm:$0xff]  ;;  %v2165_v37 = vcombine.high %v35_v30, %v35_v30 }
  0xa6   :  { %2601 = vmatpush1.msra.mxu1 %v1317_v39  ;;  %2531 = vmatprep.subr.mxu0 %v1310_v40  ;;  %v1294_v49 = vld [vmem:[%s12143_s1 + $0x2748] sm:$0xff]  ;;  %v1293_v51 = vld [vmem:[%s12143_s1 + $0x2740] sm:$0xff] }
  0xa7   :  { %2602 = vmatprep.subr.mxu1 %v1566_v42  ;;  %2532 = vmatpush2.msra.mxu0 %v1309_v43  ;;  %v1550_v50 = vld [vmem:[%s12143_s1 + $0x2f48] sm:$0xff]  ;;  %v1549_v53 = vld [vmem:[%s12143_s1 + $0x2f40] sm:$0xff]  ;;  %v6376_v43 = vrot.slane %v35_v30, %v5539_v52 }
  0xa8   :  { %2603 = vmatpush2.msra.mxu1 %v1565_v44  ;;  %2533 = vmatprep.subr.mxu0 %v1302_v45  ;;  %v1286_v54 = vld [vmem:[%s12143_s1 + $0x2708] sm:$0xff]  ;;  %v1285_v56 = vld [vmem:[%s12143_s1 + $0x2700] sm:$0xff] }
  0xa9   :  { %2604 = vmatprep.subr.mxu1 %v1558_v46  ;;  %2534 = vmatpush2.msra.mxu0 %v1301_v47  ;;  %v1542_v55 = vld [vmem:[%s12143_s1 + $0x2f08] sm:$0xff]  ;;  %v1541_v57 = vld [vmem:[%s12143_s1 + $0x2f00] sm:$0xff] }
  0xaa   :  { %2605 = vmatpush2.msra.mxu1 %v1557_v48  ;;  %2535 = vmatprep.subr.mxu0 %v1294_v49  ;;  %v1278_v58 = vld [vmem:[%s12143_s1 + $0x26c8] sm:$0xff]  ;;  %v1277_v60 = vld [vmem:[%s12143_s1 + $0x26c0] sm:$0xff]  ;;  %v6391_v48 = vrot.slane %v2165_v37, %v5539_v52 }
  0xab   :  { %2606 = vmatprep.subr.mxu1 %v1550_v50  ;;  %2536 = vmatpush2.msra.mxu0 %v1293_v51  ;;  %v1534_v59 = vld [vmem:[%s12143_s1 + $0x2ec8] sm:$0xff]  ;;  %v1533_v61 = vld [vmem:[%s12143_s1 + $0x2ec0] sm:$0xff] }
  0xac   :  { %2607 = vmatpush2.msra.mxu1 %v1549_v53  ;;  %2537 = vmatprep.subr.mxu0 %v1286_v54  ;;  %v1270_v63 = vld [vmem:[%s12143_s1 + $0x2688] sm:$0xff]  ;;  %v1269_v1 = vld [vmem:[%s12143_s1 + $0x2680] sm:$0xff]  ;;  %v6407_v54 = vcombine.high %v6376_v43, %v6376_v43 }
  0xad   :  { %2608 = vmatprep.subr.mxu1 %v1542_v55  ;;  %2538 = vmatpush2.msra.mxu0 %v1285_v56  ;;  %v1526_v0 = vld [vmem:[%s12143_s1 + $0x2e88] sm:$0xff]  ;;  %v1525_v2 = vld [vmem:[%s12143_s1 + $0x2e80] sm:$0xff] }
  0xae   :  { %2609 = vmatpush2.msra.mxu1 %v1541_v57  ;;  %2539 = vmatprep.subr.mxu0 %v1278_v58  ;;  %v1262_v4 = vld [vmem:[%s12143_s1 + $0x2648] sm:$0xff]  ;;  %v1261_v6 = vld [vmem:[%s12143_s1 + $0x2640] sm:$0xff]  ;;  %v6417_v57 = vcombine.high %v6391_v48, %v6391_v48 }
  0xaf   :  { %2610 = vmatprep.subr.mxu1 %v1534_v59  ;;  %2540 = vmatpush2.msra.mxu0 %v1277_v60  ;;  %v1518_v5 = vld [vmem:[%s12143_s1 + $0x2e48] sm:$0xff]  ;;  %v1517_v7 = vld [vmem:[%s12143_s1 + $0x2e40] sm:$0xff] }
  0xb0   :  { %2611 = vmatpush2.msra.mxu1 %v1533_v61  ;;  %2541 = vmatprep.subr.mxu0 %v1270_v63  ;;  %v1254_v9 = vld [vmem:[%s12143_s1 + $0x2608] sm:$0xff]  ;;  %v1253_v12 = vld [vmem:[%s12143_s1 + $0x2600] sm:$0xff] }
  0xb1   :  { %2612 = vmatprep.subr.mxu1 %v1526_v0  ;;  %2542 = vmatpush2.msra.mxu0 %v1269_v1  ;;  %v1510_v10 = vld [vmem:[%s12143_s1 + $0x2e08] sm:$0xff]  ;;  %v1509_v13 = vld [vmem:[%s12143_s1 + $0x2e00] sm:$0xff] }
  0xb2   :  { %2613 = vmatpush2.msra.mxu1 %v1525_v2  ;;  %2543 = vmatprep.subr.mxu0 %v1262_v4  ;;  %v1246_v14 = vld [vmem:[%s12143_s1 + $0x25c8] sm:$0xff]  ;;  %v1245_v17 = vld [vmem:[%s12143_s1 + $0x25c0] sm:$0xff] }
  0xb3   :  { %2614 = vmatprep.subr.mxu1 %v1518_v5  ;;  %2544 = vmatpush2.msra.mxu0 %v1261_v6  ;;  %v1502_v15 = vld [vmem:[%s12143_s1 + $0x2dc8] sm:$0xff]  ;;  %v1501_v18 = vld [vmem:[%s12143_s1 + $0x2dc0] sm:$0xff] }
  0xb4   :  { %2615 = vmatpush2.msra.mxu1 %v1517_v7  ;;  %2545 = vmatprep.subr.mxu0 %v1254_v9  ;;  %v1238_v19 = vld [vmem:[%s12143_s1 + $0x2588] sm:$0xff]  ;;  %v1237_v22 = vld [vmem:[%s12143_s1 + $0x2580] sm:$0xff] }
  0xb5   :  { %2616 = vmatprep.subr.mxu1 %v1510_v10  ;;  %2546 = vmatpush2.msra.mxu0 %v1253_v12  ;;  %v1494_v20 = vld [vmem:[%s12143_s1 + $0x2d88] sm:$0xff]  ;;  %v1493_v23 = vld [vmem:[%s12143_s1 + $0x2d80] sm:$0xff] }
  0xb6   :  { %2617 = vmatpush2.msra.mxu1 %v1509_v13  ;;  %2547 = vmatprep.subr.mxu0 %v1246_v14  ;;  %v1230_v24 = vld [vmem:[%s12143_s1 + $0x2548] sm:$0xff]  ;;  %v1229_v27 = vld [vmem:[%s12143_s1 + $0x2540] sm:$0xff] }
  0xb7   :  { %2618 = vmatprep.subr.mxu1 %v1502_v15  ;;  %2548 = vmatpush2.msra.mxu0 %v1245_v17  ;;  %v1486_v25 = vld [vmem:[%s12143_s1 + $0x2d48] sm:$0xff]  ;;  %v1485_v28 = vld [vmem:[%s12143_s1 + $0x2d40] sm:$0xff] }
  0xb8   :  { %2619 = vmatpush2.msra.mxu1 %v1501_v18  ;;  %2549 = vmatprep.subr.mxu0 %v1238_v19  ;;  %v1222_v31 = vld [vmem:[%s12143_s1 + $0x2508] sm:$0xff]  ;;  %v1221_v33 = vld [vmem:[%s12143_s1 + $0x2500] sm:$0xff] }
  0xb9   :  { %2620 = vmatprep.subr.mxu1 %v1494_v20  ;;  %2550 = vmatpush2.msra.mxu0 %v1237_v22  ;;  %v1478_v32 = vld [vmem:[%s12143_s1 + $0x2d08] sm:$0xff]  ;;  %v1477_v34 = vld [vmem:[%s12143_s1 + $0x2d00] sm:$0xff] }
  0xba   :  { %2621 = vmatpush2.msra.mxu1 %v1493_v23  ;;  %2551 = vmatprep.subr.mxu0 %v1230_v24  ;;  %v1214_v35 = vld [vmem:[%s12143_s1 + $0x24c8] sm:$0xff]  ;;  %v1213_v38 = vld [vmem:[%s12143_s1 + $0x24c0] sm:$0xff] }
  0xbb   :  { %2622 = vmatprep.subr.mxu1 %v1486_v25  ;;  %2552 = vmatpush2.msra.mxu0 %v1229_v27  ;;  %v1470_v36 = vld [vmem:[%s12143_s1 + $0x2cc8] sm:$0xff]  ;;  %v1469_v39 = vld [vmem:[%s12143_s1 + $0x2cc0] sm:$0xff] }
  0xbc   :  { %2623 = vmatpush2.msra.mxu1 %v1485_v28  ;;  %2553 = vmatprep.subr.mxu0 %v1222_v31  ;;  %v1206_v40 = vld [vmem:[%s12143_s1 + $0x2488] sm:$0xff]  ;;  %v1205_v44 = vld [vmem:[%s12143_s1 + $0x2480] sm:$0xff] }
  0xbd   :  { %2624 = vmatprep.subr.mxu1 %v1478_v32  ;;  %2554 = vmatpush2.msra.mxu0 %v1221_v33  ;;  %v1462_v42 = vld [vmem:[%s12143_s1 + $0x2c88] sm:$0xff]  ;;  %v1461_v45 = vld [vmem:[%s12143_s1 + $0x2c80] sm:$0xff] }
  0xbe   :  { %2625 = vmatpush2.msra.mxu1 %v1477_v34  ;;  %2555 = vmatprep.subr.mxu0 %v1214_v35  ;;  %v1198_v46 = vld [vmem:[%s12143_s1 + $0x2448] sm:$0xff]  ;;  %v1197_v49 = vld [vmem:[%s12143_s1 + $0x2440] sm:$0xff] }
  0xbf   :  { %2626 = vmatprep.subr.mxu1 %v1470_v36  ;;  %2556 = vmatpush2.msra.mxu0 %v1213_v38  ;;  %v1454_v47 = vld [vmem:[%s12143_s1 + $0x2c48] sm:$0xff]  ;;  %v1453_v50 = vld [vmem:[%s12143_s1 + $0x2c40] sm:$0xff] }
  0xc0   :  { %2627 = vmatpush2.msra.mxu1 %v1469_v39  ;;  %2557 = vmatprep.subr.mxu0 %v1206_v40  ;;  %v1190_v51 = vld [vmem:[%s12143_s1 + $0x2408] sm:$0xff]  ;;  %v1189_v55 = vld [vmem:[%s12143_s1 + $0x2400] sm:$0xff] }
  0xc1   :  { %2628 = vmatprep.subr.mxu1 %v1462_v42  ;;  %2558 = vmatpush2.msra.mxu0 %v1205_v44  ;;  %v1446_v53 = vld [vmem:[%s12143_s1 + $0x2c08] sm:$0xff]  ;;  %v1445_v56 = vld [vmem:[%s12143_s1 + $0x2c00] sm:$0xff] }
  0xc2   :  { %2629 = vmatpush2.msra.mxu1 %v1461_v45  ;;  %2559 = vmatprep.subr.mxu0 %v1198_v46  ;;  %v1694_v58 = vld [vmem:[%s12143_s1 + $0x33c8] sm:$0xff]  ;;  %v1693_v60 = vld [vmem:[%s12143_s1 + $0x33c0] sm:$0xff] }
  0xc3   :  { %2630 = vmatprep.subr.mxu1 %v1454_v47  ;;  %2560 = vmatpush2.msra.mxu0 %v1197_v49  ;;  %v1950_v59 = vld [vmem:[%s12143_s1 + $0x3bc8] sm:$0xff]  ;;  %v1949_v61 = vld [vmem:[%s12143_s1 + $0x3bc0] sm:$0xff] }
  0xc4   :  { %2631 = vmatpush2.msra.mxu1 %v1453_v50  ;;  %2561 = vmatprep.subr.mxu0 %v1190_v51  ;;  %v1686_v63 = vld [vmem:[%s12143_s1 + $0x3388] sm:$0xff]  ;;  %v1685_v1 = vld [vmem:[%s12143_s1 + $0x3380] sm:$0xff] }
  0xc5   :  { %2632 = vmatprep.subr.mxu1 %v1446_v53  ;;  %2562 = vmatpush2.msra.mxu0 %v1189_v55  ;;  %v1942_v0 = vld [vmem:[%s12143_s1 + $0x3b88] sm:$0xff]  ;;  %v1941_v2 = vld [vmem:[%s12143_s1 + $0x3b80] sm:$0xff] }
  0xc6   :  { %2563 = vmatprep.mubr.f32.mxu0 %v6407_v54  ;;  %2633 = vmatpush2.msra.mxu1 %v1445_v56  ;;  %v1678_v4 = vld [vmem:[%s12143_s1 + $0x3348] sm:$0xff]  ;;  %v1677_v6 = vld [vmem:[%s12143_s1 + $0x3340] sm:$0xff] }
  0xc7   :  { %2564 = vmatmul.mubr.f32.vlgmr.msra.gmra.mxu0 %v6376_v43  ;;  %2634 = vmatprep.mubr.f32.mxu1 %v6417_v57  ;;  %v1934_v5 = vld [vmem:[%s12143_s1 + $0x3b48] sm:$0xff]  ;;  %v1933_v7 = vld [vmem:[%s12143_s1 + $0x3b40] sm:$0xff] }
  0xc8   :  { %2641 = vmatprep.subr.mxu0 %v1694_v58  ;;  %2712 = vmatprep.subr.mxu1 %v1950_v59  ;;  %v1670_v9 = vld [vmem:[%s12143_s1 + $0x3308] sm:$0xff]  ;;  %v1669_v12 = vld [vmem:[%s12143_s1 + $0x3300] sm:$0xff] }
  0xc9   :  { %2635 = vmatmul.mubr.f32.vlgmr.msra.gmra.mxu1 %v6391_v48  ;;  %2642 = vmatpush1.msra.mxu0 %v1693_v60  ;;  %v1926_v10 = vld [vmem:[%s12143_s1 + $0x3b08] sm:$0xff]  ;;  %v1925_v13 = vld [vmem:[%s12143_s1 + $0x3b00] sm:$0xff] }
  0xca   :  { %2713 = vmatpush1.msra.mxu1 %v1949_v61  ;;  %2643 = vmatprep.subr.mxu0 %v1686_v63  ;;  %v1662_v14 = vld [vmem:[%s12143_s1 + $0x32c8] sm:$0xff]  ;;  %v1661_v17 = vld [vmem:[%s12143_s1 + $0x32c0] sm:$0xff] }
  0xcb   :  { %2714 = vmatprep.subr.mxu1 %v1942_v0  ;;  %2644 = vmatpush1.msra.mxu0 %v1685_v1  ;;  %v1918_v15 = vld [vmem:[%s12143_s1 + $0x3ac8] sm:$0xff]  ;;  %v1917_v18 = vld [vmem:[%s12143_s1 + $0x3ac0] sm:$0xff] }
  0xcc   :  { %2715 = vmatpush1.msra.mxu1 %v1941_v2  ;;  %2645 = vmatprep.subr.mxu0 %v1678_v4  ;;  %v1654_v19 = vld [vmem:[%s12143_s1 + $0x3288] sm:$0xff]  ;;  %v1653_v22 = vld [vmem:[%s12143_s1 + $0x3280] sm:$0xff] }
  0xcd   :  { %2716 = vmatprep.subr.mxu1 %v1934_v5  ;;  %2646 = vmatpush1.msra.mxu0 %v1677_v6  ;;  %v1910_v20 = vld [vmem:[%s12143_s1 + $0x3a88] sm:$0xff]  ;;  %v1909_v23 = vld [vmem:[%s12143_s1 + $0x3a80] sm:$0xff] }
  0xce   :  { %2717 = vmatpush1.msra.mxu1 %v1933_v7  ;;  %2647 = vmatprep.subr.mxu0 %v1670_v9  ;;  %v1646_v24 = vld [vmem:[%s12143_s1 + $0x3248] sm:$0xff]  ;;  %v1645_v27 = vld [vmem:[%s12143_s1 + $0x3240] sm:$0xff] }
  0xcf   :  { %2718 = vmatprep.subr.mxu1 %v1926_v10  ;;  %2648 = vmatpush1.msra.mxu0 %v1669_v12  ;;  %v1902_v25 = vld [vmem:[%s12143_s1 + $0x3a48] sm:$0xff]  ;;  %v1901_v28 = vld [vmem:[%s12143_s1 + $0x3a40] sm:$0xff] }
  0xd0   :  { %2719 = vmatpush1.msra.mxu1 %v1925_v13  ;;  %2649 = vmatprep.subr.mxu0 %v1662_v14  ;;  %v1638_v30 = vld [vmem:[%s12143_s1 + $0x3208] sm:$0xff]  ;;  %v1637_v32 = vld [vmem:[%s12143_s1 + $0x3200] sm:$0xff] }
  0xd1   :  { %2720 = vmatprep.subr.mxu1 %v1918_v15  ;;  %2650 = vmatpush1.msra.mxu0 %v1661_v17  ;;  %v1894_v31 = vld [vmem:[%s12143_s1 + $0x3a08] sm:$0xff]  ;;  %v1893_v33 = vld [vmem:[%s12143_s1 + $0x3a00] sm:$0xff] }
  0xd2   :  { %2721 = vmatpush1.msra.mxu1 %v1917_v18  ;;  %2651 = vmatprep.subr.mxu0 %v1654_v19  ;;  %v1630_v34 = vld [vmem:[%s12143_s1 + $0x31c8] sm:$0xff]  ;;  %v1629_v36 = vld [vmem:[%s12143_s1 + $0x31c0] sm:$0xff] }
  0xd3   :  { %2722 = vmatprep.subr.mxu1 %v1910_v20  ;;  %2652 = vmatpush1.msra.mxu0 %v1653_v22  ;;  %v1886_v35 = vld [vmem:[%s12143_s1 + $0x39c8] sm:$0xff]  ;;  %v1885_v37 = vld [vmem:[%s12143_s1 + $0x39c0] sm:$0xff] }
  0xd4   :  { %2723 = vmatpush1.msra.mxu1 %v1909_v23  ;;  %2653 = vmatprep.subr.mxu0 %v1646_v24  ;;  %v1622_v38 = vld [vmem:[%s12143_s1 + $0x3188] sm:$0xff]  ;;  %v1621_v40 = vld [vmem:[%s12143_s1 + $0x3180] sm:$0xff] }
  0xd5   :  { %2724 = vmatprep.subr.mxu1 %v1902_v25  ;;  %2654 = vmatpush1.msra.mxu0 %v1645_v27  ;;  %v1878_v39 = vld [vmem:[%s12143_s1 + $0x3988] sm:$0xff]  ;;  %v1877_v42 = vld [vmem:[%s12143_s1 + $0x3980] sm:$0xff] }
  0xd6   :  { %2725 = vmatpush1.msra.mxu1 %v1901_v28  ;;  %2655 = vmatprep.subr.mxu0 %v1638_v30  ;;  %v1614_v44 = vld [vmem:[%s12143_s1 + $0x3148] sm:$0xff]  ;;  %v1613_v46 = vld [vmem:[%s12143_s1 + $0x3140] sm:$0xff] }
  0xd7   :  { %2726 = vmatprep.subr.mxu1 %v1894_v31  ;;  %2656 = vmatpush1.msra.mxu0 %v1637_v32  ;;  %v1870_v45 = vld [vmem:[%s12143_s1 + $0x3948] sm:$0xff]  ;;  %v1869_v47 = vld [vmem:[%s12143_s1 + $0x3940] sm:$0xff] }
  0xd8   :  { %2727 = vmatpush1.msra.mxu1 %v1893_v33  ;;  %2657 = vmatprep.subr.mxu0 %v1630_v34  ;;  %v1606_v49 = vld [vmem:[%s12143_s1 + $0x3108] sm:$0xff]  ;;  %v1605_v51 = vld [vmem:[%s12143_s1 + $0x3100] sm:$0xff] }
  0xd9   :  { %2728 = vmatprep.subr.mxu1 %v1886_v35  ;;  %2658 = vmatpush1.msra.mxu0 %v1629_v36  ;;  %v1862_v50 = vld [vmem:[%s12143_s1 + $0x3908] sm:$0xff]  ;;  %v1861_v53 = vld [vmem:[%s12143_s1 + $0x3900] sm:$0xff] }
  0xda   :  { %2729 = vmatpush1.msra.mxu1 %v1885_v37  ;;  %2659 = vmatprep.subr.mxu0 %v1622_v38  ;;  %v1598_v55 = vld [vmem:[%s12143_s1 + $0x30c8] sm:$0xff]  ;;  %v1597_v58 = vld [vmem:[%s12143_s1 + $0x30c0] sm:$0xff] }
  0xdb   :  { %2730 = vmatprep.subr.mxu1 %v1878_v39  ;;  %2660 = vmatpush1.msra.mxu0 %v1621_v40  ;;  %v1854_v56 = vld [vmem:[%s12143_s1 + $0x38c8] sm:$0xff]  ;;  %v1853_v59 = vld [vmem:[%s12143_s1 + $0x38c0] sm:$0xff] }
  0xdc   :  { %2731 = vmatpush1.msra.mxu1 %v1877_v42  ;;  %2661 = vmatprep.subr.mxu0 %v1614_v44  ;;  %v1590_v60 = vld [vmem:[%s12143_s1 + $0x3088] sm:$0xff]  ;;  %v1589_v63 = vld [vmem:[%s12143_s1 + $0x3080] sm:$0xff] }
  0xdd   :  { %2732 = vmatprep.subr.mxu1 %v1870_v45  ;;  %2662 = vmatpush1.msra.mxu0 %v1613_v46  ;;  %v1846_v61 = vld [vmem:[%s12143_s1 + $0x3888] sm:$0xff]  ;;  %v1845_v0 = vld [vmem:[%s12143_s1 + $0x3880] sm:$0xff] }
  0xde   :  { %2733 = vmatpush1.msra.mxu1 %v1869_v47  ;;  %2663 = vmatprep.subr.mxu0 %v1606_v49  ;;  %v1582_v1 = vld [vmem:[%s12143_s1 + $0x3048] sm:$0xff]  ;;  %v1581_v4 = vld [vmem:[%s12143_s1 + $0x3040] sm:$0xff] }
  0xdf   :  { %2734 = vmatprep.subr.mxu1 %v1862_v50  ;;  %2664 = vmatpush1.msra.mxu0 %v1605_v51  ;;  %v1838_v2 = vld [vmem:[%s12143_s1 + $0x3848] sm:$0xff]  ;;  %v1837_v5 = vld [vmem:[%s12143_s1 + $0x3840] sm:$0xff] }
  0xe0   :  { %2735 = vmatpush1.msra.mxu1 %v1861_v53  ;;  %2665 = vmatprep.subr.mxu0 %v1598_v55  ;;  %v1574_v6 = vld [vmem:[%s12143_s1 + $0x3008] sm:$0xff]  ;;  %v1573_v9 = vld [vmem:[%s12143_s1 + $0x3000] sm:$0xff] }
  0xe1   :  { %2736 = vmatprep.subr.mxu1 %v1854_v56  ;;  %2666 = vmatpush1.msra.mxu0 %v1597_v58  ;;  %v1830_v7 = vld [vmem:[%s12143_s1 + $0x3808] sm:$0xff]  ;;  %v1829_v10 = vld [vmem:[%s12143_s1 + $0x3800] sm:$0xff] }
  0xe2   :  { %2737 = vmatpush1.msra.mxu1 %v1853_v59  ;;  %2667 = vmatprep.subr.mxu0 %v1590_v60  ;;  %v1822_v12 = vld [vmem:[%s12143_s1 + $0x37c8] sm:$0xff]  ;;  %v1821_v14 = vld [vmem:[%s12143_s1 + $0x37c0] sm:$0xff] }
  0xe3   :  { %2738 = vmatprep.subr.mxu1 %v1846_v61  ;;  %2668 = vmatpush1.msra.mxu0 %v1589_v63  ;;  %v2078_v13 = vld [vmem:[%s12143_s1 + $0x3fc8] sm:$0xff]  ;;  %v2077_v15 = vld [vmem:[%s12143_s1 + $0x3fc0] sm:$0xff] }
  0xe4   :  { %2739 = vmatpush1.msra.mxu1 %v1845_v0  ;;  %2669 = vmatprep.subr.mxu0 %v1582_v1  ;;  %v1814_v17 = vld [vmem:[%s12143_s1 + $0x3788] sm:$0xff]  ;;  %v1813_v19 = vld [vmem:[%s12143_s1 + $0x3780] sm:$0xff] }
  0xe5   :  { %2740 = vmatprep.subr.mxu1 %v1838_v2  ;;  %2670 = vmatpush1.msra.mxu0 %v1581_v4  ;;  %v2070_v18 = vld [vmem:[%s12143_s1 + $0x3f88] sm:$0xff]  ;;  %v2069_v20 = vld [vmem:[%s12143_s1 + $0x3f80] sm:$0xff] }
  0xe6   :  { %2741 = vmatpush1.msra.mxu1 %v1837_v5  ;;  %2671 = vmatprep.subr.mxu0 %v1574_v6  ;;  %v1806_v22 = vld [vmem:[%s12143_s1 + $0x3748] sm:$0xff]  ;;  %v1805_v24 = vld [vmem:[%s12143_s1 + $0x3740] sm:$0xff] }
  0xe7   :  { %2742 = vmatprep.subr.mxu1 %v1830_v7  ;;  %2672 = vmatpush1.msra.mxu0 %v1573_v9  ;;  %v2062_v23 = vld [vmem:[%s12143_s1 + $0x3f48] sm:$0xff]  ;;  %v2061_v25 = vld [vmem:[%s12143_s1 + $0x3f40] sm:$0xff] }
  0xe8   :  { %2743 = vmatpush1.msra.mxu1 %v1829_v10  ;;  %2673 = vmatprep.subr.mxu0 %v1822_v12  ;;  %v1798_v27 = vld [vmem:[%s12143_s1 + $0x3708] sm:$0xff]  ;;  %v1797_v30 = vld [vmem:[%s12143_s1 + $0x3700] sm:$0xff] }
  0xe9   :  { %2744 = vmatprep.subr.mxu1 %v2078_v13  ;;  %2674 = vmatpush2.msra.mxu0 %v1821_v14  ;;  %v2054_v28 = vld [vmem:[%s12143_s1 + $0x3f08] sm:$0xff]  ;;  %v2053_v31 = vld [vmem:[%s12143_s1 + $0x3f00] sm:$0xff] }
  0xea   :  { %2745 = vmatpush2.msra.mxu1 %v2077_v15  ;;  %2675 = vmatprep.subr.mxu0 %v1814_v17  ;;  %v1790_v32 = vld [vmem:[%s12143_s1 + $0x36c8] sm:$0xff]  ;;  %v1789_v34 = vld [vmem:[%s12143_s1 + $0x36c0] sm:$0xff] }
  0xeb   :  { %2746 = vmatprep.subr.mxu1 %v2070_v18  ;;  %2676 = vmatpush2.msra.mxu0 %v1813_v19  ;;  %v2046_v33 = vld [vmem:[%s12143_s1 + $0x3ec8] sm:$0xff]  ;;  %v2045_v35 = vld [vmem:[%s12143_s1 + $0x3ec0] sm:$0xff] }
  0xec   :  { %2747 = vmatpush2.msra.mxu1 %v2069_v20  ;;  %2677 = vmatprep.subr.mxu0 %v1806_v22  ;;  %v1782_v36 = vld [vmem:[%s12143_s1 + $0x3688] sm:$0xff]  ;;  %v1781_v38 = vld [vmem:[%s12143_s1 + $0x3680] sm:$0xff] }
  0xed   :  { %2748 = vmatprep.subr.mxu1 %v2062_v23  ;;  %2678 = vmatpush2.msra.mxu0 %v1805_v24  ;;  %v2038_v37 = vld [vmem:[%s12143_s1 + $0x3e88] sm:$0xff]  ;;  %v2037_v39 = vld [vmem:[%s12143_s1 + $0x3e80] sm:$0xff] }
  0xee   :  { %2749 = vmatpush2.msra.mxu1 %v2061_v25  ;;  %2679 = vmatprep.subr.mxu0 %v1798_v27  ;;  %v1774_v40 = vld [vmem:[%s12143_s1 + $0x3648] sm:$0xff]  ;;  %v1773_v44 = vld [vmem:[%s12143_s1 + $0x3640] sm:$0xff] }
  0xef   :  { %2750 = vmatprep.subr.mxu1 %v2054_v28  ;;  %2680 = vmatpush2.msra.mxu0 %v1797_v30  ;;  %v2030_v42 = vld [vmem:[%s12143_s1 + $0x3e48] sm:$0xff]  ;;  %v2029_v45 = vld [vmem:[%s12143_s1 + $0x3e40] sm:$0xff] }
  0xf0   :  { %2751 = vmatpush2.msra.mxu1 %v2053_v31  ;;  %2681 = vmatprep.subr.mxu0 %v1790_v32 }
  0xf1   :  { %2752 = vmatprep.subr.mxu1 %v2046_v33  ;;  %2682 = vmatpush2.msra.mxu0 %v1789_v34 }
  0xf2   :  { %2753 = vmatpush2.msra.mxu1 %v2045_v35  ;;  %2683 = vmatprep.subr.mxu0 %v1782_v36 }
  0xf3   :  { %2754 = vmatprep.subr.mxu1 %v2038_v37 }
  0xf4   :  { %14 = vsyncpa [#allocation3], 0  ;;  %2684 = vmatpush2.msra.mxu0 %v1781_v38  ;;  %2755 = vmatpush2.msra.mxu1 %v2037_v39  ;;  %v1766_v46 = vld [vmem:[%s12143_s1 + $0x3608] sm:$0xff]  ;;  %v1765_v49 = vld [vmem:[%s12143_s1 + $0x3600] sm:$0xff]  ;;  %vm5151_vm0 = vmmov 0   ;;  %vm4989_vm1 = vcmask 1041408  }
  0xf5   :  { %v2022_v47 = vld [vmem:[%s12143_s1 + $0x3e08] sm:$0xff]  ;;  %2685 = vmatprep.subr.mxu0 %v1774_v40  ;;  %2756 = vmatprep.subr.mxu1 %v2030_v42  ;;  %v2021_v50 = vld [vmem:[%s12143_s1 + $0x3e00] sm:$0xff]  ;;  %v36_v4 = vld [vmem:[%s12142_s0 + $0x18] sm:$0xff] }
  0xf6   :  { %2686 = vmatpush2.msra.mxu0 %v1773_v44  ;;  %2757 = vmatpush2.msra.mxu1 %v2029_v45  ;;  %v1758_v51 = vld [vmem:[%s12143_s1 + $0x35c8] sm:$0xff]  ;;  %v1757_v55 = vld [vmem:[%s12143_s1 + $0x35c0] sm:$0xff]  ;;  %v2182_v13 = vcombine.high %v36_v4, %v36_v4  ;;  %v6781_v19 = vrot.slane %v36_v4, %v5539_v52  ;;  %v160_v35 = vld [vmem:[%s12143_s1 + $0x3d8] sm:$0xff] }
  0xf7   :  { %v2014_v53 = vld [vmem:[%s12143_s1 + $0x3dc8] sm:$0xff]  ;;  %2687 = vmatprep.subr.mxu0 %v1766_v46  ;;  %2758 = vmatprep.subr.mxu1 %v2022_v47  ;;  %v2013_v56 = vld [vmem:[%s12143_s1 + $0x3dc0] sm:$0xff]  ;;  %v416_v36 = vld [vmem:[%s12143_s1 + $0xbd8] sm:$0xff] }
  0xf8   :  { %2688 = vmatpush2.msra.mxu0 %v1765_v49  ;;  %2759 = vmatpush2.msra.mxu1 %v2021_v50  ;;  %v1750_v58 = vld [vmem:[%s12143_s1 + $0x3588] sm:$0xff]  ;;  %v1749_v60 = vld [vmem:[%s12143_s1 + $0x3580] sm:$0xff]  ;;  %v6796_v25 = vrot.slane %v2182_v13, %v5539_v52  ;;  %v6812_v31 = vcombine.high %v6781_v19, %v6781_v19  ;;  %v159_v37 = vld [vmem:[%s12143_s1 + $0x3d0] sm:$0xff] }
  0xf9   :  { %v2006_v59 = vld [vmem:[%s12143_s1 + $0x3d88] sm:$0xff]  ;;  %2689 = vmatprep.subr.mxu0 %v1758_v51  ;;  %2760 = vmatprep.subr.mxu1 %v2014_v53  ;;  %v2005_v61 = vld [vmem:[%s12143_s1 + $0x3d80] sm:$0xff]  ;;  %v415_v38 = vld [vmem:[%s12143_s1 + $0xbd0] sm:$0xff] }
  0xfa   :  { %2690 = vmatpush2.msra.mxu0 %v1757_v55  ;;  %2761 = vmatpush2.msra.mxu1 %v2013_v56  ;;  %v1742_v63 = vld [vmem:[%s12143_s1 + $0x3548] sm:$0xff]  ;;  %v1741_v1 = vld [vmem:[%s12143_s1 + $0x3540] sm:$0xff]  ;;  %v6822_v34 = vcombine.high %v6796_v25, %v6796_v25  ;;  %v152_v39 = vld [vmem:[%s12143_s1 + $0x398] sm:$0xff] }
  0xfb   :  { %v1998_v0 = vld [vmem:[%s12143_s1 + $0x3d48] sm:$0xff]  ;;  %2691 = vmatprep.subr.mxu0 %v1750_v58  ;;  %2762 = vmatprep.subr.mxu1 %v2006_v59  ;;  %v1997_v2 = vld [vmem:[%s12143_s1 + $0x3d40] sm:$0xff]  ;;  %v408_v40 = vld [vmem:[%s12143_s1 + $0xb98] sm:$0xff] }
  0xfc   :  { %2692 = vmatpush2.msra.mxu0 %v1749_v60  ;;  %2763 = vmatpush2.msra.mxu1 %v2005_v61  ;;  %v1734_v5 = vld [vmem:[%s12143_s1 + $0x3508] sm:$0xff]  ;;  %v1733_v7 = vld [vmem:[%s12143_s1 + $0x3500] sm:$0xff]  ;;  %v151_v42 = vld [vmem:[%s12143_s1 + $0x390] sm:$0xff] }
  0xfd   :  { %v1990_v6 = vld [vmem:[%s12143_s1 + $0x3d08] sm:$0xff]  ;;  %2693 = vmatprep.subr.mxu0 %v1742_v63  ;;  %2764 = vmatprep.subr.mxu1 %v1998_v0  ;;  %v1989_v9 = vld [vmem:[%s12143_s1 + $0x3d00] sm:$0xff]  ;;  %v407_v44 = vld [vmem:[%s12143_s1 + $0xb90] sm:$0xff] }
  0xfe   :  { %2694 = vmatpush2.msra.mxu0 %v1741_v1  ;;  %2765 = vmatpush2.msra.mxu1 %v1997_v2  ;;  %v1726_v10 = vld [vmem:[%s12143_s1 + $0x34c8] sm:$0xff]  ;;  %v1725_v14 = vld [vmem:[%s12143_s1 + $0x34c0] sm:$0xff]  ;;  %v144_v45 = vld [vmem:[%s12143_s1 + $0x358] sm:$0xff] }
  0xff   :  { %v1982_v12 = vld [vmem:[%s12143_s1 + $0x3cc8] sm:$0xff]  ;;  %2695 = vmatprep.subr.mxu0 %v1734_v5  ;;  %2766 = vmatprep.subr.mxu1 %v1990_v6  ;;  %v1981_v15 = vld [vmem:[%s12143_s1 + $0x3cc0] sm:$0xff]  ;;  %v400_v46 = vld [vmem:[%s12143_s1 + $0xb58] sm:$0xff] }
 0x100   :  { %2696 = vmatpush2.msra.mxu0 %v1733_v7  ;;  %2767 = vmatpush2.msra.mxu1 %v1989_v9  ;;  %v1718_v17 = vld [vmem:[%s12143_s1 + $0x3488] sm:$0xff]  ;;  %v1717_v20 = vld [vmem:[%s12143_s1 + $0x3480] sm:$0xff]  ;;  %v143_v47 = vld [vmem:[%s12143_s1 + $0x350] sm:$0xff] }
 0x101   :  { %v1974_v18 = vld [vmem:[%s12143_s1 + $0x3c88] sm:$0xff]  ;;  %2697 = vmatprep.subr.mxu0 %v1726_v10  ;;  %2768 = vmatprep.subr.mxu1 %v1982_v12  ;;  %v1973_v22 = vld [vmem:[%s12143_s1 + $0x3c80] sm:$0xff]  ;;  %v399_v49 = vld [vmem:[%s12143_s1 + $0xb50] sm:$0xff] }
 0x102   :  { %2698 = vmatpush2.msra.mxu0 %v1725_v14  ;;  %2769 = vmatpush2.msra.mxu1 %v1981_v15  ;;  %v1710_v23 = vld [vmem:[%s12143_s1 + $0x3448] sm:$0xff]  ;;  %v1709_v27 = vld [vmem:[%s12143_s1 + $0x3440] sm:$0xff]  ;;  %v136_v50 = vld [vmem:[%s12143_s1 + $0x318] sm:$0xff] }
 0x103   :  { %v1966_v24 = vld [vmem:[%s12143_s1 + $0x3c48] sm:$0xff]  ;;  %2699 = vmatprep.subr.mxu0 %v1718_v17  ;;  %2770 = vmatprep.subr.mxu1 %v1974_v18  ;;  %v1965_v28 = vld [vmem:[%s12143_s1 + $0x3c40] sm:$0xff]  ;;  %v392_v51 = vld [vmem:[%s12143_s1 + $0xb18] sm:$0xff] }
 0x104   :  { %2700 = vmatpush2.msra.mxu0 %v1717_v20  ;;  %2771 = vmatpush2.msra.mxu1 %v1973_v22  ;;  %v1702_v30 = vld [vmem:[%s12143_s1 + $0x3408] sm:$0xff]  ;;  %v1701_v32 = vld [vmem:[%s12143_s1 + $0x3400] sm:$0xff]  ;;  %v135_v53 = vld [vmem:[%s12143_s1 + $0x310] sm:$0xff] }
 0x105   :  { %v1958_v52 = vld [vmem:[%s12143_s1 + $0x3c08] sm:$0xff]  ;;  %2701 = vmatprep.subr.mxu0 %v1710_v23  ;;  %2772 = vmatprep.subr.mxu1 %v1966_v24  ;;  %v1957_v33 = vld [vmem:[%s12143_s1 + $0x3c00] sm:$0xff]  ;;  %v391_v55 = vld [vmem:[%s12143_s1 + $0xb10] sm:$0xff] }
 0x106   :  { %2702 = vmatpush2.msra.mxu0 %v1709_v27  ;;  %2773 = vmatpush2.msra.mxu1 %v1965_v28  ;;  %v128_v56 = vld [vmem:[%s12143_s1 + $0x2d8] sm:$0xff]  ;;  %v127_v59 = vld [vmem:[%s12143_s1 + $0x2d0] sm:$0xff] }
 0x107   :  { %2703 = vmatprep.subr.mxu0 %v1702_v30  ;;  %2774 = vmatprep.subr.mxu1 %v1958_v52  ;;  %v384_v58 = vld [vmem:[%s12143_s1 + $0xad8] sm:$0xff]  ;;  %v383_v60 = vld [vmem:[%s12143_s1 + $0xad0] sm:$0xff] }
 0x108   :  { %2704 = vmatpush2.msra.mxu0 %v1701_v32  ;;  %2705 = vmatprep.mubr.f32.mxu0 %v6812_v31  ;;  %v120_v61 = vld [vmem:[%s12143_s1 + $0x298] sm:$0xff]  ;;  %v119_v0 = vld [vmem:[%s12143_s1 + $0x290] sm:$0xff] }
 0x109   :  { %2775 = vmatpush2.msra.mxu1 %v1957_v33  ;;  %2706 = vmatmul.mubr.f32.vlgmr.msra.gmra.mxu0 %v6781_v19  ;;  %v376_v63 = vld [vmem:[%s12143_s1 + $0xa98] sm:$0xff]  ;;  %v375_v1 = vld [vmem:[%s12143_s1 + $0xa90] sm:$0xff] }
 0x10a   :  { %2776 = vmatprep.mubr.f32.mxu1 %v6822_v34  ;;  %2783 = vmatprep.subr.mxu0 %v160_v35  ;;  %v112_v2 = vld [vmem:[%s12143_s1 + $0x258] sm:$0xff]  ;;  %v111_v5 = vld [vmem:[%s12143_s1 + $0x250] sm:$0xff] }
 0x10b   :  { %2854 = vmatprep.subr.mxu1 %v416_v36  ;;  %2777 = vmatmul.mubr.f32.vlgmr.msra.gmra.mxu1 %v6796_v25  ;;  %v368_v4 = vld [vmem:[%s12143_s1 + $0xa58] sm:$0xff]  ;;  %v367_v6 = vld [vmem:[%s12143_s1 + $0xa50] sm:$0xff] }
 0x10c   :  { %2784 = vmatpush1.msra.mxu0 %v159_v37  ;;  %2855 = vmatpush1.msra.mxu1 %v415_v38  ;;  %v104_v7 = vld [vmem:[%s12143_s1 + $0x218] sm:$0xff]  ;;  %v103_v10 = vld [vmem:[%s12143_s1 + $0x210] sm:$0xff] }
 0x10d   :  { %2785 = vmatprep.subr.mxu0 %v152_v39  ;;  %2856 = vmatprep.subr.mxu1 %v408_v40  ;;  %v360_v9 = vld [vmem:[%s12143_s1 + $0xa18] sm:$0xff]  ;;  %v359_v12 = vld [vmem:[%s12143_s1 + $0xa10] sm:$0xff] }
 0x10e   :  { %2786 = vmatpush1.msra.mxu0 %v151_v42  ;;  %2857 = vmatpush1.msra.mxu1 %v407_v44  ;;  %v96_v13 = vld [vmem:[%s12143_s1 + $0x1d8] sm:$0xff]  ;;  %v95_v15 = vld [vmem:[%s12143_s1 + $0x1d0] sm:$0xff] }
 0x10f   :  { %2787 = vmatprep.subr.mxu0 %v144_v45  ;;  %2858 = vmatprep.subr.mxu1 %v400_v46  ;;  %v352_v14 = vld [vmem:[%s12143_s1 + $0x9d8] sm:$0xff]  ;;  %v351_v17 = vld [vmem:[%s12143_s1 + $0x9d0] sm:$0xff] }
 0x110   :  { %2788 = vmatpush1.msra.mxu0 %v143_v47  ;;  %2859 = vmatpush1.msra.mxu1 %v399_v49  ;;  %v88_v18 = vld [vmem:[%s12143_s1 + $0x198] sm:$0xff]  ;;  %v87_v22 = vld [vmem:[%s12143_s1 + $0x190] sm:$0xff] }
 0x111   :  { %2789 = vmatprep.subr.mxu0 %v136_v50  ;;  %2860 = vmatprep.subr.mxu1 %v392_v51  ;;  %v344_v20 = vld [vmem:[%s12143_s1 + $0x998] sm:$0xff]  ;;  %v343_v23 = vld [vmem:[%s12143_s1 + $0x990] sm:$0xff] }
 0x112   :  { %2790 = vmatpush1.msra.mxu0 %v135_v53  ;;  %2861 = vmatpush1.msra.mxu1 %v391_v55  ;;  %v80_v24 = vld [vmem:[%s12143_s1 + $0x158] sm:$0xff]  ;;  %v79_v28 = vld [vmem:[%s12143_s1 + $0x150] sm:$0xff] }
 0x113   :  { %2791 = vmatprep.subr.mxu0 %v128_v56  ;;  %2862 = vmatprep.subr.mxu1 %v384_v58  ;;  %v336_v27 = vld [vmem:[%s12143_s1 + $0x958] sm:$0xff]  ;;  %v335_v30 = vld [vmem:[%s12143_s1 + $0x950] sm:$0xff] }
 0x114   :  { %2792 = vmatpush1.msra.mxu0 %v127_v59  ;;  %2863 = vmatpush1.msra.mxu1 %v383_v60  ;;  %v72_v52 = vld [vmem:[%s12143_s1 + $0x118] sm:$0xff]  ;;  %v71_v33 = vld [vmem:[%s12143_s1 + $0x110] sm:$0xff] }
 0x115   :  { %2793 = vmatprep.subr.mxu0 %v120_v61  ;;  %2864 = vmatprep.subr.mxu1 %v376_v63  ;;  %v328_v32 = vld [vmem:[%s12143_s1 + $0x918] sm:$0xff]  ;;  %v327_v35 = vld [vmem:[%s12143_s1 + $0x910] sm:$0xff] }
 0x116   :  { %2794 = vmatpush1.msra.mxu0 %v119_v0  ;;  %2865 = vmatpush1.msra.mxu1 %v375_v1  ;;  %v64_v36 = vld [vmem:[%s12143_s1 + $0xd8] sm:$0xff]  ;;  %v63_v38 = vld [vmem:[%s12143_s1 + $0xd0] sm:$0xff] }
 0x117   :  { %2795 = vmatprep.subr.mxu0 %v112_v2  ;;  %2866 = vmatprep.subr.mxu1 %v368_v4  ;;  %v320_v37 = vld [vmem:[%s12143_s1 + $0x8d8] sm:$0xff]  ;;  %v319_v39 = vld [vmem:[%s12143_s1 + $0x8d0] sm:$0xff] }
 0x118   :  { %2796 = vmatpush1.msra.mxu0 %v111_v5  ;;  %2867 = vmatpush1.msra.mxu1 %v367_v6  ;;  %v56_v40 = vld [vmem:[%s12143_s1 + $0x98] sm:$0xff]  ;;  %v55_v44 = vld [vmem:[%s12143_s1 + $0x90] sm:$0xff] }
 0x119   :  { %2797 = vmatprep.subr.mxu0 %v104_v7  ;;  %2868 = vmatprep.subr.mxu1 %v360_v9  ;;  %v312_v42 = vld [vmem:[%s12143_s1 + $0x898] sm:$0xff]  ;;  %v311_v45 = vld [vmem:[%s12143_s1 + $0x890] sm:$0xff] }
 0x11a   :  { %2798 = vmatpush1.msra.mxu0 %v103_v10  ;;  %2869 = vmatpush1.msra.mxu1 %v359_v12  ;;  %v48_v46 = vld [vmem:[%s12143_s1 + $0x58] sm:$0xff]  ;;  %v47_v49 = vld [vmem:[%s12143_s1 + $0x50] sm:$0xff] }
 0x11b   :  { %2799 = vmatprep.subr.mxu0 %v96_v13  ;;  %2870 = vmatprep.subr.mxu1 %v352_v14  ;;  %v304_v47 = vld [vmem:[%s12143_s1 + $0x858] sm:$0xff]  ;;  %v303_v50 = vld [vmem:[%s12143_s1 + $0x850] sm:$0xff] }
 0x11c   :  { %2800 = vmatpush1.msra.mxu0 %v95_v15  ;;  %2871 = vmatpush1.msra.mxu1 %v351_v17  ;;  %v40_v51 = vld [vmem:[%s12143_s1 + $0x18] sm:$0xff]  ;;  %v39_v55 = vld [vmem:[%s12143_s1 + $0x10] sm:$0xff] }
 0x11d   :  { %2801 = vmatprep.subr.mxu0 %v88_v18  ;;  %2872 = vmatprep.subr.mxu1 %v344_v20  ;;  %v296_v53 = vld [vmem:[%s12143_s1 + $0x818] sm:$0xff]  ;;  %v295_v56 = vld [vmem:[%s12143_s1 + $0x810] sm:$0xff] }
 0x11e   :  { %2802 = vmatpush1.msra.mxu0 %v87_v22  ;;  %2873 = vmatpush1.msra.mxu1 %v343_v23  ;;  %v288_v58 = vld [vmem:[%s12143_s1 + $0x7d8] sm:$0xff]  ;;  %v287_v60 = vld [vmem:[%s12143_s1 + $0x7d0] sm:$0xff] }
 0x11f   :  { %2803 = vmatprep.subr.mxu0 %v80_v24  ;;  %2874 = vmatprep.subr.mxu1 %v336_v27  ;;  %v544_v59 = vld [vmem:[%s12143_s1 + $0xfd8] sm:$0xff]  ;;  %v543_v61 = vld [vmem:[%s12143_s1 + $0xfd0] sm:$0xff] }
 0x120   :  { %2804 = vmatpush1.msra.mxu0 %v79_v28  ;;  %2875 = vmatpush1.msra.mxu1 %v335_v30  ;;  %v280_v63 = vld [vmem:[%s12143_s1 + $0x798] sm:$0xff]  ;;  %v279_v1 = vld [vmem:[%s12143_s1 + $0x790] sm:$0xff] }
 0x121   :  { %2805 = vmatprep.subr.mxu0 %v72_v52  ;;  %2876 = vmatprep.subr.mxu1 %v328_v32  ;;  %v536_v0 = vld [vmem:[%s12143_s1 + $0xf98] sm:$0xff]  ;;  %v535_v2 = vld [vmem:[%s12143_s1 + $0xf90] sm:$0xff] }
 0x122   :  { %2806 = vmatpush1.msra.mxu0 %v71_v33  ;;  %2877 = vmatpush1.msra.mxu1 %v327_v35  ;;  %v272_v4 = vld [vmem:[%s12143_s1 + $0x758] sm:$0xff]  ;;  %v271_v6 = vld [vmem:[%s12143_s1 + $0x750] sm:$0xff] }
 0x123   :  { %2807 = vmatprep.subr.mxu0 %v64_v36  ;;  %2878 = vmatprep.subr.mxu1 %v320_v37  ;;  %v528_v5 = vld [vmem:[%s12143_s1 + $0xf58] sm:$0xff]  ;;  %v527_v7 = vld [vmem:[%s12143_s1 + $0xf50] sm:$0xff] }
 0x124   :  { %2808 = vmatpush1.msra.mxu0 %v63_v38  ;;  %2879 = vmatpush1.msra.mxu1 %v319_v39  ;;  %v264_v9 = vld [vmem:[%s12143_s1 + $0x718] sm:$0xff]  ;;  %v263_v12 = vld [vmem:[%s12143_s1 + $0x710] sm:$0xff] }
 0x125   :  { %2809 = vmatprep.subr.mxu0 %v56_v40  ;;  %2880 = vmatprep.subr.mxu1 %v312_v42  ;;  %v520_v10 = vld [vmem:[%s12143_s1 + $0xf18] sm:$0xff]  ;;  %v519_v13 = vld [vmem:[%s12143_s1 + $0xf10] sm:$0xff] }
 0x126   :  { %2810 = vmatpush1.msra.mxu0 %v55_v44  ;;  %2881 = vmatpush1.msra.mxu1 %v311_v45  ;;  %v256_v14 = vld [vmem:[%s12143_s1 + $0x6d8] sm:$0xff]  ;;  %v255_v17 = vld [vmem:[%s12143_s1 + $0x6d0] sm:$0xff] }
 0x127   :  { %2811 = vmatprep.subr.mxu0 %v48_v46  ;;  %2882 = vmatprep.subr.mxu1 %v304_v47  ;;  %v512_v15 = vld [vmem:[%s12143_s1 + $0xed8] sm:$0xff]  ;;  %v511_v18 = vld [vmem:[%s12143_s1 + $0xed0] sm:$0xff] }
 0x128   :  { %2812 = vmatpush1.msra.mxu0 %v47_v49  ;;  %2883 = vmatpush1.msra.mxu1 %v303_v50  ;;  %v248_v20 = vld [vmem:[%s12143_s1 + $0x698] sm:$0xff]  ;;  %v247_v23 = vld [vmem:[%s12143_s1 + $0x690] sm:$0xff] }
 0x129   :  { %2813 = vmatprep.subr.mxu0 %v40_v51  ;;  %2884 = vmatprep.subr.mxu1 %v296_v53  ;;  %v504_v22 = vld [vmem:[%s12143_s1 + $0xe98] sm:$0xff]  ;;  %v503_v24 = vld [vmem:[%s12143_s1 + $0xe90] sm:$0xff] }
 0x12a   :  { %2814 = vmatpush1.msra.mxu0 %v39_v55  ;;  %2885 = vmatpush1.msra.mxu1 %v295_v56  ;;  %v240_v27 = vld [vmem:[%s12143_s1 + $0x658] sm:$0xff]  ;;  %v239_v30 = vld [vmem:[%s12143_s1 + $0x650] sm:$0xff] }
 0x12b   :  { %2815 = vmatprep.subr.mxu0 %v288_v58  ;;  %2886 = vmatprep.subr.mxu1 %v544_v59  ;;  %v496_v28 = vld [vmem:[%s12143_s1 + $0xe58] sm:$0xff]  ;;  %v495_v52 = vld [vmem:[%s12143_s1 + $0xe50] sm:$0xff] }
 0x12c   :  { %2816 = vmatpush2.msra.mxu0 %v287_v60  ;;  %2887 = vmatpush2.msra.mxu1 %v543_v61  ;;  %v232_v32 = vld [vmem:[%s12143_s1 + $0x618] sm:$0xff]  ;;  %v231_v35 = vld [vmem:[%s12143_s1 + $0x610] sm:$0xff] }
 0x12d   :  { %2817 = vmatprep.subr.mxu0 %v280_v63  ;;  %2888 = vmatprep.subr.mxu1 %v536_v0  ;;  %v488_v33 = vld [vmem:[%s12143_s1 + $0xe18] sm:$0xff]  ;;  %v487_v36 = vld [vmem:[%s12143_s1 + $0xe10] sm:$0xff] }
 0x12e   :  { %2818 = vmatpush2.msra.mxu0 %v279_v1  ;;  %2889 = vmatpush2.msra.mxu1 %v535_v2  ;;  %v224_v37 = vld [vmem:[%s12143_s1 + $0x5d8] sm:$0xff]  ;;  %v223_v39 = vld [vmem:[%s12143_s1 + $0x5d0] sm:$0xff] }
 0x12f   :  { %2819 = vmatprep.subr.mxu0 %v272_v4  ;;  %2890 = vmatprep.subr.mxu1 %v528_v5  ;;  %v480_v38 = vld [vmem:[%s12143_s1 + $0xdd8] sm:$0xff]  ;;  %v479_v40 = vld [vmem:[%s12143_s1 + $0xdd0] sm:$0xff] }
 0x130   :  { %2820 = vmatpush2.msra.mxu0 %v271_v6  ;;  %2891 = vmatpush2.msra.mxu1 %v527_v7  ;;  %v216_v42 = vld [vmem:[%s12143_s1 + $0x598] sm:$0xff]  ;;  %v215_v45 = vld [vmem:[%s12143_s1 + $0x590] sm:$0xff] }
 0x131   :  { %2821 = vmatprep.subr.mxu0 %v264_v9  ;;  %2892 = vmatprep.subr.mxu1 %v520_v10  ;;  %v472_v44 = vld [vmem:[%s12143_s1 + $0xd98] sm:$0xff]  ;;  %v471_v46 = vld [vmem:[%s12143_s1 + $0xd90] sm:$0xff] }
 0x132   :  { %2822 = vmatpush2.msra.mxu0 %v263_v12  ;;  %2893 = vmatpush2.msra.mxu1 %v519_v13  ;;  %v208_v47 = vld [vmem:[%s12143_s1 + $0x558] sm:$0xff]  ;;  %v207_v50 = vld [vmem:[%s12143_s1 + $0x550] sm:$0xff] }
 0x133   :  { %2823 = vmatprep.subr.mxu0 %v256_v14  ;;  %2894 = vmatprep.subr.mxu1 %v512_v15  ;;  %v464_v49 = vld [vmem:[%s12143_s1 + $0xd58] sm:$0xff]  ;;  %v463_v51 = vld [vmem:[%s12143_s1 + $0xd50] sm:$0xff] }
 0x134   :  { %2824 = vmatpush2.msra.mxu0 %v255_v17  ;;  %2895 = vmatpush2.msra.mxu1 %v511_v18  ;;  %v200_v53 = vld [vmem:[%s12143_s1 + $0x518] sm:$0xff]  ;;  %v199_v56 = vld [vmem:[%s12143_s1 + $0x510] sm:$0xff] }
 0x135   :  { %2825 = vmatprep.subr.mxu0 %v248_v20  ;;  %2896 = vmatprep.subr.mxu1 %v504_v22  ;;  %v456_v55 = vld [vmem:[%s12143_s1 + $0xd18] sm:$0xff]  ;;  %v455_v58 = vld [vmem:[%s12143_s1 + $0xd10] sm:$0xff] }
 0x136   :  { %2826 = vmatpush2.msra.mxu0 %v247_v23  ;;  %2897 = vmatpush2.msra.mxu1 %v503_v24  ;;  %v192_v59 = vld [vmem:[%s12143_s1 + $0x4d8] sm:$0xff]  ;;  %v191_v61 = vld [vmem:[%s12143_s1 + $0x4d0] sm:$0xff] }
 0x137   :  { %2827 = vmatprep.subr.mxu0 %v240_v27  ;;  %2898 = vmatprep.subr.mxu1 %v496_v28  ;;  %v448_v60 = vld [vmem:[%s12143_s1 + $0xcd8] sm:$0xff]  ;;  %v447_v63 = vld [vmem:[%s12143_s1 + $0xcd0] sm:$0xff] }
 0x138   :  { %2828 = vmatpush2.msra.mxu0 %v239_v30  ;;  %2899 = vmatpush2.msra.mxu1 %v495_v52  ;;  %v184_v0 = vld [vmem:[%s12143_s1 + $0x498] sm:$0xff]  ;;  %v183_v2 = vld [vmem:[%s12143_s1 + $0x490] sm:$0xff] }
 0x139   :  { %2829 = vmatprep.subr.mxu0 %v232_v32  ;;  %2900 = vmatprep.subr.mxu1 %v488_v33  ;;  %v440_v1 = vld [vmem:[%s12143_s1 + $0xc98] sm:$0xff]  ;;  %v439_v4 = vld [vmem:[%s12143_s1 + $0xc90] sm:$0xff] }
 0x13a   :  { %2830 = vmatpush2.msra.mxu0 %v231_v35  ;;  %2901 = vmatpush2.msra.mxu1 %v487_v36  ;;  %v176_v5 = vld [vmem:[%s12143_s1 + $0x458] sm:$0xff]  ;;  %v175_v7 = vld [vmem:[%s12143_s1 + $0x450] sm:$0xff] }
 0x13b   :  { %2831 = vmatprep.subr.mxu0 %v224_v37  ;;  %2902 = vmatprep.subr.mxu1 %v480_v38  ;;  %v432_v6 = vld [vmem:[%s12143_s1 + $0xc58] sm:$0xff]  ;;  %v431_v9 = vld [vmem:[%s12143_s1 + $0xc50] sm:$0xff] }
 0x13c   :  { %2832 = vmatpush2.msra.mxu0 %v223_v39  ;;  %2903 = vmatpush2.msra.mxu1 %v479_v40  ;;  %v168_v10 = vld [vmem:[%s12143_s1 + $0x418] sm:$0xff]  ;;  %v167_v13 = vld [vmem:[%s12143_s1 + $0x410] sm:$0xff] }
 0x13d   :  { %2833 = vmatprep.subr.mxu0 %v216_v42  ;;  %2904 = vmatprep.subr.mxu1 %v472_v44  ;;  %v424_v12 = vld [vmem:[%s12143_s1 + $0xc18] sm:$0xff]  ;;  %v423_v14 = vld [vmem:[%s12143_s1 + $0xc10] sm:$0xff] }
 0x13e   :  { %2834 = vmatpush2.msra.mxu0 %v215_v45  ;;  %2905 = vmatpush2.msra.mxu1 %v471_v46  ;;  %v672_v15 = vld [vmem:[%s12143_s1 + $0x13d8] sm:$0xff]  ;;  %v671_v18 = vld [vmem:[%s12143_s1 + $0x13d0] sm:$0xff] }
 0x13f   :  { %2835 = vmatprep.subr.mxu0 %v208_v47  ;;  %2906 = vmatprep.subr.mxu1 %v464_v49  ;;  %v928_v17 = vld [vmem:[%s12143_s1 + $0x1bd8] sm:$0xff]  ;;  %v927_v20 = vld [vmem:[%s12143_s1 + $0x1bd0] sm:$0xff] }
 0x140   :  { %2836 = vmatpush2.msra.mxu0 %v207_v50  ;;  %2907 = vmatpush2.msra.mxu1 %v463_v51  ;;  %v664_v22 = vld [vmem:[%s12143_s1 + $0x1398] sm:$0xff]  ;;  %v663_v24 = vld [vmem:[%s12143_s1 + $0x1390] sm:$0xff] }
 0x141   :  { %2837 = vmatprep.subr.mxu0 %v200_v53  ;;  %2908 = vmatprep.subr.mxu1 %v456_v55  ;;  %v920_v23 = vld [vmem:[%s12143_s1 + $0x1b98] sm:$0xff]  ;;  %v919_v27 = vld [vmem:[%s12143_s1 + $0x1b90] sm:$0xff] }
 0x142   :  { %2838 = vmatpush2.msra.mxu0 %v199_v56  ;;  %2909 = vmatpush2.msra.mxu1 %v455_v58  ;;  %v656_v28 = vld [vmem:[%s12143_s1 + $0x1358] sm:$0xff]  ;;  %v655_v52 = vld [vmem:[%s12143_s1 + $0x1350] sm:$0xff] }
 0x143   :  { %2839 = vmatprep.subr.mxu0 %v192_v59  ;;  %2910 = vmatprep.subr.mxu1 %v448_v60  ;;  %v912_v30 = vld [vmem:[%s12143_s1 + $0x1b58] sm:$0xff]  ;;  %v911_v32 = vld [vmem:[%s12143_s1 + $0x1b50] sm:$0xff] }
 0x144   :  { %2840 = vmatpush2.msra.mxu0 %v191_v61  ;;  %2911 = vmatpush2.msra.mxu1 %v447_v63  ;;  %v648_v33 = vld [vmem:[%s12143_s1 + $0x1318] sm:$0xff]  ;;  %v647_v36 = vld [vmem:[%s12143_s1 + $0x1310] sm:$0xff] }
 0x145   :  { %2841 = vmatprep.subr.mxu0 %v184_v0  ;;  %2912 = vmatprep.subr.mxu1 %v440_v1  ;;  %v904_v35 = vld [vmem:[%s12143_s1 + $0x1b18] sm:$0xff]  ;;  %v903_v37 = vld [vmem:[%s12143_s1 + $0x1b10] sm:$0xff] }
 0x146   :  { %2842 = vmatpush2.msra.mxu0 %v183_v2  ;;  %2913 = vmatpush2.msra.mxu1 %v439_v4  ;;  %v640_v38 = vld [vmem:[%s12143_s1 + $0x12d8] sm:$0xff]  ;;  %v639_v40 = vld [vmem:[%s12143_s1 + $0x12d0] sm:$0xff] }
 0x147   :  { %2843 = vmatprep.subr.mxu0 %v176_v5  ;;  %2914 = vmatprep.subr.mxu1 %v432_v6  ;;  %v896_v39 = vld [vmem:[%s12143_s1 + $0x1ad8] sm:$0xff]  ;;  %v895_v42 = vld [vmem:[%s12143_s1 + $0x1ad0] sm:$0xff] }
 0x148   :  { %2844 = vmatpush2.msra.mxu0 %v175_v7  ;;  %2915 = vmatpush2.msra.mxu1 %v431_v9  ;;  %v632_v44 = vld [vmem:[%s12143_s1 + $0x1298] sm:$0xff]  ;;  %v631_v46 = vld [vmem:[%s12143_s1 + $0x1290] sm:$0xff] }
 0x149   :  { %2845 = vmatprep.subr.mxu0 %v168_v10  ;;  %2916 = vmatprep.subr.mxu1 %v424_v12  ;;  %v888_v45 = vld [vmem:[%s12143_s1 + $0x1a98] sm:$0xff]  ;;  %v887_v47 = vld [vmem:[%s12143_s1 + $0x1a90] sm:$0xff] }
 0x14a   :  { %2846 = vmatpush2.msra.mxu0 %v167_v13  ;;  %2847 = vmatprep.mubr.f32.mxu0 %v5597_v8  ;;  %v624_v49 = vld [vmem:[%s12143_s1 + $0x1258] sm:$0xff]  ;;  %v623_v51 = vld [vmem:[%s12143_s1 + $0x1250] sm:$0xff] }
 0x14b   :  { %2917 = vmatpush2.msra.mxu1 %v423_v14  ;;  %2848 = vmatmul.mubr.f32.vlgmr.msra.gmra.mxu0 %v5566_v62  ;;  %v880_v50 = vld [vmem:[%s12143_s1 + $0x1a58] sm:$0xff]  ;;  %v879_v53 = vld [vmem:[%s12143_s1 + $0x1a50] sm:$0xff] }
 0x14c   :  { %2918 = vmatprep.mubr.f32.mxu1 %v5607_v11  ;;  %2925 = vmatprep.subr.mxu0 %v672_v15  ;;  %v616_v55 = vld [vmem:[%s12143_s1 + $0x1218] sm:$0xff]  ;;  %v615_v58 = vld [vmem:[%s12143_s1 + $0x1210] sm:$0xff] }
 0x14d   :  { %2996 = vmatprep.subr.mxu1 %v928_v17  ;;  %2919 = vmatmul.mubr.f32.vlgmr.msra.gmra.mxu1 %v5581_v3  ;;  %v872_v56 = vld [vmem:[%s12143_s1 + $0x1a18] sm:$0xff]  ;;  %v871_v59 = vld [vmem:[%s12143_s1 + $0x1a10] sm:$0xff] }
 0x14e   :  { %2926 = vmatpush1.msra.mxu0 %v671_v18  ;;  %2997 = vmatpush1.msra.mxu1 %v927_v20  ;;  %v608_v60 = vld [vmem:[%s12143_s1 + $0x11d8] sm:$0xff]  ;;  %v607_v63 = vld [vmem:[%s12143_s1 + $0x11d0] sm:$0xff] }
 0x14f   :  { %2927 = vmatprep.subr.mxu0 %v664_v22  ;;  %2998 = vmatprep.subr.mxu1 %v920_v23  ;;  %v864_v61 = vld [vmem:[%s12143_s1 + $0x19d8] sm:$0xff]  ;;  %v863_v0 = vld [vmem:[%s12143_s1 + $0x19d0] sm:$0xff] }
 0x150   :  { %2928 = vmatpush1.msra.mxu0 %v663_v24  ;;  %2999 = vmatpush1.msra.mxu1 %v919_v27  ;;  %v600_v1 = vld [vmem:[%s12143_s1 + $0x1198] sm:$0xff]  ;;  %v599_v4 = vld [vmem:[%s12143_s1 + $0x1190] sm:$0xff] }
 0x151   :  { %2929 = vmatprep.subr.mxu0 %v656_v28  ;;  %3000 = vmatprep.subr.mxu1 %v912_v30  ;;  %v856_v2 = vld [vmem:[%s12143_s1 + $0x1998] sm:$0xff]  ;;  %v855_v5 = vld [vmem:[%s12143_s1 + $0x1990] sm:$0xff] }
 0x152   :  { %2930 = vmatpush1.msra.mxu0 %v655_v52  ;;  %3001 = vmatpush1.msra.mxu1 %v911_v32  ;;  %v592_v6 = vld [vmem:[%s12143_s1 + $0x1158] sm:$0xff]  ;;  %v591_v9 = vld [vmem:[%s12143_s1 + $0x1150] sm:$0xff] }
 0x153   :  { %2931 = vmatprep.subr.mxu0 %v648_v33  ;;  %3002 = vmatprep.subr.mxu1 %v904_v35  ;;  %v848_v7 = vld [vmem:[%s12143_s1 + $0x1958] sm:$0xff]  ;;  %v847_v10 = vld [vmem:[%s12143_s1 + $0x1950] sm:$0xff] }
 0x154   :  { %2932 = vmatpush1.msra.mxu0 %v647_v36  ;;  %3003 = vmatpush1.msra.mxu1 %v903_v37  ;;  %v584_v12 = vld [vmem:[%s12143_s1 + $0x1118] sm:$0xff]  ;;  %v583_v14 = vld [vmem:[%s12143_s1 + $0x1110] sm:$0xff] }
 0x155   :  { %2933 = vmatprep.subr.mxu0 %v640_v38  ;;  %3004 = vmatprep.subr.mxu1 %v896_v39  ;;  %v840_v13 = vld [vmem:[%s12143_s1 + $0x1918] sm:$0xff]  ;;  %v839_v15 = vld [vmem:[%s12143_s1 + $0x1910] sm:$0xff] }
 0x156   :  { %2934 = vmatpush1.msra.mxu0 %v639_v40  ;;  %3005 = vmatpush1.msra.mxu1 %v895_v42  ;;  %v576_v17 = vld [vmem:[%s12143_s1 + $0x10d8] sm:$0xff]  ;;  %v575_v20 = vld [vmem:[%s12143_s1 + $0x10d0] sm:$0xff] }
 0x157   :  { %2935 = vmatprep.subr.mxu0 %v632_v44  ;;  %3006 = vmatprep.subr.mxu1 %v888_v45  ;;  %v832_v18 = vld [vmem:[%s12143_s1 + $0x18d8] sm:$0xff]  ;;  %v831_v22 = vld [vmem:[%s12143_s1 + $0x18d0] sm:$0xff] }
 0x158   :  { %2936 = vmatpush1.msra.mxu0 %v631_v46  ;;  %3007 = vmatpush1.msra.mxu1 %v887_v47  ;;  %v568_v23 = vld [vmem:[%s12143_s1 + $0x1098] sm:$0xff]  ;;  %v567_v27 = vld [vmem:[%s12143_s1 + $0x1090] sm:$0xff] }
 0x159   :  { %2937 = vmatprep.subr.mxu0 %v624_v49  ;;  %3008 = vmatprep.subr.mxu1 %v880_v50  ;;  %v824_v24 = vld [vmem:[%s12143_s1 + $0x1898] sm:$0xff]  ;;  %v823_v28 = vld [vmem:[%s12143_s1 + $0x1890] sm:$0xff] }
 0x15a   :  { %2938 = vmatpush1.msra.mxu0 %v623_v51  ;;  %3009 = vmatpush1.msra.mxu1 %v879_v53  ;;  %v560_v30 = vld [vmem:[%s12143_s1 + $0x1058] sm:$0xff]  ;;  %v559_v32 = vld [vmem:[%s12143_s1 + $0x1050] sm:$0xff] }
 0x15b   :  { %2939 = vmatprep.subr.mxu0 %v616_v55  ;;  %3010 = vmatprep.subr.mxu1 %v872_v56  ;;  %v816_v52 = vld [vmem:[%s12143_s1 + $0x1858] sm:$0xff]  ;;  %v815_v33 = vld [vmem:[%s12143_s1 + $0x1850] sm:$0xff] }
 0x15c   :  { %2940 = vmatpush1.msra.mxu0 %v615_v58  ;;  %3011 = vmatpush1.msra.mxu1 %v871_v59  ;;  %v552_v35 = vld [vmem:[%s12143_s1 + $0x1018] sm:$0xff]  ;;  %v551_v37 = vld [vmem:[%s12143_s1 + $0x1010] sm:$0xff] }
 0x15d   :  { %2941 = vmatprep.subr.mxu0 %v608_v60  ;;  %3012 = vmatprep.subr.mxu1 %v864_v61  ;;  %v808_v36 = vld [vmem:[%s12143_s1 + $0x1818] sm:$0xff]  ;;  %v807_v38 = vld [vmem:[%s12143_s1 + $0x1810] sm:$0xff] }
 0x15e   :  { %2942 = vmatpush1.msra.mxu0 %v607_v63  ;;  %3013 = vmatpush1.msra.mxu1 %v863_v0  ;;  %v800_v39 = vld [vmem:[%s12143_s1 + $0x17d8] sm:$0xff]  ;;  %v799_v42 = vld [vmem:[%s12143_s1 + $0x17d0] sm:$0xff] }
 0x15f   :  { %2943 = vmatprep.subr.mxu0 %v600_v1  ;;  %3014 = vmatprep.subr.mxu1 %v856_v2  ;;  %v1056_v40 = vld [vmem:[%s12143_s1 + $0x1fd8] sm:$0xff]  ;;  %v1055_v44 = vld [vmem:[%s12143_s1 + $0x1fd0] sm:$0xff] }
 0x160   :  { %2944 = vmatpush1.msra.mxu0 %v599_v4  ;;  %3015 = vmatpush1.msra.mxu1 %v855_v5  ;;  %v792_v45 = vld [vmem:[%s12143_s1 + $0x1798] sm:$0xff]  ;;  %v791_v47 = vld [vmem:[%s12143_s1 + $0x1790] sm:$0xff] }
 0x161   :  { %2945 = vmatprep.subr.mxu0 %v592_v6  ;;  %3016 = vmatprep.subr.mxu1 %v848_v7  ;;  %v1048_v46 = vld [vmem:[%s12143_s1 + $0x1f98] sm:$0xff]  ;;  %v1047_v49 = vld [vmem:[%s12143_s1 + $0x1f90] sm:$0xff] }
 0x162   :  { %2946 = vmatpush1.msra.mxu0 %v591_v9  ;;  %3017 = vmatpush1.msra.mxu1 %v847_v10  ;;  %v784_v50 = vld [vmem:[%s12143_s1 + $0x1758] sm:$0xff]  ;;  %v783_v53 = vld [vmem:[%s12143_s1 + $0x1750] sm:$0xff] }
 0x163   :  { %2947 = vmatprep.subr.mxu0 %v584_v12  ;;  %3018 = vmatprep.subr.mxu1 %v840_v13  ;;  %v1040_v51 = vld [vmem:[%s12143_s1 + $0x1f58] sm:$0xff]  ;;  %v1039_v55 = vld [vmem:[%s12143_s1 + $0x1f50] sm:$0xff] }
 0x164   :  { %2948 = vmatpush1.msra.mxu0 %v583_v14  ;;  %3019 = vmatpush1.msra.mxu1 %v839_v15  ;;  %v776_v56 = vld [vmem:[%s12143_s1 + $0x1718] sm:$0xff]  ;;  %v775_v59 = vld [vmem:[%s12143_s1 + $0x1710] sm:$0xff] }
 0x165   :  { %2949 = vmatprep.subr.mxu0 %v576_v17  ;;  %3020 = vmatprep.subr.mxu1 %v832_v18  ;;  %v1032_v58 = vld [vmem:[%s12143_s1 + $0x1f18] sm:$0xff]  ;;  %v1031_v60 = vld [vmem:[%s12143_s1 + $0x1f10] sm:$0xff] }
 0x166   :  { %2950 = vmatpush1.msra.mxu0 %v575_v20  ;;  %3021 = vmatpush1.msra.mxu1 %v831_v22  ;;  %v768_v61 = vld [vmem:[%s12143_s1 + $0x16d8] sm:$0xff]  ;;  %v767_v0 = vld [vmem:[%s12143_s1 + $0x16d0] sm:$0xff] }
 0x167   :  { %2951 = vmatprep.subr.mxu0 %v568_v23  ;;  %3022 = vmatprep.subr.mxu1 %v824_v24  ;;  %v1024_v63 = vld [vmem:[%s12143_s1 + $0x1ed8] sm:$0xff]  ;;  %v1023_v1 = vld [vmem:[%s12143_s1 + $0x1ed0] sm:$0xff] }
 0x168   :  { %2952 = vmatpush1.msra.mxu0 %v567_v27  ;;  %3023 = vmatpush1.msra.mxu1 %v823_v28  ;;  %v760_v2 = vld [vmem:[%s12143_s1 + $0x1698] sm:$0xff]  ;;  %v759_v5 = vld [vmem:[%s12143_s1 + $0x1690] sm:$0xff] }
 0x169   :  { %2953 = vmatprep.subr.mxu0 %v560_v30  ;;  %3024 = vmatprep.subr.mxu1 %v816_v52  ;;  %v1016_v4 = vld [vmem:[%s12143_s1 + $0x1e98] sm:$0xff]  ;;  %v1015_v6 = vld [vmem:[%s12143_s1 + $0x1e90] sm:$0xff] }
 0x16a   :  { %2954 = vmatpush1.msra.mxu0 %v559_v32  ;;  %3025 = vmatpush1.msra.mxu1 %v815_v33  ;;  %v752_v7 = vld [vmem:[%s12143_s1 + $0x1658] sm:$0xff]  ;;  %v751_v10 = vld [vmem:[%s12143_s1 + $0x1650] sm:$0xff] }
 0x16b   :  { %2955 = vmatprep.subr.mxu0 %v552_v35  ;;  %3026 = vmatprep.subr.mxu1 %v808_v36  ;;  %v1008_v9 = vld [vmem:[%s12143_s1 + $0x1e58] sm:$0xff]  ;;  %v1007_v12 = vld [vmem:[%s12143_s1 + $0x1e50] sm:$0xff] }
 0x16c   :  { %2956 = vmatpush1.msra.mxu0 %v551_v37  ;;  %3027 = vmatpush1.msra.mxu1 %v807_v38  ;;  %v744_v13 = vld [vmem:[%s12143_s1 + $0x1618] sm:$0xff]  ;;  %v743_v15 = vld [vmem:[%s12143_s1 + $0x1610] sm:$0xff] }
 0x16d   :  { %2957 = vmatprep.subr.mxu0 %v800_v39  ;;  %3028 = vmatprep.subr.mxu1 %v1056_v40  ;;  %v1000_v14 = vld [vmem:[%s12143_s1 + $0x1e18] sm:$0xff]  ;;  %v999_v17 = vld [vmem:[%s12143_s1 + $0x1e10] sm:$0xff] }
 0x16e   :  { %2958 = vmatpush2.msra.mxu0 %v799_v42  ;;  %3029 = vmatpush2.msra.mxu1 %v1055_v44  ;;  %v736_v18 = vld [vmem:[%s12143_s1 + $0x15d8] sm:$0xff]  ;;  %v735_v22 = vld [vmem:[%s12143_s1 + $0x15d0] sm:$0xff] }
 0x16f   :  { %2959 = vmatprep.subr.mxu0 %v792_v45  ;;  %3030 = vmatprep.subr.mxu1 %v1048_v46  ;;  %v992_v20 = vld [vmem:[%s12143_s1 + $0x1dd8] sm:$0xff]  ;;  %v991_v23 = vld [vmem:[%s12143_s1 + $0x1dd0] sm:$0xff] }
 0x170   :  { %2960 = vmatpush2.msra.mxu0 %v791_v47  ;;  %3031 = vmatpush2.msra.mxu1 %v1047_v49  ;;  %v728_v24 = vld [vmem:[%s12143_s1 + $0x1598] sm:$0xff]  ;;  %v727_v28 = vld [vmem:[%s12143_s1 + $0x1590] sm:$0xff] }
 0x171   :  { %2961 = vmatprep.subr.mxu0 %v784_v50  ;;  %3032 = vmatprep.subr.mxu1 %v1040_v51  ;;  %v984_v27 = vld [vmem:[%s12143_s1 + $0x1d98] sm:$0xff]  ;;  %v983_v30 = vld [vmem:[%s12143_s1 + $0x1d90] sm:$0xff] }
 0x172   :  { %2962 = vmatpush2.msra.mxu0 %v783_v53  ;;  %3033 = vmatpush2.msra.mxu1 %v1039_v55  ;;  %v720_v52 = vld [vmem:[%s12143_s1 + $0x1558] sm:$0xff]  ;;  %v719_v33 = vld [vmem:[%s12143_s1 + $0x1550] sm:$0xff] }
 0x173   :  { %2963 = vmatprep.subr.mxu0 %v776_v56  ;;  %3034 = vmatprep.subr.mxu1 %v1032_v58  ;;  %v976_v32 = vld [vmem:[%s12143_s1 + $0x1d58] sm:$0xff]  ;;  %v975_v35 = vld [vmem:[%s12143_s1 + $0x1d50] sm:$0xff] }
 0x174   :  { %2964 = vmatpush2.msra.mxu0 %v775_v59  ;;  %3035 = vmatpush2.msra.mxu1 %v1031_v60  ;;  %v712_v36 = vld [vmem:[%s12143_s1 + $0x1518] sm:$0xff]  ;;  %v711_v38 = vld [vmem:[%s12143_s1 + $0x1510] sm:$0xff] }
 0x175   :  { %2965 = vmatprep.subr.mxu0 %v768_v61  ;;  %3036 = vmatprep.subr.mxu1 %v1024_v63  ;;  %v968_v37 = vld [vmem:[%s12143_s1 + $0x1d18] sm:$0xff]  ;;  %v967_v39 = vld [vmem:[%s12143_s1 + $0x1d10] sm:$0xff] }
 0x176   :  { %2966 = vmatpush2.msra.mxu0 %v767_v0  ;;  %3037 = vmatpush2.msra.mxu1 %v1023_v1  ;;  %v704_v40 = vld [vmem:[%s12143_s1 + $0x14d8] sm:$0xff]  ;;  %v703_v44 = vld [vmem:[%s12143_s1 + $0x14d0] sm:$0xff] }
 0x177   :  { %2967 = vmatprep.subr.mxu0 %v760_v2  ;;  %3038 = vmatprep.subr.mxu1 %v1016_v4  ;;  %v960_v42 = vld [vmem:[%s12143_s1 + $0x1cd8] sm:$0xff]  ;;  %v959_v45 = vld [vmem:[%s12143_s1 + $0x1cd0] sm:$0xff] }
 0x178   :  { %2968 = vmatpush2.msra.mxu0 %v759_v5  ;;  %3039 = vmatpush2.msra.mxu1 %v1015_v6  ;;  %v696_v46 = vld [vmem:[%s12143_s1 + $0x1498] sm:$0xff]  ;;  %v695_v49 = vld [vmem:[%s12143_s1 + $0x1490] sm:$0xff] }
 0x179   :  { %2969 = vmatprep.subr.mxu0 %v752_v7  ;;  %3040 = vmatprep.subr.mxu1 %v1008_v9  ;;  %v952_v47 = vld [vmem:[%s12143_s1 + $0x1c98] sm:$0xff]  ;;  %v951_v50 = vld [vmem:[%s12143_s1 + $0x1c90] sm:$0xff] }
 0x17a   :  { %2970 = vmatpush2.msra.mxu0 %v751_v10  ;;  %3041 = vmatpush2.msra.mxu1 %v1007_v12  ;;  %v688_v51 = vld [vmem:[%s12143_s1 + $0x1458] sm:$0xff]  ;;  %v687_v55 = vld [vmem:[%s12143_s1 + $0x1450] sm:$0xff] }
 0x17b   :  { %2971 = vmatprep.subr.mxu0 %v744_v13  ;;  %3042 = vmatprep.subr.mxu1 %v1000_v14  ;;  %v944_v53 = vld [vmem:[%s12143_s1 + $0x1c58] sm:$0xff]  ;;  %v943_v56 = vld [vmem:[%s12143_s1 + $0x1c50] sm:$0xff] }
 0x17c   :  { %2972 = vmatpush2.msra.mxu0 %v743_v15  ;;  %3043 = vmatpush2.msra.mxu1 %v999_v17  ;;  %v680_v58 = vld [vmem:[%s12143_s1 + $0x1418] sm:$0xff]  ;;  %v679_v60 = vld [vmem:[%s12143_s1 + $0x1410] sm:$0xff] }
 0x17d   :  { %2973 = vmatprep.subr.mxu0 %v736_v18  ;;  %3044 = vmatprep.subr.mxu1 %v992_v20  ;;  %v936_v59 = vld [vmem:[%s12143_s1 + $0x1c18] sm:$0xff]  ;;  %v935_v61 = vld [vmem:[%s12143_s1 + $0x1c10] sm:$0xff] }
 0x17e   :  { %2974 = vmatpush2.msra.mxu0 %v735_v22  ;;  %3045 = vmatpush2.msra.mxu1 %v991_v23  ;;  %v1184_v63 = vld [vmem:[%s12143_s1 + $0x23d8] sm:$0xff]  ;;  %v1183_v1 = vld [vmem:[%s12143_s1 + $0x23d0] sm:$0xff] }
 0x17f   :  { %2975 = vmatprep.subr.mxu0 %v728_v24  ;;  %3046 = vmatprep.subr.mxu1 %v984_v27  ;;  %v1440_v0 = vld [vmem:[%s12143_s1 + $0x2bd8] sm:$0xff]  ;;  %v1439_v2 = vld [vmem:[%s12143_s1 + $0x2bd0] sm:$0xff] }
 0x180   :  { %2976 = vmatpush2.msra.mxu0 %v727_v28  ;;  %3047 = vmatpush2.msra.mxu1 %v983_v30  ;;  %v1176_v4 = vld [vmem:[%s12143_s1 + $0x2398] sm:$0xff]  ;;  %v1175_v6 = vld [vmem:[%s12143_s1 + $0x2390] sm:$0xff] }
 0x181   :  { %2977 = vmatprep.subr.mxu0 %v720_v52  ;;  %3048 = vmatprep.subr.mxu1 %v976_v32  ;;  %v1432_v5 = vld [vmem:[%s12143_s1 + $0x2b98] sm:$0xff]  ;;  %v1431_v7 = vld [vmem:[%s12143_s1 + $0x2b90] sm:$0xff] }
 0x182   :  { %2978 = vmatpush2.msra.mxu0 %v719_v33  ;;  %3049 = vmatpush2.msra.mxu1 %v975_v35  ;;  %v1168_v9 = vld [vmem:[%s12143_s1 + $0x2358] sm:$0xff]  ;;  %v1167_v12 = vld [vmem:[%s12143_s1 + $0x2350] sm:$0xff] }
 0x183   :  { %2979 = vmatprep.subr.mxu0 %v712_v36  ;;  %3050 = vmatprep.subr.mxu1 %v968_v37  ;;  %v1424_v10 = vld [vmem:[%s12143_s1 + $0x2b58] sm:$0xff]  ;;  %v1423_v13 = vld [vmem:[%s12143_s1 + $0x2b50] sm:$0xff] }
 0x184   :  { %2980 = vmatpush2.msra.mxu0 %v711_v38  ;;  %3051 = vmatpush2.msra.mxu1 %v967_v39  ;;  %v1160_v14 = vld [vmem:[%s12143_s1 + $0x2318] sm:$0xff]  ;;  %v1159_v17 = vld [vmem:[%s12143_s1 + $0x2310] sm:$0xff] }
 0x185   :  { %2981 = vmatprep.subr.mxu0 %v704_v40  ;;  %3052 = vmatprep.subr.mxu1 %v960_v42  ;;  %v1416_v15 = vld [vmem:[%s12143_s1 + $0x2b18] sm:$0xff]  ;;  %v1415_v18 = vld [vmem:[%s12143_s1 + $0x2b10] sm:$0xff] }
 0x186   :  { %2982 = vmatpush2.msra.mxu0 %v703_v44  ;;  %3053 = vmatpush2.msra.mxu1 %v959_v45  ;;  %v1152_v20 = vld [vmem:[%s12143_s1 + $0x22d8] sm:$0xff]  ;;  %v1151_v23 = vld [vmem:[%s12143_s1 + $0x22d0] sm:$0xff] }
 0x187   :  { %2983 = vmatprep.subr.mxu0 %v696_v46  ;;  %3054 = vmatprep.subr.mxu1 %v952_v47  ;;  %v1408_v22 = vld [vmem:[%s12143_s1 + $0x2ad8] sm:$0xff]  ;;  %v1407_v24 = vld [vmem:[%s12143_s1 + $0x2ad0] sm:$0xff] }
 0x188   :  { %2984 = vmatpush2.msra.mxu0 %v695_v49  ;;  %3055 = vmatpush2.msra.mxu1 %v951_v50  ;;  %v1144_v27 = vld [vmem:[%s12143_s1 + $0x2298] sm:$0xff]  ;;  %v1143_v30 = vld [vmem:[%s12143_s1 + $0x2290] sm:$0xff] }
 0x189   :  { %2985 = vmatprep.subr.mxu0 %v688_v51  ;;  %3056 = vmatprep.subr.mxu1 %v944_v53  ;;  %v1400_v28 = vld [vmem:[%s12143_s1 + $0x2a98] sm:$0xff]  ;;  %v1399_v52 = vld [vmem:[%s12143_s1 + $0x2a90] sm:$0xff] }
 0x18a   :  { %2986 = vmatpush2.msra.mxu0 %v687_v55  ;;  %3057 = vmatpush2.msra.mxu1 %v943_v56  ;;  %v1136_v32 = vld [vmem:[%s12143_s1 + $0x2258] sm:$0xff]  ;;  %v1135_v35 = vld [vmem:[%s12143_s1 + $0x2250] sm:$0xff] }
 0x18b   :  { %2987 = vmatprep.subr.mxu0 %v680_v58  ;;  %3058 = vmatprep.subr.mxu1 %v936_v59  ;;  %v1392_v33 = vld [vmem:[%s12143_s1 + $0x2a58] sm:$0xff]  ;;  %v1391_v36 = vld [vmem:[%s12143_s1 + $0x2a50] sm:$0xff] }
 0x18c   :  { %2988 = vmatpush2.msra.mxu0 %v679_v60  ;;  %2989 = vmatprep.mubr.f32.mxu0 %v6002_v26  ;;  %v1128_v37 = vld [vmem:[%s12143_s1 + $0x2218] sm:$0xff]  ;;  %v1127_v39 = vld [vmem:[%s12143_s1 + $0x2210] sm:$0xff] }
 0x18d   :  { %3059 = vmatpush2.msra.mxu1 %v935_v61  ;;  %2990 = vmatmul.mubr.f32.vlgmr.msra.gmra.mxu0 %v5971_v16  ;;  %v1384_v38 = vld [vmem:[%s12143_s1 + $0x2a18] sm:$0xff]  ;;  %v1383_v40 = vld [vmem:[%s12143_s1 + $0x2a10] sm:$0xff] }
 0x18e   :  { %3060 = vmatprep.mubr.f32.mxu1 %v6012_v29  ;;  %3067 = vmatprep.subr.mxu0 %v1184_v63  ;;  %v1120_v42 = vld [vmem:[%s12143_s1 + $0x21d8] sm:$0xff]  ;;  %v1119_v45 = vld [vmem:[%s12143_s1 + $0x21d0] sm:$0xff] }
 0x18f   :  { %3138 = vmatprep.subr.mxu1 %v1440_v0  ;;  %3061 = vmatmul.mubr.f32.vlgmr.msra.gmra.mxu1 %v5986_v21  ;;  %v1376_v44 = vld [vmem:[%s12143_s1 + $0x29d8] sm:$0xff]  ;;  %v1375_v46 = vld [vmem:[%s12143_s1 + $0x29d0] sm:$0xff] }
 0x190   :  { %3068 = vmatpush1.msra.mxu0 %v1183_v1  ;;  %3139 = vmatpush1.msra.mxu1 %v1439_v2  ;;  %v1112_v47 = vld [vmem:[%s12143_s1 + $0x2198] sm:$0xff]  ;;  %v1111_v50 = vld [vmem:[%s12143_s1 + $0x2190] sm:$0xff] }
 0x191   :  { %3069 = vmatprep.subr.mxu0 %v1176_v4  ;;  %3140 = vmatprep.subr.mxu1 %v1432_v5  ;;  %v1368_v49 = vld [vmem:[%s12143_s1 + $0x2998] sm:$0xff]  ;;  %v1367_v51 = vld [vmem:[%s12143_s1 + $0x2990] sm:$0xff] }
 0x192   :  { %3070 = vmatpush1.msra.mxu0 %v1175_v6  ;;  %3141 = vmatpush1.msra.mxu1 %v1431_v7  ;;  %v1104_v53 = vld [vmem:[%s12143_s1 + $0x2158] sm:$0xff]  ;;  %v1103_v56 = vld [vmem:[%s12143_s1 + $0x2150] sm:$0xff] }
 0x193   :  { %3071 = vmatprep.subr.mxu0 %v1168_v9  ;;  %3142 = vmatprep.subr.mxu1 %v1424_v10  ;;  %v1360_v55 = vld [vmem:[%s12143_s1 + $0x2958] sm:$0xff]  ;;  %v1359_v58 = vld [vmem:[%s12143_s1 + $0x2950] sm:$0xff] }
 0x194   :  { %3072 = vmatpush1.msra.mxu0 %v1167_v12  ;;  %3143 = vmatpush1.msra.mxu1 %v1423_v13  ;;  %v1096_v59 = vld [vmem:[%s12143_s1 + $0x2118] sm:$0xff]  ;;  %v1095_v61 = vld [vmem:[%s12143_s1 + $0x2110] sm:$0xff] }
 0x195   :  { %3073 = vmatprep.subr.mxu0 %v1160_v14  ;;  %3144 = vmatprep.subr.mxu1 %v1416_v15  ;;  %v1352_v60 = vld [vmem:[%s12143_s1 + $0x2918] sm:$0xff]  ;;  %v1351_v63 = vld [vmem:[%s12143_s1 + $0x2910] sm:$0xff] }
 0x196   :  { %3074 = vmatpush1.msra.mxu0 %v1159_v17  ;;  %3145 = vmatpush1.msra.mxu1 %v1415_v18  ;;  %v1088_v0 = vld [vmem:[%s12143_s1 + $0x20d8] sm:$0xff]  ;;  %v1087_v2 = vld [vmem:[%s12143_s1 + $0x20d0] sm:$0xff] }
 0x197   :  { %3075 = vmatprep.subr.mxu0 %v1152_v20  ;;  %3146 = vmatprep.subr.mxu1 %v1408_v22  ;;  %v1344_v1 = vld [vmem:[%s12143_s1 + $0x28d8] sm:$0xff]  ;;  %v1343_v4 = vld [vmem:[%s12143_s1 + $0x28d0] sm:$0xff] }
 0x198   :  { %3076 = vmatpush1.msra.mxu0 %v1151_v23  ;;  %3147 = vmatpush1.msra.mxu1 %v1407_v24  ;;  %v1080_v5 = vld [vmem:[%s12143_s1 + $0x2098] sm:$0xff]  ;;  %v1079_v7 = vld [vmem:[%s12143_s1 + $0x2090] sm:$0xff] }
 0x199   :  { %3077 = vmatprep.subr.mxu0 %v1144_v27  ;;  %3148 = vmatprep.subr.mxu1 %v1400_v28  ;;  %v1336_v6 = vld [vmem:[%s12143_s1 + $0x2898] sm:$0xff]  ;;  %v1335_v9 = vld [vmem:[%s12143_s1 + $0x2890] sm:$0xff] }
 0x19a   :  { %3078 = vmatpush1.msra.mxu0 %v1143_v30  ;;  %3149 = vmatpush1.msra.mxu1 %v1399_v52  ;;  %v1072_v10 = vld [vmem:[%s12143_s1 + $0x2058] sm:$0xff]  ;;  %v1071_v13 = vld [vmem:[%s12143_s1 + $0x2050] sm:$0xff] }
 0x19b   :  { %3079 = vmatprep.subr.mxu0 %v1136_v32  ;;  %3150 = vmatprep.subr.mxu1 %v1392_v33  ;;  %v1328_v12 = vld [vmem:[%s12143_s1 + $0x2858] sm:$0xff]  ;;  %v1327_v14 = vld [vmem:[%s12143_s1 + $0x2850] sm:$0xff] }
 0x19c   :  { %3080 = vmatpush1.msra.mxu0 %v1135_v35  ;;  %3151 = vmatpush1.msra.mxu1 %v1391_v36  ;;  %v1064_v15 = vld [vmem:[%s12143_s1 + $0x2018] sm:$0xff]  ;;  %v1063_v18 = vld [vmem:[%s12143_s1 + $0x2010] sm:$0xff] }
 0x19d   :  { %3081 = vmatprep.subr.mxu0 %v1128_v37  ;;  %3152 = vmatprep.subr.mxu1 %v1384_v38  ;;  %v1320_v17 = vld [vmem:[%s12143_s1 + $0x2818] sm:$0xff]  ;;  %v1319_v20 = vld [vmem:[%s12143_s1 + $0x2810] sm:$0xff] }
 0x19e   :  { %3082 = vmatpush1.msra.mxu0 %v1127_v39  ;;  %3153 = vmatpush1.msra.mxu1 %v1383_v40  ;;  %v1312_v22 = vld [vmem:[%s12143_s1 + $0x27d8] sm:$0xff]  ;;  %v1311_v24 = vld [vmem:[%s12143_s1 + $0x27d0] sm:$0xff] }
 0x19f   :  { %3083 = vmatprep.subr.mxu0 %v1120_v42  ;;  %3154 = vmatprep.subr.mxu1 %v1376_v44  ;;  %v1568_v23 = vld [vmem:[%s12143_s1 + $0x2fd8] sm:$0xff]  ;;  %v1567_v27 = vld [vmem:[%s12143_s1 + $0x2fd0] sm:$0xff] }
 0x1a0   :  { %3084 = vmatpush1.msra.mxu0 %v1119_v45  ;;  %3155 = vmatpush1.msra.mxu1 %v1375_v46  ;;  %v1304_v28 = vld [vmem:[%s12143_s1 + $0x2798] sm:$0xff]  ;;  %v1303_v52 = vld [vmem:[%s12143_s1 + $0x2790] sm:$0xff] }
 0x1a1   :  { %3085 = vmatprep.subr.mxu0 %v1112_v47  ;;  %3156 = vmatprep.subr.mxu1 %v1368_v49  ;;  %v1560_v30 = vld [vmem:[%s12143_s1 + $0x2f98] sm:$0xff]  ;;  %v1559_v32 = vld [vmem:[%s12143_s1 + $0x2f90] sm:$0xff] }
 0x1a2   :  { %3086 = vmatpush1.msra.mxu0 %v1111_v50  ;;  %3157 = vmatpush1.msra.mxu1 %v1367_v51  ;;  %v1296_v33 = vld [vmem:[%s12143_s1 + $0x2758] sm:$0xff]  ;;  %v1295_v36 = vld [vmem:[%s12143_s1 + $0x2750] sm:$0xff] }
 0x1a3   :  { %3087 = vmatprep.subr.mxu0 %v1104_v53  ;;  %3158 = vmatprep.subr.mxu1 %v1360_v55  ;;  %v1552_v35 = vld [vmem:[%s12143_s1 + $0x2f58] sm:$0xff]  ;;  %v1551_v37 = vld [vmem:[%s12143_s1 + $0x2f50] sm:$0xff] }
 0x1a4   :  { %3088 = vmatpush1.msra.mxu0 %v1103_v56  ;;  %3159 = vmatpush1.msra.mxu1 %v1359_v58  ;;  %v1288_v38 = vld [vmem:[%s12143_s1 + $0x2718] sm:$0xff]  ;;  %v1287_v40 = vld [vmem:[%s12143_s1 + $0x2710] sm:$0xff] }
 0x1a5   :  { %3089 = vmatprep.subr.mxu0 %v1096_v59  ;;  %3160 = vmatprep.subr.mxu1 %v1352_v60  ;;  %v1544_v39 = vld [vmem:[%s12143_s1 + $0x2f18] sm:$0xff]  ;;  %v1543_v42 = vld [vmem:[%s12143_s1 + $0x2f10] sm:$0xff] }
 0x1a6   :  { %3090 = vmatpush1.msra.mxu0 %v1095_v61  ;;  %3161 = vmatpush1.msra.mxu1 %v1351_v63  ;;  %v1280_v44 = vld [vmem:[%s12143_s1 + $0x26d8] sm:$0xff]  ;;  %v1279_v46 = vld [vmem:[%s12143_s1 + $0x26d0] sm:$0xff] }
 0x1a7   :  { %3091 = vmatprep.subr.mxu0 %v1088_v0  ;;  %3162 = vmatprep.subr.mxu1 %v1344_v1  ;;  %v1536_v45 = vld [vmem:[%s12143_s1 + $0x2ed8] sm:$0xff]  ;;  %v1535_v47 = vld [vmem:[%s12143_s1 + $0x2ed0] sm:$0xff] }
 0x1a8   :  { %3092 = vmatpush1.msra.mxu0 %v1087_v2  ;;  %3163 = vmatpush1.msra.mxu1 %v1343_v4  ;;  %v1272_v49 = vld [vmem:[%s12143_s1 + $0x2698] sm:$0xff]  ;;  %v1271_v51 = vld [vmem:[%s12143_s1 + $0x2690] sm:$0xff] }
 0x1a9   :  { %3093 = vmatprep.subr.mxu0 %v1080_v5  ;;  %3164 = vmatprep.subr.mxu1 %v1336_v6  ;;  %v1528_v50 = vld [vmem:[%s12143_s1 + $0x2e98] sm:$0xff]  ;;  %v1527_v53 = vld [vmem:[%s12143_s1 + $0x2e90] sm:$0xff] }
 0x1aa   :  { %3094 = vmatpush1.msra.mxu0 %v1079_v7  ;;  %3165 = vmatpush1.msra.mxu1 %v1335_v9  ;;  %v1264_v55 = vld [vmem:[%s12143_s1 + $0x2658] sm:$0xff]  ;;  %v1263_v58 = vld [vmem:[%s12143_s1 + $0x2650] sm:$0xff] }
 0x1ab   :  { %3095 = vmatprep.subr.mxu0 %v1072_v10  ;;  %3166 = vmatprep.subr.mxu1 %v1328_v12  ;;  %v1520_v56 = vld [vmem:[%s12143_s1 + $0x2e58] sm:$0xff]  ;;  %v1519_v59 = vld [vmem:[%s12143_s1 + $0x2e50] sm:$0xff] }
 0x1ac   :  { %3096 = vmatpush1.msra.mxu0 %v1071_v13  ;;  %3167 = vmatpush1.msra.mxu1 %v1327_v14  ;;  %v1256_v60 = vld [vmem:[%s12143_s1 + $0x2618] sm:$0xff]  ;;  %v1255_v63 = vld [vmem:[%s12143_s1 + $0x2610] sm:$0xff] }
 0x1ad   :  { %3097 = vmatprep.subr.mxu0 %v1064_v15  ;;  %3168 = vmatprep.subr.mxu1 %v1320_v17  ;;  %v1512_v61 = vld [vmem:[%s12143_s1 + $0x2e18] sm:$0xff]  ;;  %v1511_v0 = vld [vmem:[%s12143_s1 + $0x2e10] sm:$0xff] }
 0x1ae   :  { %3098 = vmatpush1.msra.mxu0 %v1063_v18  ;;  %3169 = vmatpush1.msra.mxu1 %v1319_v20  ;;  %v1248_v1 = vld [vmem:[%s12143_s1 + $0x25d8] sm:$0xff]  ;;  %v1247_v4 = vld [vmem:[%s12143_s1 + $0x25d0] sm:$0xff] }
 0x1af   :  { %3099 = vmatprep.subr.mxu0 %v1312_v22  ;;  %3170 = vmatprep.subr.mxu1 %v1568_v23  ;;  %v1504_v2 = vld [vmem:[%s12143_s1 + $0x2dd8] sm:$0xff]  ;;  %v1503_v5 = vld [vmem:[%s12143_s1 + $0x2dd0] sm:$0xff] }
 0x1b0   :  { %3100 = vmatpush2.msra.mxu0 %v1311_v24  ;;  %3171 = vmatpush2.msra.mxu1 %v1567_v27  ;;  %v1240_v6 = vld [vmem:[%s12143_s1 + $0x2598] sm:$0xff]  ;;  %v1239_v9 = vld [vmem:[%s12143_s1 + $0x2590] sm:$0xff] }
 0x1b1   :  { %3101 = vmatprep.subr.mxu0 %v1304_v28  ;;  %3172 = vmatprep.subr.mxu1 %v1560_v30  ;;  %v1496_v7 = vld [vmem:[%s12143_s1 + $0x2d98] sm:$0xff]  ;;  %v1495_v10 = vld [vmem:[%s12143_s1 + $0x2d90] sm:$0xff] }
 0x1b2   :  { %3102 = vmatpush2.msra.mxu0 %v1303_v52  ;;  %3173 = vmatpush2.msra.mxu1 %v1559_v32  ;;  %v1232_v12 = vld [vmem:[%s12143_s1 + $0x2558] sm:$0xff]  ;;  %v1231_v14 = vld [vmem:[%s12143_s1 + $0x2550] sm:$0xff] }
 0x1b3   :  { %3103 = vmatprep.subr.mxu0 %v1296_v33  ;;  %3174 = vmatprep.subr.mxu1 %v1552_v35  ;;  %v1488_v13 = vld [vmem:[%s12143_s1 + $0x2d58] sm:$0xff]  ;;  %v1487_v15 = vld [vmem:[%s12143_s1 + $0x2d50] sm:$0xff] }
 0x1b4   :  { %3104 = vmatpush2.msra.mxu0 %v1295_v36  ;;  %3175 = vmatpush2.msra.mxu1 %v1551_v37  ;;  %v1224_v17 = vld [vmem:[%s12143_s1 + $0x2518] sm:$0xff]  ;;  %v1223_v20 = vld [vmem:[%s12143_s1 + $0x2510] sm:$0xff] }
 0x1b5   :  { %3105 = vmatprep.subr.mxu0 %v1288_v38  ;;  %3176 = vmatprep.subr.mxu1 %v1544_v39  ;;  %v1480_v18 = vld [vmem:[%s12143_s1 + $0x2d18] sm:$0xff]  ;;  %v1479_v22 = vld [vmem:[%s12143_s1 + $0x2d10] sm:$0xff] }
 0x1b6   :  { %3106 = vmatpush2.msra.mxu0 %v1287_v40  ;;  %3177 = vmatpush2.msra.mxu1 %v1543_v42  ;;  %v1216_v23 = vld [vmem:[%s12143_s1 + $0x24d8] sm:$0xff]  ;;  %v1215_v27 = vld [vmem:[%s12143_s1 + $0x24d0] sm:$0xff] }
 0x1b7   :  { %3107 = vmatprep.subr.mxu0 %v1280_v44  ;;  %3178 = vmatprep.subr.mxu1 %v1536_v45  ;;  %v1472_v24 = vld [vmem:[%s12143_s1 + $0x2cd8] sm:$0xff]  ;;  %v1471_v28 = vld [vmem:[%s12143_s1 + $0x2cd0] sm:$0xff] }
 0x1b8   :  { %3108 = vmatpush2.msra.mxu0 %v1279_v46  ;;  %3179 = vmatpush2.msra.mxu1 %v1535_v47  ;;  %v1208_v30 = vld [vmem:[%s12143_s1 + $0x2498] sm:$0xff]  ;;  %v1207_v32 = vld [vmem:[%s12143_s1 + $0x2490] sm:$0xff] }
 0x1b9   :  { %3109 = vmatprep.subr.mxu0 %v1272_v49  ;;  %3180 = vmatprep.subr.mxu1 %v1528_v50  ;;  %v1464_v52 = vld [vmem:[%s12143_s1 + $0x2c98] sm:$0xff]  ;;  %v1463_v33 = vld [vmem:[%s12143_s1 + $0x2c90] sm:$0xff] }
 0x1ba   :  { %3110 = vmatpush2.msra.mxu0 %v1271_v51  ;;  %3181 = vmatpush2.msra.mxu1 %v1527_v53  ;;  %v1200_v35 = vld [vmem:[%s12143_s1 + $0x2458] sm:$0xff]  ;;  %v1199_v37 = vld [vmem:[%s12143_s1 + $0x2450] sm:$0xff] }
 0x1bb   :  { %3111 = vmatprep.subr.mxu0 %v1264_v55  ;;  %3182 = vmatprep.subr.mxu1 %v1520_v56  ;;  %v1456_v36 = vld [vmem:[%s12143_s1 + $0x2c58] sm:$0xff]  ;;  %v1455_v38 = vld [vmem:[%s12143_s1 + $0x2c50] sm:$0xff] }
 0x1bc   :  { %3112 = vmatpush2.msra.mxu0 %v1263_v58  ;;  %3183 = vmatpush2.msra.mxu1 %v1519_v59  ;;  %v1192_v39 = vld [vmem:[%s12143_s1 + $0x2418] sm:$0xff]  ;;  %v1191_v42 = vld [vmem:[%s12143_s1 + $0x2410] sm:$0xff] }
 0x1bd   :  { %3113 = vmatprep.subr.mxu0 %v1256_v60  ;;  %3184 = vmatprep.subr.mxu1 %v1512_v61  ;;  %v1448_v40 = vld [vmem:[%s12143_s1 + $0x2c18] sm:$0xff]  ;;  %v1447_v44 = vld [vmem:[%s12143_s1 + $0x2c10] sm:$0xff] }
 0x1be   :  { %3114 = vmatpush2.msra.mxu0 %v1255_v63  ;;  %3185 = vmatpush2.msra.mxu1 %v1511_v0  ;;  %v1696_v45 = vld [vmem:[%s12143_s1 + $0x33d8] sm:$0xff]  ;;  %v1695_v47 = vld [vmem:[%s12143_s1 + $0x33d0] sm:$0xff] }
 0x1bf   :  { %3115 = vmatprep.subr.mxu0 %v1248_v1  ;;  %3186 = vmatprep.subr.mxu1 %v1504_v2  ;;  %v1952_v46 = vld [vmem:[%s12143_s1 + $0x3bd8] sm:$0xff]  ;;  %v1951_v49 = vld [vmem:[%s12143_s1 + $0x3bd0] sm:$0xff] }
 0x1c0   :  { %3116 = vmatpush2.msra.mxu0 %v1247_v4  ;;  %3187 = vmatpush2.msra.mxu1 %v1503_v5  ;;  %v1688_v50 = vld [vmem:[%s12143_s1 + $0x3398] sm:$0xff]  ;;  %v1687_v53 = vld [vmem:[%s12143_s1 + $0x3390] sm:$0xff] }
 0x1c1   :  { %3117 = vmatprep.subr.mxu0 %v1240_v6  ;;  %3188 = vmatprep.subr.mxu1 %v1496_v7  ;;  %v1944_v51 = vld [vmem:[%s12143_s1 + $0x3b98] sm:$0xff]  ;;  %v1943_v55 = vld [vmem:[%s12143_s1 + $0x3b90] sm:$0xff] }
 0x1c2   :  { %3118 = vmatpush2.msra.mxu0 %v1239_v9  ;;  %3189 = vmatpush2.msra.mxu1 %v1495_v10  ;;  %v1680_v56 = vld [vmem:[%s12143_s1 + $0x3358] sm:$0xff]  ;;  %v1679_v59 = vld [vmem:[%s12143_s1 + $0x3350] sm:$0xff] }
 0x1c3   :  { %3119 = vmatprep.subr.mxu0 %v1232_v12  ;;  %3190 = vmatprep.subr.mxu1 %v1488_v13  ;;  %v1936_v58 = vld [vmem:[%s12143_s1 + $0x3b58] sm:$0xff]  ;;  %v1935_v60 = vld [vmem:[%s12143_s1 + $0x3b50] sm:$0xff] }
 0x1c4   :  { %3120 = vmatpush2.msra.mxu0 %v1231_v14  ;;  %3191 = vmatpush2.msra.mxu1 %v1487_v15  ;;  %v1672_v61 = vld [vmem:[%s12143_s1 + $0x3318] sm:$0xff]  ;;  %v1671_v0 = vld [vmem:[%s12143_s1 + $0x3310] sm:$0xff] }
 0x1c5   :  { %3121 = vmatprep.subr.mxu0 %v1224_v17  ;;  %3192 = vmatprep.subr.mxu1 %v1480_v18  ;;  %v1928_v63 = vld [vmem:[%s12143_s1 + $0x3b18] sm:$0xff]  ;;  %v1927_v1 = vld [vmem:[%s12143_s1 + $0x3b10] sm:$0xff] }
 0x1c6   :  { %3122 = vmatpush2.msra.mxu0 %v1223_v20  ;;  %3193 = vmatpush2.msra.mxu1 %v1479_v22  ;;  %v1664_v2 = vld [vmem:[%s12143_s1 + $0x32d8] sm:$0xff]  ;;  %v1663_v5 = vld [vmem:[%s12143_s1 + $0x32d0] sm:$0xff] }
 0x1c7   :  { %3123 = vmatprep.subr.mxu0 %v1216_v23  ;;  %3194 = vmatprep.subr.mxu1 %v1472_v24  ;;  %v1920_v4 = vld [vmem:[%s12143_s1 + $0x3ad8] sm:$0xff]  ;;  %v1919_v6 = vld [vmem:[%s12143_s1 + $0x3ad0] sm:$0xff] }
 0x1c8   :  { %3124 = vmatpush2.msra.mxu0 %v1215_v27  ;;  %3195 = vmatpush2.msra.mxu1 %v1471_v28  ;;  %v1656_v7 = vld [vmem:[%s12143_s1 + $0x3298] sm:$0xff]  ;;  %v1655_v10 = vld [vmem:[%s12143_s1 + $0x3290] sm:$0xff] }
 0x1c9   :  { %3125 = vmatprep.subr.mxu0 %v1208_v30  ;;  %3196 = vmatprep.subr.mxu1 %v1464_v52  ;;  %v1912_v9 = vld [vmem:[%s12143_s1 + $0x3a98] sm:$0xff]  ;;  %v1911_v12 = vld [vmem:[%s12143_s1 + $0x3a90] sm:$0xff] }
 0x1ca   :  { %3126 = vmatpush2.msra.mxu0 %v1207_v32  ;;  %3197 = vmatpush2.msra.mxu1 %v1463_v33  ;;  %v1648_v13 = vld [vmem:[%s12143_s1 + $0x3258] sm:$0xff]  ;;  %v1647_v15 = vld [vmem:[%s12143_s1 + $0x3250] sm:$0xff] }
 0x1cb   :  { %3127 = vmatprep.subr.mxu0 %v1200_v35  ;;  %3198 = vmatprep.subr.mxu1 %v1456_v36  ;;  %v1904_v14 = vld [vmem:[%s12143_s1 + $0x3a58] sm:$0xff]  ;;  %v1903_v17 = vld [vmem:[%s12143_s1 + $0x3a50] sm:$0xff] }
 0x1cc   :  { %3128 = vmatpush2.msra.mxu0 %v1199_v37  ;;  %3199 = vmatpush2.msra.mxu1 %v1455_v38  ;;  %v1640_v18 = vld [vmem:[%s12143_s1 + $0x3218] sm:$0xff]  ;;  %v1639_v22 = vld [vmem:[%s12143_s1 + $0x3210] sm:$0xff] }
 0x1cd   :  { %3129 = vmatprep.subr.mxu0 %v1192_v39  ;;  %3200 = vmatprep.subr.mxu1 %v1448_v40  ;;  %v1896_v20 = vld [vmem:[%s12143_s1 + $0x3a18] sm:$0xff]  ;;  %v1895_v23 = vld [vmem:[%s12143_s1 + $0x3a10] sm:$0xff] }
 0x1ce   :  { %3130 = vmatpush2.msra.mxu0 %v1191_v42  ;;  %3131 = vmatprep.mubr.f32.mxu0 %v6407_v54  ;;  %v1632_v24 = vld [vmem:[%s12143_s1 + $0x31d8] sm:$0xff]  ;;  %v1631_v28 = vld [vmem:[%s12143_s1 + $0x31d0] sm:$0xff] }
 0x1cf   :  { %3201 = vmatpush2.msra.mxu1 %v1447_v44  ;;  %3132 = vmatmul.mubr.f32.vlgmr.msra.gmra.mxu0 %v6376_v43  ;;  %v1888_v27 = vld [vmem:[%s12143_s1 + $0x39d8] sm:$0xff]  ;;  %v1887_v30 = vld [vmem:[%s12143_s1 + $0x39d0] sm:$0xff] }
 0x1d0   :  { %3202 = vmatprep.mubr.f32.mxu1 %v6417_v57  ;;  %3209 = vmatprep.subr.mxu0 %v1696_v45  ;;  %v1624_v52 = vld [vmem:[%s12143_s1 + $0x3198] sm:$0xff]  ;;  %v1623_v33 = vld [vmem:[%s12143_s1 + $0x3190] sm:$0xff] }
 0x1d1   :  { %3280 = vmatprep.subr.mxu1 %v1952_v46  ;;  %3203 = vmatmul.mubr.f32.vlgmr.msra.gmra.mxu1 %v6391_v48  ;;  %v1880_v32 = vld [vmem:[%s12143_s1 + $0x3998] sm:$0xff]  ;;  %v1879_v35 = vld [vmem:[%s12143_s1 + $0x3990] sm:$0xff] }
 0x1d2   :  { %3210 = vmatpush1.msra.mxu0 %v1695_v47  ;;  %3281 = vmatpush1.msra.mxu1 %v1951_v49  ;;  %v1616_v36 = vld [vmem:[%s12143_s1 + $0x3158] sm:$0xff]  ;;  %v1615_v38 = vld [vmem:[%s12143_s1 + $0x3150] sm:$0xff] }
 0x1d3   :  { %3211 = vmatprep.subr.mxu0 %v1688_v50  ;;  %3282 = vmatprep.subr.mxu1 %v1944_v51  ;;  %v1872_v37 = vld [vmem:[%s12143_s1 + $0x3958] sm:$0xff]  ;;  %v1871_v39 = vld [vmem:[%s12143_s1 + $0x3950] sm:$0xff] }
 0x1d4   :  { %3212 = vmatpush1.msra.mxu0 %v1687_v53  ;;  %3283 = vmatpush1.msra.mxu1 %v1943_v55  ;;  %v1608_v40 = vld [vmem:[%s12143_s1 + $0x3118] sm:$0xff]  ;;  %v1607_v44 = vld [vmem:[%s12143_s1 + $0x3110] sm:$0xff] }
 0x1d5   :  { %3213 = vmatprep.subr.mxu0 %v1680_v56  ;;  %3284 = vmatprep.subr.mxu1 %v1936_v58  ;;  %v1864_v42 = vld [vmem:[%s12143_s1 + $0x3918] sm:$0xff]  ;;  %v1863_v45 = vld [vmem:[%s12143_s1 + $0x3910] sm:$0xff] }
 0x1d6   :  { %3214 = vmatpush1.msra.mxu0 %v1679_v59  ;;  %3285 = vmatpush1.msra.mxu1 %v1935_v60  ;;  %v1600_v46 = vld [vmem:[%s12143_s1 + $0x30d8] sm:$0xff]  ;;  %v1599_v49 = vld [vmem:[%s12143_s1 + $0x30d0] sm:$0xff] }
 0x1d7   :  { %3215 = vmatprep.subr.mxu0 %v1672_v61  ;;  %3286 = vmatprep.subr.mxu1 %v1928_v63  ;;  %v1856_v47 = vld [vmem:[%s12143_s1 + $0x38d8] sm:$0xff]  ;;  %v1855_v50 = vld [vmem:[%s12143_s1 + $0x38d0] sm:$0xff] }
 0x1d8   :  { %3216 = vmatpush1.msra.mxu0 %v1671_v0  ;;  %3287 = vmatpush1.msra.mxu1 %v1927_v1  ;;  %v1592_v51 = vld [vmem:[%s12143_s1 + $0x3098] sm:$0xff]  ;;  %v1591_v55 = vld [vmem:[%s12143_s1 + $0x3090] sm:$0xff] }
 0x1d9   :  { %3217 = vmatprep.subr.mxu0 %v1664_v2  ;;  %3288 = vmatprep.subr.mxu1 %v1920_v4  ;;  %v1848_v53 = vld [vmem:[%s12143_s1 + $0x3898] sm:$0xff]  ;;  %v1847_v56 = vld [vmem:[%s12143_s1 + $0x3890] sm:$0xff] }
 0x1da   :  { %3218 = vmatpush1.msra.mxu0 %v1663_v5  ;;  %3289 = vmatpush1.msra.mxu1 %v1919_v6  ;;  %v1584_v58 = vld [vmem:[%s12143_s1 + $0x3058] sm:$0xff]  ;;  %v1583_v60 = vld [vmem:[%s12143_s1 + $0x3050] sm:$0xff] }
 0x1db   :  { %3219 = vmatprep.subr.mxu0 %v1656_v7  ;;  %3290 = vmatprep.subr.mxu1 %v1912_v9  ;;  %v1840_v59 = vld [vmem:[%s12143_s1 + $0x3858] sm:$0xff]  ;;  %v1839_v61 = vld [vmem:[%s12143_s1 + $0x3850] sm:$0xff] }
 0x1dc   :  { %3220 = vmatpush1.msra.mxu0 %v1655_v10  ;;  %3291 = vmatpush1.msra.mxu1 %v1911_v12  ;;  %v1576_v63 = vld [vmem:[%s12143_s1 + $0x3018] sm:$0xff]  ;;  %v1575_v1 = vld [vmem:[%s12143_s1 + $0x3010] sm:$0xff] }
 0x1dd   :  { %3221 = vmatprep.subr.mxu0 %v1648_v13  ;;  %3292 = vmatprep.subr.mxu1 %v1904_v14  ;;  %v1832_v0 = vld [vmem:[%s12143_s1 + $0x3818] sm:$0xff]  ;;  %v1831_v2 = vld [vmem:[%s12143_s1 + $0x3810] sm:$0xff] }
 0x1de   :  { %3222 = vmatpush1.msra.mxu0 %v1647_v15  ;;  %3293 = vmatpush1.msra.mxu1 %v1903_v17  ;;  %v1824_v4 = vld [vmem:[%s12143_s1 + $0x37d8] sm:$0xff]  ;;  %v1823_v6 = vld [vmem:[%s12143_s1 + $0x37d0] sm:$0xff] }
 0x1df   :  { %3223 = vmatprep.subr.mxu0 %v1640_v18  ;;  %3294 = vmatprep.subr.mxu1 %v1896_v20  ;;  %v2080_v5 = vld [vmem:[%s12143_s1 + $0x3fd8] sm:$0xff]  ;;  %v2079_v7 = vld [vmem:[%s12143_s1 + $0x3fd0] sm:$0xff] }
 0x1e0   :  { %3224 = vmatpush1.msra.mxu0 %v1639_v22  ;;  %3295 = vmatpush1.msra.mxu1 %v1895_v23  ;;  %v1816_v9 = vld [vmem:[%s12143_s1 + $0x3798] sm:$0xff]  ;;  %v1815_v12 = vld [vmem:[%s12143_s1 + $0x3790] sm:$0xff] }
 0x1e1   :  { %3225 = vmatprep.subr.mxu0 %v1632_v24  ;;  %3296 = vmatprep.subr.mxu1 %v1888_v27  ;;  %v2072_v10 = vld [vmem:[%s12143_s1 + $0x3f98] sm:$0xff]  ;;  %v2071_v13 = vld [vmem:[%s12143_s1 + $0x3f90] sm:$0xff] }
 0x1e2   :  { %3226 = vmatpush1.msra.mxu0 %v1631_v28  ;;  %3297 = vmatpush1.msra.mxu1 %v1887_v30  ;;  %v1808_v14 = vld [vmem:[%s12143_s1 + $0x3758] sm:$0xff]  ;;  %v1807_v17 = vld [vmem:[%s12143_s1 + $0x3750] sm:$0xff] }
 0x1e3   :  { %3227 = vmatprep.subr.mxu0 %v1624_v52  ;;  %3298 = vmatprep.subr.mxu1 %v1880_v32  ;;  %v2064_v15 = vld [vmem:[%s12143_s1 + $0x3f58] sm:$0xff]  ;;  %v2063_v18 = vld [vmem:[%s12143_s1 + $0x3f50] sm:$0xff] }
 0x1e4   :  { %3228 = vmatpush1.msra.mxu0 %v1623_v33  ;;  %3299 = vmatpush1.msra.mxu1 %v1879_v35  ;;  %v1800_v20 = vld [vmem:[%s12143_s1 + $0x3718] sm:$0xff]  ;;  %v1799_v23 = vld [vmem:[%s12143_s1 + $0x3710] sm:$0xff] }
 0x1e5   :  { %3229 = vmatprep.subr.mxu0 %v1616_v36  ;;  %3300 = vmatprep.subr.mxu1 %v1872_v37  ;;  %v2056_v22 = vld [vmem:[%s12143_s1 + $0x3f18] sm:$0xff]  ;;  %v2055_v24 = vld [vmem:[%s12143_s1 + $0x3f10] sm:$0xff] }
 0x1e6   :  { %3230 = vmatpush1.msra.mxu0 %v1615_v38  ;;  %3301 = vmatpush1.msra.mxu1 %v1871_v39  ;;  %v1792_v27 = vld [vmem:[%s12143_s1 + $0x36d8] sm:$0xff]  ;;  %v1791_v30 = vld [vmem:[%s12143_s1 + $0x36d0] sm:$0xff] }
 0x1e7   :  { %3231 = vmatprep.subr.mxu0 %v1608_v40  ;;  %3302 = vmatprep.subr.mxu1 %v1864_v42  ;;  %v2048_v28 = vld [vmem:[%s12143_s1 + $0x3ed8] sm:$0xff]  ;;  %v2047_v52 = vld [vmem:[%s12143_s1 + $0x3ed0] sm:$0xff] }
 0x1e8   :  { %3232 = vmatpush1.msra.mxu0 %v1607_v44  ;;  %3303 = vmatpush1.msra.mxu1 %v1863_v45  ;;  %v1784_v32 = vld [vmem:[%s12143_s1 + $0x3698] sm:$0xff]  ;;  %v1783_v35 = vld [vmem:[%s12143_s1 + $0x3690] sm:$0xff] }
 0x1e9   :  { %3233 = vmatprep.subr.mxu0 %v1600_v46  ;;  %3304 = vmatprep.subr.mxu1 %v1856_v47  ;;  %v2040_v33 = vld [vmem:[%s12143_s1 + $0x3e98] sm:$0xff]  ;;  %v2039_v36 = vld [vmem:[%s12143_s1 + $0x3e90] sm:$0xff] }
 0x1ea   :  { %3234 = vmatpush1.msra.mxu0 %v1599_v49  ;;  %3305 = vmatpush1.msra.mxu1 %v1855_v50  ;;  %v1776_v37 = vld [vmem:[%s12143_s1 + $0x3658] sm:$0xff]  ;;  %v1775_v39 = vld [vmem:[%s12143_s1 + $0x3650] sm:$0xff] }
 0x1eb   :  { %3235 = vmatprep.subr.mxu0 %v1592_v51  ;;  %3306 = vmatprep.subr.mxu1 %v1848_v53  ;;  %v2032_v38 = vld [vmem:[%s12143_s1 + $0x3e58] sm:$0xff]  ;;  %v2031_v40 = vld [vmem:[%s12143_s1 + $0x3e50] sm:$0xff] }
 0x1ec   :  { %3236 = vmatpush1.msra.mxu0 %v1591_v55  ;;  %3307 = vmatpush1.msra.mxu1 %v1847_v56  ;;  %v1768_v42 = vld [vmem:[%s12143_s1 + $0x3618] sm:$0xff]  ;;  %v1767_v45 = vld [vmem:[%s12143_s1 + $0x3610] sm:$0xff] }
 0x1ed   :  { %3237 = vmatprep.subr.mxu0 %v1584_v58  ;;  %3308 = vmatprep.subr.mxu1 %v1840_v59  ;;  %v2024_v44 = vld [vmem:[%s12143_s1 + $0x3e18] sm:$0xff]  ;;  %v2023_v46 = vld [vmem:[%s12143_s1 + $0x3e10] sm:$0xff] }
 0x1ee   :  { %3238 = vmatpush1.msra.mxu0 %v1583_v60  ;;  %3309 = vmatpush1.msra.mxu1 %v1839_v61  ;;  %v1760_v47 = vld [vmem:[%s12143_s1 + $0x35d8] sm:$0xff]  ;;  %v1759_v50 = vld [vmem:[%s12143_s1 + $0x35d0] sm:$0xff] }
 0x1ef   :  { %3239 = vmatprep.subr.mxu0 %v1576_v63  ;;  %3310 = vmatprep.subr.mxu1 %v1832_v0  ;;  %v2016_v49 = vld [vmem:[%s12143_s1 + $0x3dd8] sm:$0xff]  ;;  %v2015_v51 = vld [vmem:[%s12143_s1 + $0x3dd0] sm:$0xff] }
 0x1f0   :  { %3240 = vmatpush1.msra.mxu0 %v1575_v1  ;;  %3311 = vmatpush1.msra.mxu1 %v1831_v2  ;;  %v1752_v53 = vld [vmem:[%s12143_s1 + $0x3598] sm:$0xff]  ;;  %v1751_v56 = vld [vmem:[%s12143_s1 + $0x3590] sm:$0xff] }
 0x1f1   :  { %3241 = vmatprep.subr.mxu0 %v1824_v4  ;;  %3312 = vmatprep.subr.mxu1 %v2080_v5  ;;  %v2008_v55 = vld [vmem:[%s12143_s1 + $0x3d98] sm:$0xff]  ;;  %v2007_v58 = vld [vmem:[%s12143_s1 + $0x3d90] sm:$0xff] }
 0x1f2   :  { %3242 = vmatpush2.msra.mxu0 %v1823_v6  ;;  %3313 = vmatpush2.msra.mxu1 %v2079_v7  ;;  %v1744_v59 = vld [vmem:[%s12143_s1 + $0x3558] sm:$0xff]  ;;  %v1743_v61 = vld [vmem:[%s12143_s1 + $0x3550] sm:$0xff] }
 0x1f3   :  { %3243 = vmatprep.subr.mxu0 %v1816_v9  ;;  %3314 = vmatprep.subr.mxu1 %v2072_v10  ;;  %v2000_v60 = vld [vmem:[%s12143_s1 + $0x3d58] sm:$0xff]  ;;  %v1999_v63 = vld [vmem:[%s12143_s1 + $0x3d50] sm:$0xff] }
 0x1f4   :  { %3244 = vmatpush2.msra.mxu0 %v1815_v12  ;;  %3315 = vmatpush2.msra.mxu1 %v2071_v13  ;;  %v1736_v0 = vld [vmem:[%s12143_s1 + $0x3518] sm:$0xff]  ;;  %v1735_v2 = vld [vmem:[%s12143_s1 + $0x3510] sm:$0xff] }
 0x1f5   :  { %3245 = vmatprep.subr.mxu0 %v1808_v14  ;;  %3316 = vmatprep.subr.mxu1 %v2064_v15  ;;  %v1992_v1 = vld [vmem:[%s12143_s1 + $0x3d18] sm:$0xff]  ;;  %v1991_v4 = vld [vmem:[%s12143_s1 + $0x3d10] sm:$0xff] }
 0x1f6   :  { %3246 = vmatpush2.msra.mxu0 %v1807_v17  ;;  %3317 = vmatpush2.msra.mxu1 %v2063_v18  ;;  %v1728_v5 = vld [vmem:[%s12143_s1 + $0x34d8] sm:$0xff]  ;;  %v1727_v7 = vld [vmem:[%s12143_s1 + $0x34d0] sm:$0xff] }
 0x1f7   :  { %3247 = vmatprep.subr.mxu0 %v1800_v20  ;;  %3318 = vmatprep.subr.mxu1 %v2056_v22  ;;  %v1984_v6 = vld [vmem:[%s12143_s1 + $0x3cd8] sm:$0xff]  ;;  %v1983_v9 = vld [vmem:[%s12143_s1 + $0x3cd0] sm:$0xff] }
 0x1f8   :  { %3248 = vmatpush2.msra.mxu0 %v1799_v23  ;;  %3319 = vmatpush2.msra.mxu1 %v2055_v24  ;;  %v1720_v10 = vld [vmem:[%s12143_s1 + $0x3498] sm:$0xff]  ;;  %v1719_v13 = vld [vmem:[%s12143_s1 + $0x3490] sm:$0xff] }
 0x1f9   :  { %3249 = vmatprep.subr.mxu0 %v1792_v27  ;;  %3320 = vmatprep.subr.mxu1 %v2048_v28  ;;  %v1976_v12 = vld [vmem:[%s12143_s1 + $0x3c98] sm:$0xff]  ;;  %v1975_v14 = vld [vmem:[%s12143_s1 + $0x3c90] sm:$0xff]  ;;  %v162_v28 = vld [vmem:[%s12143_s1 + $0x3e8] sm:$0xff] }
 0x1fa   :  { %3250 = vmatpush2.msra.mxu0 %v1791_v30  ;;  %3321 = vmatpush2.msra.mxu1 %v2047_v52  ;;  %v1712_v15 = vld [vmem:[%s12143_s1 + $0x3458] sm:$0xff]  ;;  %v1711_v18 = vld [vmem:[%s12143_s1 + $0x3450] sm:$0xff]  ;;  %v418_v30 = vld [vmem:[%s12143_s1 + $0xbe8] sm:$0xff] }
 0x1fb   :  { %3251 = vmatprep.subr.mxu0 %v1784_v32  ;;  %3322 = vmatprep.subr.mxu1 %v2040_v33  ;;  %v1968_v17 = vld [vmem:[%s12143_s1 + $0x3c58] sm:$0xff]  ;;  %v1967_v20 = vld [vmem:[%s12143_s1 + $0x3c50] sm:$0xff]  ;;  %v161_v52 = vld [vmem:[%s12143_s1 + $0x3e0] sm:$0xff] }
 0x1fc   :  { %3252 = vmatpush2.msra.mxu0 %v1783_v35  ;;  %3323 = vmatpush2.msra.mxu1 %v2039_v36  ;;  %v1704_v22 = vld [vmem:[%s12143_s1 + $0x3418] sm:$0xff]  ;;  %v1703_v24 = vld [vmem:[%s12143_s1 + $0x3410] sm:$0xff]  ;;  %v417_v32 = vld [vmem:[%s12143_s1 + $0xbe0] sm:$0xff] }
 0x1fd   :  { %3253 = vmatprep.subr.mxu0 %v1776_v37  ;;  %3324 = vmatprep.subr.mxu1 %v2032_v38  ;;  %v1960_v23 = vld [vmem:[%s12143_s1 + $0x3c18] sm:$0xff]  ;;  %v1959_v27 = vld [vmem:[%s12143_s1 + $0x3c10] sm:$0xff]  ;;  %v154_v33 = vld [vmem:[%s12143_s1 + $0x3a8] sm:$0xff] }
 0x1fe   :  { %3254 = vmatpush2.msra.mxu0 %v1775_v39  ;;  %3325 = vmatpush2.msra.mxu1 %v2031_v40  ;;  %v410_v35 = vld [vmem:[%s12143_s1 + $0xba8] sm:$0xff]  ;;  %v153_v36 = vld [vmem:[%s12143_s1 + $0x3a0] sm:$0xff] }
 0x1ff   :  { %3255 = vmatprep.subr.mxu0 %v1768_v42  ;;  %3326 = vmatprep.subr.mxu1 %v2024_v44  ;;  %v409_v37 = vld [vmem:[%s12143_s1 + $0xba0] sm:$0xff]  ;;  %v146_v38 = vld [vmem:[%s12143_s1 + $0x368] sm:$0xff] }
 0x200   :  { %3256 = vmatpush2.msra.mxu0 %v1767_v45  ;;  %3327 = vmatpush2.msra.mxu1 %v2023_v46  ;;  %v402_v39 = vld [vmem:[%s12143_s1 + $0xb68] sm:$0xff]  ;;  %v145_v40 = vld [vmem:[%s12143_s1 + $0x360] sm:$0xff] }
 0x201   :  { %3257 = vmatprep.subr.mxu0 %v1760_v47  ;;  %3328 = vmatprep.subr.mxu1 %v2016_v49  ;;  %v401_v42 = vld [vmem:[%s12143_s1 + $0xb60] sm:$0xff]  ;;  %v138_v44 = vld [vmem:[%s12143_s1 + $0x328] sm:$0xff] }
 0x202   :  { %3258 = vmatpush2.msra.mxu0 %v1759_v50  ;;  %3329 = vmatpush2.msra.mxu1 %v2015_v51  ;;  %v394_v45 = vld [vmem:[%s12143_s1 + $0xb28] sm:$0xff]  ;;  %v137_v46 = vld [vmem:[%s12143_s1 + $0x320] sm:$0xff] }
 0x203   :  { %3259 = vmatprep.subr.mxu0 %v1752_v53  ;;  %3330 = vmatprep.subr.mxu1 %v2008_v55  ;;  %v393_v47 = vld [vmem:[%s12143_s1 + $0xb20] sm:$0xff]  ;;  %v130_v49 = vld [vmem:[%s12143_s1 + $0x2e8] sm:$0xff] }
 0x204   :  { %3260 = vmatpush2.msra.mxu0 %v1751_v56  ;;  %3331 = vmatpush2.msra.mxu1 %v2007_v58  ;;  %v386_v50 = vld [vmem:[%s12143_s1 + $0xae8] sm:$0xff]  ;;  %v129_v51 = vld [vmem:[%s12143_s1 + $0x2e0] sm:$0xff] }
 0x205   :  { %3261 = vmatprep.subr.mxu0 %v1744_v59  ;;  %3332 = vmatprep.subr.mxu1 %v2000_v60  ;;  %v385_v53 = vld [vmem:[%s12143_s1 + $0xae0] sm:$0xff]  ;;  %v122_v55 = vld [vmem:[%s12143_s1 + $0x2a8] sm:$0xff] }
 0x206   :  { %3262 = vmatpush2.msra.mxu0 %v1743_v61  ;;  %3333 = vmatpush2.msra.mxu1 %v1999_v63  ;;  %v378_v56 = vld [vmem:[%s12143_s1 + $0xaa8] sm:$0xff]  ;;  %v121_v58 = vld [vmem:[%s12143_s1 + $0x2a0] sm:$0xff] }
 0x207   :  { %3263 = vmatprep.subr.mxu0 %v1736_v0  ;;  %3334 = vmatprep.subr.mxu1 %v1992_v1  ;;  %v377_v59 = vld [vmem:[%s12143_s1 + $0xaa0] sm:$0xff]  ;;  %v114_v60 = vld [vmem:[%s12143_s1 + $0x268] sm:$0xff] }
 0x208   :  { %3264 = vmatpush2.msra.mxu0 %v1735_v2  ;;  %3335 = vmatpush2.msra.mxu1 %v1991_v4  ;;  %v370_v61 = vld [vmem:[%s12143_s1 + $0xa68] sm:$0xff]  ;;  %v113_v63 = vld [vmem:[%s12143_s1 + $0x260] sm:$0xff] }
 0x209   :  { %3265 = vmatprep.subr.mxu0 %v1728_v5  ;;  %3336 = vmatprep.subr.mxu1 %v1984_v6  ;;  %v369_v0 = vld [vmem:[%s12143_s1 + $0xa60] sm:$0xff]  ;;  %v106_v1 = vld [vmem:[%s12143_s1 + $0x228] sm:$0xff] }
 0x20a   :  { %3266 = vmatpush2.msra.mxu0 %v1727_v7  ;;  %3337 = vmatpush2.msra.mxu1 %v1983_v9  ;;  %v362_v2 = vld [vmem:[%s12143_s1 + $0xa28] sm:$0xff]  ;;  %v105_v4 = vld [vmem:[%s12143_s1 + $0x220] sm:$0xff] }
 0x20b   :  { %3267 = vmatprep.subr.mxu0 %v1720_v10  ;;  %3338 = vmatprep.subr.mxu1 %v1976_v12  ;;  %v361_v5 = vld [vmem:[%s12143_s1 + $0xa20] sm:$0xff]  ;;  %v98_v6 = vld [vmem:[%s12143_s1 + $0x1e8] sm:$0xff] }
 0x20c   :  { %3268 = vmatpush2.msra.mxu0 %v1719_v13  ;;  %3339 = vmatpush2.msra.mxu1 %v1975_v14  ;;  %v354_v7 = vld [vmem:[%s12143_s1 + $0x9e8] sm:$0xff]  ;;  %v97_v9 = vld [vmem:[%s12143_s1 + $0x1e0] sm:$0xff] }
 0x20d   :  { %3269 = vmatprep.subr.mxu0 %v1712_v15  ;;  %3340 = vmatprep.subr.mxu1 %v1968_v17  ;;  %v353_v10 = vld [vmem:[%s12143_s1 + $0x9e0] sm:$0xff]  ;;  %v90_v12 = vld [vmem:[%s12143_s1 + $0x1a8] sm:$0xff] }
 0x20e   :  { %3270 = vmatpush2.msra.mxu0 %v1711_v18  ;;  %3341 = vmatpush2.msra.mxu1 %v1967_v20  ;;  %v346_v13 = vld [vmem:[%s12143_s1 + $0x9a8] sm:$0xff]  ;;  %v89_v14 = vld [vmem:[%s12143_s1 + $0x1a0] sm:$0xff] }
 0x20f   :  { %3271 = vmatprep.subr.mxu0 %v1704_v22  ;;  %3342 = vmatprep.subr.mxu1 %v1960_v23  ;;  %v345_v15 = vld [vmem:[%s12143_s1 + $0x9a0] sm:$0xff]  ;;  %v82_v17 = vld [vmem:[%s12143_s1 + $0x168] sm:$0xff] }
 0x210   :  { %3272 = vmatpush2.msra.mxu0 %v1703_v24  ;;  %3273 = vmatprep.mubr.f32.mxu0 %v6812_v31  ;;  %v338_v18 = vld [vmem:[%s12143_s1 + $0x968] sm:$0xff]  ;;  %v81_v20 = vld [vmem:[%s12143_s1 + $0x160] sm:$0xff] }
 0x211   :  { %3343 = vmatpush2.msra.mxu1 %v1959_v27  ;;  %3274 = vmatmul.mubr.f32.vlgmr.msra.gmra.mxu0 %v6781_v19  ;;  %v337_v22 = vld [vmem:[%s12143_s1 + $0x960] sm:$0xff]  ;;  %v74_v23 = vld [vmem:[%s12143_s1 + $0x128] sm:$0xff] }
 0x212   :  { %3344 = vmatprep.mubr.f32.mxu1 %v6822_v34  ;;  %3351 = vmatprep.subr.mxu0 %v162_v28  ;;  %v330_v24 = vld [vmem:[%s12143_s1 + $0x928] sm:$0xff]  ;;  %v73_v27 = vld [vmem:[%s12143_s1 + $0x120] sm:$0xff] }
 0x213   :  { %3422 = vmatprep.subr.mxu1 %v418_v30  ;;  %3345 = vmatmul.mubr.f32.vlgmr.msra.gmra.mxu1 %v6796_v25  ;;  %v329_v28 = vld [vmem:[%s12143_s1 + $0x920] sm:$0xff]  ;;  %v66_v30 = vld [vmem:[%s12143_s1 + $0xe8] sm:$0xff] }
 0x214   :  { %3352 = vmatpush1.msra.mxu0 %v161_v52  ;;  %3423 = vmatpush1.msra.mxu1 %v417_v32  ;;  %v322_v52 = vld [vmem:[%s12143_s1 + $0x8e8] sm:$0xff]  ;;  %v65_v32 = vld [vmem:[%s12143_s1 + $0xe0] sm:$0xff] }
 0x215   :  { %3353 = vmatprep.subr.mxu0 %v154_v33  ;;  %3424 = vmatprep.subr.mxu1 %v410_v35  ;;  %v321_v33 = vld [vmem:[%s12143_s1 + $0x8e0] sm:$0xff]  ;;  %v58_v35 = vld [vmem:[%s12143_s1 + $0xa8] sm:$0xff] }
 0x216   :  { %3354 = vmatpush1.msra.mxu0 %v153_v36  ;;  %3425 = vmatpush1.msra.mxu1 %v409_v37  ;;  %v314_v36 = vld [vmem:[%s12143_s1 + $0x8a8] sm:$0xff]  ;;  %v57_v37 = vld [vmem:[%s12143_s1 + $0xa0] sm:$0xff] }
 0x217   :  { %3355 = vmatprep.subr.mxu0 %v146_v38  ;;  %3426 = vmatprep.subr.mxu1 %v402_v39  ;;  %v313_v38 = vld [vmem:[%s12143_s1 + $0x8a0] sm:$0xff]  ;;  %v50_v39 = vld [vmem:[%s12143_s1 + $0x68] sm:$0xff] }
 0x218   :  { %3356 = vmatpush1.msra.mxu0 %v145_v40  ;;  %3427 = vmatpush1.msra.mxu1 %v401_v42  ;;  %v306_v40 = vld [vmem:[%s12143_s1 + $0x868] sm:$0xff]  ;;  %v49_v42 = vld [vmem:[%s12143_s1 + $0x60] sm:$0xff] }
 0x219   :  { %3357 = vmatprep.subr.mxu0 %v138_v44  ;;  %3428 = vmatprep.subr.mxu1 %v394_v45  ;;  %v305_v44 = vld [vmem:[%s12143_s1 + $0x860] sm:$0xff]  ;;  %v42_v45 = vld [vmem:[%s12143_s1 + $0x28] sm:$0xff] }
 0x21a   :  { %3358 = vmatpush1.msra.mxu0 %v137_v46  ;;  %3429 = vmatpush1.msra.mxu1 %v393_v47  ;;  %v298_v46 = vld [vmem:[%s12143_s1 + $0x828] sm:$0xff]  ;;  %v41_v47 = vld [vmem:[%s12143_s1 + $0x20] sm:$0xff] }
 0x21b   :  { %3359 = vmatprep.subr.mxu0 %v130_v49  ;;  %3430 = vmatprep.subr.mxu1 %v386_v50  ;;  %v297_v49 = vld [vmem:[%s12143_s1 + $0x820] sm:$0xff]  ;;  %v290_v50 = vld [vmem:[%s12143_s1 + $0x7e8] sm:$0xff] }
 0x21c   :  { %3360 = vmatpush1.msra.mxu0 %v129_v51  ;;  %3431 = vmatpush1.msra.mxu1 %v385_v53  ;;  %v546_v51 = vld [vmem:[%s12143_s1 + $0xfe8] sm:$0xff]  ;;  %v289_v53 = vld [vmem:[%s12143_s1 + $0x7e0] sm:$0xff] }
 0x21d   :  { %3361 = vmatprep.subr.mxu0 %v122_v55  ;;  %3432 = vmatprep.subr.mxu1 %v378_v56  ;;  %v545_v55 = vld [vmem:[%s12143_s1 + $0xfe0] sm:$0xff]  ;;  %v282_v56 = vld [vmem:[%s12143_s1 + $0x7a8] sm:$0xff] }
 0x21e   :  { %3362 = vmatpush1.msra.mxu0 %v121_v58  ;;  %3433 = vmatpush1.msra.mxu1 %v377_v59  ;;  %v538_v58 = vld [vmem:[%s12143_s1 + $0xfa8] sm:$0xff]  ;;  %v281_v59 = vld [vmem:[%s12143_s1 + $0x7a0] sm:$0xff] }
 0x21f   :  { %3363 = vmatprep.subr.mxu0 %v114_v60  ;;  %3434 = vmatprep.subr.mxu1 %v370_v61  ;;  %v537_v60 = vld [vmem:[%s12143_s1 + $0xfa0] sm:$0xff]  ;;  %v274_v61 = vld [vmem:[%s12143_s1 + $0x768] sm:$0xff] }
 0x220   :  { %3364 = vmatpush1.msra.mxu0 %v113_v63  ;;  %3435 = vmatpush1.msra.mxu1 %v369_v0  ;;  %v530_v63 = vld [vmem:[%s12143_s1 + $0xf68] sm:$0xff]  ;;  %v273_v0 = vld [vmem:[%s12143_s1 + $0x760] sm:$0xff] }
 0x221   :  { %3365 = vmatprep.subr.mxu0 %v106_v1  ;;  %3436 = vmatprep.subr.mxu1 %v362_v2  ;;  %v529_v1 = vld [vmem:[%s12143_s1 + $0xf60] sm:$0xff]  ;;  %v266_v2 = vld [vmem:[%s12143_s1 + $0x728] sm:$0xff] }
 0x222   :  { %3366 = vmatpush1.msra.mxu0 %v105_v4  ;;  %3437 = vmatpush1.msra.mxu1 %v361_v5  ;;  %v522_v4 = vld [vmem:[%s12143_s1 + $0xf28] sm:$0xff]  ;;  %v265_v5 = vld [vmem:[%s12143_s1 + $0x720] sm:$0xff] }
 0x223   :  { %3367 = vmatprep.subr.mxu0 %v98_v6  ;;  %3438 = vmatprep.subr.mxu1 %v354_v7  ;;  %v521_v6 = vld [vmem:[%s12143_s1 + $0xf20] sm:$0xff]  ;;  %v258_v7 = vld [vmem:[%s12143_s1 + $0x6e8] sm:$0xff] }
 0x224   :  { %3368 = vmatpush1.msra.mxu0 %v97_v9  ;;  %3439 = vmatpush1.msra.mxu1 %v353_v10  ;;  %v514_v9 = vld [vmem:[%s12143_s1 + $0xee8] sm:$0xff]  ;;  %v257_v10 = vld [vmem:[%s12143_s1 + $0x6e0] sm:$0xff] }
 0x225   :  { %3369 = vmatprep.subr.mxu0 %v90_v12  ;;  %3440 = vmatprep.subr.mxu1 %v346_v13  ;;  %v513_v12 = vld [vmem:[%s12143_s1 + $0xee0] sm:$0xff]  ;;  %v250_v13 = vld [vmem:[%s12143_s1 + $0x6a8] sm:$0xff] }
 0x226   :  { %3370 = vmatpush1.msra.mxu0 %v89_v14  ;;  %3441 = vmatpush1.msra.mxu1 %v345_v15  ;;  %v506_v14 = vld [vmem:[%s12143_s1 + $0xea8] sm:$0xff]  ;;  %v249_v15 = vld [vmem:[%s12143_s1 + $0x6a0] sm:$0xff] }
 0x227   :  { %3371 = vmatprep.subr.mxu0 %v82_v17  ;;  %3442 = vmatprep.subr.mxu1 %v338_v18  ;;  %v505_v17 = vld [vmem:[%s12143_s1 + $0xea0] sm:$0xff]  ;;  %v242_v18 = vld [vmem:[%s12143_s1 + $0x668] sm:$0xff] }
 0x228   :  { %3372 = vmatpush1.msra.mxu0 %v81_v20  ;;  %3443 = vmatpush1.msra.mxu1 %v337_v22  ;;  %v498_v20 = vld [vmem:[%s12143_s1 + $0xe68] sm:$0xff]  ;;  %v241_v22 = vld [vmem:[%s12143_s1 + $0x660] sm:$0xff] }
 0x229   :  { %3373 = vmatprep.subr.mxu0 %v74_v23  ;;  %3444 = vmatprep.subr.mxu1 %v330_v24  ;;  %v497_v23 = vld [vmem:[%s12143_s1 + $0xe60] sm:$0xff]  ;;  %v234_v24 = vld [vmem:[%s12143_s1 + $0x628] sm:$0xff] }
 0x22a   :  { %3374 = vmatpush1.msra.mxu0 %v73_v27  ;;  %3445 = vmatpush1.msra.mxu1 %v329_v28  ;;  %v490_v27 = vld [vmem:[%s12143_s1 + $0xe28] sm:$0xff]  ;;  %v233_v28 = vld [vmem:[%s12143_s1 + $0x620] sm:$0xff] }
 0x22b   :  { %3375 = vmatprep.subr.mxu0 %v66_v30  ;;  %3446 = vmatprep.subr.mxu1 %v322_v52  ;;  %v489_v30 = vld [vmem:[%s12143_s1 + $0xe20] sm:$0xff]  ;;  %v226_v52 = vld [vmem:[%s12143_s1 + $0x5e8] sm:$0xff] }
 0x22c   :  { %3376 = vmatpush1.msra.mxu0 %v65_v32  ;;  %3447 = vmatpush1.msra.mxu1 %v321_v33  ;;  %v482_v32 = vld [vmem:[%s12143_s1 + $0xde8] sm:$0xff]  ;;  %v225_v33 = vld [vmem:[%s12143_s1 + $0x5e0] sm:$0xff] }
 0x22d   :  { %3377 = vmatprep.subr.mxu0 %v58_v35  ;;  %3448 = vmatprep.subr.mxu1 %v314_v36  ;;  %v481_v35 = vld [vmem:[%s12143_s1 + $0xde0] sm:$0xff]  ;;  %v218_v36 = vld [vmem:[%s12143_s1 + $0x5a8] sm:$0xff] }
 0x22e   :  { %3378 = vmatpush1.msra.mxu0 %v57_v37  ;;  %3449 = vmatpush1.msra.mxu1 %v313_v38  ;;  %v474_v37 = vld [vmem:[%s12143_s1 + $0xda8] sm:$0xff]  ;;  %v217_v38 = vld [vmem:[%s12143_s1 + $0x5a0] sm:$0xff] }
 0x22f   :  { %3379 = vmatprep.subr.mxu0 %v50_v39  ;;  %3450 = vmatprep.subr.mxu1 %v306_v40  ;;  %v473_v39 = vld [vmem:[%s12143_s1 + $0xda0] sm:$0xff]  ;;  %v210_v40 = vld [vmem:[%s12143_s1 + $0x568] sm:$0xff] }
 0x230   :  { %3380 = vmatpush1.msra.mxu0 %v49_v42  ;;  %3451 = vmatpush1.msra.mxu1 %v305_v44  ;;  %v466_v42 = vld [vmem:[%s12143_s1 + $0xd68] sm:$0xff]  ;;  %v209_v44 = vld [vmem:[%s12143_s1 + $0x560] sm:$0xff] }
 0x231   :  { %3381 = vmatprep.subr.mxu0 %v42_v45  ;;  %3452 = vmatprep.subr.mxu1 %v298_v46  ;;  %v465_v45 = vld [vmem:[%s12143_s1 + $0xd60] sm:$0xff]  ;;  %v202_v46 = vld [vmem:[%s12143_s1 + $0x528] sm:$0xff] }
 0x232   :  { %3382 = vmatpush1.msra.mxu0 %v41_v47  ;;  %3453 = vmatpush1.msra.mxu1 %v297_v49  ;;  %v458_v47 = vld [vmem:[%s12143_s1 + $0xd28] sm:$0xff]  ;;  %v201_v49 = vld [vmem:[%s12143_s1 + $0x520] sm:$0xff] }
 0x233   :  { %3383 = vmatprep.subr.mxu0 %v290_v50  ;;  %3454 = vmatprep.subr.mxu1 %v546_v51  ;;  %v457_v50 = vld [vmem:[%s12143_s1 + $0xd20] sm:$0xff]  ;;  %v194_v51 = vld [vmem:[%s12143_s1 + $0x4e8] sm:$0xff] }
 0x234   :  { %3384 = vmatpush2.msra.mxu0 %v289_v53  ;;  %3455 = vmatpush2.msra.mxu1 %v545_v55  ;;  %v450_v53 = vld [vmem:[%s12143_s1 + $0xce8] sm:$0xff]  ;;  %v193_v55 = vld [vmem:[%s12143_s1 + $0x4e0] sm:$0xff] }
 0x235   :  { %3385 = vmatprep.subr.mxu0 %v282_v56  ;;  %3456 = vmatprep.subr.mxu1 %v538_v58  ;;  %v449_v56 = vld [vmem:[%s12143_s1 + $0xce0] sm:$0xff]  ;;  %v186_v58 = vld [vmem:[%s12143_s1 + $0x4a8] sm:$0xff] }
 0x236   :  { %3386 = vmatpush2.msra.mxu0 %v281_v59  ;;  %3457 = vmatpush2.msra.mxu1 %v537_v60  ;;  %v442_v59 = vld [vmem:[%s12143_s1 + $0xca8] sm:$0xff]  ;;  %v185_v60 = vld [vmem:[%s12143_s1 + $0x4a0] sm:$0xff] }
 0x237   :  { %3387 = vmatprep.subr.mxu0 %v274_v61  ;;  %3458 = vmatprep.subr.mxu1 %v530_v63  ;;  %v441_v61 = vld [vmem:[%s12143_s1 + $0xca0] sm:$0xff]  ;;  %v178_v63 = vld [vmem:[%s12143_s1 + $0x468] sm:$0xff] }
 0x238   :  { %3388 = vmatpush2.msra.mxu0 %v273_v0  ;;  %3459 = vmatpush2.msra.mxu1 %v529_v1  ;;  %v434_v0 = vld [vmem:[%s12143_s1 + $0xc68] sm:$0xff]  ;;  %v177_v1 = vld [vmem:[%s12143_s1 + $0x460] sm:$0xff] }
 0x239   :  { %3389 = vmatprep.subr.mxu0 %v266_v2  ;;  %3460 = vmatprep.subr.mxu1 %v522_v4  ;;  %v433_v2 = vld [vmem:[%s12143_s1 + $0xc60] sm:$0xff]  ;;  %v170_v4 = vld [vmem:[%s12143_s1 + $0x428] sm:$0xff] }
 0x23a   :  { %3390 = vmatpush2.msra.mxu0 %v265_v5  ;;  %3461 = vmatpush2.msra.mxu1 %v521_v6  ;;  %v426_v5 = vld [vmem:[%s12143_s1 + $0xc28] sm:$0xff]  ;;  %v169_v6 = vld [vmem:[%s12143_s1 + $0x420] sm:$0xff] }
 0x23b   :  { %3391 = vmatprep.subr.mxu0 %v258_v7  ;;  %3462 = vmatprep.subr.mxu1 %v514_v9  ;;  %v425_v7 = vld [vmem:[%s12143_s1 + $0xc20] sm:$0xff]  ;;  %v674_v9 = vld [vmem:[%s12143_s1 + $0x13e8] sm:$0xff] }
 0x23c   :  { %3392 = vmatpush2.msra.mxu0 %v257_v10  ;;  %3463 = vmatpush2.msra.mxu1 %v513_v12  ;;  %v930_v10 = vld [vmem:[%s12143_s1 + $0x1be8] sm:$0xff]  ;;  %v673_v12 = vld [vmem:[%s12143_s1 + $0x13e0] sm:$0xff] }
 0x23d   :  { %3393 = vmatprep.subr.mxu0 %v250_v13  ;;  %3464 = vmatprep.subr.mxu1 %v506_v14  ;;  %v929_v13 = vld [vmem:[%s12143_s1 + $0x1be0] sm:$0xff]  ;;  %v666_v14 = vld [vmem:[%s12143_s1 + $0x13a8] sm:$0xff] }
 0x23e   :  { %3394 = vmatpush2.msra.mxu0 %v249_v15  ;;  %3465 = vmatpush2.msra.mxu1 %v505_v17  ;;  %v922_v15 = vld [vmem:[%s12143_s1 + $0x1ba8] sm:$0xff]  ;;  %v665_v17 = vld [vmem:[%s12143_s1 + $0x13a0] sm:$0xff] }
 0x23f   :  { %3395 = vmatprep.subr.mxu0 %v242_v18  ;;  %3466 = vmatprep.subr.mxu1 %v498_v20  ;;  %v921_v18 = vld [vmem:[%s12143_s1 + $0x1ba0] sm:$0xff]  ;;  %v658_v20 = vld [vmem:[%s12143_s1 + $0x1368] sm:$0xff] }
 0x240   :  { %3396 = vmatpush2.msra.mxu0 %v241_v22  ;;  %3467 = vmatpush2.msra.mxu1 %v497_v23  ;;  %v914_v22 = vld [vmem:[%s12143_s1 + $0x1b68] sm:$0xff]  ;;  %v657_v23 = vld [vmem:[%s12143_s1 + $0x1360] sm:$0xff] }
 0x241   :  { %3397 = vmatprep.subr.mxu0 %v234_v24  ;;  %3468 = vmatprep.subr.mxu1 %v490_v27  ;;  %v913_v24 = vld [vmem:[%s12143_s1 + $0x1b60] sm:$0xff]  ;;  %v650_v27 = vld [vmem:[%s12143_s1 + $0x1328] sm:$0xff] }
 0x242   :  { %3398 = vmatpush2.msra.mxu0 %v233_v28  ;;  %3469 = vmatpush2.msra.mxu1 %v489_v30  ;;  %v906_v28 = vld [vmem:[%s12143_s1 + $0x1b28] sm:$0xff]  ;;  %v649_v30 = vld [vmem:[%s12143_s1 + $0x1320] sm:$0xff] }
 0x243   :  { %3399 = vmatprep.subr.mxu0 %v226_v52  ;;  %3470 = vmatprep.subr.mxu1 %v482_v32  ;;  %v905_v52 = vld [vmem:[%s12143_s1 + $0x1b20] sm:$0xff]  ;;  %v642_v32 = vld [vmem:[%s12143_s1 + $0x12e8] sm:$0xff] }
 0x244   :  { %3400 = vmatpush2.msra.mxu0 %v225_v33  ;;  %3471 = vmatpush2.msra.mxu1 %v481_v35  ;;  %v898_v33 = vld [vmem:[%s12143_s1 + $0x1ae8] sm:$0xff]  ;;  %v641_v35 = vld [vmem:[%s12143_s1 + $0x12e0] sm:$0xff] }
 0x245   :  { %3401 = vmatprep.subr.mxu0 %v218_v36  ;;  %3472 = vmatprep.subr.mxu1 %v474_v37  ;;  %v897_v36 = vld [vmem:[%s12143_s1 + $0x1ae0] sm:$0xff]  ;;  %v634_v37 = vld [vmem:[%s12143_s1 + $0x12a8] sm:$0xff] }
 0x246   :  { %3402 = vmatpush2.msra.mxu0 %v217_v38  ;;  %3473 = vmatpush2.msra.mxu1 %v473_v39  ;;  %v890_v38 = vld [vmem:[%s12143_s1 + $0x1aa8] sm:$0xff]  ;;  %v633_v39 = vld [vmem:[%s12143_s1 + $0x12a0] sm:$0xff] }
 0x247   :  { %3403 = vmatprep.subr.mxu0 %v210_v40  ;;  %3474 = vmatprep.subr.mxu1 %v466_v42  ;;  %v889_v40 = vld [vmem:[%s12143_s1 + $0x1aa0] sm:$0xff]  ;;  %v626_v42 = vld [vmem:[%s12143_s1 + $0x1268] sm:$0xff] }
 0x248   :  { %3404 = vmatpush2.msra.mxu0 %v209_v44  ;;  %3475 = vmatpush2.msra.mxu1 %v465_v45  ;;  %v882_v44 = vld [vmem:[%s12143_s1 + $0x1a68] sm:$0xff]  ;;  %v625_v45 = vld [vmem:[%s12143_s1 + $0x1260] sm:$0xff] }
 0x249   :  { %3405 = vmatprep.subr.mxu0 %v202_v46  ;;  %3476 = vmatprep.subr.mxu1 %v458_v47  ;;  %v881_v46 = vld [vmem:[%s12143_s1 + $0x1a60] sm:$0xff]  ;;  %v618_v47 = vld [vmem:[%s12143_s1 + $0x1228] sm:$0xff] }
 0x24a   :  { %3406 = vmatpush2.msra.mxu0 %v201_v49  ;;  %3477 = vmatpush2.msra.mxu1 %v457_v50  ;;  %v874_v49 = vld [vmem:[%s12143_s1 + $0x1a28] sm:$0xff]  ;;  %v617_v50 = vld [vmem:[%s12143_s1 + $0x1220] sm:$0xff] }
 0x24b   :  { %3407 = vmatprep.subr.mxu0 %v194_v51  ;;  %3478 = vmatprep.subr.mxu1 %v450_v53  ;;  %v873_v51 = vld [vmem:[%s12143_s1 + $0x1a20] sm:$0xff]  ;;  %v610_v53 = vld [vmem:[%s12143_s1 + $0x11e8] sm:$0xff] }
 0x24c   :  { %3408 = vmatpush2.msra.mxu0 %v193_v55  ;;  %3479 = vmatpush2.msra.mxu1 %v449_v56  ;;  %v866_v55 = vld [vmem:[%s12143_s1 + $0x19e8] sm:$0xff]  ;;  %v609_v56 = vld [vmem:[%s12143_s1 + $0x11e0] sm:$0xff] }
 0x24d   :  { %3409 = vmatprep.subr.mxu0 %v186_v58  ;;  %3480 = vmatprep.subr.mxu1 %v442_v59  ;;  %v865_v58 = vld [vmem:[%s12143_s1 + $0x19e0] sm:$0xff]  ;;  %v602_v59 = vld [vmem:[%s12143_s1 + $0x11a8] sm:$0xff] }
 0x24e   :  { %3410 = vmatpush2.msra.mxu0 %v185_v60  ;;  %3481 = vmatpush2.msra.mxu1 %v441_v61  ;;  %v858_v60 = vld [vmem:[%s12143_s1 + $0x19a8] sm:$0xff]  ;;  %v601_v61 = vld [vmem:[%s12143_s1 + $0x11a0] sm:$0xff] }
 0x24f   :  { %3411 = vmatprep.subr.mxu0 %v178_v63  ;;  %3482 = vmatprep.subr.mxu1 %v434_v0  ;;  %v857_v63 = vld [vmem:[%s12143_s1 + $0x19a0] sm:$0xff]  ;;  %v594_v0 = vld [vmem:[%s12143_s1 + $0x1168] sm:$0xff] }
 0x250   :  { %3412 = vmatpush2.msra.mxu0 %v177_v1  ;;  %3483 = vmatpush2.msra.mxu1 %v433_v2  ;;  %v850_v1 = vld [vmem:[%s12143_s1 + $0x1968] sm:$0xff]  ;;  %v593_v2 = vld [vmem:[%s12143_s1 + $0x1160] sm:$0xff] }
 0x251   :  { %3413 = vmatprep.subr.mxu0 %v170_v4  ;;  %3484 = vmatprep.subr.mxu1 %v426_v5  ;;  %v849_v4 = vld [vmem:[%s12143_s1 + $0x1960] sm:$0xff]  ;;  %v586_v5 = vld [vmem:[%s12143_s1 + $0x1128] sm:$0xff] }
 0x252   :  { %3414 = vmatpush2.msra.mxu0 %v169_v6  ;;  %3415 = vmatprep.mubr.f32.mxu0 %v5597_v8  ;;  %v842_v6 = vld [vmem:[%s12143_s1 + $0x1928] sm:$0xff] }
 0x253   :  { %3485 = vmatpush2.msra.mxu1 %v425_v7  ;;  %3416 = vmatmul.mubr.f32.vlgmr.msra.gmra.mxu0 %v5566_v62  ;;  %v585_v7 = vld [vmem:[%s12143_s1 + $0x1120] sm:$0xff] }
 0x254   :  { %3486 = vmatprep.mubr.f32.mxu1 %v5607_v11  ;;  %3493 = vmatprep.subr.mxu0 %v674_v9  ;;  %v841_v9 = vld [vmem:[%s12143_s1 + $0x1920] sm:$0xff] }
 0x255   :  { %3564 = vmatprep.subr.mxu1 %v930_v10  ;;  %3487 = vmatmul.mubr.f32.vlgmr.msra.gmra.mxu1 %v5581_v3  ;;  %v578_v10 = vld [vmem:[%s12143_s1 + $0x10e8] sm:$0xff] }
 0x256   :  { %3494 = vmatpush1.msra.mxu0 %v673_v12  ;;  %3565 = vmatpush1.msra.mxu1 %v929_v13  ;;  %v834_v12 = vld [vmem:[%s12143_s1 + $0x18e8] sm:$0xff]  ;;  %v577_v13 = vld [vmem:[%s12143_s1 + $0x10e0] sm:$0xff] }
 0x257   :  { %3495 = vmatprep.subr.mxu0 %v666_v14  ;;  %3566 = vmatprep.subr.mxu1 %v922_v15  ;;  %v833_v14 = vld [vmem:[%s12143_s1 + $0x18e0] sm:$0xff]  ;;  %v570_v15 = vld [vmem:[%s12143_s1 + $0x10a8] sm:$0xff] }
 0x258   :  { %3496 = vmatpush1.msra.mxu0 %v665_v17  ;;  %3567 = vmatpush1.msra.mxu1 %v921_v18  ;;  %v826_v17 = vld [vmem:[%s12143_s1 + $0x18a8] sm:$0xff]  ;;  %v569_v18 = vld [vmem:[%s12143_s1 + $0x10a0] sm:$0xff] }
 0x259   :  { %3497 = vmatprep.subr.mxu0 %v658_v20  ;;  %3568 = vmatprep.subr.mxu1 %v914_v22  ;;  %v825_v20 = vld [vmem:[%s12143_s1 + $0x18a0] sm:$0xff]  ;;  %v562_v22 = vld [vmem:[%s12143_s1 + $0x1068] sm:$0xff] }
 0x25a   :  { %3498 = vmatpush1.msra.mxu0 %v657_v23  ;;  %3569 = vmatpush1.msra.mxu1 %v913_v24  ;;  %v818_v23 = vld [vmem:[%s12143_s1 + $0x1868] sm:$0xff]  ;;  %v561_v24 = vld [vmem:[%s12143_s1 + $0x1060] sm:$0xff] }
 0x25b   :  { %3499 = vmatprep.subr.mxu0 %v650_v27  ;;  %3570 = vmatprep.subr.mxu1 %v906_v28  ;;  %v817_v27 = vld [vmem:[%s12143_s1 + $0x1860] sm:$0xff]  ;;  %v554_v28 = vld [vmem:[%s12143_s1 + $0x1028] sm:$0xff] }
 0x25c   :  { %3500 = vmatpush1.msra.mxu0 %v649_v30  ;;  %3571 = vmatpush1.msra.mxu1 %v905_v52  ;;  %v810_v30 = vld [vmem:[%s12143_s1 + $0x1828] sm:$0xff]  ;;  %v553_v52 = vld [vmem:[%s12143_s1 + $0x1020] sm:$0xff] }
 0x25d   :  { %3501 = vmatprep.subr.mxu0 %v642_v32  ;;  %3572 = vmatprep.subr.mxu1 %v898_v33  ;;  %v809_v32 = vld [vmem:[%s12143_s1 + $0x1820] sm:$0xff]  ;;  %v802_v33 = vld [vmem:[%s12143_s1 + $0x17e8] sm:$0xff] }
 0x25e   :  { %3502 = vmatpush1.msra.mxu0 %v641_v35  ;;  %3573 = vmatpush1.msra.mxu1 %v897_v36  ;;  %v1058_v35 = vld [vmem:[%s12143_s1 + $0x1fe8] sm:$0xff]  ;;  %v801_v36 = vld [vmem:[%s12143_s1 + $0x17e0] sm:$0xff] }
 0x25f   :  { %3503 = vmatprep.subr.mxu0 %v634_v37  ;;  %3574 = vmatprep.subr.mxu1 %v890_v38  ;;  %v1057_v37 = vld [vmem:[%s12143_s1 + $0x1fe0] sm:$0xff]  ;;  %v794_v38 = vld [vmem:[%s12143_s1 + $0x17a8] sm:$0xff] }
 0x260   :  { %3504 = vmatpush1.msra.mxu0 %v633_v39  ;;  %3575 = vmatpush1.msra.mxu1 %v889_v40  ;;  %v1050_v39 = vld [vmem:[%s12143_s1 + $0x1fa8] sm:$0xff]  ;;  %v793_v40 = vld [vmem:[%s12143_s1 + $0x17a0] sm:$0xff] }
 0x261   :  { %3505 = vmatprep.subr.mxu0 %v626_v42  ;;  %3576 = vmatprep.subr.mxu1 %v882_v44  ;;  %v1049_v42 = vld [vmem:[%s12143_s1 + $0x1fa0] sm:$0xff]  ;;  %v786_v44 = vld [vmem:[%s12143_s1 + $0x1768] sm:$0xff] }
 0x262   :  { %3506 = vmatpush1.msra.mxu0 %v625_v45  ;;  %3577 = vmatpush1.msra.mxu1 %v881_v46  ;;  %v1042_v45 = vld [vmem:[%s12143_s1 + $0x1f68] sm:$0xff]  ;;  %v785_v46 = vld [vmem:[%s12143_s1 + $0x1760] sm:$0xff] }
 0x263   :  { %3507 = vmatprep.subr.mxu0 %v618_v47  ;;  %3578 = vmatprep.subr.mxu1 %v874_v49  ;;  %v1041_v47 = vld [vmem:[%s12143_s1 + $0x1f60] sm:$0xff]  ;;  %v778_v49 = vld [vmem:[%s12143_s1 + $0x1728] sm:$0xff] }
 0x264   :  { %3508 = vmatpush1.msra.mxu0 %v617_v50  ;;  %3579 = vmatpush1.msra.mxu1 %v873_v51  ;;  %v1034_v50 = vld [vmem:[%s12143_s1 + $0x1f28] sm:$0xff]  ;;  %v777_v51 = vld [vmem:[%s12143_s1 + $0x1720] sm:$0xff] }
 0x265   :  { %3509 = vmatprep.subr.mxu0 %v610_v53  ;;  %3580 = vmatprep.subr.mxu1 %v866_v55  ;;  %v1033_v53 = vld [vmem:[%s12143_s1 + $0x1f20] sm:$0xff]  ;;  %v770_v55 = vld [vmem:[%s12143_s1 + $0x16e8] sm:$0xff] }
 0x266   :  { %3510 = vmatpush1.msra.mxu0 %v609_v56  ;;  %3581 = vmatpush1.msra.mxu1 %v865_v58  ;;  %v1026_v56 = vld [vmem:[%s12143_s1 + $0x1ee8] sm:$0xff]  ;;  %v769_v58 = vld [vmem:[%s12143_s1 + $0x16e0] sm:$0xff] }
 0x267   :  { %3511 = vmatprep.subr.mxu0 %v602_v59  ;;  %3582 = vmatprep.subr.mxu1 %v858_v60  ;;  %v1025_v59 = vld [vmem:[%s12143_s1 + $0x1ee0] sm:$0xff]  ;;  %v762_v60 = vld [vmem:[%s12143_s1 + $0x16a8] sm:$0xff] }
 0x268   :  { %3512 = vmatpush1.msra.mxu0 %v601_v61  ;;  %3583 = vmatpush1.msra.mxu1 %v857_v63  ;;  %v1018_v61 = vld [vmem:[%s12143_s1 + $0x1ea8] sm:$0xff]  ;;  %v761_v63 = vld [vmem:[%s12143_s1 + $0x16a0] sm:$0xff] }
 0x269   :  { %3513 = vmatprep.subr.mxu0 %v594_v0  ;;  %3584 = vmatprep.subr.mxu1 %v850_v1  ;;  %v1017_v0 = vld [vmem:[%s12143_s1 + $0x1ea0] sm:$0xff]  ;;  %v754_v1 = vld [vmem:[%s12143_s1 + $0x1668] sm:$0xff] }
 0x26a   :  { %3514 = vmatpush1.msra.mxu0 %v593_v2  ;;  %3585 = vmatpush1.msra.mxu1 %v849_v4  ;;  %v1010_v2 = vld [vmem:[%s12143_s1 + $0x1e68] sm:$0xff]  ;;  %v753_v4 = vld [vmem:[%s12143_s1 + $0x1660] sm:$0xff] }
 0x26b   :  { %3515 = vmatprep.subr.mxu0 %v586_v5  ;;  %3586 = vmatprep.subr.mxu1 %v842_v6  ;;  %v1009_v5 = vld [vmem:[%s12143_s1 + $0x1e60] sm:$0xff]  ;;  %v746_v6 = vld [vmem:[%s12143_s1 + $0x1628] sm:$0xff] }
 0x26c   :  { %3516 = vmatpush1.msra.mxu0 %v585_v7  ;;  %3587 = vmatpush1.msra.mxu1 %v841_v9  ;;  %v1002_v7 = vld [vmem:[%s12143_s1 + $0x1e28] sm:$0xff]  ;;  %v745_v9 = vld [vmem:[%s12143_s1 + $0x1620] sm:$0xff] }
 0x26d   :  { %3517 = vmatprep.subr.mxu0 %v578_v10  ;;  %3588 = vmatprep.subr.mxu1 %v834_v12  ;;  %v1001_v10 = vld [vmem:[%s12143_s1 + $0x1e20] sm:$0xff]  ;;  %v738_v12 = vld [vmem:[%s12143_s1 + $0x15e8] sm:$0xff] }
 0x26e   :  { %3518 = vmatpush1.msra.mxu0 %v577_v13  ;;  %3589 = vmatpush1.msra.mxu1 %v833_v14  ;;  %v994_v13 = vld [vmem:[%s12143_s1 + $0x1de8] sm:$0xff]  ;;  %v737_v14 = vld [vmem:[%s12143_s1 + $0x15e0] sm:$0xff] }
 0x26f   :  { %3519 = vmatprep.subr.mxu0 %v570_v15  ;;  %3590 = vmatprep.subr.mxu1 %v826_v17  ;;  %v993_v15 = vld [vmem:[%s12143_s1 + $0x1de0] sm:$0xff]  ;;  %v730_v17 = vld [vmem:[%s12143_s1 + $0x15a8] sm:$0xff] }
 0x270   :  { %3520 = vmatpush1.msra.mxu0 %v569_v18  ;;  %3591 = vmatpush1.msra.mxu1 %v825_v20  ;;  %v986_v18 = vld [vmem:[%s12143_s1 + $0x1da8] sm:$0xff]  ;;  %v729_v20 = vld [vmem:[%s12143_s1 + $0x15a0] sm:$0xff] }
 0x271   :  { %3521 = vmatprep.subr.mxu0 %v562_v22  ;;  %3592 = vmatprep.subr.mxu1 %v818_v23  ;;  %v985_v22 = vld [vmem:[%s12143_s1 + $0x1da0] sm:$0xff]  ;;  %v722_v23 = vld [vmem:[%s12143_s1 + $0x1568] sm:$0xff] }
 0x272   :  { %3522 = vmatpush1.msra.mxu0 %v561_v24  ;;  %3593 = vmatpush1.msra.mxu1 %v817_v27  ;;  %v978_v24 = vld [vmem:[%s12143_s1 + $0x1d68] sm:$0xff]  ;;  %v721_v27 = vld [vmem:[%s12143_s1 + $0x1560] sm:$0xff] }
 0x273   :  { %3523 = vmatprep.subr.mxu0 %v554_v28  ;;  %3594 = vmatprep.subr.mxu1 %v810_v30  ;;  %v977_v28 = vld [vmem:[%s12143_s1 + $0x1d60] sm:$0xff]  ;;  %v714_v30 = vld [vmem:[%s12143_s1 + $0x1528] sm:$0xff] }
 0x274   :  { %3524 = vmatpush1.msra.mxu0 %v553_v52  ;;  %3595 = vmatpush1.msra.mxu1 %v809_v32  ;;  %v970_v52 = vld [vmem:[%s12143_s1 + $0x1d28] sm:$0xff]  ;;  %v713_v32 = vld [vmem:[%s12143_s1 + $0x1520] sm:$0xff] }
 0x275   :  { %3525 = vmatprep.subr.mxu0 %v802_v33  ;;  %3596 = vmatprep.subr.mxu1 %v1058_v35  ;;  %v969_v33 = vld [vmem:[%s12143_s1 + $0x1d20] sm:$0xff]  ;;  %v706_v35 = vld [vmem:[%s12143_s1 + $0x14e8] sm:$0xff] }
 0x276   :  { %3526 = vmatpush2.msra.mxu0 %v801_v36  ;;  %3597 = vmatpush2.msra.mxu1 %v1057_v37  ;;  %v962_v36 = vld [vmem:[%s12143_s1 + $0x1ce8] sm:$0xff]  ;;  %v705_v37 = vld [vmem:[%s12143_s1 + $0x14e0] sm:$0xff] }
 0x277   :  { %3527 = vmatprep.subr.mxu0 %v794_v38  ;;  %3598 = vmatprep.subr.mxu1 %v1050_v39  ;;  %v961_v38 = vld [vmem:[%s12143_s1 + $0x1ce0] sm:$0xff]  ;;  %v698_v39 = vld [vmem:[%s12143_s1 + $0x14a8] sm:$0xff] }
 0x278   :  { %3528 = vmatpush2.msra.mxu0 %v793_v40  ;;  %3599 = vmatpush2.msra.mxu1 %v1049_v42  ;;  %v954_v40 = vld [vmem:[%s12143_s1 + $0x1ca8] sm:$0xff]  ;;  %v697_v42 = vld [vmem:[%s12143_s1 + $0x14a0] sm:$0xff] }
 0x279   :  { %3529 = vmatprep.subr.mxu0 %v786_v44  ;;  %3600 = vmatprep.subr.mxu1 %v1042_v45  ;;  %v953_v44 = vld [vmem:[%s12143_s1 + $0x1ca0] sm:$0xff]  ;;  %v690_v45 = vld [vmem:[%s12143_s1 + $0x1468] sm:$0xff] }
 0x27a   :  { %3530 = vmatpush2.msra.mxu0 %v785_v46  ;;  %3601 = vmatpush2.msra.mxu1 %v1041_v47  ;;  %v946_v46 = vld [vmem:[%s12143_s1 + $0x1c68] sm:$0xff]  ;;  %v689_v47 = vld [vmem:[%s12143_s1 + $0x1460] sm:$0xff] }
 0x27b   :  { %3531 = vmatprep.subr.mxu0 %v778_v49  ;;  %3602 = vmatprep.subr.mxu1 %v1034_v50  ;;  %v945_v49 = vld [vmem:[%s12143_s1 + $0x1c60] sm:$0xff]  ;;  %v682_v50 = vld [vmem:[%s12143_s1 + $0x1428] sm:$0xff] }
 0x27c   :  { %3532 = vmatpush2.msra.mxu0 %v777_v51  ;;  %3603 = vmatpush2.msra.mxu1 %v1033_v53  ;;  %v938_v51 = vld [vmem:[%s12143_s1 + $0x1c28] sm:$0xff]  ;;  %v681_v53 = vld [vmem:[%s12143_s1 + $0x1420] sm:$0xff] }
 0x27d   :  { %3533 = vmatprep.subr.mxu0 %v770_v55  ;;  %3604 = vmatprep.subr.mxu1 %v1026_v56  ;;  %v937_v55 = vld [vmem:[%s12143_s1 + $0x1c20] sm:$0xff]  ;;  %v1186_v56 = vld [vmem:[%s12143_s1 + $0x23e8] sm:$0xff] }
 0x27e   :  { %3534 = vmatpush2.msra.mxu0 %v769_v58  ;;  %3605 = vmatpush2.msra.mxu1 %v1025_v59  ;;  %v1442_v58 = vld [vmem:[%s12143_s1 + $0x2be8] sm:$0xff]  ;;  %v1185_v59 = vld [vmem:[%s12143_s1 + $0x23e0] sm:$0xff] }
 0x27f   :  { %3535 = vmatprep.subr.mxu0 %v762_v60  ;;  %3606 = vmatprep.subr.mxu1 %v1018_v61  ;;  %v1441_v60 = vld [vmem:[%s12143_s1 + $0x2be0] sm:$0xff]  ;;  %v1178_v61 = vld [vmem:[%s12143_s1 + $0x23a8] sm:$0xff] }
 0x280   :  { %3536 = vmatpush2.msra.mxu0 %v761_v63  ;;  %3607 = vmatpush2.msra.mxu1 %v1017_v0  ;;  %v1434_v63 = vld [vmem:[%s12143_s1 + $0x2ba8] sm:$0xff]  ;;  %v1177_v0 = vld [vmem:[%s12143_s1 + $0x23a0] sm:$0xff] }
 0x281   :  { %3537 = vmatprep.subr.mxu0 %v754_v1  ;;  %3608 = vmatprep.subr.mxu1 %v1010_v2  ;;  %v1433_v1 = vld [vmem:[%s12143_s1 + $0x2ba0] sm:$0xff]  ;;  %v1170_v2 = vld [vmem:[%s12143_s1 + $0x2368] sm:$0xff] }
 0x282   :  { %3538 = vmatpush2.msra.mxu0 %v753_v4  ;;  %3609 = vmatpush2.msra.mxu1 %v1009_v5  ;;  %v1426_v4 = vld [vmem:[%s12143_s1 + $0x2b68] sm:$0xff]  ;;  %v1169_v5 = vld [vmem:[%s12143_s1 + $0x2360] sm:$0xff] }
 0x283   :  { %3539 = vmatprep.subr.mxu0 %v746_v6  ;;  %3610 = vmatprep.subr.mxu1 %v1002_v7  ;;  %v1425_v6 = vld [vmem:[%s12143_s1 + $0x2b60] sm:$0xff]  ;;  %v1162_v7 = vld [vmem:[%s12143_s1 + $0x2328] sm:$0xff] }
 0x284   :  { %3540 = vmatpush2.msra.mxu0 %v745_v9  ;;  %3611 = vmatpush2.msra.mxu1 %v1001_v10  ;;  %v1418_v9 = vld [vmem:[%s12143_s1 + $0x2b28] sm:$0xff]  ;;  %v1161_v10 = vld [vmem:[%s12143_s1 + $0x2320] sm:$0xff] }
 0x285   :  { %3541 = vmatprep.subr.mxu0 %v738_v12  ;;  %3612 = vmatprep.subr.mxu1 %v994_v13  ;;  %v1417_v12 = vld [vmem:[%s12143_s1 + $0x2b20] sm:$0xff]  ;;  %v1154_v13 = vld [vmem:[%s12143_s1 + $0x22e8] sm:$0xff] }
 0x286   :  { %3542 = vmatpush2.msra.mxu0 %v737_v14  ;;  %3613 = vmatpush2.msra.mxu1 %v993_v15  ;;  %v1410_v14 = vld [vmem:[%s12143_s1 + $0x2ae8] sm:$0xff]  ;;  %v1153_v15 = vld [vmem:[%s12143_s1 + $0x22e0] sm:$0xff] }
 0x287   :  { %3543 = vmatprep.subr.mxu0 %v730_v17  ;;  %3614 = vmatprep.subr.mxu1 %v986_v18  ;;  %v1409_v17 = vld [vmem:[%s12143_s1 + $0x2ae0] sm:$0xff]  ;;  %v1146_v18 = vld [vmem:[%s12143_s1 + $0x22a8] sm:$0xff] }
 0x288   :  { %3544 = vmatpush2.msra.mxu0 %v729_v20  ;;  %3615 = vmatpush2.msra.mxu1 %v985_v22  ;;  %v1402_v20 = vld [vmem:[%s12143_s1 + $0x2aa8] sm:$0xff]  ;;  %v1145_v22 = vld [vmem:[%s12143_s1 + $0x22a0] sm:$0xff] }
 0x289   :  { %3545 = vmatprep.subr.mxu0 %v722_v23  ;;  %3616 = vmatprep.subr.mxu1 %v978_v24  ;;  %v1401_v23 = vld [vmem:[%s12143_s1 + $0x2aa0] sm:$0xff]  ;;  %v1138_v24 = vld [vmem:[%s12143_s1 + $0x2268] sm:$0xff] }
 0x28a   :  { %3546 = vmatpush2.msra.mxu0 %v721_v27  ;;  %3617 = vmatpush2.msra.mxu1 %v977_v28  ;;  %v1394_v27 = vld [vmem:[%s12143_s1 + $0x2a68] sm:$0xff]  ;;  %v1137_v28 = vld [vmem:[%s12143_s1 + $0x2260] sm:$0xff] }
 0x28b   :  { %3547 = vmatprep.subr.mxu0 %v714_v30  ;;  %3618 = vmatprep.subr.mxu1 %v970_v52  ;;  %v1393_v30 = vld [vmem:[%s12143_s1 + $0x2a60] sm:$0xff]  ;;  %v1130_v52 = vld [vmem:[%s12143_s1 + $0x2228] sm:$0xff] }
 0x28c   :  { %3548 = vmatpush2.msra.mxu0 %v713_v32  ;;  %3619 = vmatpush2.msra.mxu1 %v969_v33  ;;  %v1386_v32 = vld [vmem:[%s12143_s1 + $0x2a28] sm:$0xff]  ;;  %v1129_v33 = vld [vmem:[%s12143_s1 + $0x2220] sm:$0xff] }
 0x28d   :  { %3549 = vmatprep.subr.mxu0 %v706_v35  ;;  %3620 = vmatprep.subr.mxu1 %v962_v36  ;;  %v1385_v35 = vld [vmem:[%s12143_s1 + $0x2a20] sm:$0xff]  ;;  %v1122_v36 = vld [vmem:[%s12143_s1 + $0x21e8] sm:$0xff] }
 0x28e   :  { %3550 = vmatpush2.msra.mxu0 %v705_v37  ;;  %3621 = vmatpush2.msra.mxu1 %v961_v38  ;;  %v1378_v37 = vld [vmem:[%s12143_s1 + $0x29e8] sm:$0xff]  ;;  %v1121_v38 = vld [vmem:[%s12143_s1 + $0x21e0] sm:$0xff] }
 0x28f   :  { %3551 = vmatprep.subr.mxu0 %v698_v39  ;;  %3622 = vmatprep.subr.mxu1 %v954_v40  ;;  %v1377_v39 = vld [vmem:[%s12143_s1 + $0x29e0] sm:$0xff]  ;;  %v1114_v40 = vld [vmem:[%s12143_s1 + $0x21a8] sm:$0xff] }
 0x290   :  { %3552 = vmatpush2.msra.mxu0 %v697_v42  ;;  %3623 = vmatpush2.msra.mxu1 %v953_v44  ;;  %v1370_v42 = vld [vmem:[%s12143_s1 + $0x29a8] sm:$0xff]  ;;  %v1113_v44 = vld [vmem:[%s12143_s1 + $0x21a0] sm:$0xff] }
 0x291   :  { %3553 = vmatprep.subr.mxu0 %v690_v45  ;;  %3624 = vmatprep.subr.mxu1 %v946_v46  ;;  %v1369_v45 = vld [vmem:[%s12143_s1 + $0x29a0] sm:$0xff]  ;;  %v1106_v46 = vld [vmem:[%s12143_s1 + $0x2168] sm:$0xff] }
 0x292   :  { %3554 = vmatpush2.msra.mxu0 %v689_v47  ;;  %3625 = vmatpush2.msra.mxu1 %v945_v49  ;;  %v1362_v47 = vld [vmem:[%s12143_s1 + $0x2968] sm:$0xff]  ;;  %v1105_v49 = vld [vmem:[%s12143_s1 + $0x2160] sm:$0xff] }
 0x293   :  { %3555 = vmatprep.subr.mxu0 %v682_v50  ;;  %3626 = vmatprep.subr.mxu1 %v938_v51  ;;  %v1361_v50 = vld [vmem:[%s12143_s1 + $0x2960] sm:$0xff]  ;;  %v1098_v51 = vld [vmem:[%s12143_s1 + $0x2128] sm:$0xff] }
 0x294   :  { %3556 = vmatpush2.msra.mxu0 %v681_v53  ;;  %3557 = vmatprep.mubr.f32.mxu0 %v6002_v26  ;;  %v1354_v53 = vld [vmem:[%s12143_s1 + $0x2928] sm:$0xff] }
 0x295   :  { %3627 = vmatpush2.msra.mxu1 %v937_v55  ;;  %3558 = vmatmul.mubr.f32.vlgmr.msra.gmra.mxu0 %v5971_v16  ;;  %v1097_v55 = vld [vmem:[%s12143_s1 + $0x2120] sm:$0xff] }
 0x296   :  { %3628 = vmatprep.mubr.f32.mxu1 %v6012_v29  ;;  %3635 = vmatprep.subr.mxu0 %v1186_v56  ;;  %v1353_v56 = vld [vmem:[%s12143_s1 + $0x2920] sm:$0xff] }
 0x297   :  { %3706 = vmatprep.subr.mxu1 %v1442_v58  ;;  %3629 = vmatmul.mubr.f32.vlgmr.msra.gmra.mxu1 %v5986_v21  ;;  %v1090_v58 = vld [vmem:[%s12143_s1 + $0x20e8] sm:$0xff] }
 0x298   :  { %3636 = vmatpush1.msra.mxu0 %v1185_v59  ;;  %3707 = vmatpush1.msra.mxu1 %v1441_v60  ;;  %v1346_v59 = vld [vmem:[%s12143_s1 + $0x28e8] sm:$0xff]  ;;  %v1089_v60 = vld [vmem:[%s12143_s1 + $0x20e0] sm:$0xff] }
 0x299   :  { %3637 = vmatprep.subr.mxu0 %v1178_v61  ;;  %3708 = vmatprep.subr.mxu1 %v1434_v63  ;;  %v1345_v61 = vld [vmem:[%s12143_s1 + $0x28e0] sm:$0xff]  ;;  %v1082_v63 = vld [vmem:[%s12143_s1 + $0x20a8] sm:$0xff] }
 0x29a   :  { %3638 = vmatpush1.msra.mxu0 %v1177_v0  ;;  %3709 = vmatpush1.msra.mxu1 %v1433_v1  ;;  %v1338_v0 = vld [vmem:[%s12143_s1 + $0x28a8] sm:$0xff]  ;;  %v1081_v1 = vld [vmem:[%s12143_s1 + $0x20a0] sm:$0xff] }
 0x29b   :  { %3639 = vmatprep.subr.mxu0 %v1170_v2  ;;  %3710 = vmatprep.subr.mxu1 %v1426_v4  ;;  %v1337_v2 = vld [vmem:[%s12143_s1 + $0x28a0] sm:$0xff]  ;;  %v1074_v4 = vld [vmem:[%s12143_s1 + $0x2068] sm:$0xff] }
 0x29c   :  { %3640 = vmatpush1.msra.mxu0 %v1169_v5  ;;  %3711 = vmatpush1.msra.mxu1 %v1425_v6  ;;  %v1330_v5 = vld [vmem:[%s12143_s1 + $0x2868] sm:$0xff]  ;;  %v1073_v6 = vld [vmem:[%s12143_s1 + $0x2060] sm:$0xff] }
 0x29d   :  { %3641 = vmatprep.subr.mxu0 %v1162_v7  ;;  %3712 = vmatprep.subr.mxu1 %v1418_v9  ;;  %v1329_v7 = vld [vmem:[%s12143_s1 + $0x2860] sm:$0xff]  ;;  %v1066_v9 = vld [vmem:[%s12143_s1 + $0x2028] sm:$0xff] }
 0x29e   :  { %3642 = vmatpush1.msra.mxu0 %v1161_v10  ;;  %3713 = vmatpush1.msra.mxu1 %v1417_v12  ;;  %v1322_v10 = vld [vmem:[%s12143_s1 + $0x2828] sm:$0xff]  ;;  %v1065_v12 = vld [vmem:[%s12143_s1 + $0x2020] sm:$0xff] }
 0x29f   :  { %3643 = vmatprep.subr.mxu0 %v1154_v13  ;;  %3714 = vmatprep.subr.mxu1 %v1410_v14  ;;  %v1321_v13 = vld [vmem:[%s12143_s1 + $0x2820] sm:$0xff]  ;;  %v1314_v14 = vld [vmem:[%s12143_s1 + $0x27e8] sm:$0xff] }
 0x2a0   :  { %3644 = vmatpush1.msra.mxu0 %v1153_v15  ;;  %3715 = vmatpush1.msra.mxu1 %v1409_v17  ;;  %v1570_v15 = vld [vmem:[%s12143_s1 + $0x2fe8] sm:$0xff]  ;;  %v1313_v17 = vld [vmem:[%s12143_s1 + $0x27e0] sm:$0xff] }
 0x2a1   :  { %3645 = vmatprep.subr.mxu0 %v1146_v18  ;;  %3716 = vmatprep.subr.mxu1 %v1402_v20  ;;  %v1569_v18 = vld [vmem:[%s12143_s1 + $0x2fe0] sm:$0xff]  ;;  %v1306_v20 = vld [vmem:[%s12143_s1 + $0x27a8] sm:$0xff] }
 0x2a2   :  { %3646 = vmatpush1.msra.mxu0 %v1145_v22  ;;  %3717 = vmatpush1.msra.mxu1 %v1401_v23  ;;  %v1562_v22 = vld [vmem:[%s12143_s1 + $0x2fa8] sm:$0xff]  ;;  %v1305_v23 = vld [vmem:[%s12143_s1 + $0x27a0] sm:$0xff] }
 0x2a3   :  { %3647 = vmatprep.subr.mxu0 %v1138_v24  ;;  %3718 = vmatprep.subr.mxu1 %v1394_v27  ;;  %v1561_v24 = vld [vmem:[%s12143_s1 + $0x2fa0] sm:$0xff]  ;;  %v1298_v27 = vld [vmem:[%s12143_s1 + $0x2768] sm:$0xff] }
 0x2a4   :  { %3648 = vmatpush1.msra.mxu0 %v1137_v28  ;;  %3719 = vmatpush1.msra.mxu1 %v1393_v30  ;;  %v1554_v28 = vld [vmem:[%s12143_s1 + $0x2f68] sm:$0xff]  ;;  %v1297_v30 = vld [vmem:[%s12143_s1 + $0x2760] sm:$0xff] }
 0x2a5   :  { %3649 = vmatprep.subr.mxu0 %v1130_v52  ;;  %3720 = vmatprep.subr.mxu1 %v1386_v32  ;;  %v1553_v52 = vld [vmem:[%s12143_s1 + $0x2f60] sm:$0xff]  ;;  %v1290_v32 = vld [vmem:[%s12143_s1 + $0x2728] sm:$0xff] }
 0x2a6   :  { %3650 = vmatpush1.msra.mxu0 %v1129_v33  ;;  %3721 = vmatpush1.msra.mxu1 %v1385_v35  ;;  %v1546_v33 = vld [vmem:[%s12143_s1 + $0x2f28] sm:$0xff]  ;;  %v1289_v35 = vld [vmem:[%s12143_s1 + $0x2720] sm:$0xff] }
 0x2a7   :  { %3651 = vmatprep.subr.mxu0 %v1122_v36  ;;  %3722 = vmatprep.subr.mxu1 %v1378_v37  ;;  %v1545_v36 = vld [vmem:[%s12143_s1 + $0x2f20] sm:$0xff]  ;;  %v1282_v37 = vld [vmem:[%s12143_s1 + $0x26e8] sm:$0xff] }
 0x2a8   :  { %3652 = vmatpush1.msra.mxu0 %v1121_v38  ;;  %3723 = vmatpush1.msra.mxu1 %v1377_v39  ;;  %v1538_v38 = vld [vmem:[%s12143_s1 + $0x2ee8] sm:$0xff]  ;;  %v1281_v39 = vld [vmem:[%s12143_s1 + $0x26e0] sm:$0xff] }
 0x2a9   :  { %3653 = vmatprep.subr.mxu0 %v1114_v40  ;;  %3724 = vmatprep.subr.mxu1 %v1370_v42  ;;  %v1537_v40 = vld [vmem:[%s12143_s1 + $0x2ee0] sm:$0xff]  ;;  %v1274_v42 = vld [vmem:[%s12143_s1 + $0x26a8] sm:$0xff] }
 0x2aa   :  { %3654 = vmatpush1.msra.mxu0 %v1113_v44  ;;  %3725 = vmatpush1.msra.mxu1 %v1369_v45  ;;  %v1530_v44 = vld [vmem:[%s12143_s1 + $0x2ea8] sm:$0xff]  ;;  %v1273_v45 = vld [vmem:[%s12143_s1 + $0x26a0] sm:$0xff] }
 0x2ab   :  { %3655 = vmatprep.subr.mxu0 %v1106_v46  ;;  %3726 = vmatprep.subr.mxu1 %v1362_v47  ;;  %v1529_v46 = vld [vmem:[%s12143_s1 + $0x2ea0] sm:$0xff]  ;;  %v1266_v47 = vld [vmem:[%s12143_s1 + $0x2668] sm:$0xff] }
 0x2ac   :  { %3656 = vmatpush1.msra.mxu0 %v1105_v49  ;;  %3727 = vmatpush1.msra.mxu1 %v1361_v50  ;;  %v1522_v49 = vld [vmem:[%s12143_s1 + $0x2e68] sm:$0xff]  ;;  %v1265_v50 = vld [vmem:[%s12143_s1 + $0x2660] sm:$0xff] }
 0x2ad   :  { %3657 = vmatprep.subr.mxu0 %v1098_v51  ;;  %3728 = vmatprep.subr.mxu1 %v1354_v53  ;;  %v1521_v51 = vld [vmem:[%s12143_s1 + $0x2e60] sm:$0xff]  ;;  %v1258_v53 = vld [vmem:[%s12143_s1 + $0x2628] sm:$0xff] }
 0x2ae   :  { %3658 = vmatpush1.msra.mxu0 %v1097_v55  ;;  %3729 = vmatpush1.msra.mxu1 %v1353_v56  ;;  %v1514_v55 = vld [vmem:[%s12143_s1 + $0x2e28] sm:$0xff]  ;;  %v1257_v56 = vld [vmem:[%s12143_s1 + $0x2620] sm:$0xff] }
 0x2af   :  { %3659 = vmatprep.subr.mxu0 %v1090_v58  ;;  %3730 = vmatprep.subr.mxu1 %v1346_v59  ;;  %v1513_v58 = vld [vmem:[%s12143_s1 + $0x2e20] sm:$0xff]  ;;  %v1250_v59 = vld [vmem:[%s12143_s1 + $0x25e8] sm:$0xff] }
 0x2b0   :  { %3660 = vmatpush1.msra.mxu0 %v1089_v60  ;;  %3731 = vmatpush1.msra.mxu1 %v1345_v61  ;;  %v1506_v60 = vld [vmem:[%s12143_s1 + $0x2de8] sm:$0xff]  ;;  %v1249_v61 = vld [vmem:[%s12143_s1 + $0x25e0] sm:$0xff] }
 0x2b1   :  { %3661 = vmatprep.subr.mxu0 %v1082_v63  ;;  %3732 = vmatprep.subr.mxu1 %v1338_v0  ;;  %v1505_v63 = vld [vmem:[%s12143_s1 + $0x2de0] sm:$0xff]  ;;  %v1242_v0 = vld [vmem:[%s12143_s1 + $0x25a8] sm:$0xff] }
 0x2b2   :  { %3662 = vmatpush1.msra.mxu0 %v1081_v1  ;;  %3733 = vmatpush1.msra.mxu1 %v1337_v2  ;;  %v1498_v1 = vld [vmem:[%s12143_s1 + $0x2da8] sm:$0xff]  ;;  %v1241_v2 = vld [vmem:[%s12143_s1 + $0x25a0] sm:$0xff] }
 0x2b3   :  { %3663 = vmatprep.subr.mxu0 %v1074_v4  ;;  %3734 = vmatprep.subr.mxu1 %v1330_v5  ;;  %v1497_v4 = vld [vmem:[%s12143_s1 + $0x2da0] sm:$0xff]  ;;  %v1234_v5 = vld [vmem:[%s12143_s1 + $0x2568] sm:$0xff] }
 0x2b4   :  { %3664 = vmatpush1.msra.mxu0 %v1073_v6  ;;  %3735 = vmatpush1.msra.mxu1 %v1329_v7  ;;  %v1490_v6 = vld [vmem:[%s12143_s1 + $0x2d68] sm:$0xff]  ;;  %v1233_v7 = vld [vmem:[%s12143_s1 + $0x2560] sm:$0xff] }
 0x2b5   :  { %3665 = vmatprep.subr.mxu0 %v1066_v9  ;;  %3736 = vmatprep.subr.mxu1 %v1322_v10  ;;  %v1489_v9 = vld [vmem:[%s12143_s1 + $0x2d60] sm:$0xff]  ;;  %v1226_v10 = vld [vmem:[%s12143_s1 + $0x2528] sm:$0xff] }
 0x2b6   :  { %3666 = vmatpush1.msra.mxu0 %v1065_v12  ;;  %3737 = vmatpush1.msra.mxu1 %v1321_v13  ;;  %v1482_v12 = vld [vmem:[%s12143_s1 + $0x2d28] sm:$0xff]  ;;  %v1225_v13 = vld [vmem:[%s12143_s1 + $0x2520] sm:$0xff] }
 0x2b7   :  { %3667 = vmatprep.subr.mxu0 %v1314_v14  ;;  %3738 = vmatprep.subr.mxu1 %v1570_v15  ;;  %v1481_v14 = vld [vmem:[%s12143_s1 + $0x2d20] sm:$0xff]  ;;  %v1218_v15 = vld [vmem:[%s12143_s1 + $0x24e8] sm:$0xff] }
 0x2b8   :  { %3668 = vmatpush2.msra.mxu0 %v1313_v17  ;;  %3739 = vmatpush2.msra.mxu1 %v1569_v18  ;;  %v1474_v17 = vld [vmem:[%s12143_s1 + $0x2ce8] sm:$0xff]  ;;  %v1217_v18 = vld [vmem:[%s12143_s1 + $0x24e0] sm:$0xff] }
 0x2b9   :  { %3669 = vmatprep.subr.mxu0 %v1306_v20  ;;  %3740 = vmatprep.subr.mxu1 %v1562_v22  ;;  %v1473_v20 = vld [vmem:[%s12143_s1 + $0x2ce0] sm:$0xff]  ;;  %v1210_v22 = vld [vmem:[%s12143_s1 + $0x24a8] sm:$0xff] }
 0x2ba   :  { %3670 = vmatpush2.msra.mxu0 %v1305_v23  ;;  %3741 = vmatpush2.msra.mxu1 %v1561_v24  ;;  %v1466_v23 = vld [vmem:[%s12143_s1 + $0x2ca8] sm:$0xff]  ;;  %v1209_v24 = vld [vmem:[%s12143_s1 + $0x24a0] sm:$0xff] }
 0x2bb   :  { %3671 = vmatprep.subr.mxu0 %v1298_v27  ;;  %3742 = vmatprep.subr.mxu1 %v1554_v28  ;;  %v1465_v27 = vld [vmem:[%s12143_s1 + $0x2ca0] sm:$0xff]  ;;  %v1202_v28 = vld [vmem:[%s12143_s1 + $0x2468] sm:$0xff] }
 0x2bc   :  { %3672 = vmatpush2.msra.mxu0 %v1297_v30  ;;  %3743 = vmatpush2.msra.mxu1 %v1553_v52  ;;  %v1458_v30 = vld [vmem:[%s12143_s1 + $0x2c68] sm:$0xff]  ;;  %v1201_v52 = vld [vmem:[%s12143_s1 + $0x2460] sm:$0xff] }
 0x2bd   :  { %3673 = vmatprep.subr.mxu0 %v1290_v32  ;;  %3744 = vmatprep.subr.mxu1 %v1546_v33  ;;  %v1457_v32 = vld [vmem:[%s12143_s1 + $0x2c60] sm:$0xff]  ;;  %v1194_v33 = vld [vmem:[%s12143_s1 + $0x2428] sm:$0xff] }
 0x2be   :  { %3674 = vmatpush2.msra.mxu0 %v1289_v35  ;;  %3745 = vmatpush2.msra.mxu1 %v1545_v36  ;;  %v1450_v35 = vld [vmem:[%s12143_s1 + $0x2c28] sm:$0xff]  ;;  %v1193_v36 = vld [vmem:[%s12143_s1 + $0x2420] sm:$0xff] }
 0x2bf   :  { %3675 = vmatprep.subr.mxu0 %v1282_v37  ;;  %3746 = vmatprep.subr.mxu1 %v1538_v38  ;;  %v1449_v37 = vld [vmem:[%s12143_s1 + $0x2c20] sm:$0xff]  ;;  %v1698_v38 = vld [vmem:[%s12143_s1 + $0x33e8] sm:$0xff] }
 0x2c0   :  { %3676 = vmatpush2.msra.mxu0 %v1281_v39  ;;  %3747 = vmatpush2.msra.mxu1 %v1537_v40  ;;  %v1954_v39 = vld [vmem:[%s12143_s1 + $0x3be8] sm:$0xff]  ;;  %v1697_v40 = vld [vmem:[%s12143_s1 + $0x33e0] sm:$0xff] }
 0x2c1   :  { %3677 = vmatprep.subr.mxu0 %v1274_v42  ;;  %3748 = vmatprep.subr.mxu1 %v1530_v44  ;;  %v1953_v42 = vld [vmem:[%s12143_s1 + $0x3be0] sm:$0xff]  ;;  %v1690_v44 = vld [vmem:[%s12143_s1 + $0x33a8] sm:$0xff] }
 0x2c2   :  { %3678 = vmatpush2.msra.mxu0 %v1273_v45  ;;  %3749 = vmatpush2.msra.mxu1 %v1529_v46  ;;  %v1946_v45 = vld [vmem:[%s12143_s1 + $0x3ba8] sm:$0xff]  ;;  %v1689_v46 = vld [vmem:[%s12143_s1 + $0x33a0] sm:$0xff] }
 0x2c3   :  { %3679 = vmatprep.subr.mxu0 %v1266_v47  ;;  %3750 = vmatprep.subr.mxu1 %v1522_v49  ;;  %v1945_v47 = vld [vmem:[%s12143_s1 + $0x3ba0] sm:$0xff]  ;;  %v1682_v49 = vld [vmem:[%s12143_s1 + $0x3368] sm:$0xff] }
 0x2c4   :  { %3680 = vmatpush2.msra.mxu0 %v1265_v50  ;;  %3751 = vmatpush2.msra.mxu1 %v1521_v51  ;;  %v1938_v50 = vld [vmem:[%s12143_s1 + $0x3b68] sm:$0xff]  ;;  %v1681_v51 = vld [vmem:[%s12143_s1 + $0x3360] sm:$0xff] }
 0x2c5   :  { %3681 = vmatprep.subr.mxu0 %v1258_v53  ;;  %3752 = vmatprep.subr.mxu1 %v1514_v55  ;;  %v1937_v53 = vld [vmem:[%s12143_s1 + $0x3b60] sm:$0xff]  ;;  %v1674_v55 = vld [vmem:[%s12143_s1 + $0x3328] sm:$0xff] }
 0x2c6   :  { %3682 = vmatpush2.msra.mxu0 %v1257_v56  ;;  %3753 = vmatpush2.msra.mxu1 %v1513_v58  ;;  %v1930_v56 = vld [vmem:[%s12143_s1 + $0x3b28] sm:$0xff]  ;;  %v1673_v58 = vld [vmem:[%s12143_s1 + $0x3320] sm:$0xff] }
 0x2c7   :  { %3683 = vmatprep.subr.mxu0 %v1250_v59  ;;  %3754 = vmatprep.subr.mxu1 %v1506_v60  ;;  %v1929_v59 = vld [vmem:[%s12143_s1 + $0x3b20] sm:$0xff]  ;;  %v1666_v60 = vld [vmem:[%s12143_s1 + $0x32e8] sm:$0xff] }
 0x2c8   :  { %3684 = vmatpush2.msra.mxu0 %v1249_v61  ;;  %3755 = vmatpush2.msra.mxu1 %v1505_v63  ;;  %v1922_v61 = vld [vmem:[%s12143_s1 + $0x3ae8] sm:$0xff]  ;;  %v1665_v63 = vld [vmem:[%s12143_s1 + $0x32e0] sm:$0xff] }
 0x2c9   :  { %3685 = vmatprep.subr.mxu0 %v1242_v0  ;;  %3756 = vmatprep.subr.mxu1 %v1498_v1  ;;  %v1921_v0 = vld [vmem:[%s12143_s1 + $0x3ae0] sm:$0xff]  ;;  %v1658_v1 = vld [vmem:[%s12143_s1 + $0x32a8] sm:$0xff] }
 0x2ca   :  { %3686 = vmatpush2.msra.mxu0 %v1241_v2  ;;  %3757 = vmatpush2.msra.mxu1 %v1497_v4  ;;  %v1914_v2 = vld [vmem:[%s12143_s1 + $0x3aa8] sm:$0xff]  ;;  %v1657_v4 = vld [vmem:[%s12143_s1 + $0x32a0] sm:$0xff] }
 0x2cb   :  { %3687 = vmatprep.subr.mxu0 %v1234_v5  ;;  %3758 = vmatprep.subr.mxu1 %v1490_v6  ;;  %v1913_v5 = vld [vmem:[%s12143_s1 + $0x3aa0] sm:$0xff]  ;;  %v1650_v6 = vld [vmem:[%s12143_s1 + $0x3268] sm:$0xff] }
 0x2cc   :  { %3688 = vmatpush2.msra.mxu0 %v1233_v7  ;;  %3759 = vmatpush2.msra.mxu1 %v1489_v9  ;;  %v1906_v7 = vld [vmem:[%s12143_s1 + $0x3a68] sm:$0xff]  ;;  %v1649_v9 = vld [vmem:[%s12143_s1 + $0x3260] sm:$0xff] }
 0x2cd   :  { %3689 = vmatprep.subr.mxu0 %v1226_v10  ;;  %3760 = vmatprep.subr.mxu1 %v1482_v12  ;;  %v1905_v10 = vld [vmem:[%s12143_s1 + $0x3a60] sm:$0xff]  ;;  %v1642_v12 = vld [vmem:[%s12143_s1 + $0x3228] sm:$0xff] }
 0x2ce   :  { %3690 = vmatpush2.msra.mxu0 %v1225_v13  ;;  %3761 = vmatpush2.msra.mxu1 %v1481_v14  ;;  %v1898_v13 = vld [vmem:[%s12143_s1 + $0x3a28] sm:$0xff]  ;;  %v1641_v14 = vld [vmem:[%s12143_s1 + $0x3220] sm:$0xff] }
 0x2cf   :  { %3691 = vmatprep.subr.mxu0 %v1218_v15  ;;  %3762 = vmatprep.subr.mxu1 %v1474_v17  ;;  %v1897_v15 = vld [vmem:[%s12143_s1 + $0x3a20] sm:$0xff]  ;;  %v1634_v17 = vld [vmem:[%s12143_s1 + $0x31e8] sm:$0xff] }
 0x2d0   :  { %3692 = vmatpush2.msra.mxu0 %v1217_v18  ;;  %3763 = vmatpush2.msra.mxu1 %v1473_v20  ;;  %v1890_v18 = vld [vmem:[%s12143_s1 + $0x39e8] sm:$0xff]  ;;  %v1633_v20 = vld [vmem:[%s12143_s1 + $0x31e0] sm:$0xff] }
 0x2d1   :  { %3693 = vmatprep.subr.mxu0 %v1210_v22  ;;  %3764 = vmatprep.subr.mxu1 %v1466_v23  ;;  %v1889_v22 = vld [vmem:[%s12143_s1 + $0x39e0] sm:$0xff]  ;;  %v1626_v23 = vld [vmem:[%s12143_s1 + $0x31a8] sm:$0xff] }
 0x2d2   :  { %3694 = vmatpush2.msra.mxu0 %v1209_v24  ;;  %3765 = vmatpush2.msra.mxu1 %v1465_v27  ;;  %v1882_v24 = vld [vmem:[%s12143_s1 + $0x39a8] sm:$0xff]  ;;  %v1625_v27 = vld [vmem:[%s12143_s1 + $0x31a0] sm:$0xff] }
 0x2d3   :  { %3695 = vmatprep.subr.mxu0 %v1202_v28  ;;  %3766 = vmatprep.subr.mxu1 %v1458_v30  ;;  %v1881_v28 = vld [vmem:[%s12143_s1 + $0x39a0] sm:$0xff]  ;;  %v1618_v30 = vld [vmem:[%s12143_s1 + $0x3168] sm:$0xff] }
 0x2d4   :  { %3696 = vmatpush2.msra.mxu0 %v1201_v52  ;;  %3767 = vmatpush2.msra.mxu1 %v1457_v32  ;;  %v1874_v52 = vld [vmem:[%s12143_s1 + $0x3968] sm:$0xff]  ;;  %v1617_v32 = vld [vmem:[%s12143_s1 + $0x3160] sm:$0xff] }
 0x2d5   :  { %3697 = vmatprep.subr.mxu0 %v1194_v33  ;;  %3768 = vmatprep.subr.mxu1 %v1450_v35  ;;  %v1873_v33 = vld [vmem:[%s12143_s1 + $0x3960] sm:$0xff]  ;;  %v1610_v35 = vld [vmem:[%s12143_s1 + $0x3128] sm:$0xff] }
 0x2d6   :  { %3698 = vmatpush2.msra.mxu0 %v1193_v36  ;;  %3699 = vmatprep.mubr.f32.mxu0 %v6407_v54  ;;  %v1866_v36 = vld [vmem:[%s12143_s1 + $0x3928] sm:$0xff] }
 0x2d7   :  { %3769 = vmatpush2.msra.mxu1 %v1449_v37  ;;  %3700 = vmatmul.mubr.f32.vlgmr.msra.gmra.mxu0 %v6376_v43  ;;  %v1609_v37 = vld [vmem:[%s12143_s1 + $0x3120] sm:$0xff] }
 0x2d8   :  { %3770 = vmatprep.mubr.f32.mxu1 %v6417_v57  ;;  %3777 = vmatprep.subr.mxu0 %v1698_v38  ;;  %v1865_v38 = vld [vmem:[%s12143_s1 + $0x3920] sm:$0xff] }
 0x2d9   :  { %3848 = vmatprep.subr.mxu1 %v1954_v39  ;;  %3771 = vmatmul.mubr.f32.vlgmr.msra.gmra.mxu1 %v6391_v48  ;;  %v1602_v39 = vld [vmem:[%s12143_s1 + $0x30e8] sm:$0xff] }
 0x2da   :  { %3778 = vmatpush1.msra.mxu0 %v1697_v40  ;;  %3849 = vmatpush1.msra.mxu1 %v1953_v42  ;;  %v1858_v40 = vld [vmem:[%s12143_s1 + $0x38e8] sm:$0xff]  ;;  %v1601_v42 = vld [vmem:[%s12143_s1 + $0x30e0] sm:$0xff] }
 0x2db   :  { %3779 = vmatprep.subr.mxu0 %v1690_v44  ;;  %3850 = vmatprep.subr.mxu1 %v1946_v45  ;;  %v1857_v44 = vld [vmem:[%s12143_s1 + $0x38e0] sm:$0xff]  ;;  %v1594_v45 = vld [vmem:[%s12143_s1 + $0x30a8] sm:$0xff] }
 0x2dc   :  { %3780 = vmatpush1.msra.mxu0 %v1689_v46  ;;  %3851 = vmatpush1.msra.mxu1 %v1945_v47  ;;  %v1850_v46 = vld [vmem:[%s12143_s1 + $0x38a8] sm:$0xff]  ;;  %v1593_v47 = vld [vmem:[%s12143_s1 + $0x30a0] sm:$0xff] }
 0x2dd   :  { %3781 = vmatprep.subr.mxu0 %v1682_v49  ;;  %3852 = vmatprep.subr.mxu1 %v1938_v50  ;;  %v1849_v49 = vld [vmem:[%s12143_s1 + $0x38a0] sm:$0xff]  ;;  %v1586_v50 = vld [vmem:[%s12143_s1 + $0x3068] sm:$0xff] }
 0x2de   :  { %3782 = vmatpush1.msra.mxu0 %v1681_v51  ;;  %3853 = vmatpush1.msra.mxu1 %v1937_v53  ;;  %v1842_v51 = vld [vmem:[%s12143_s1 + $0x3868] sm:$0xff]  ;;  %v1585_v53 = vld [vmem:[%s12143_s1 + $0x3060] sm:$0xff] }
 0x2df   :  { %3783 = vmatprep.subr.mxu0 %v1674_v55  ;;  %3854 = vmatprep.subr.mxu1 %v1930_v56  ;;  %v1841_v55 = vld [vmem:[%s12143_s1 + $0x3860] sm:$0xff]  ;;  %v1578_v56 = vld [vmem:[%s12143_s1 + $0x3028] sm:$0xff] }
 0x2e0   :  { %3784 = vmatpush1.msra.mxu0 %v1673_v58  ;;  %3855 = vmatpush1.msra.mxu1 %v1929_v59  ;;  %v1834_v58 = vld [vmem:[%s12143_s1 + $0x3828] sm:$0xff]  ;;  %v1577_v59 = vld [vmem:[%s12143_s1 + $0x3020] sm:$0xff] }
 0x2e1   :  { %3785 = vmatprep.subr.mxu0 %v1666_v60  ;;  %3856 = vmatprep.subr.mxu1 %v1922_v61  ;;  %v1833_v60 = vld [vmem:[%s12143_s1 + $0x3820] sm:$0xff]  ;;  %v1826_v61 = vld [vmem:[%s12143_s1 + $0x37e8] sm:$0xff] }
 0x2e2   :  { %3786 = vmatpush1.msra.mxu0 %v1665_v63  ;;  %3857 = vmatpush1.msra.mxu1 %v1921_v0  ;;  %v2082_v63 = vld [vmem:[%s12143_s1 + $0x3fe8] sm:$0xff]  ;;  %v1825_v0 = vld [vmem:[%s12143_s1 + $0x37e0] sm:$0xff] }
 0x2e3   :  { %3787 = vmatprep.subr.mxu0 %v1658_v1  ;;  %3858 = vmatprep.subr.mxu1 %v1914_v2  ;;  %v2081_v1 = vld [vmem:[%s12143_s1 + $0x3fe0] sm:$0xff]  ;;  %v1818_v2 = vld [vmem:[%s12143_s1 + $0x37a8] sm:$0xff] }
 0x2e4   :  { %3788 = vmatpush1.msra.mxu0 %v1657_v4  ;;  %3859 = vmatpush1.msra.mxu1 %v1913_v5  ;;  %v2074_v4 = vld [vmem:[%s12143_s1 + $0x3fa8] sm:$0xff]  ;;  %v1817_v5 = vld [vmem:[%s12143_s1 + $0x37a0] sm:$0xff] }
 0x2e5   :  { %3789 = vmatprep.subr.mxu0 %v1650_v6  ;;  %3860 = vmatprep.subr.mxu1 %v1906_v7  ;;  %v2073_v6 = vld [vmem:[%s12143_s1 + $0x3fa0] sm:$0xff]  ;;  %v1810_v7 = vld [vmem:[%s12143_s1 + $0x3768] sm:$0xff] }
 0x2e6   :  { %3790 = vmatpush1.msra.mxu0 %v1649_v9  ;;  %3861 = vmatpush1.msra.mxu1 %v1905_v10  ;;  %v2066_v9 = vld [vmem:[%s12143_s1 + $0x3f68] sm:$0xff]  ;;  %v1809_v10 = vld [vmem:[%s12143_s1 + $0x3760] sm:$0xff] }
 0x2e7   :  { %3791 = vmatprep.subr.mxu0 %v1642_v12  ;;  %3862 = vmatprep.subr.mxu1 %v1898_v13  ;;  %v2065_v12 = vld [vmem:[%s12143_s1 + $0x3f60] sm:$0xff]  ;;  %v1802_v13 = vld [vmem:[%s12143_s1 + $0x3728] sm:$0xff] }
 0x2e8   :  { %3792 = vmatpush1.msra.mxu0 %v1641_v14  ;;  %3863 = vmatpush1.msra.mxu1 %v1897_v15  ;;  %v2058_v14 = vld [vmem:[%s12143_s1 + $0x3f28] sm:$0xff]  ;;  %v1801_v15 = vld [vmem:[%s12143_s1 + $0x3720] sm:$0xff] }
 0x2e9   :  { %3793 = vmatprep.subr.mxu0 %v1634_v17  ;;  %3864 = vmatprep.subr.mxu1 %v1890_v18  ;;  %v2057_v17 = vld [vmem:[%s12143_s1 + $0x3f20] sm:$0xff]  ;;  %v1794_v18 = vld [vmem:[%s12143_s1 + $0x36e8] sm:$0xff] }
 0x2ea   :  { %3794 = vmatpush1.msra.mxu0 %v1633_v20  ;;  %3865 = vmatpush1.msra.mxu1 %v1889_v22  ;;  %v2050_v20 = vld [vmem:[%s12143_s1 + $0x3ee8] sm:$0xff]  ;;  %v1793_v22 = vld [vmem:[%s12143_s1 + $0x36e0] sm:$0xff] }
 0x2eb   :  { %3795 = vmatprep.subr.mxu0 %v1626_v23  ;;  %3866 = vmatprep.subr.mxu1 %v1882_v24  ;;  %v2049_v23 = vld [vmem:[%s12143_s1 + $0x3ee0] sm:$0xff]  ;;  %v1786_v24 = vld [vmem:[%s12143_s1 + $0x36a8] sm:$0xff] }
 0x2ec   :  { %3796 = vmatpush1.msra.mxu0 %v1625_v27  ;;  %3867 = vmatpush1.msra.mxu1 %v1881_v28  ;;  %v2042_v27 = vld [vmem:[%s12143_s1 + $0x3ea8] sm:$0xff]  ;;  %v1785_v28 = vld [vmem:[%s12143_s1 + $0x36a0] sm:$0xff] }
 0x2ed   :  { %3797 = vmatprep.subr.mxu0 %v1618_v30  ;;  %3868 = vmatprep.subr.mxu1 %v1874_v52  ;;  %v2041_v30 = vld [vmem:[%s12143_s1 + $0x3ea0] sm:$0xff]  ;;  %v1778_v52 = vld [vmem:[%s12143_s1 + $0x3668] sm:$0xff] }
 0x2ee   :  { %3798 = vmatpush1.msra.mxu0 %v1617_v32  ;;  %3869 = vmatpush1.msra.mxu1 %v1873_v33  ;;  %v2034_v32 = vld [vmem:[%s12143_s1 + $0x3e68] sm:$0xff]  ;;  %v1777_v33 = vld [vmem:[%s12143_s1 + $0x3660] sm:$0xff] }
 0x2ef   :  { %3799 = vmatprep.subr.mxu0 %v1610_v35  ;;  %3870 = vmatprep.subr.mxu1 %v1866_v36  ;;  %v2033_v35 = vld [vmem:[%s12143_s1 + $0x3e60] sm:$0xff]  ;;  %v1770_v36 = vld [vmem:[%s12143_s1 + $0x3628] sm:$0xff] }
 0x2f0   :  { %3800 = vmatpush1.msra.mxu0 %v1609_v37  ;;  %3871 = vmatpush1.msra.mxu1 %v1865_v38  ;;  %v2026_v37 = vld [vmem:[%s12143_s1 + $0x3e28] sm:$0xff]  ;;  %v1769_v38 = vld [vmem:[%s12143_s1 + $0x3620] sm:$0xff] }
 0x2f1   :  { %3801 = vmatprep.subr.mxu0 %v1602_v39  ;;  %3872 = vmatprep.subr.mxu1 %v1858_v40  ;;  %v2025_v39 = vld [vmem:[%s12143_s1 + $0x3e20] sm:$0xff]  ;;  %v1762_v40 = vld [vmem:[%s12143_s1 + $0x35e8] sm:$0xff] }
 0x2f2   :  { %3802 = vmatpush1.msra.mxu0 %v1601_v42  ;;  %3873 = vmatpush1.msra.mxu1 %v1857_v44  ;;  %v2018_v42 = vld [vmem:[%s12143_s1 + $0x3de8] sm:$0xff]  ;;  %v1761_v44 = vld [vmem:[%s12143_s1 + $0x35e0] sm:$0xff] }
 0x2f3   :  { %3803 = vmatprep.subr.mxu0 %v1594_v45  ;;  %3874 = vmatprep.subr.mxu1 %v1850_v46  ;;  %v2017_v45 = vld [vmem:[%s12143_s1 + $0x3de0] sm:$0xff]  ;;  %v1754_v46 = vld [vmem:[%s12143_s1 + $0x35a8] sm:$0xff] }
 0x2f4   :  { %3804 = vmatpush1.msra.mxu0 %v1593_v47  ;;  %3875 = vmatpush1.msra.mxu1 %v1849_v49  ;;  %v2010_v47 = vld [vmem:[%s12143_s1 + $0x3da8] sm:$0xff]  ;;  %v1753_v49 = vld [vmem:[%s12143_s1 + $0x35a0] sm:$0xff] }
 0x2f5   :  { %3805 = vmatprep.subr.mxu0 %v1586_v50  ;;  %3876 = vmatprep.subr.mxu1 %v1842_v51  ;;  %v2009_v50 = vld [vmem:[%s12143_s1 + $0x3da0] sm:$0xff]  ;;  %v1746_v51 = vld [vmem:[%s12143_s1 + $0x3568] sm:$0xff] }
 0x2f6   :  { %3806 = vmatpush1.msra.mxu0 %v1585_v53  ;;  %3877 = vmatpush1.msra.mxu1 %v1841_v55  ;;  %v2002_v53 = vld [vmem:[%s12143_s1 + $0x3d68] sm:$0xff]  ;;  %v1745_v55 = vld [vmem:[%s12143_s1 + $0x3560] sm:$0xff] }
 0x2f7   :  { %3807 = vmatprep.subr.mxu0 %v1578_v56  ;;  %3878 = vmatprep.subr.mxu1 %v1834_v58  ;;  %v2001_v56 = vld [vmem:[%s12143_s1 + $0x3d60] sm:$0xff]  ;;  %v1738_v58 = vld [vmem:[%s12143_s1 + $0x3528] sm:$0xff] }
 0x2f8   :  { %3808 = vmatpush1.msra.mxu0 %v1577_v59  ;;  %3879 = vmatpush1.msra.mxu1 %v1833_v60  ;;  %v1994_v59 = vld [vmem:[%s12143_s1 + $0x3d28] sm:$0xff]  ;;  %v1737_v60 = vld [vmem:[%s12143_s1 + $0x3520] sm:$0xff] }
 0x2f9   :  { %3809 = vmatprep.subr.mxu0 %v1826_v61  ;;  %3880 = vmatprep.subr.mxu1 %v2082_v63  ;;  %v1993_v61 = vld [vmem:[%s12143_s1 + $0x3d20] sm:$0xff]  ;;  %v1730_v63 = vld [vmem:[%s12143_s1 + $0x34e8] sm:$0xff] }
 0x2fa   :  { %3810 = vmatpush2.msra.mxu0 %v1825_v0  ;;  %3881 = vmatpush2.msra.mxu1 %v2081_v1  ;;  %v1986_v0 = vld [vmem:[%s12143_s1 + $0x3ce8] sm:$0xff]  ;;  %v1729_v1 = vld [vmem:[%s12143_s1 + $0x34e0] sm:$0xff] }
 0x2fb   :  { %3811 = vmatprep.subr.mxu0 %v1818_v2  ;;  %3882 = vmatprep.subr.mxu1 %v2074_v4  ;;  %v1985_v2 = vld [vmem:[%s12143_s1 + $0x3ce0] sm:$0xff]  ;;  %v1722_v4 = vld [vmem:[%s12143_s1 + $0x34a8] sm:$0xff] }
 0x2fc   :  { %3812 = vmatpush2.msra.mxu0 %v1817_v5  ;;  %3883 = vmatpush2.msra.mxu1 %v2073_v6  ;;  %v1978_v5 = vld [vmem:[%s12143_s1 + $0x3ca8] sm:$0xff]  ;;  %v1721_v6 = vld [vmem:[%s12143_s1 + $0x34a0] sm:$0xff] }
 0x2fd   :  { %3813 = vmatprep.subr.mxu0 %v1810_v7  ;;  %3884 = vmatprep.subr.mxu1 %v2066_v9  ;;  %v1977_v7 = vld [vmem:[%s12143_s1 + $0x3ca0] sm:$0xff]  ;;  %v1714_v9 = vld [vmem:[%s12143_s1 + $0x3468] sm:$0xff] }
 0x2fe   :  { %3814 = vmatpush2.msra.mxu0 %v1809_v10  ;;  %3885 = vmatpush2.msra.mxu1 %v2065_v12  ;;  %v1970_v10 = vld [vmem:[%s12143_s1 + $0x3c68] sm:$0xff]  ;;  %v1713_v12 = vld [vmem:[%s12143_s1 + $0x3460] sm:$0xff] }
 0x2ff   :  { %3815 = vmatprep.subr.mxu0 %v1802_v13  ;;  %3886 = vmatprep.subr.mxu1 %v2058_v14  ;;  %v1969_v13 = vld [vmem:[%s12143_s1 + $0x3c60] sm:$0xff]  ;;  %v1706_v14 = vld [vmem:[%s12143_s1 + $0x3428] sm:$0xff] }
 0x300   :  { %3816 = vmatpush2.msra.mxu0 %v1801_v15  ;;  %3887 = vmatpush2.msra.mxu1 %v2057_v17  ;;  %v1962_v15 = vld [vmem:[%s12143_s1 + $0x3c28] sm:$0xff]  ;;  %v1705_v17 = vld [vmem:[%s12143_s1 + $0x3420] sm:$0xff] }
 0x301   :  { %3817 = vmatprep.subr.mxu0 %v1794_v18  ;;  %3888 = vmatprep.subr.mxu1 %v2050_v20  ;;  %v1961_v18 = vld [vmem:[%s12143_s1 + $0x3c20] sm:$0xff]  ;;  %v164_v20 = vld [vmem:[%s12143_s1 + $0x3f8] sm:$0xff] }
 0x302   :  { %3818 = vmatpush2.msra.mxu0 %v1793_v22  ;;  %3889 = vmatpush2.msra.mxu1 %v2049_v23  ;;  %v420_v22 = vld [vmem:[%s12143_s1 + $0xbf8] sm:$0xff]  ;;  %v163_v23 = vld [vmem:[%s12143_s1 + $0x3f0] sm:$0xff] }
 0x303   :  { %3819 = vmatprep.subr.mxu0 %v1786_v24  ;;  %3890 = vmatprep.subr.mxu1 %v2042_v27  ;;  %v419_v24 = vld [vmem:[%s12143_s1 + $0xbf0] sm:$0xff]  ;;  %v156_v27 = vld [vmem:[%s12143_s1 + $0x3b8] sm:$0xff] }
 0x304   :  { %3820 = vmatpush2.msra.mxu0 %v1785_v28  ;;  %3891 = vmatpush2.msra.mxu1 %v2041_v30  ;;  %v412_v28 = vld [vmem:[%s12143_s1 + $0xbb8] sm:$0xff]  ;;  %v155_v30 = vld [vmem:[%s12143_s1 + $0x3b0] sm:$0xff] }
 0x305   :  { %3821 = vmatprep.subr.mxu0 %v1778_v52  ;;  %3892 = vmatprep.subr.mxu1 %v2034_v32  ;;  %v411_v52 = vld [vmem:[%s12143_s1 + $0xbb0] sm:$0xff]  ;;  %v148_v32 = vld [vmem:[%s12143_s1 + $0x378] sm:$0xff] }
 0x306   :  { %3822 = vmatpush2.msra.mxu0 %v1777_v33  ;;  %3893 = vmatpush2.msra.mxu1 %v2033_v35  ;;  %v404_v33 = vld [vmem:[%s12143_s1 + $0xb78] sm:$0xff]  ;;  %v147_v35 = vld [vmem:[%s12143_s1 + $0x370] sm:$0xff] }
 0x307   :  { %3823 = vmatprep.subr.mxu0 %v1770_v36  ;;  %3894 = vmatprep.subr.mxu1 %v2026_v37  ;;  %v403_v36 = vld [vmem:[%s12143_s1 + $0xb70] sm:$0xff]  ;;  %v140_v37 = vld [vmem:[%s12143_s1 + $0x338] sm:$0xff] }
 0x308   :  { %3824 = vmatpush2.msra.mxu0 %v1769_v38  ;;  %3895 = vmatpush2.msra.mxu1 %v2025_v39  ;;  %v396_v38 = vld [vmem:[%s12143_s1 + $0xb38] sm:$0xff]  ;;  %v139_v39 = vld [vmem:[%s12143_s1 + $0x330] sm:$0xff] }
 0x309   :  { %3825 = vmatprep.subr.mxu0 %v1762_v40  ;;  %3896 = vmatprep.subr.mxu1 %v2018_v42  ;;  %v395_v40 = vld [vmem:[%s12143_s1 + $0xb30] sm:$0xff]  ;;  %v132_v42 = vld [vmem:[%s12143_s1 + $0x2f8] sm:$0xff] }
 0x30a   :  { %3826 = vmatpush2.msra.mxu0 %v1761_v44  ;;  %3897 = vmatpush2.msra.mxu1 %v2017_v45  ;;  %v388_v44 = vld [vmem:[%s12143_s1 + $0xaf8] sm:$0xff]  ;;  %v131_v45 = vld [vmem:[%s12143_s1 + $0x2f0] sm:$0xff] }
 0x30b   :  { %3827 = vmatprep.subr.mxu0 %v1754_v46  ;;  %3898 = vmatprep.subr.mxu1 %v2010_v47  ;;  %v387_v46 = vld [vmem:[%s12143_s1 + $0xaf0] sm:$0xff]  ;;  %v124_v47 = vld [vmem:[%s12143_s1 + $0x2b8] sm:$0xff] }
 0x30c   :  { %3828 = vmatpush2.msra.mxu0 %v1753_v49  ;;  %3899 = vmatpush2.msra.mxu1 %v2009_v50  ;;  %v380_v49 = vld [vmem:[%s12143_s1 + $0xab8] sm:$0xff]  ;;  %v123_v50 = vld [vmem:[%s12143_s1 + $0x2b0] sm:$0xff] }
 0x30d   :  { %3829 = vmatprep.subr.mxu0 %v1746_v51  ;;  %3900 = vmatprep.subr.mxu1 %v2002_v53  ;;  %v379_v51 = vld [vmem:[%s12143_s1 + $0xab0] sm:$0xff]  ;;  %v116_v53 = vld [vmem:[%s12143_s1 + $0x278] sm:$0xff] }
 0x30e   :  { %3830 = vmatpush2.msra.mxu0 %v1745_v55  ;;  %3901 = vmatpush2.msra.mxu1 %v2001_v56  ;;  %v372_v55 = vld [vmem:[%s12143_s1 + $0xa78] sm:$0xff]  ;;  %v115_v56 = vld [vmem:[%s12143_s1 + $0x270] sm:$0xff] }
 0x30f   :  { %3831 = vmatprep.subr.mxu0 %v1738_v58  ;;  %3902 = vmatprep.subr.mxu1 %v1994_v59  ;;  %v371_v58 = vld [vmem:[%s12143_s1 + $0xa70] sm:$0xff]  ;;  %v108_v59 = vld [vmem:[%s12143_s1 + $0x238] sm:$0xff] }
 0x310   :  { %3832 = vmatpush2.msra.mxu0 %v1737_v60  ;;  %3903 = vmatpush2.msra.mxu1 %v1993_v61  ;;  %v364_v60 = vld [vmem:[%s12143_s1 + $0xa38] sm:$0xff]  ;;  %v107_v61 = vld [vmem:[%s12143_s1 + $0x230] sm:$0xff] }
 0x311   :  { %3833 = vmatprep.subr.mxu0 %v1730_v63  ;;  %3904 = vmatprep.subr.mxu1 %v1986_v0  ;;  %v363_v63 = vld [vmem:[%s12143_s1 + $0xa30] sm:$0xff]  ;;  %v100_v0 = vld [vmem:[%s12143_s1 + $0x1f8] sm:$0xff] }
 0x312   :  { %3834 = vmatpush2.msra.mxu0 %v1729_v1  ;;  %3905 = vmatpush2.msra.mxu1 %v1985_v2  ;;  %v356_v1 = vld [vmem:[%s12143_s1 + $0x9f8] sm:$0xff]  ;;  %v99_v2 = vld [vmem:[%s12143_s1 + $0x1f0] sm:$0xff] }
 0x313   :  { %3835 = vmatprep.subr.mxu0 %v1722_v4  ;;  %3906 = vmatprep.subr.mxu1 %v1978_v5  ;;  %v355_v4 = vld [vmem:[%s12143_s1 + $0x9f0] sm:$0xff]  ;;  %v92_v5 = vld [vmem:[%s12143_s1 + $0x1b8] sm:$0xff] }
 0x314   :  { %3836 = vmatpush2.msra.mxu0 %v1721_v6  ;;  %3907 = vmatpush2.msra.mxu1 %v1977_v7  ;;  %v348_v6 = vld [vmem:[%s12143_s1 + $0x9b8] sm:$0xff]  ;;  %v91_v7 = vld [vmem:[%s12143_s1 + $0x1b0] sm:$0xff] }
 0x315   :  { %3837 = vmatprep.subr.mxu0 %v1714_v9  ;;  %3908 = vmatprep.subr.mxu1 %v1970_v10  ;;  %v347_v9 = vld [vmem:[%s12143_s1 + $0x9b0] sm:$0xff]  ;;  %v84_v10 = vld [vmem:[%s12143_s1 + $0x178] sm:$0xff] }
 0x316   :  { %3838 = vmatpush2.msra.mxu0 %v1713_v12  ;;  %3909 = vmatpush2.msra.mxu1 %v1969_v13  ;;  %v340_v12 = vld [vmem:[%s12143_s1 + $0x978] sm:$0xff]  ;;  %v83_v13 = vld [vmem:[%s12143_s1 + $0x170] sm:$0xff] }
 0x317   :  { %3839 = vmatprep.subr.mxu0 %v1706_v14  ;;  %3910 = vmatprep.subr.mxu1 %v1962_v15  ;;  %v339_v14 = vld [vmem:[%s12143_s1 + $0x970] sm:$0xff]  ;;  %v76_v15 = vld [vmem:[%s12143_s1 + $0x138] sm:$0xff] }
 0x318   :  { %3840 = vmatpush2.msra.mxu0 %v1705_v17  ;;  %3841 = vmatprep.mubr.f32.mxu0 %v6812_v31  ;;  %v332_v17 = vld [vmem:[%s12143_s1 + $0x938] sm:$0xff] }
 0x319   :  { %3911 = vmatpush2.msra.mxu1 %v1961_v18  ;;  %3842 = vmatmul.mubr.f32.vlgmr.msra.gmra.mxu0 %v6781_v19  ;;  %v75_v18 = vld [vmem:[%s12143_s1 + $0x130] sm:$0xff] }
 0x31a   :  { %3912 = vmatprep.mubr.f32.mxu1 %v6822_v34  ;;  %3919 = vmatprep.subr.mxu0 %v164_v20  ;;  %v331_v20 = vld [vmem:[%s12143_s1 + $0x930] sm:$0xff] }
 0x31b   :  { %3990 = vmatprep.subr.mxu1 %v420_v22  ;;  %3913 = vmatmul.mubr.f32.vlgmr.msra.gmra.mxu1 %v6796_v25  ;;  %v68_v22 = vld [vmem:[%s12143_s1 + $0xf8] sm:$0xff] }
 0x31c   :  { %3920 = vmatpush1.msra.mxu0 %v163_v23  ;;  %3991 = vmatpush1.msra.mxu1 %v419_v24  ;;  %v324_v23 = vld [vmem:[%s12143_s1 + $0x8f8] sm:$0xff]  ;;  %v67_v24 = vld [vmem:[%s12143_s1 + $0xf0] sm:$0xff] }
 0x31d   :  { %3921 = vmatprep.subr.mxu0 %v156_v27  ;;  %3992 = vmatprep.subr.mxu1 %v412_v28  ;;  %v323_v27 = vld [vmem:[%s12143_s1 + $0x8f0] sm:$0xff]  ;;  %v60_v28 = vld [vmem:[%s12143_s1 + $0xb8] sm:$0xff] }
 0x31e   :  { %3922 = vmatpush1.msra.mxu0 %v155_v30  ;;  %3993 = vmatpush1.msra.mxu1 %v411_v52  ;;  %v316_v30 = vld [vmem:[%s12143_s1 + $0x8b8] sm:$0xff]  ;;  %v59_v52 = vld [vmem:[%s12143_s1 + $0xb0] sm:$0xff] }
 0x31f   :  { %3923 = vmatprep.subr.mxu0 %v148_v32  ;;  %3994 = vmatprep.subr.mxu1 %v404_v33  ;;  %v315_v32 = vld [vmem:[%s12143_s1 + $0x8b0] sm:$0xff]  ;;  %v52_v33 = vld [vmem:[%s12143_s1 + $0x78] sm:$0xff] }
 0x320   :  { %3924 = vmatpush1.msra.mxu0 %v147_v35  ;;  %3995 = vmatpush1.msra.mxu1 %v403_v36  ;;  %v308_v35 = vld [vmem:[%s12143_s1 + $0x878] sm:$0xff]  ;;  %v51_v36 = vld [vmem:[%s12143_s1 + $0x70] sm:$0xff] }
 0x321   :  { %3925 = vmatprep.subr.mxu0 %v140_v37  ;;  %3996 = vmatprep.subr.mxu1 %v396_v38  ;;  %v307_v37 = vld [vmem:[%s12143_s1 + $0x870] sm:$0xff]  ;;  %v44_v38 = vld [vmem:[%s12143_s1 + $0x38] sm:$0xff] }
 0x322   :  { %3926 = vmatpush1.msra.mxu0 %v139_v39  ;;  %3997 = vmatpush1.msra.mxu1 %v395_v40  ;;  %v300_v39 = vld [vmem:[%s12143_s1 + $0x838] sm:$0xff]  ;;  %v43_v40 = vld [vmem:[%s12143_s1 + $0x30] sm:$0xff] }
 0x323   :  { %3927 = vmatprep.subr.mxu0 %v132_v42  ;;  %3998 = vmatprep.subr.mxu1 %v388_v44  ;;  %v299_v42 = vld [vmem:[%s12143_s1 + $0x830] sm:$0xff]  ;;  %v292_v44 = vld [vmem:[%s12143_s1 + $0x7f8] sm:$0xff] }
 0x324   :  { %3928 = vmatpush1.msra.mxu0 %v131_v45  ;;  %3999 = vmatpush1.msra.mxu1 %v387_v46  ;;  %v548_v45 = vld [vmem:[%s12143_s1 + $0xff8] sm:$0xff]  ;;  %v291_v46 = vld [vmem:[%s12143_s1 + $0x7f0] sm:$0xff] }
 0x325   :  { %3929 = vmatprep.subr.mxu0 %v124_v47  ;;  %4000 = vmatprep.subr.mxu1 %v380_v49  ;;  %v547_v47 = vld [vmem:[%s12143_s1 + $0xff0] sm:$0xff]  ;;  %v284_v49 = vld [vmem:[%s12143_s1 + $0x7b8] sm:$0xff] }
 0x326   :  { %3930 = vmatpush1.msra.mxu0 %v123_v50  ;;  %4001 = vmatpush1.msra.mxu1 %v379_v51  ;;  %v540_v50 = vld [vmem:[%s12143_s1 + $0xfb8] sm:$0xff]  ;;  %v283_v51 = vld [vmem:[%s12143_s1 + $0x7b0] sm:$0xff] }
 0x327   :  { %3931 = vmatprep.subr.mxu0 %v116_v53  ;;  %4002 = vmatprep.subr.mxu1 %v372_v55  ;;  %v539_v53 = vld [vmem:[%s12143_s1 + $0xfb0] sm:$0xff]  ;;  %v276_v55 = vld [vmem:[%s12143_s1 + $0x778] sm:$0xff] }
 0x328   :  { %3932 = vmatpush1.msra.mxu0 %v115_v56  ;;  %4003 = vmatpush1.msra.mxu1 %v371_v58  ;;  %v532_v56 = vld [vmem:[%s12143_s1 + $0xf78] sm:$0xff]  ;;  %v275_v58 = vld [vmem:[%s12143_s1 + $0x770] sm:$0xff] }
 0x329   :  { %3933 = vmatprep.subr.mxu0 %v108_v59  ;;  %4004 = vmatprep.subr.mxu1 %v364_v60  ;;  %v531_v59 = vld [vmem:[%s12143_s1 + $0xf70] sm:$0xff]  ;;  %v268_v60 = vld [vmem:[%s12143_s1 + $0x738] sm:$0xff] }
 0x32a   :  { %3934 = vmatpush1.msra.mxu0 %v107_v61  ;;  %4005 = vmatpush1.msra.mxu1 %v363_v63  ;;  %v524_v61 = vld [vmem:[%s12143_s1 + $0xf38] sm:$0xff]  ;;  %v267_v63 = vld [vmem:[%s12143_s1 + $0x730] sm:$0xff] }
 0x32b   :  { %3935 = vmatprep.subr.mxu0 %v100_v0  ;;  %4006 = vmatprep.subr.mxu1 %v356_v1  ;;  %v523_v0 = vld [vmem:[%s12143_s1 + $0xf30] sm:$0xff]  ;;  %v260_v1 = vld [vmem:[%s12143_s1 + $0x6f8] sm:$0xff] }
 0x32c   :  { %3936 = vmatpush1.msra.mxu0 %v99_v2  ;;  %4007 = vmatpush1.msra.mxu1 %v355_v4  ;;  %v516_v2 = vld [vmem:[%s12143_s1 + $0xef8] sm:$0xff]  ;;  %v259_v4 = vld [vmem:[%s12143_s1 + $0x6f0] sm:$0xff] }
 0x32d   :  { %3937 = vmatprep.subr.mxu0 %v92_v5  ;;  %4008 = vmatprep.subr.mxu1 %v348_v6  ;;  %v515_v5 = vld [vmem:[%s12143_s1 + $0xef0] sm:$0xff]  ;;  %v252_v6 = vld [vmem:[%s12143_s1 + $0x6b8] sm:$0xff] }
 0x32e   :  { %3938 = vmatpush1.msra.mxu0 %v91_v7  ;;  %4009 = vmatpush1.msra.mxu1 %v347_v9  ;;  %v508_v7 = vld [vmem:[%s12143_s1 + $0xeb8] sm:$0xff]  ;;  %v251_v9 = vld [vmem:[%s12143_s1 + $0x6b0] sm:$0xff] }
 0x32f   :  { %3939 = vmatprep.subr.mxu0 %v84_v10  ;;  %4010 = vmatprep.subr.mxu1 %v340_v12  ;;  %v507_v10 = vld [vmem:[%s12143_s1 + $0xeb0] sm:$0xff]  ;;  %v244_v12 = vld [vmem:[%s12143_s1 + $0x678] sm:$0xff] }
 0x330   :  { %3940 = vmatpush1.msra.mxu0 %v83_v13  ;;  %4011 = vmatpush1.msra.mxu1 %v339_v14  ;;  %v500_v13 = vld [vmem:[%s12143_s1 + $0xe78] sm:$0xff]  ;;  %v243_v14 = vld [vmem:[%s12143_s1 + $0x670] sm:$0xff] }
 0x331   :  { %3941 = vmatprep.subr.mxu0 %v76_v15  ;;  %4012 = vmatprep.subr.mxu1 %v332_v17  ;;  %v499_v15 = vld [vmem:[%s12143_s1 + $0xe70] sm:$0xff]  ;;  %v236_v17 = vld [vmem:[%s12143_s1 + $0x638] sm:$0xff] }
 0x332   :  { %3942 = vmatpush1.msra.mxu0 %v75_v18  ;;  %4013 = vmatpush1.msra.mxu1 %v331_v20  ;;  %v492_v18 = vld [vmem:[%s12143_s1 + $0xe38] sm:$0xff]  ;;  %v235_v20 = vld [vmem:[%s12143_s1 + $0x630] sm:$0xff] }
 0x333   :  { %3943 = vmatprep.subr.mxu0 %v68_v22  ;;  %4014 = vmatprep.subr.mxu1 %v324_v23  ;;  %v491_v22 = vld [vmem:[%s12143_s1 + $0xe30] sm:$0xff]  ;;  %v228_v23 = vld [vmem:[%s12143_s1 + $0x5f8] sm:$0xff] }
 0x334   :  { %3944 = vmatpush1.msra.mxu0 %v67_v24  ;;  %4015 = vmatpush1.msra.mxu1 %v323_v27  ;;  %v484_v24 = vld [vmem:[%s12143_s1 + $0xdf8] sm:$0xff]  ;;  %v227_v27 = vld [vmem:[%s12143_s1 + $0x5f0] sm:$0xff] }
 0x335   :  { %3945 = vmatprep.subr.mxu0 %v60_v28  ;;  %4016 = vmatprep.subr.mxu1 %v316_v30  ;;  %v483_v28 = vld [vmem:[%s12143_s1 + $0xdf0] sm:$0xff]  ;;  %v220_v30 = vld [vmem:[%s12143_s1 + $0x5b8] sm:$0xff] }
 0x336   :  { %3946 = vmatpush1.msra.mxu0 %v59_v52  ;;  %4017 = vmatpush1.msra.mxu1 %v315_v32  ;;  %v476_v52 = vld [vmem:[%s12143_s1 + $0xdb8] sm:$0xff]  ;;  %v219_v32 = vld [vmem:[%s12143_s1 + $0x5b0] sm:$0xff] }
 0x337   :  { %3947 = vmatprep.subr.mxu0 %v52_v33  ;;  %4018 = vmatprep.subr.mxu1 %v308_v35  ;;  %v475_v33 = vld [vmem:[%s12143_s1 + $0xdb0] sm:$0xff]  ;;  %v212_v35 = vld [vmem:[%s12143_s1 + $0x578] sm:$0xff] }
 0x338   :  { %3948 = vmatpush1.msra.mxu0 %v51_v36  ;;  %4019 = vmatpush1.msra.mxu1 %v307_v37  ;;  %v468_v36 = vld [vmem:[%s12143_s1 + $0xd78] sm:$0xff]  ;;  %v211_v37 = vld [vmem:[%s12143_s1 + $0x570] sm:$0xff] }
 0x339   :  { %3949 = vmatprep.subr.mxu0 %v44_v38  ;;  %4020 = vmatprep.subr.mxu1 %v300_v39  ;;  %v467_v38 = vld [vmem:[%s12143_s1 + $0xd70] sm:$0xff]  ;;  %v204_v39 = vld [vmem:[%s12143_s1 + $0x538] sm:$0xff] }
 0x33a   :  { %3950 = vmatpush1.msra.mxu0 %v43_v40  ;;  %4021 = vmatpush1.msra.mxu1 %v299_v42  ;;  %v460_v40 = vld [vmem:[%s12143_s1 + $0xd38] sm:$0xff]  ;;  %v203_v42 = vld [vmem:[%s12143_s1 + $0x530] sm:$0xff] }
 0x33b   :  { %3951 = vmatprep.subr.mxu0 %v292_v44  ;;  %4022 = vmatprep.subr.mxu1 %v548_v45  ;;  %v459_v44 = vld [vmem:[%s12143_s1 + $0xd30] sm:$0xff]  ;;  %v196_v45 = vld [vmem:[%s12143_s1 + $0x4f8] sm:$0xff] }
 0x33c   :  { %3952 = vmatpush2.msra.mxu0 %v291_v46  ;;  %4023 = vmatpush2.msra.mxu1 %v547_v47  ;;  %v452_v46 = vld [vmem:[%s12143_s1 + $0xcf8] sm:$0xff]  ;;  %v195_v47 = vld [vmem:[%s12143_s1 + $0x4f0] sm:$0xff] }
 0x33d   :  { %3953 = vmatprep.subr.mxu0 %v284_v49  ;;  %4024 = vmatprep.subr.mxu1 %v540_v50  ;;  %v451_v49 = vld [vmem:[%s12143_s1 + $0xcf0] sm:$0xff]  ;;  %v188_v50 = vld [vmem:[%s12143_s1 + $0x4b8] sm:$0xff] }
 0x33e   :  { %3954 = vmatpush2.msra.mxu0 %v283_v51  ;;  %4025 = vmatpush2.msra.mxu1 %v539_v53  ;;  %v444_v51 = vld [vmem:[%s12143_s1 + $0xcb8] sm:$0xff]  ;;  %v187_v53 = vld [vmem:[%s12143_s1 + $0x4b0] sm:$0xff] }
 0x33f   :  { %3955 = vmatprep.subr.mxu0 %v276_v55  ;;  %4026 = vmatprep.subr.mxu1 %v532_v56  ;;  %v443_v55 = vld [vmem:[%s12143_s1 + $0xcb0] sm:$0xff]  ;;  %v180_v56 = vld [vmem:[%s12143_s1 + $0x478] sm:$0xff] }
 0x340   :  { %3956 = vmatpush2.msra.mxu0 %v275_v58  ;;  %4027 = vmatpush2.msra.mxu1 %v531_v59  ;;  %v436_v58 = vld [vmem:[%s12143_s1 + $0xc78] sm:$0xff]  ;;  %v179_v59 = vld [vmem:[%s12143_s1 + $0x470] sm:$0xff] }
 0x341   :  { %3957 = vmatprep.subr.mxu0 %v268_v60  ;;  %4028 = vmatprep.subr.mxu1 %v524_v61  ;;  %v435_v60 = vld [vmem:[%s12143_s1 + $0xc70] sm:$0xff]  ;;  %v172_v61 = vld [vmem:[%s12143_s1 + $0x438] sm:$0xff] }
 0x342   :  { %3958 = vmatpush2.msra.mxu0 %v267_v63  ;;  %4029 = vmatpush2.msra.mxu1 %v523_v0  ;;  %v428_v63 = vld [vmem:[%s12143_s1 + $0xc38] sm:$0xff]  ;;  %v171_v0 = vld [vmem:[%s12143_s1 + $0x430] sm:$0xff] }
 0x343   :  { %3959 = vmatprep.subr.mxu0 %v260_v1  ;;  %4030 = vmatprep.subr.mxu1 %v516_v2  ;;  %v427_v1 = vld [vmem:[%s12143_s1 + $0xc30] sm:$0xff]  ;;  %v676_v2 = vld [vmem:[%s12143_s1 + $0x13f8] sm:$0xff] }
 0x344   :  { %3960 = vmatpush2.msra.mxu0 %v259_v4  ;;  %4031 = vmatpush2.msra.mxu1 %v515_v5  ;;  %v932_v4 = vld [vmem:[%s12143_s1 + $0x1bf8] sm:$0xff]  ;;  %v675_v5 = vld [vmem:[%s12143_s1 + $0x13f0] sm:$0xff] }
 0x345   :  { %3961 = vmatprep.subr.mxu0 %v252_v6  ;;  %4032 = vmatprep.subr.mxu1 %v508_v7  ;;  %v931_v6 = vld [vmem:[%s12143_s1 + $0x1bf0] sm:$0xff]  ;;  %v924_v7 = vld [vmem:[%s12143_s1 + $0x1bb8] sm:$0xff] }
 0x346   :  { %3962 = vmatpush2.msra.mxu0 %v251_v9  ;;  %4033 = vmatpush2.msra.mxu1 %v507_v10  ;;  %v660_v9 = vld [vmem:[%s12143_s1 + $0x1378] sm:$0xff] }
 0x347   :  { %3963 = vmatprep.subr.mxu0 %v244_v12  ;;  %4034 = vmatprep.subr.mxu1 %v500_v13  ;;  %v916_v10 = vld [vmem:[%s12143_s1 + $0x1b78] sm:$0xff]  ;;  %v915_v12 = vld [vmem:[%s12143_s1 + $0x1b70] sm:$0xff] }
 0x348   :  { %3964 = vmatpush2.msra.mxu0 %v243_v14  ;;  %4035 = vmatpush2.msra.mxu1 %v499_v15  ;;  %v652_v13 = vld [vmem:[%s12143_s1 + $0x1338] sm:$0xff]  ;;  %v651_v15 = vld [vmem:[%s12143_s1 + $0x1330] sm:$0xff] }
 0x349   :  { %3965 = vmatprep.subr.mxu0 %v236_v17  ;;  %4036 = vmatprep.subr.mxu1 %v492_v18  ;;  %v908_v14 = vld [vmem:[%s12143_s1 + $0x1b38] sm:$0xff]  ;;  %v907_v17 = vld [vmem:[%s12143_s1 + $0x1b30] sm:$0xff] }
 0x34a   :  { %3966 = vmatpush2.msra.mxu0 %v235_v20  ;;  %4037 = vmatpush2.msra.mxu1 %v491_v22  ;;  %v644_v18 = vld [vmem:[%s12143_s1 + $0x12f8] sm:$0xff]  ;;  %v643_v22 = vld [vmem:[%s12143_s1 + $0x12f0] sm:$0xff] }
 0x34b   :  { %3967 = vmatprep.subr.mxu0 %v228_v23  ;;  %4038 = vmatprep.subr.mxu1 %v484_v24  ;;  %v900_v20 = vld [vmem:[%s12143_s1 + $0x1af8] sm:$0xff]  ;;  %v899_v23 = vld [vmem:[%s12143_s1 + $0x1af0] sm:$0xff] }
 0x34c   :  { %3968 = vmatpush2.msra.mxu0 %v227_v27  ;;  %4039 = vmatpush2.msra.mxu1 %v483_v28  ;;  %v636_v24 = vld [vmem:[%s12143_s1 + $0x12b8] sm:$0xff]  ;;  %v635_v28 = vld [vmem:[%s12143_s1 + $0x12b0] sm:$0xff] }
 0x34d   :  { %3969 = vmatprep.subr.mxu0 %v220_v30  ;;  %4040 = vmatprep.subr.mxu1 %v476_v52  ;;  %v892_v27 = vld [vmem:[%s12143_s1 + $0x1ab8] sm:$0xff]  ;;  %v891_v30 = vld [vmem:[%s12143_s1 + $0x1ab0] sm:$0xff] }
 0x34e   :  { %3970 = vmatpush2.msra.mxu0 %v219_v32  ;;  %4041 = vmatpush2.msra.mxu1 %v475_v33  ;;  %v628_v52 = vld [vmem:[%s12143_s1 + $0x1278] sm:$0xff]  ;;  %v627_v33 = vld [vmem:[%s12143_s1 + $0x1270] sm:$0xff] }
 0x34f   :  { %3971 = vmatprep.subr.mxu0 %v212_v35  ;;  %4042 = vmatprep.subr.mxu1 %v468_v36  ;;  %v884_v32 = vld [vmem:[%s12143_s1 + $0x1a78] sm:$0xff]  ;;  %v883_v35 = vld [vmem:[%s12143_s1 + $0x1a70] sm:$0xff] }
 0x350   :  { %3972 = vmatpush2.msra.mxu0 %v211_v37  ;;  %4043 = vmatpush2.msra.mxu1 %v467_v38  ;;  %v620_v36 = vld [vmem:[%s12143_s1 + $0x1238] sm:$0xff]  ;;  %v619_v38 = vld [vmem:[%s12143_s1 + $0x1230] sm:$0xff] }
 0x351   :  { %3973 = vmatprep.subr.mxu0 %v204_v39  ;;  %4044 = vmatprep.subr.mxu1 %v460_v40  ;;  %v876_v37 = vld [vmem:[%s12143_s1 + $0x1a38] sm:$0xff]  ;;  %v875_v39 = vld [vmem:[%s12143_s1 + $0x1a30] sm:$0xff] }
 0x352   :  { %3974 = vmatpush2.msra.mxu0 %v203_v42  ;;  %4045 = vmatpush2.msra.mxu1 %v459_v44  ;;  %v612_v40 = vld [vmem:[%s12143_s1 + $0x11f8] sm:$0xff]  ;;  %v611_v44 = vld [vmem:[%s12143_s1 + $0x11f0] sm:$0xff] }
 0x353   :  { %3975 = vmatprep.subr.mxu0 %v196_v45  ;;  %4046 = vmatprep.subr.mxu1 %v452_v46  ;;  %v868_v42 = vld [vmem:[%s12143_s1 + $0x19f8] sm:$0xff]  ;;  %v867_v45 = vld [vmem:[%s12143_s1 + $0x19f0] sm:$0xff] }
 0x354   :  { %3976 = vmatpush2.msra.mxu0 %v195_v47  ;;  %4047 = vmatpush2.msra.mxu1 %v451_v49  ;;  %v604_v46 = vld [vmem:[%s12143_s1 + $0x11b8] sm:$0xff]  ;;  %v603_v49 = vld [vmem:[%s12143_s1 + $0x11b0] sm:$0xff] }
 0x355   :  { %3977 = vmatprep.subr.mxu0 %v188_v50  ;;  %4048 = vmatprep.subr.mxu1 %v444_v51  ;;  %v860_v47 = vld [vmem:[%s12143_s1 + $0x19b8] sm:$0xff]  ;;  %v859_v50 = vld [vmem:[%s12143_s1 + $0x19b0] sm:$0xff] }
 0x356   :  { %3978 = vmatpush2.msra.mxu0 %v187_v53  ;;  %4049 = vmatpush2.msra.mxu1 %v443_v55  ;;  %v596_v51 = vld [vmem:[%s12143_s1 + $0x1178] sm:$0xff]  ;;  %v595_v55 = vld [vmem:[%s12143_s1 + $0x1170] sm:$0xff] }
 0x357   :  { %3979 = vmatprep.subr.mxu0 %v180_v56  ;;  %4050 = vmatprep.subr.mxu1 %v436_v58  ;;  %v852_v53 = vld [vmem:[%s12143_s1 + $0x1978] sm:$0xff]  ;;  %v851_v56 = vld [vmem:[%s12143_s1 + $0x1970] sm:$0xff] }
 0x358   :  { %3980 = vmatpush2.msra.mxu0 %v179_v59  ;;  %4051 = vmatpush2.msra.mxu1 %v435_v60  ;;  %v588_v58 = vld [vmem:[%s12143_s1 + $0x1138] sm:$0xff]  ;;  %v587_v60 = vld [vmem:[%s12143_s1 + $0x1130] sm:$0xff] }
 0x359   :  { %3981 = vmatprep.subr.mxu0 %v172_v61  ;;  %4052 = vmatprep.subr.mxu1 %v428_v63  ;;  %v844_v59 = vld [vmem:[%s12143_s1 + $0x1938] sm:$0xff]  ;;  %v843_v61 = vld [vmem:[%s12143_s1 + $0x1930] sm:$0xff] }
 0x35a   :  { %3982 = vmatpush2.msra.mxu0 %v171_v0  ;;  %3983 = vmatprep.mubr.f32.mxu0 %v5597_v8  ;;  %v668_v8 = vld [vmem:[%s12143_s1 + $0x13b8] sm:$0xff] }
 0x35b   :  { %4053 = vmatpush2.msra.mxu1 %v427_v1  ;;  %3984 = vmatmul.mubr.f32.vlgmr.msra.gmra.mxu0 %v5566_v62  ;;  %v667_v62 = vld [vmem:[%s12143_s1 + $0x13b0] sm:$0xff]  ;;  %v580_v63 = vld [vmem:[%s12143_s1 + $0x10f8] sm:$0xff] }
 0x35c   :  { %4054 = vmatprep.mubr.f32.mxu1 %v5607_v11  ;;  %4061 = vmatprep.subr.mxu0 %v676_v2  ;;  %v923_v11 = vld [vmem:[%s12143_s1 + $0x1bb0] sm:$0xff]  ;;  %v836_v0 = vld [vmem:[%s12143_s1 + $0x18f8] sm:$0xff] }
 0x35d   :  { %4132 = vmatprep.subr.mxu1 %v932_v4  ;;  %4055 = vmatmul.mubr.f32.vlgmr.msra.gmra.mxu1 %v5581_v3  ;;  %v659_v3 = vld [vmem:[%s12143_s1 + $0x1370] sm:$0xff]  ;;  %v572_v4 = vld [vmem:[%s12143_s1 + $0x10b8] sm:$0xff] }
 0x35e   :  { %4062 = vmatpush1.msra.mxu0 %v675_v5  ;;  %4133 = vmatpush1.msra.mxu1 %v931_v6  ;;  %v579_v1 = vld [vmem:[%s12143_s1 + $0x10f0] sm:$0xff]  ;;  %v828_v5 = vld [vmem:[%s12143_s1 + $0x18b8] sm:$0xff] }
 0x35f   :  { %4063 = vmatprep.subr.mxu0 %v668_v8  ;;  %4134 = vmatprep.subr.mxu1 %v924_v7  ;;  %v835_v2 = vld [vmem:[%s12143_s1 + $0x18f0] sm:$0xff]  ;;  %v564_v7 = vld [vmem:[%s12143_s1 + $0x1078] sm:$0xff] }
 0x360   :  { %4064 = vmatpush1.msra.mxu0 %v667_v62  ;;  %4135 = vmatpush1.msra.mxu1 %v923_v11  ;;  %v571_v6 = vld [vmem:[%s12143_s1 + $0x10b0] sm:$0xff]  ;;  %v820_v62 = vld [vmem:[%s12143_s1 + $0x1878] sm:$0xff] }
 0x361   :  { %4065 = vmatprep.subr.mxu0 %v660_v9  ;;  %4136 = vmatprep.subr.mxu1 %v916_v10  ;;  %v827_v8 = vld [vmem:[%s12143_s1 + $0x18b0] sm:$0xff]  ;;  %v556_v10 = vld [vmem:[%s12143_s1 + $0x1038] sm:$0xff] }
 0x362   :  { %4066 = vmatpush1.msra.mxu0 %v659_v3  ;;  %4137 = vmatpush1.msra.mxu1 %v915_v12  ;;  %v563_v11 = vld [vmem:[%s12143_s1 + $0x1070] sm:$0xff]  ;;  %v812_v3 = vld [vmem:[%s12143_s1 + $0x1838] sm:$0xff] }
 0x363   :  { %4067 = vmatprep.subr.mxu0 %v652_v13  ;;  %4138 = vmatprep.subr.mxu1 %v908_v14  ;;  %v819_v9 = vld [vmem:[%s12143_s1 + $0x1870] sm:$0xff]  ;;  %v804_v14 = vld [vmem:[%s12143_s1 + $0x17f8] sm:$0xff] }
 0x364   :  { %4068 = vmatpush1.msra.mxu0 %v651_v15  ;;  %4139 = vmatpush1.msra.mxu1 %v907_v17  ;;  %v555_v12 = vld [vmem:[%s12143_s1 + $0x1030] sm:$0xff]  ;;  %v1060_v15 = vld [vmem:[%s12143_s1 + $0x1ff8] sm:$0xff] }
 0x365   :  { %4069 = vmatprep.subr.mxu0 %v644_v18  ;;  %4140 = vmatprep.subr.mxu1 %v900_v20  ;;  %v811_v13 = vld [vmem:[%s12143_s1 + $0x1830] sm:$0xff]  ;;  %v796_v20 = vld [vmem:[%s12143_s1 + $0x17b8] sm:$0xff] }
 0x366   :  { %4070 = vmatpush1.msra.mxu0 %v643_v22  ;;  %4141 = vmatpush1.msra.mxu1 %v899_v23  ;;  %v803_v17 = vld [vmem:[%s12143_s1 + $0x17f0] sm:$0xff]  ;;  %v1052_v22 = vld [vmem:[%s12143_s1 + $0x1fb8] sm:$0xff] }
 0x367   :  { %4071 = vmatprep.subr.mxu0 %v636_v24  ;;  %4142 = vmatprep.subr.mxu1 %v892_v27  ;;  %v1059_v18 = vld [vmem:[%s12143_s1 + $0x1ff0] sm:$0xff]  ;;  %v788_v27 = vld [vmem:[%s12143_s1 + $0x1778] sm:$0xff] }
 0x368   :  { %4072 = vmatpush1.msra.mxu0 %v635_v28  ;;  %4143 = vmatpush1.msra.mxu1 %v891_v30  ;;  %v795_v23 = vld [vmem:[%s12143_s1 + $0x17b0] sm:$0xff]  ;;  %v1044_v28 = vld [vmem:[%s12143_s1 + $0x1f78] sm:$0xff] }
 0x369   :  { %4073 = vmatprep.subr.mxu0 %v628_v52  ;;  %4144 = vmatprep.subr.mxu1 %v884_v32  ;;  %v1051_v24 = vld [vmem:[%s12143_s1 + $0x1fb0] sm:$0xff]  ;;  %v780_v32 = vld [vmem:[%s12143_s1 + $0x1738] sm:$0xff] }
 0x36a   :  { %4074 = vmatpush1.msra.mxu0 %v627_v33  ;;  %4145 = vmatpush1.msra.mxu1 %v883_v35  ;;  %v787_v30 = vld [vmem:[%s12143_s1 + $0x1770] sm:$0xff]  ;;  %v1036_v33 = vld [vmem:[%s12143_s1 + $0x1f38] sm:$0xff] }
 0x36b   :  { %4075 = vmatprep.subr.mxu0 %v620_v36  ;;  %4146 = vmatprep.subr.mxu1 %v876_v37  ;;  %v1043_v52 = vld [vmem:[%s12143_s1 + $0x1f70] sm:$0xff]  ;;  %v772_v37 = vld [vmem:[%s12143_s1 + $0x16f8] sm:$0xff] }
 0x36c   :  { %4076 = vmatpush1.msra.mxu0 %v619_v38  ;;  %4147 = vmatpush1.msra.mxu1 %v875_v39  ;;  %v779_v35 = vld [vmem:[%s12143_s1 + $0x1730] sm:$0xff]  ;;  %v1028_v38 = vld [vmem:[%s12143_s1 + $0x1ef8] sm:$0xff] }
 0x36d   :  { %4077 = vmatprep.subr.mxu0 %v612_v40  ;;  %4148 = vmatprep.subr.mxu1 %v868_v42  ;;  %v1035_v36 = vld [vmem:[%s12143_s1 + $0x1f30] sm:$0xff]  ;;  %v764_v42 = vld [vmem:[%s12143_s1 + $0x16b8] sm:$0xff] }
 0x36e   :  { %4078 = vmatpush1.msra.mxu0 %v611_v44  ;;  %4149 = vmatpush1.msra.mxu1 %v867_v45  ;;  %v771_v39 = vld [vmem:[%s12143_s1 + $0x16f0] sm:$0xff]  ;;  %v1020_v44 = vld [vmem:[%s12143_s1 + $0x1eb8] sm:$0xff] }
 0x36f   :  { %4079 = vmatprep.subr.mxu0 %v604_v46  ;;  %4150 = vmatprep.subr.mxu1 %v860_v47  ;;  %v1027_v40 = vld [vmem:[%s12143_s1 + $0x1ef0] sm:$0xff]  ;;  %v756_v47 = vld [vmem:[%s12143_s1 + $0x1678] sm:$0xff] }
 0x370   :  { %4080 = vmatpush1.msra.mxu0 %v603_v49  ;;  %4151 = vmatpush1.msra.mxu1 %v859_v50  ;;  %v763_v45 = vld [vmem:[%s12143_s1 + $0x16b0] sm:$0xff]  ;;  %v1012_v49 = vld [vmem:[%s12143_s1 + $0x1e78] sm:$0xff] }
 0x371   :  { %4081 = vmatprep.subr.mxu0 %v596_v51  ;;  %4152 = vmatprep.subr.mxu1 %v852_v53  ;;  %v1019_v46 = vld [vmem:[%s12143_s1 + $0x1eb0] sm:$0xff]  ;;  %v748_v53 = vld [vmem:[%s12143_s1 + $0x1638] sm:$0xff] }
 0x372   :  { %4082 = vmatpush1.msra.mxu0 %v595_v55  ;;  %4153 = vmatpush1.msra.mxu1 %v851_v56  ;;  %v755_v50 = vld [vmem:[%s12143_s1 + $0x1670] sm:$0xff]  ;;  %v1004_v55 = vld [vmem:[%s12143_s1 + $0x1e38] sm:$0xff] }
 0x373   :  { %4083 = vmatprep.subr.mxu0 %v588_v58  ;;  %4154 = vmatprep.subr.mxu1 %v844_v59  ;;  %v1011_v51 = vld [vmem:[%s12143_s1 + $0x1e70] sm:$0xff]  ;;  %v740_v59 = vld [vmem:[%s12143_s1 + $0x15f8] sm:$0xff] }
 0x374   :  { %4084 = vmatpush1.msra.mxu0 %v587_v60  ;;  %4155 = vmatpush1.msra.mxu1 %v843_v61  ;;  %v747_v56 = vld [vmem:[%s12143_s1 + $0x1630] sm:$0xff]  ;;  %v996_v60 = vld [vmem:[%s12143_s1 + $0x1df8] sm:$0xff] }
 0x375   :  { %4085 = vmatprep.subr.mxu0 %v580_v63  ;;  %4156 = vmatprep.subr.mxu1 %v836_v0  ;;  %v1003_v58 = vld [vmem:[%s12143_s1 + $0x1e30] sm:$0xff]  ;;  %v732_v0 = vld [vmem:[%s12143_s1 + $0x15b8] sm:$0xff] }
 0x376   :  { %4086 = vmatpush1.msra.mxu0 %v579_v1  ;;  %4157 = vmatpush1.msra.mxu1 %v835_v2  ;;  %v739_v61 = vld [vmem:[%s12143_s1 + $0x15f0] sm:$0xff]  ;;  %v988_v1 = vld [vmem:[%s12143_s1 + $0x1db8] sm:$0xff] }
 0x377   :  { %4087 = vmatprep.subr.mxu0 %v572_v4  ;;  %4158 = vmatprep.subr.mxu1 %v828_v5  ;;  %v995_v63 = vld [vmem:[%s12143_s1 + $0x1df0] sm:$0xff]  ;;  %v724_v5 = vld [vmem:[%s12143_s1 + $0x1578] sm:$0xff] }
 0x378   :  { %4088 = vmatpush1.msra.mxu0 %v571_v6  ;;  %4159 = vmatpush1.msra.mxu1 %v827_v8  ;;  %v731_v2 = vld [vmem:[%s12143_s1 + $0x15b0] sm:$0xff]  ;;  %v980_v6 = vld [vmem:[%s12143_s1 + $0x1d78] sm:$0xff] }
 0x379   :  { %4089 = vmatprep.subr.mxu0 %v564_v7  ;;  %4160 = vmatprep.subr.mxu1 %v820_v62  ;;  %v987_v4 = vld [vmem:[%s12143_s1 + $0x1db0] sm:$0xff]  ;;  %v716_v62 = vld [vmem:[%s12143_s1 + $0x1538] sm:$0xff] }
 0x37a   :  { %4090 = vmatpush1.msra.mxu0 %v563_v11  ;;  %4161 = vmatpush1.msra.mxu1 %v819_v9  ;;  %v723_v8 = vld [vmem:[%s12143_s1 + $0x1570] sm:$0xff]  ;;  %v972_v11 = vld [vmem:[%s12143_s1 + $0x1d38] sm:$0xff] }
 0x37b   :  { %4091 = vmatprep.subr.mxu0 %v556_v10  ;;  %4162 = vmatprep.subr.mxu1 %v812_v3  ;;  %v979_v7 = vld [vmem:[%s12143_s1 + $0x1d70] sm:$0xff]  ;;  %v708_v3 = vld [vmem:[%s12143_s1 + $0x14f8] sm:$0xff] }
 0x37c   :  { %4092 = vmatpush1.msra.mxu0 %v555_v12  ;;  %4163 = vmatpush1.msra.mxu1 %v811_v13  ;;  %v715_v9 = vld [vmem:[%s12143_s1 + $0x1530] sm:$0xff]  ;;  %v964_v12 = vld [vmem:[%s12143_s1 + $0x1cf8] sm:$0xff] }
 0x37d   :  { %4093 = vmatprep.subr.mxu0 %v804_v14  ;;  %4164 = vmatprep.subr.mxu1 %v1060_v15  ;;  %v971_v10 = vld [vmem:[%s12143_s1 + $0x1d30] sm:$0xff]  ;;  %v700_v15 = vld [vmem:[%s12143_s1 + $0x14b8] sm:$0xff] }
 0x37e   :  { %4094 = vmatpush2.msra.mxu0 %v803_v17  ;;  %4165 = vmatpush2.msra.mxu1 %v1059_v18  ;;  %v707_v13 = vld [vmem:[%s12143_s1 + $0x14f0] sm:$0xff]  ;;  %v956_v17 = vld [vmem:[%s12143_s1 + $0x1cb8] sm:$0xff] }
 0x37f   :  { %4095 = vmatprep.subr.mxu0 %v796_v20  ;;  %4166 = vmatprep.subr.mxu1 %v1052_v22  ;;  %v963_v14 = vld [vmem:[%s12143_s1 + $0x1cf0] sm:$0xff]  ;;  %v692_v22 = vld [vmem:[%s12143_s1 + $0x1478] sm:$0xff] }
 0x380   :  { %4096 = vmatpush2.msra.mxu0 %v795_v23  ;;  %4167 = vmatpush2.msra.mxu1 %v1051_v24  ;;  %v699_v18 = vld [vmem:[%s12143_s1 + $0x14b0] sm:$0xff]  ;;  %v948_v23 = vld [vmem:[%s12143_s1 + $0x1c78] sm:$0xff] }
 0x381   :  { %4097 = vmatprep.subr.mxu0 %v788_v27  ;;  %4168 = vmatprep.subr.mxu1 %v1044_v28  ;;  %v955_v20 = vld [vmem:[%s12143_s1 + $0x1cb0] sm:$0xff]  ;;  %v684_v28 = vld [vmem:[%s12143_s1 + $0x1438] sm:$0xff] }
 0x382   :  { %4098 = vmatpush2.msra.mxu0 %v787_v30  ;;  %4169 = vmatpush2.msra.mxu1 %v1043_v52  ;;  %v691_v24 = vld [vmem:[%s12143_s1 + $0x1470] sm:$0xff]  ;;  %v940_v30 = vld [vmem:[%s12143_s1 + $0x1c38] sm:$0xff] }
 0x383   :  { %4099 = vmatprep.subr.mxu0 %v780_v32  ;;  %4170 = vmatprep.subr.mxu1 %v1036_v33  ;;  %v947_v27 = vld [vmem:[%s12143_s1 + $0x1c70] sm:$0xff]  ;;  %v1188_v33 = vld [vmem:[%s12143_s1 + $0x23f8] sm:$0xff] }
 0x384   :  { %4100 = vmatpush2.msra.mxu0 %v779_v35  ;;  %4171 = vmatpush2.msra.mxu1 %v1035_v36  ;;  %v683_v52 = vld [vmem:[%s12143_s1 + $0x1430] sm:$0xff]  ;;  %v1444_v35 = vld [vmem:[%s12143_s1 + $0x2bf8] sm:$0xff] }
 0x385   :  { %4101 = vmatprep.subr.mxu0 %v772_v37  ;;  %4172 = vmatprep.subr.mxu1 %v1028_v38  ;;  %v939_v32 = vld [vmem:[%s12143_s1 + $0x1c30] sm:$0xff]  ;;  %v1436_v38 = vld [vmem:[%s12143_s1 + $0x2bb8] sm:$0xff] }
 0x386   :  { %4102 = vmatpush2.msra.mxu0 %v771_v39  ;;  %4173 = vmatpush2.msra.mxu1 %v1027_v40  ;;  %v1187_v36 = vld [vmem:[%s12143_s1 + $0x23f0] sm:$0xff]  ;;  %v1172_v39 = vld [vmem:[%s12143_s1 + $0x2378] sm:$0xff] }
 0x387   :  { %4103 = vmatprep.subr.mxu0 %v764_v42  ;;  %4174 = vmatprep.subr.mxu1 %v1020_v44  ;;  %v1443_v37 = vld [vmem:[%s12143_s1 + $0x2bf0] sm:$0xff]  ;;  %v1428_v40 = vld [vmem:[%s12143_s1 + $0x2b78] sm:$0xff] }
 0x388   :  { %4104 = vmatpush2.msra.mxu0 %v763_v45  ;;  %4175 = vmatpush2.msra.mxu1 %v1019_v46  ;;  %v1427_v42 = vld [vmem:[%s12143_s1 + $0x2b70] sm:$0xff]  ;;  %v1164_v44 = vld [vmem:[%s12143_s1 + $0x2338] sm:$0xff] }
 0x389   :  { %4105 = vmatprep.subr.mxu0 %v756_v47  ;;  %4176 = vmatprep.subr.mxu1 %v1012_v49  ;;  %v1420_v45 = vld [vmem:[%s12143_s1 + $0x2b38] sm:$0xff]  ;;  %v1163_v46 = vld [vmem:[%s12143_s1 + $0x2330] sm:$0xff] }
 0x38a   :  { %4106 = vmatpush2.msra.mxu0 %v755_v50  ;;  %4177 = vmatpush2.msra.mxu1 %v1011_v51  ;;  %v1419_v47 = vld [vmem:[%s12143_s1 + $0x2b30] sm:$0xff]  ;;  %v1156_v49 = vld [vmem:[%s12143_s1 + $0x22f8] sm:$0xff] }
 0x38b   :  { %4107 = vmatprep.subr.mxu0 %v748_v53  ;;  %4178 = vmatprep.subr.mxu1 %v1004_v55  ;;  %v1412_v50 = vld [vmem:[%s12143_s1 + $0x2af8] sm:$0xff]  ;;  %v1155_v51 = vld [vmem:[%s12143_s1 + $0x22f0] sm:$0xff] }
 0x38c   :  { %4108 = vmatpush2.msra.mxu0 %v747_v56  ;;  %4179 = vmatpush2.msra.mxu1 %v1003_v58  ;;  %v1411_v53 = vld [vmem:[%s12143_s1 + $0x2af0] sm:$0xff]  ;;  %v1148_v55 = vld [vmem:[%s12143_s1 + $0x22b8] sm:$0xff] }
 0x38d   :  { %4109 = vmatprep.subr.mxu0 %v740_v59  ;;  %4180 = vmatprep.subr.mxu1 %v996_v60  ;;  %v1404_v56 = vld [vmem:[%s12143_s1 + $0x2ab8] sm:$0xff]  ;;  %v1147_v58 = vld [vmem:[%s12143_s1 + $0x22b0] sm:$0xff] }
 0x38e   :  { %4110 = vmatpush2.msra.mxu0 %v739_v61  ;;  %4181 = vmatpush2.msra.mxu1 %v995_v63  ;;  %v1403_v59 = vld [vmem:[%s12143_s1 + $0x2ab0] sm:$0xff]  ;;  %v1140_v60 = vld [vmem:[%s12143_s1 + $0x2278] sm:$0xff] }
 0x38f   :  { %4111 = vmatprep.subr.mxu0 %v732_v0  ;;  %4182 = vmatprep.subr.mxu1 %v988_v1  ;;  %v1396_v61 = vld [vmem:[%s12143_s1 + $0x2a78] sm:$0xff]  ;;  %v1139_v63 = vld [vmem:[%s12143_s1 + $0x2270] sm:$0xff] }
 0x390   :  { %4112 = vmatpush2.msra.mxu0 %v731_v2  ;;  %4183 = vmatpush2.msra.mxu1 %v987_v4  ;;  %v1395_v0 = vld [vmem:[%s12143_s1 + $0x2a70] sm:$0xff]  ;;  %v1132_v1 = vld [vmem:[%s12143_s1 + $0x2238] sm:$0xff] }
 0x391   :  { %4113 = vmatprep.subr.mxu0 %v724_v5  ;;  %4184 = vmatprep.subr.mxu1 %v980_v6  ;;  %v1388_v2 = vld [vmem:[%s12143_s1 + $0x2a38] sm:$0xff]  ;;  %v1131_v4 = vld [vmem:[%s12143_s1 + $0x2230] sm:$0xff] }
 0x392   :  { %4114 = vmatpush2.msra.mxu0 %v723_v8  ;;  %4185 = vmatpush2.msra.mxu1 %v979_v7  ;;  %v1387_v5 = vld [vmem:[%s12143_s1 + $0x2a30] sm:$0xff]  ;;  %v1124_v6 = vld [vmem:[%s12143_s1 + $0x21f8] sm:$0xff] }
 0x393   :  { %4115 = vmatprep.subr.mxu0 %v716_v62  ;;  %4186 = vmatprep.subr.mxu1 %v972_v11  ;;  %v1380_v8 = vld [vmem:[%s12143_s1 + $0x29f8] sm:$0xff]  ;;  %v1123_v7 = vld [vmem:[%s12143_s1 + $0x21f0] sm:$0xff] }
 0x394   :  { %4116 = vmatpush2.msra.mxu0 %v715_v9  ;;  %4187 = vmatpush2.msra.mxu1 %v971_v10  ;;  %v1379_v62 = vld [vmem:[%s12143_s1 + $0x29f0] sm:$0xff]  ;;  %v1116_v11 = vld [vmem:[%s12143_s1 + $0x21b8] sm:$0xff] }
 0x395   :  { %4117 = vmatprep.subr.mxu0 %v708_v3  ;;  %4188 = vmatprep.subr.mxu1 %v964_v12  ;;  %v1372_v9 = vld [vmem:[%s12143_s1 + $0x29b8] sm:$0xff]  ;;  %v1115_v10 = vld [vmem:[%s12143_s1 + $0x21b0] sm:$0xff] }
 0x396   :  { %4118 = vmatpush2.msra.mxu0 %v707_v13  ;;  %4189 = vmatpush2.msra.mxu1 %v963_v14  ;;  %v1371_v3 = vld [vmem:[%s12143_s1 + $0x29b0] sm:$0xff]  ;;  %v1108_v12 = vld [vmem:[%s12143_s1 + $0x2178] sm:$0xff] }
 0x397   :  { %4119 = vmatprep.subr.mxu0 %v700_v15  ;;  %4190 = vmatprep.subr.mxu1 %v956_v17  ;;  %v1364_v13 = vld [vmem:[%s12143_s1 + $0x2978] sm:$0xff]  ;;  %v1107_v14 = vld [vmem:[%s12143_s1 + $0x2170] sm:$0xff] }
 0x398   :  { %4120 = vmatpush2.msra.mxu0 %v699_v18  ;;  %4191 = vmatpush2.msra.mxu1 %v955_v20  ;;  %v1363_v15 = vld [vmem:[%s12143_s1 + $0x2970] sm:$0xff]  ;;  %v1100_v17 = vld [vmem:[%s12143_s1 + $0x2138] sm:$0xff] }
 0x399   :  { %4121 = vmatprep.subr.mxu0 %v692_v22  ;;  %4192 = vmatprep.subr.mxu1 %v948_v23  ;;  %v1356_v18 = vld [vmem:[%s12143_s1 + $0x2938] sm:$0xff]  ;;  %v1099_v20 = vld [vmem:[%s12143_s1 + $0x2130] sm:$0xff] }
 0x39a   :  { %4122 = vmatpush2.msra.mxu0 %v691_v24  ;;  %4193 = vmatpush2.msra.mxu1 %v947_v27  ;;  %v1355_v22 = vld [vmem:[%s12143_s1 + $0x2930] sm:$0xff]  ;;  %v1092_v23 = vld [vmem:[%s12143_s1 + $0x20f8] sm:$0xff] }
 0x39b   :  { %4123 = vmatprep.subr.mxu0 %v684_v28  ;;  %4194 = vmatprep.subr.mxu1 %v940_v30  ;;  %v1348_v24 = vld [vmem:[%s12143_s1 + $0x28f8] sm:$0xff]  ;;  %v1091_v27 = vld [vmem:[%s12143_s1 + $0x20f0] sm:$0xff] }
 0x39c   :  { %4124 = vmatpush2.msra.mxu0 %v683_v52  ;;  %4125 = vmatprep.mubr.f32.mxu0 %v6002_v26  ;;  %v1180_v26 = vld [vmem:[%s12143_s1 + $0x23b8] sm:$0xff]  ;;  %v1347_v28 = vld [vmem:[%s12143_s1 + $0x28f0] sm:$0xff] }
 0x39d   :  { %4195 = vmatpush2.msra.mxu1 %v939_v32  ;;  %4126 = vmatmul.mubr.f32.vlgmr.msra.gmra.mxu0 %v5971_v16  ;;  %v1179_v16 = vld [vmem:[%s12143_s1 + $0x23b0] sm:$0xff]  ;;  %v1084_v30 = vld [vmem:[%s12143_s1 + $0x20b8] sm:$0xff] }
 0x39e   :  { %4196 = vmatprep.mubr.f32.mxu1 %v6012_v29  ;;  %4203 = vmatprep.subr.mxu0 %v1188_v33  ;;  %v1435_v29 = vld [vmem:[%s12143_s1 + $0x2bb0] sm:$0xff]  ;;  %v1340_v52 = vld [vmem:[%s12143_s1 + $0x28b8] sm:$0xff] }
 0x39f   :  { %4274 = vmatprep.subr.mxu1 %v1444_v35  ;;  %4197 = vmatmul.mubr.f32.vlgmr.msra.gmra.mxu1 %v5986_v21  ;;  %v1171_v21 = vld [vmem:[%s12143_s1 + $0x2370] sm:$0xff]  ;;  %v1076_v35 = vld [vmem:[%s12143_s1 + $0x2078] sm:$0xff] }
 0x3a0   :  { %4204 = vmatpush1.msra.mxu0 %v1187_v36  ;;  %4275 = vmatpush1.msra.mxu1 %v1443_v37  ;;  %v1083_v32 = vld [vmem:[%s12143_s1 + $0x20b0] sm:$0xff]  ;;  %v1332_v36 = vld [vmem:[%s12143_s1 + $0x2878] sm:$0xff] }
 0x3a1   :  { %4205 = vmatprep.subr.mxu0 %v1180_v26  ;;  %4276 = vmatprep.subr.mxu1 %v1436_v38  ;;  %v1339_v33 = vld [vmem:[%s12143_s1 + $0x28b0] sm:$0xff]  ;;  %v1068_v38 = vld [vmem:[%s12143_s1 + $0x2038] sm:$0xff] }
 0x3a2   :  { %4206 = vmatpush1.msra.mxu0 %v1179_v16  ;;  %4277 = vmatpush1.msra.mxu1 %v1435_v29  ;;  %v1075_v37 = vld [vmem:[%s12143_s1 + $0x2070] sm:$0xff]  ;;  %v1324_v16 = vld [vmem:[%s12143_s1 + $0x2838] sm:$0xff] }
 0x3a3   :  { %4207 = vmatprep.subr.mxu0 %v1172_v39  ;;  %4278 = vmatprep.subr.mxu1 %v1428_v40  ;;  %v1331_v26 = vld [vmem:[%s12143_s1 + $0x2870] sm:$0xff]  ;;  %v1316_v40 = vld [vmem:[%s12143_s1 + $0x27f8] sm:$0xff] }
 0x3a4   :  { %4208 = vmatpush1.msra.mxu0 %v1171_v21  ;;  %4279 = vmatpush1.msra.mxu1 %v1427_v42  ;;  %v1067_v29 = vld [vmem:[%s12143_s1 + $0x2030] sm:$0xff]  ;;  %v1572_v21 = vld [vmem:[%s12143_s1 + $0x2ff8] sm:$0xff] }
 0x3a5   :  { %4209 = vmatprep.subr.mxu0 %v1164_v44  ;;  %4280 = vmatprep.subr.mxu1 %v1420_v45  ;;  %v1323_v39 = vld [vmem:[%s12143_s1 + $0x2830] sm:$0xff]  ;;  %v1308_v45 = vld [vmem:[%s12143_s1 + $0x27b8] sm:$0xff] }
 0x3a6   :  { %4210 = vmatpush1.msra.mxu0 %v1163_v46  ;;  %4281 = vmatpush1.msra.mxu1 %v1419_v47  ;;  %v1315_v42 = vld [vmem:[%s12143_s1 + $0x27f0] sm:$0xff]  ;;  %v1564_v46 = vld [vmem:[%s12143_s1 + $0x2fb8] sm:$0xff] }
 0x3a7   :  { %4211 = vmatprep.subr.mxu0 %v1156_v49  ;;  %4282 = vmatprep.subr.mxu1 %v1412_v50  ;;  %v1571_v44 = vld [vmem:[%s12143_s1 + $0x2ff0] sm:$0xff]  ;;  %v1300_v50 = vld [vmem:[%s12143_s1 + $0x2778] sm:$0xff] }
 0x3a8   :  { %4212 = vmatpush1.msra.mxu0 %v1155_v51  ;;  %4283 = vmatpush1.msra.mxu1 %v1411_v53  ;;  %v1307_v47 = vld [vmem:[%s12143_s1 + $0x27b0] sm:$0xff]  ;;  %v1556_v51 = vld [vmem:[%s12143_s1 + $0x2f78] sm:$0xff] }
 0x3a9   :  { %4213 = vmatprep.subr.mxu0 %v1148_v55  ;;  %4284 = vmatprep.subr.mxu1 %v1404_v56  ;;  %v1563_v49 = vld [vmem:[%s12143_s1 + $0x2fb0] sm:$0xff]  ;;  %v1292_v56 = vld [vmem:[%s12143_s1 + $0x2738] sm:$0xff] }
 0x3aa   :  { %4214 = vmatpush1.msra.mxu0 %v1147_v58  ;;  %4285 = vmatpush1.msra.mxu1 %v1403_v59  ;;  %v1299_v53 = vld [vmem:[%s12143_s1 + $0x2770] sm:$0xff]  ;;  %v1548_v58 = vld [vmem:[%s12143_s1 + $0x2f38] sm:$0xff] }
 0x3ab   :  { %4215 = vmatprep.subr.mxu0 %v1140_v60  ;;  %4286 = vmatprep.subr.mxu1 %v1396_v61  ;;  %v1555_v55 = vld [vmem:[%s12143_s1 + $0x2f70] sm:$0xff]  ;;  %v1284_v61 = vld [vmem:[%s12143_s1 + $0x26f8] sm:$0xff] }
 0x3ac   :  { %4216 = vmatpush1.msra.mxu0 %v1139_v63  ;;  %4287 = vmatpush1.msra.mxu1 %v1395_v0  ;;  %v1291_v59 = vld [vmem:[%s12143_s1 + $0x2730] sm:$0xff]  ;;  %v1540_v63 = vld [vmem:[%s12143_s1 + $0x2ef8] sm:$0xff] }
 0x3ad   :  { %4217 = vmatprep.subr.mxu0 %v1132_v1  ;;  %4288 = vmatprep.subr.mxu1 %v1388_v2  ;;  %v1547_v60 = vld [vmem:[%s12143_s1 + $0x2f30] sm:$0xff]  ;;  %v1276_v2 = vld [vmem:[%s12143_s1 + $0x26b8] sm:$0xff] }
 0x3ae   :  { %4218 = vmatpush1.msra.mxu0 %v1131_v4  ;;  %4289 = vmatpush1.msra.mxu1 %v1387_v5  ;;  %v1283_v0 = vld [vmem:[%s12143_s1 + $0x26f0] sm:$0xff]  ;;  %v1532_v4 = vld [vmem:[%s12143_s1 + $0x2eb8] sm:$0xff] }
 0x3af   :  { %4219 = vmatprep.subr.mxu0 %v1124_v6  ;;  %4290 = vmatprep.subr.mxu1 %v1380_v8  ;;  %v1539_v1 = vld [vmem:[%s12143_s1 + $0x2ef0] sm:$0xff]  ;;  %v1268_v8 = vld [vmem:[%s12143_s1 + $0x2678] sm:$0xff] }
 0x3b0   :  { %4220 = vmatpush1.msra.mxu0 %v1123_v7  ;;  %4291 = vmatpush1.msra.mxu1 %v1379_v62  ;;  %v1275_v5 = vld [vmem:[%s12143_s1 + $0x26b0] sm:$0xff]  ;;  %v1524_v7 = vld [vmem:[%s12143_s1 + $0x2e78] sm:$0xff] }
 0x3b1   :  { %4221 = vmatprep.subr.mxu0 %v1116_v11  ;;  %4292 = vmatprep.subr.mxu1 %v1372_v9  ;;  %v1531_v6 = vld [vmem:[%s12143_s1 + $0x2eb0] sm:$0xff]  ;;  %v1260_v9 = vld [vmem:[%s12143_s1 + $0x2638] sm:$0xff] }
 0x3b2   :  { %4222 = vmatpush1.msra.mxu0 %v1115_v10  ;;  %4293 = vmatpush1.msra.mxu1 %v1371_v3  ;;  %v1267_v62 = vld [vmem:[%s12143_s1 + $0x2670] sm:$0xff]  ;;  %v1516_v10 = vld [vmem:[%s12143_s1 + $0x2e38] sm:$0xff] }
 0x3b3   :  { %4223 = vmatprep.subr.mxu0 %v1108_v12  ;;  %4294 = vmatprep.subr.mxu1 %v1364_v13  ;;  %v1523_v11 = vld [vmem:[%s12143_s1 + $0x2e70] sm:$0xff]  ;;  %v1252_v13 = vld [vmem:[%s12143_s1 + $0x25f8] sm:$0xff] }
 0x3b4   :  { %4224 = vmatpush1.msra.mxu0 %v1107_v14  ;;  %4295 = vmatpush1.msra.mxu1 %v1363_v15  ;;  %v1259_v3 = vld [vmem:[%s12143_s1 + $0x2630] sm:$0xff]  ;;  %v1508_v14 = vld [vmem:[%s12143_s1 + $0x2df8] sm:$0xff] }
 0x3b5   :  { %4225 = vmatprep.subr.mxu0 %v1100_v17  ;;  %4296 = vmatprep.subr.mxu1 %v1356_v18  ;;  %v1515_v12 = vld [vmem:[%s12143_s1 + $0x2e30] sm:$0xff]  ;;  %v1244_v18 = vld [vmem:[%s12143_s1 + $0x25b8] sm:$0xff] }
 0x3b6   :  { %4226 = vmatpush1.msra.mxu0 %v1099_v20  ;;  %4297 = vmatpush1.msra.mxu1 %v1355_v22  ;;  %v1251_v15 = vld [vmem:[%s12143_s1 + $0x25f0] sm:$0xff]  ;;  %v1500_v20 = vld [vmem:[%s12143_s1 + $0x2db8] sm:$0xff] }
 0x3b7   :  { %4227 = vmatprep.subr.mxu0 %v1092_v23  ;;  %4298 = vmatprep.subr.mxu1 %v1348_v24  ;;  %v1507_v17 = vld [vmem:[%s12143_s1 + $0x2df0] sm:$0xff]  ;;  %v1236_v24 = vld [vmem:[%s12143_s1 + $0x2578] sm:$0xff] }
 0x3b8   :  { %4228 = vmatpush1.msra.mxu0 %v1091_v27  ;;  %4299 = vmatpush1.msra.mxu1 %v1347_v28  ;;  %v1243_v22 = vld [vmem:[%s12143_s1 + $0x25b0] sm:$0xff]  ;;  %v1492_v27 = vld [vmem:[%s12143_s1 + $0x2d78] sm:$0xff] }
 0x3b9   :  { %4229 = vmatprep.subr.mxu0 %v1084_v30  ;;  %4300 = vmatprep.subr.mxu1 %v1340_v52  ;;  %v1499_v23 = vld [vmem:[%s12143_s1 + $0x2db0] sm:$0xff]  ;;  %v1228_v52 = vld [vmem:[%s12143_s1 + $0x2538] sm:$0xff] }
 0x3ba   :  { %4230 = vmatpush1.msra.mxu0 %v1083_v32  ;;  %4301 = vmatpush1.msra.mxu1 %v1339_v33  ;;  %v1235_v28 = vld [vmem:[%s12143_s1 + $0x2570] sm:$0xff]  ;;  %v1484_v32 = vld [vmem:[%s12143_s1 + $0x2d38] sm:$0xff] }
 0x3bb   :  { %4231 = vmatprep.subr.mxu0 %v1076_v35  ;;  %4302 = vmatprep.subr.mxu1 %v1332_v36  ;;  %v1491_v30 = vld [vmem:[%s12143_s1 + $0x2d70] sm:$0xff]  ;;  %v1220_v36 = vld [vmem:[%s12143_s1 + $0x24f8] sm:$0xff] }
 0x3bc   :  { %4232 = vmatpush1.msra.mxu0 %v1075_v37  ;;  %4303 = vmatpush1.msra.mxu1 %v1331_v26  ;;  %v1227_v33 = vld [vmem:[%s12143_s1 + $0x2530] sm:$0xff]  ;;  %v1476_v37 = vld [vmem:[%s12143_s1 + $0x2cf8] sm:$0xff] }
 0x3bd   :  { %4233 = vmatprep.subr.mxu0 %v1068_v38  ;;  %4304 = vmatprep.subr.mxu1 %v1324_v16  ;;  %v1483_v35 = vld [vmem:[%s12143_s1 + $0x2d30] sm:$0xff]  ;;  %v1212_v16 = vld [vmem:[%s12143_s1 + $0x24b8] sm:$0xff] }
 0x3be   :  { %4234 = vmatpush1.msra.mxu0 %v1067_v29  ;;  %4305 = vmatpush1.msra.mxu1 %v1323_v39  ;;  %v1219_v26 = vld [vmem:[%s12143_s1 + $0x24f0] sm:$0xff]  ;;  %v1468_v29 = vld [vmem:[%s12143_s1 + $0x2cb8] sm:$0xff] }
 0x3bf   :  { %4235 = vmatprep.subr.mxu0 %v1316_v40  ;;  %4306 = vmatprep.subr.mxu1 %v1572_v21  ;;  %v1475_v38 = vld [vmem:[%s12143_s1 + $0x2cf0] sm:$0xff]  ;;  %v1204_v21 = vld [vmem:[%s12143_s1 + $0x2478] sm:$0xff] }
 0x3c0   :  { %4236 = vmatpush2.msra.mxu0 %v1315_v42  ;;  %4307 = vmatpush2.msra.mxu1 %v1571_v44  ;;  %v1211_v39 = vld [vmem:[%s12143_s1 + $0x24b0] sm:$0xff]  ;;  %v1460_v42 = vld [vmem:[%s12143_s1 + $0x2c78] sm:$0xff] }
 0x3c1   :  { %4237 = vmatprep.subr.mxu0 %v1308_v45  ;;  %4308 = vmatprep.subr.mxu1 %v1564_v46  ;;  %v1467_v40 = vld [vmem:[%s12143_s1 + $0x2cb0] sm:$0xff]  ;;  %v1196_v46 = vld [vmem:[%s12143_s1 + $0x2438] sm:$0xff] }
 0x3c2   :  { %4238 = vmatpush2.msra.mxu0 %v1307_v47  ;;  %4309 = vmatpush2.msra.mxu1 %v1563_v49  ;;  %v1203_v44 = vld [vmem:[%s12143_s1 + $0x2470] sm:$0xff]  ;;  %v1452_v47 = vld [vmem:[%s12143_s1 + $0x2c38] sm:$0xff] }
 0x3c3   :  { %4239 = vmatprep.subr.mxu0 %v1300_v50  ;;  %4310 = vmatprep.subr.mxu1 %v1556_v51  ;;  %v1459_v45 = vld [vmem:[%s12143_s1 + $0x2c70] sm:$0xff]  ;;  %v1700_v51 = vld [vmem:[%s12143_s1 + $0x33f8] sm:$0xff] }
 0x3c4   :  { %4240 = vmatpush2.msra.mxu0 %v1299_v53  ;;  %4311 = vmatpush2.msra.mxu1 %v1555_v55  ;;  %v1195_v49 = vld [vmem:[%s12143_s1 + $0x2430] sm:$0xff]  ;;  %v1956_v53 = vld [vmem:[%s12143_s1 + $0x3bf8] sm:$0xff] }
 0x3c5   :  { %4241 = vmatprep.subr.mxu0 %v1292_v56  ;;  %4312 = vmatprep.subr.mxu1 %v1548_v58  ;;  %v1451_v50 = vld [vmem:[%s12143_s1 + $0x2c30] sm:$0xff]  ;;  %v1948_v58 = vld [vmem:[%s12143_s1 + $0x3bb8] sm:$0xff] }
 0x3c6   :  { %4242 = vmatpush2.msra.mxu0 %v1291_v59  ;;  %4313 = vmatpush2.msra.mxu1 %v1547_v60  ;;  %v1699_v55 = vld [vmem:[%s12143_s1 + $0x33f0] sm:$0xff]  ;;  %v1684_v59 = vld [vmem:[%s12143_s1 + $0x3378] sm:$0xff] }
 0x3c7   :  { %4243 = vmatprep.subr.mxu0 %v1284_v61  ;;  %4314 = vmatprep.subr.mxu1 %v1540_v63  ;;  %v1955_v56 = vld [vmem:[%s12143_s1 + $0x3bf0] sm:$0xff]  ;;  %v1940_v60 = vld [vmem:[%s12143_s1 + $0x3b78] sm:$0xff] }
 0x3c8   :  { %4244 = vmatpush2.msra.mxu0 %v1283_v0  ;;  %4315 = vmatpush2.msra.mxu1 %v1539_v1  ;;  %v1939_v61 = vld [vmem:[%s12143_s1 + $0x3b70] sm:$0xff]  ;;  %v1676_v63 = vld [vmem:[%s12143_s1 + $0x3338] sm:$0xff] }
 0x3c9   :  { %4245 = vmatprep.subr.mxu0 %v1276_v2  ;;  %4316 = vmatprep.subr.mxu1 %v1532_v4  ;;  %v1932_v0 = vld [vmem:[%s12143_s1 + $0x3b38] sm:$0xff]  ;;  %v1675_v1 = vld [vmem:[%s12143_s1 + $0x3330] sm:$0xff] }
 0x3ca   :  { %4246 = vmatpush2.msra.mxu0 %v1275_v5  ;;  %4317 = vmatpush2.msra.mxu1 %v1531_v6  ;;  %v1931_v2 = vld [vmem:[%s12143_s1 + $0x3b30] sm:$0xff]  ;;  %v1668_v4 = vld [vmem:[%s12143_s1 + $0x32f8] sm:$0xff] }
 0x3cb   :  { %4247 = vmatprep.subr.mxu0 %v1268_v8  ;;  %4318 = vmatprep.subr.mxu1 %v1524_v7  ;;  %v1924_v5 = vld [vmem:[%s12143_s1 + $0x3af8] sm:$0xff]  ;;  %v1667_v6 = vld [vmem:[%s12143_s1 + $0x32f0] sm:$0xff] }
 0x3cc   :  { %4248 = vmatpush2.msra.mxu0 %v1267_v62  ;;  %4319 = vmatpush2.msra.mxu1 %v1523_v11  ;;  %v1923_v8 = vld [vmem:[%s12143_s1 + $0x3af0] sm:$0xff]  ;;  %v1660_v7 = vld [vmem:[%s12143_s1 + $0x32b8] sm:$0xff] }
 0x3cd   :  { %4249 = vmatprep.subr.mxu0 %v1260_v9  ;;  %4320 = vmatprep.subr.mxu1 %v1516_v10  ;;  %v1916_v62 = vld [vmem:[%s12143_s1 + $0x3ab8] sm:$0xff]  ;;  %v1659_v11 = vld [vmem:[%s12143_s1 + $0x32b0] sm:$0xff] }
 0x3ce   :  { %4250 = vmatpush2.msra.mxu0 %v1259_v3  ;;  %4321 = vmatpush2.msra.mxu1 %v1515_v12  ;;  %v1915_v9 = vld [vmem:[%s12143_s1 + $0x3ab0] sm:$0xff]  ;;  %v1652_v10 = vld [vmem:[%s12143_s1 + $0x3278] sm:$0xff] }
 0x3cf   :  { %4251 = vmatprep.subr.mxu0 %v1252_v13  ;;  %4322 = vmatprep.subr.mxu1 %v1508_v14  ;;  %v1908_v3 = vld [vmem:[%s12143_s1 + $0x3a78] sm:$0xff]  ;;  %v1651_v12 = vld [vmem:[%s12143_s1 + $0x3270] sm:$0xff] }
 0x3d0   :  { %4252 = vmatpush2.msra.mxu0 %v1251_v15  ;;  %4323 = vmatpush2.msra.mxu1 %v1507_v17  ;;  %v1907_v13 = vld [vmem:[%s12143_s1 + $0x3a70] sm:$0xff]  ;;  %v1644_v14 = vld [vmem:[%s12143_s1 + $0x3238] sm:$0xff] }
 0x3d1   :  { %4253 = vmatprep.subr.mxu0 %v1244_v18  ;;  %4324 = vmatprep.subr.mxu1 %v1500_v20  ;;  %v1900_v15 = vld [vmem:[%s12143_s1 + $0x3a38] sm:$0xff]  ;;  %v1643_v17 = vld [vmem:[%s12143_s1 + $0x3230] sm:$0xff] }
 0x3d2   :  { %4254 = vmatpush2.msra.mxu0 %v1243_v22  ;;  %4325 = vmatpush2.msra.mxu1 %v1499_v23  ;;  %v1899_v18 = vld [vmem:[%s12143_s1 + $0x3a30] sm:$0xff]  ;;  %v1636_v20 = vld [vmem:[%s12143_s1 + $0x31f8] sm:$0xff] }
 0x3d3   :  { %4255 = vmatprep.subr.mxu0 %v1236_v24  ;;  %4326 = vmatprep.subr.mxu1 %v1492_v27  ;;  %v1892_v22 = vld [vmem:[%s12143_s1 + $0x39f8] sm:$0xff]  ;;  %v1635_v23 = vld [vmem:[%s12143_s1 + $0x31f0] sm:$0xff] }
 0x3d4   :  { %4256 = vmatpush2.msra.mxu0 %v1235_v28  ;;  %4327 = vmatpush2.msra.mxu1 %v1491_v30  ;;  %v1891_v24 = vld [vmem:[%s12143_s1 + $0x39f0] sm:$0xff]  ;;  %v1628_v27 = vld [vmem:[%s12143_s1 + $0x31b8] sm:$0xff] }
 0x3d5   :  { %4257 = vmatprep.subr.mxu0 %v1228_v52  ;;  %4328 = vmatprep.subr.mxu1 %v1484_v32  ;;  %v1884_v28 = vld [vmem:[%s12143_s1 + $0x39b8] sm:$0xff]  ;;  %v1627_v30 = vld [vmem:[%s12143_s1 + $0x31b0] sm:$0xff] }
 0x3d6   :  { %4258 = vmatpush2.msra.mxu0 %v1227_v33  ;;  %4329 = vmatpush2.msra.mxu1 %v1483_v35  ;;  %v1883_v52 = vld [vmem:[%s12143_s1 + $0x39b0] sm:$0xff]  ;;  %v1620_v32 = vld [vmem:[%s12143_s1 + $0x3178] sm:$0xff] }
 0x3d7   :  { %4259 = vmatprep.subr.mxu0 %v1220_v36  ;;  %4330 = vmatprep.subr.mxu1 %v1476_v37  ;;  %v1876_v33 = vld [vmem:[%s12143_s1 + $0x3978] sm:$0xff]  ;;  %v1619_v35 = vld [vmem:[%s12143_s1 + $0x3170] sm:$0xff] }
 0x3d8   :  { %4260 = vmatpush2.msra.mxu0 %v1219_v26  ;;  %4331 = vmatpush2.msra.mxu1 %v1475_v38  ;;  %v1875_v36 = vld [vmem:[%s12143_s1 + $0x3970] sm:$0xff]  ;;  %v1612_v37 = vld [vmem:[%s12143_s1 + $0x3138] sm:$0xff] }
 0x3d9   :  { %4261 = vmatprep.subr.mxu0 %v1212_v16  ;;  %4332 = vmatprep.subr.mxu1 %v1468_v29  ;;  %v1868_v26 = vld [vmem:[%s12143_s1 + $0x3938] sm:$0xff]  ;;  %v1611_v38 = vld [vmem:[%s12143_s1 + $0x3130] sm:$0xff] }
 0x3da   :  { %4262 = vmatpush2.msra.mxu0 %v1211_v39  ;;  %4333 = vmatpush2.msra.mxu1 %v1467_v40  ;;  %v1867_v16 = vld [vmem:[%s12143_s1 + $0x3930] sm:$0xff]  ;;  %v1604_v29 = vld [vmem:[%s12143_s1 + $0x30f8] sm:$0xff] }
 0x3db   :  { %4263 = vmatprep.subr.mxu0 %v1204_v21  ;;  %4334 = vmatprep.subr.mxu1 %v1460_v42  ;;  %v1860_v39 = vld [vmem:[%s12143_s1 + $0x38f8] sm:$0xff]  ;;  %v1603_v40 = vld [vmem:[%s12143_s1 + $0x30f0] sm:$0xff] }
 0x3dc   :  { %4264 = vmatpush2.msra.mxu0 %v1203_v44  ;;  %4335 = vmatpush2.msra.mxu1 %v1459_v45  ;;  %v1859_v21 = vld [vmem:[%s12143_s1 + $0x38f0] sm:$0xff]  ;;  %v1596_v42 = vld [vmem:[%s12143_s1 + $0x30b8] sm:$0xff] }
 0x3dd   :  { %4265 = vmatprep.subr.mxu0 %v1196_v46  ;;  %4336 = vmatprep.subr.mxu1 %v1452_v47  ;;  %v1852_v44 = vld [vmem:[%s12143_s1 + $0x38b8] sm:$0xff]  ;;  %v1595_v45 = vld [vmem:[%s12143_s1 + $0x30b0] sm:$0xff] }
 0x3de   :  { %4266 = vmatpush2.msra.mxu0 %v1195_v49  ;;  %4267 = vmatprep.mubr.f32.mxu0 %v6407_v54  ;;  %v1692_v54 = vld [vmem:[%s12143_s1 + $0x33b8] sm:$0xff]  ;;  %v1851_v46 = vld [vmem:[%s12143_s1 + $0x38b0] sm:$0xff] }
 0x3df   :  { %4337 = vmatpush2.msra.mxu1 %v1451_v50  ;;  %4268 = vmatmul.mubr.f32.vlgmr.msra.gmra.mxu0 %v6376_v43  ;;  %v1691_v43 = vld [vmem:[%s12143_s1 + $0x33b0] sm:$0xff]  ;;  %v1588_v47 = vld [vmem:[%s12143_s1 + $0x3078] sm:$0xff] }
 0x3e0   :  { %4338 = vmatprep.mubr.f32.mxu1 %v6417_v57  ;;  %4345 = vmatprep.subr.mxu0 %v1700_v51  ;;  %v1947_v57 = vld [vmem:[%s12143_s1 + $0x3bb0] sm:$0xff]  ;;  %v1844_v49 = vld [vmem:[%s12143_s1 + $0x3878] sm:$0xff] }
 0x3e1   :  { %4416 = vmatprep.subr.mxu1 %v1956_v53  ;;  %4339 = vmatmul.mubr.f32.vlgmr.msra.gmra.mxu1 %v6391_v48  ;;  %v1683_v48 = vld [vmem:[%s12143_s1 + $0x3370] sm:$0xff]  ;;  %v1580_v53 = vld [vmem:[%s12143_s1 + $0x3038] sm:$0xff] }
 0x3e2   :  { %4346 = vmatpush1.msra.mxu0 %v1699_v55  ;;  %4417 = vmatpush1.msra.mxu1 %v1955_v56  ;;  %v1587_v50 = vld [vmem:[%s12143_s1 + $0x3070] sm:$0xff]  ;;  %v1836_v55 = vld [vmem:[%s12143_s1 + $0x3838] sm:$0xff] }
 0x3e3   :  { %4347 = vmatprep.subr.mxu0 %v1692_v54  ;;  %4418 = vmatprep.subr.mxu1 %v1948_v58  ;;  %v1843_v51 = vld [vmem:[%s12143_s1 + $0x3870] sm:$0xff]  ;;  %v1828_v58 = vld [vmem:[%s12143_s1 + $0x37f8] sm:$0xff] }
 0x3e4   :  { %4348 = vmatpush1.msra.mxu0 %v1691_v43  ;;  %4419 = vmatpush1.msra.mxu1 %v1947_v57  ;;  %v1579_v56 = vld [vmem:[%s12143_s1 + $0x3030] sm:$0xff]  ;;  %v2084_v43 = vld [vmem:[%s12143_s1 + $0x3ff8] sm:$0xff] }
 0x3e5   :  { %4349 = vmatprep.subr.mxu0 %v1684_v59  ;;  %4420 = vmatprep.subr.mxu1 %v1940_v60  ;;  %v1835_v54 = vld [vmem:[%s12143_s1 + $0x3830] sm:$0xff]  ;;  %v1820_v60 = vld [vmem:[%s12143_s1 + $0x37b8] sm:$0xff] }
 0x3e6   :  { %4350 = vmatpush1.msra.mxu0 %v1683_v48  ;;  %4421 = vmatpush1.msra.mxu1 %v1939_v61  ;;  %v1827_v57 = vld [vmem:[%s12143_s1 + $0x37f0] sm:$0xff]  ;;  %v2076_v48 = vld [vmem:[%s12143_s1 + $0x3fb8] sm:$0xff] }
 0x3e7   :  { %4351 = vmatprep.subr.mxu0 %v1676_v63  ;;  %4422 = vmatprep.subr.mxu1 %v1932_v0  ;;  %v2083_v59 = vld [vmem:[%s12143_s1 + $0x3ff0] sm:$0xff]  ;;  %v1812_v0 = vld [vmem:[%s12143_s1 + $0x3778] sm:$0xff] }
 0x3e8   :  { %4352 = vmatpush1.msra.mxu0 %v1675_v1  ;;  %4423 = vmatpush1.msra.mxu1 %v1931_v2  ;;  %v1819_v61 = vld [vmem:[%s12143_s1 + $0x37b0] sm:$0xff]  ;;  %v2068_v1 = vld [vmem:[%s12143_s1 + $0x3f78] sm:$0xff] }
 0x3e9   :  { %4353 = vmatprep.subr.mxu0 %v1668_v4  ;;  %4424 = vmatprep.subr.mxu1 %v1924_v5  ;;  %v2075_v63 = vld [vmem:[%s12143_s1 + $0x3fb0] sm:$0xff]  ;;  %v1804_v5 = vld [vmem:[%s12143_s1 + $0x3738] sm:$0xff] }
 0x3ea   :  { %4354 = vmatpush1.msra.mxu0 %v1667_v6  ;;  %4425 = vmatpush1.msra.mxu1 %v1923_v8  ;;  %v1811_v2 = vld [vmem:[%s12143_s1 + $0x3770] sm:$0xff]  ;;  %v2060_v6 = vld [vmem:[%s12143_s1 + $0x3f38] sm:$0xff] }
 0x3eb   :  { %4355 = vmatprep.subr.mxu0 %v1660_v7  ;;  %4426 = vmatprep.subr.mxu1 %v1916_v62  ;;  %v2067_v4 = vld [vmem:[%s12143_s1 + $0x3f70] sm:$0xff]  ;;  %v1796_v62 = vld [vmem:[%s12143_s1 + $0x36f8] sm:$0xff] }
 0x3ec   :  { %4356 = vmatpush1.msra.mxu0 %v1659_v11  ;;  %4427 = vmatpush1.msra.mxu1 %v1915_v9  ;;  %v1803_v8 = vld [vmem:[%s12143_s1 + $0x3730] sm:$0xff]  ;;  %v2052_v11 = vld [vmem:[%s12143_s1 + $0x3ef8] sm:$0xff] }
 0x3ed   :  { %4357 = vmatprep.subr.mxu0 %v1652_v10  ;;  %4428 = vmatprep.subr.mxu1 %v1908_v3  ;;  %v2059_v7 = vld [vmem:[%s12143_s1 + $0x3f30] sm:$0xff]  ;;  %v1788_v3 = vld [vmem:[%s12143_s1 + $0x36b8] sm:$0xff] }
 0x3ee   :  { %4358 = vmatpush1.msra.mxu0 %v1651_v12  ;;  %4429 = vmatpush1.msra.mxu1 %v1907_v13  ;;  %v1795_v9 = vld [vmem:[%s12143_s1 + $0x36f0] sm:$0xff]  ;;  %v2044_v12 = vld [vmem:[%s12143_s1 + $0x3eb8] sm:$0xff] }
 0x3ef   :  { %4359 = vmatprep.subr.mxu0 %v1644_v14  ;;  %4430 = vmatprep.subr.mxu1 %v1900_v15  ;;  %v2051_v10 = vld [vmem:[%s12143_s1 + $0x3ef0] sm:$0xff]  ;;  %v1780_v15 = vld [vmem:[%s12143_s1 + $0x3678] sm:$0xff] }
 0x3f0   :  { %4360 = vmatpush1.msra.mxu0 %v1643_v17  ;;  %4431 = vmatpush1.msra.mxu1 %v1899_v18  ;;  %v1787_v13 = vld [vmem:[%s12143_s1 + $0x36b0] sm:$0xff]  ;;  %v2036_v17 = vld [vmem:[%s12143_s1 + $0x3e78] sm:$0xff] }
 0x3f1   :  { %4361 = vmatprep.subr.mxu0 %v1636_v20  ;;  %4432 = vmatprep.subr.mxu1 %v1892_v22  ;;  %v2043_v14 = vld [vmem:[%s12143_s1 + $0x3eb0] sm:$0xff]  ;;  %v1772_v22 = vld [vmem:[%s12143_s1 + $0x3638] sm:$0xff] }
 0x3f2   :  { %4362 = vmatpush1.msra.mxu0 %v1635_v23  ;;  %4433 = vmatpush1.msra.mxu1 %v1891_v24  ;;  %v1779_v18 = vld [vmem:[%s12143_s1 + $0x3670] sm:$0xff]  ;;  %v2028_v23 = vld [vmem:[%s12143_s1 + $0x3e38] sm:$0xff] }
 0x3f3   :  { %4363 = vmatprep.subr.mxu0 %v1628_v27  ;;  %4434 = vmatprep.subr.mxu1 %v1884_v28  ;;  %v2035_v20 = vld [vmem:[%s12143_s1 + $0x3e70] sm:$0xff]  ;;  %v1764_v28 = vld [vmem:[%s12143_s1 + $0x35f8] sm:$0xff] }
 0x3f4   :  { %4364 = vmatpush1.msra.mxu0 %v1627_v30  ;;  %4435 = vmatpush1.msra.mxu1 %v1883_v52  ;;  %v1771_v24 = vld [vmem:[%s12143_s1 + $0x3630] sm:$0xff]  ;;  %v2020_v30 = vld [vmem:[%s12143_s1 + $0x3df8] sm:$0xff] }
 0x3f5   :  { %4365 = vmatprep.subr.mxu0 %v1620_v32  ;;  %4436 = vmatprep.subr.mxu1 %v1876_v33  ;;  %v2027_v27 = vld [vmem:[%s12143_s1 + $0x3e30] sm:$0xff]  ;;  %v1756_v33 = vld [vmem:[%s12143_s1 + $0x35b8] sm:$0xff] }
 0x3f6   :  { %4366 = vmatpush1.msra.mxu0 %v1619_v35  ;;  %4437 = vmatpush1.msra.mxu1 %v1875_v36  ;;  %v1763_v52 = vld [vmem:[%s12143_s1 + $0x35f0] sm:$0xff]  ;;  %v2012_v35 = vld [vmem:[%s12143_s1 + $0x3db8] sm:$0xff] }
 0x3f7   :  { %4367 = vmatprep.subr.mxu0 %v1612_v37  ;;  %4438 = vmatprep.subr.mxu1 %v1868_v26  ;;  %v2019_v32 = vld [vmem:[%s12143_s1 + $0x3df0] sm:$0xff]  ;;  %v1748_v26 = vld [vmem:[%s12143_s1 + $0x3578] sm:$0xff] }
 0x3f8   :  { %4368 = vmatpush1.msra.mxu0 %v1611_v38  ;;  %4439 = vmatpush1.msra.mxu1 %v1867_v16  ;;  %v1755_v36 = vld [vmem:[%s12143_s1 + $0x35b0] sm:$0xff]  ;;  %v2004_v38 = vld [vmem:[%s12143_s1 + $0x3d78] sm:$0xff] }
 0x3f9   :  { %4369 = vmatprep.subr.mxu0 %v1604_v29  ;;  %4440 = vmatprep.subr.mxu1 %v1860_v39  ;;  %v2011_v37 = vld [vmem:[%s12143_s1 + $0x3db0] sm:$0xff]  ;;  %v1740_v39 = vld [vmem:[%s12143_s1 + $0x3538] sm:$0xff] }
 0x3fa   :  { %4370 = vmatpush1.msra.mxu0 %v1603_v40  ;;  %4441 = vmatpush1.msra.mxu1 %v1859_v21  ;;  %v1747_v16 = vld [vmem:[%s12143_s1 + $0x3570] sm:$0xff]  ;;  %v1996_v40 = vld [vmem:[%s12143_s1 + $0x3d38] sm:$0xff] }
 0x3fb   :  { %4371 = vmatprep.subr.mxu0 %v1596_v42  ;;  %4442 = vmatprep.subr.mxu1 %v1852_v44  ;;  %v2003_v29 = vld [vmem:[%s12143_s1 + $0x3d70] sm:$0xff]  ;;  %v1732_v44 = vld [vmem:[%s12143_s1 + $0x34f8] sm:$0xff] }
 0x3fc   :  { %4372 = vmatpush1.msra.mxu0 %v1595_v45  ;;  %4443 = vmatpush1.msra.mxu1 %v1851_v46  ;;  %v1739_v21 = vld [vmem:[%s12143_s1 + $0x3530] sm:$0xff]  ;;  %v1988_v45 = vld [vmem:[%s12143_s1 + $0x3cf8] sm:$0xff] }
 0x3fd   :  { %4373 = vmatprep.subr.mxu0 %v1588_v47  ;;  %4444 = vmatprep.subr.mxu1 %v1844_v49  ;;  %v1995_v42 = vld [vmem:[%s12143_s1 + $0x3d30] sm:$0xff]  ;;  %v1724_v49 = vld [vmem:[%s12143_s1 + $0x34b8] sm:$0xff] }
 0x3fe   :  { %4374 = vmatpush1.msra.mxu0 %v1587_v50  ;;  %4445 = vmatpush1.msra.mxu1 %v1843_v51  ;;  %v1731_v46 = vld [vmem:[%s12143_s1 + $0x34f0] sm:$0xff]  ;;  %v1980_v50 = vld [vmem:[%s12143_s1 + $0x3cb8] sm:$0xff] }
 0x3ff   :  { %4375 = vmatprep.subr.mxu0 %v1580_v53  ;;  %4446 = vmatprep.subr.mxu1 %v1836_v55  ;;  %v1987_v47 = vld [vmem:[%s12143_s1 + $0x3cf0] sm:$0xff]  ;;  %v1716_v55 = vld [vmem:[%s12143_s1 + $0x3478] sm:$0xff] }
 0x400   :  { %4376 = vmatpush1.msra.mxu0 %v1579_v56  ;;  %4447 = vmatpush1.msra.mxu1 %v1835_v54  ;;  %v1723_v51 = vld [vmem:[%s12143_s1 + $0x34b0] sm:$0xff]  ;;  %v1972_v56 = vld [vmem:[%s12143_s1 + $0x3c78] sm:$0xff] }
 0x401   :  { %4377 = vmatprep.subr.mxu0 %v1828_v58  ;;  %4448 = vmatprep.subr.mxu1 %v2084_v43  ;;  %v1979_v53 = vld [vmem:[%s12143_s1 + $0x3cb0] sm:$0xff]  ;;  %v1708_v43 = vld [vmem:[%s12143_s1 + $0x3438] sm:$0xff] }
 0x402   :  { %4378 = vmatpush2.msra.mxu0 %v1827_v57  ;;  %4449 = vmatpush2.msra.mxu1 %v2083_v59  ;;  %v1715_v54 = vld [vmem:[%s12143_s1 + $0x3470] sm:$0xff]  ;;  %v1964_v57 = vld [vmem:[%s12143_s1 + $0x3c38] sm:$0xff] }
 0x403   :  { %4379 = vmatprep.subr.mxu0 %v1820_v60  ;;  %4450 = vmatprep.subr.mxu1 %v2076_v48  ;;  %v1971_v58 = vld [vmem:[%s12143_s1 + $0x3c70] sm:$0xff]  ;;  %v4562_v48 = vld [vmem:[%s12145_s3 + $0x1e8] sm:$0xff] }
 0x404   :  { %4380 = vmatpush2.msra.mxu0 %v1819_v61  ;;  %4451 = vmatpush2.msra.mxu1 %v2075_v63  ;;  %v1707_v59 = vld [vmem:[%s12143_s1 + $0x3430] sm:$0xff]  ;;  %v4564_v61 = vld [vmem:[%s12145_s3 + $0x1f8] sm:$0xff]  ;;  %v4561_v63 = vld [vmem:[%s12145_s3 + $0x1e0] sm:$0xff] }
 0x405   :  { %4381 = vmatprep.subr.mxu0 %v1812_v0  ;;  %4452 = vmatprep.subr.mxu1 %v2068_v1  ;;  %v1963_v60 = vld [vmem:[%s12143_s1 + $0x3c30] sm:$0xff]  ;;  %v4554_v1 = vld [vmem:[%s12145_s3 + $0x1a8] sm:$0xff] }
 0x406   :  { %4382 = vmatpush2.msra.mxu0 %v1811_v2  ;;  %4453 = vmatpush2.msra.mxu1 %v2067_v4  ;;  %v4559_v0 = vld [vmem:[%s12145_s3 + $0x1d0] sm:$0xff]  ;;  %v4556_v2 = vld [vmem:[%s12145_s3 + $0x1b8] sm:$0xff]  ;;  %v4553_v4 = vld [vmem:[%s12145_s3 + $0x1a0] sm:$0xff] }
 0x407   :  { %4383 = vmatprep.subr.mxu0 %v1804_v5  ;;  %4454 = vmatprep.subr.mxu1 %v2060_v6  ;;  %v4555_v5 = vld [vmem:[%s12145_s3 + $0x1b0] sm:$0xff]  ;;  %v4550_v6 = vld [vmem:[%s12145_s3 + $0x188] sm:$0xff] }
 0x408   :  { %4384 = vmatpush2.msra.mxu0 %v1803_v8  ;;  %4455 = vmatpush2.msra.mxu1 %v2059_v7  ;;  %v4552_v8 = vld [vmem:[%s12145_s3 + $0x198] sm:$0xff]  ;;  %v4549_v7 = vld [vmem:[%s12145_s3 + $0x180] sm:$0xff] }
 0x409   :  { %4385 = vmatprep.subr.mxu0 %v1796_v62  ;;  %4456 = vmatprep.subr.mxu1 %v2052_v11  ;;  %v4551_v62 = vld [vmem:[%s12145_s3 + $0x190] sm:$0xff]  ;;  %v4546_v11 = vld [vmem:[%s12145_s3 + $0x168] sm:$0xff] }
 0x40a   :  { %4386 = vmatpush2.msra.mxu0 %v1795_v9  ;;  %4457 = vmatpush2.msra.mxu1 %v2051_v10  ;;  %v4548_v9 = vld [vmem:[%s12145_s3 + $0x178] sm:$0xff]  ;;  %v4545_v10 = vld [vmem:[%s12145_s3 + $0x160] sm:$0xff] }
 0x40b   :  { %4387 = vmatprep.subr.mxu0 %v1788_v3  ;;  %4458 = vmatprep.subr.mxu1 %v2044_v12  ;;  %v4547_v3 = vld [vmem:[%s12145_s3 + $0x170] sm:$0xff]  ;;  %v4542_v12 = vld [vmem:[%s12145_s3 + $0x148] sm:$0xff] }
 0x40c   :  { %4388 = vmatpush2.msra.mxu0 %v1787_v13  ;;  %4459 = vmatpush2.msra.mxu1 %v2043_v14  ;;  %v4544_v13 = vld [vmem:[%s12145_s3 + $0x158] sm:$0xff]  ;;  %v4541_v14 = vld [vmem:[%s12145_s3 + $0x140] sm:$0xff] }
 0x40d   :  { %4389 = vmatprep.subr.mxu0 %v1780_v15  ;;  %4460 = vmatprep.subr.mxu1 %v2036_v17  ;;  %v4543_v15 = vld [vmem:[%s12145_s3 + $0x150] sm:$0xff]  ;;  %v4538_v17 = vld [vmem:[%s12145_s3 + $0x128] sm:$0xff] }
 0x40e   :  { %4390 = vmatpush2.msra.mxu0 %v1779_v18  ;;  %4461 = vmatpush2.msra.mxu1 %v2035_v20  ;;  %v4540_v18 = vld [vmem:[%s12145_s3 + $0x138] sm:$0xff]  ;;  %v4537_v20 = vld [vmem:[%s12145_s3 + $0x120] sm:$0xff] }
 0x40f   :  { %4391 = vmatprep.subr.mxu0 %v1772_v22  ;;  %4462 = vmatprep.subr.mxu1 %v2028_v23  ;;  %v4539_v22 = vld [vmem:[%s12145_s3 + $0x130] sm:$0xff]  ;;  %v4534_v23 = vld [vmem:[%s12145_s3 + $0x108] sm:$0xff] }
 0x410   :  { %4392 = vmatpush2.msra.mxu0 %v1771_v24  ;;  %4463 = vmatpush2.msra.mxu1 %v2027_v27  ;;  %v4536_v24 = vld [vmem:[%s12145_s3 + $0x118] sm:$0xff]  ;;  %v4533_v27 = vld [vmem:[%s12145_s3 + $0x100] sm:$0xff] }
 0x411   :  { %4393 = vmatprep.subr.mxu0 %v1764_v28  ;;  %4464 = vmatprep.subr.mxu1 %v2020_v30  ;;  %v4535_v28 = vld [vmem:[%s12145_s3 + $0x110] sm:$0xff]  ;;  %v4530_v30 = vld [vmem:[%s12145_s3 + $0xe8] sm:$0xff] }
 0x412   :  { %4394 = vmatpush2.msra.mxu0 %v1763_v52  ;;  %4465 = vmatpush2.msra.mxu1 %v2019_v32  ;;  %v4532_v52 = vld [vmem:[%s12145_s3 + $0xf8] sm:$0xff]  ;;  %v4529_v32 = vld [vmem:[%s12145_s3 + $0xe0] sm:$0xff] }
 0x413   :  { %4395 = vmatprep.subr.mxu0 %v1756_v33  ;;  %4466 = vmatprep.subr.mxu1 %v2012_v35  ;;  %v4531_v33 = vld [vmem:[%s12145_s3 + $0xf0] sm:$0xff]  ;;  %v4526_v35 = vld [vmem:[%s12145_s3 + $0xc8] sm:$0xff] }
 0x414   :  { %4396 = vmatpush2.msra.mxu0 %v1755_v36  ;;  %4467 = vmatpush2.msra.mxu1 %v2011_v37  ;;  %v4528_v36 = vld [vmem:[%s12145_s3 + $0xd8] sm:$0xff]  ;;  %v4525_v37 = vld [vmem:[%s12145_s3 + $0xc0] sm:$0xff] }
 0x415   :  { %4397 = vmatprep.subr.mxu0 %v1748_v26  ;;  %4468 = vmatprep.subr.mxu1 %v2004_v38  ;;  %v4527_v26 = vld [vmem:[%s12145_s3 + $0xd0] sm:$0xff]  ;;  %v4522_v38 = vld [vmem:[%s12145_s3 + $0xa8] sm:$0xff] }
 0x416   :  { %4398 = vmatpush2.msra.mxu0 %v1747_v16  ;;  %4469 = vmatpush2.msra.mxu1 %v2003_v29  ;;  %v4524_v16 = vld [vmem:[%s12145_s3 + $0xb8] sm:$0xff]  ;;  %v4521_v29 = vld [vmem:[%s12145_s3 + $0xa0] sm:$0xff] }
 0x417   :  { %4399 = vmatprep.subr.mxu0 %v1740_v39  ;;  %4470 = vmatprep.subr.mxu1 %v1996_v40  ;;  %v4523_v39 = vld [vmem:[%s12145_s3 + $0xb0] sm:$0xff]  ;;  %v4518_v40 = vld [vmem:[%s12145_s3 + $0x88] sm:$0xff] }
 0x418   :  { %4400 = vmatpush2.msra.mxu0 %v1739_v21  ;;  %4471 = vmatpush2.msra.mxu1 %v1995_v42  ;;  %v4520_v21 = vld [vmem:[%s12145_s3 + $0x98] sm:$0xff]  ;;  %v4517_v42 = vld [vmem:[%s12145_s3 + $0x80] sm:$0xff] }
 0x419   :  { %4401 = vmatprep.subr.mxu0 %v1732_v44  ;;  %4472 = vmatprep.subr.mxu1 %v1988_v45  ;;  %v4519_v44 = vld [vmem:[%s12145_s3 + $0x90] sm:$0xff]  ;;  %v4514_v45 = vld [vmem:[%s12145_s3 + $0x68] sm:$0xff] }
 0x41a   :  { %4402 = vmatpush2.msra.mxu0 %v1731_v46  ;;  %4473 = vmatpush2.msra.mxu1 %v1987_v47  ;;  %v4516_v46 = vld [vmem:[%s12145_s3 + $0x78] sm:$0xff]  ;;  %v4513_v47 = vld [vmem:[%s12145_s3 + $0x60] sm:$0xff] }
 0x41b   :  { %4403 = vmatprep.subr.mxu0 %v1724_v49  ;;  %4474 = vmatprep.subr.mxu1 %v1980_v50  ;;  %v4515_v49 = vld [vmem:[%s12145_s3 + $0x70] sm:$0xff]  ;;  %v4510_v50 = vld [vmem:[%s12145_s3 + $0x48] sm:$0xff] }
 0x41c   :  { %4404 = vmatpush2.msra.mxu0 %v1723_v51  ;;  %4475 = vmatpush2.msra.mxu1 %v1979_v53  ;;  %v4512_v51 = vld [vmem:[%s12145_s3 + $0x58] sm:$0xff]  ;;  %v4509_v53 = vld [vmem:[%s12145_s3 + $0x40] sm:$0xff] }
 0x41d   :  { %4405 = vmatprep.subr.mxu0 %v1716_v55  ;;  %4476 = vmatprep.subr.mxu1 %v1972_v56  ;;  %v4511_v55 = vld [vmem:[%s12145_s3 + $0x50] sm:$0xff]  ;;  %v4506_v56 = vld [vmem:[%s12145_s3 + $0x28] sm:$0xff] }
 0x41e   :  { %4406 = vmatpush2.msra.mxu0 %v1715_v54  ;;  %4477 = vmatpush2.msra.mxu1 %v1971_v58  ;;  %v4508_v54 = vld [vmem:[%s12145_s3 + $0x38] sm:$0xff]  ;;  %v4505_v58 = vld [vmem:[%s12145_s3 + $0x20] sm:$0xff] }
 0x41f   :  { %4407 = vmatprep.subr.mxu0 %v1708_v43  ;;  %4478 = vmatprep.subr.mxu1 %v1964_v57  ;;  %v4507_v43 = vld [vmem:[%s12145_s3 + $0x30] sm:$0xff]  ;;  %v4502_v57 = vld [vmem:[%s12145_s3 + $0x8] sm:$0xff] }
 0x420   :  { %4408 = vmatpush2.msra.mxu0 %v1707_v59  ;;  %4409 = vmatprep.mubr.f32.mxu0 %v6812_v31  ;;  %v4560_v31 = vld [vmem:[%s12145_s3 + $0x1d8] sm:$0xff] }
 0x421   :  { %4479 = vmatpush2.msra.mxu1 %v1963_v60  ;;  %4480 = vmatprep.mubr.f32.mxu1 %v6822_v34  ;;  %v4557_v34 = vld [vmem:[%s12145_s3 + $0x1c0] sm:$0xff]  ;;  %v4504_v59 = vld [vmem:[%s12145_s3 + $0x18] sm:$0xff] }
 0x422   :  { %4410 = vmatmul.mubr.f32.vlgmr.msra.gmra.mxu0 %v6781_v19  ;;  %4481 = vmatmul.mubr.f32.vlgmr.msra.gmra.mxu1 %v6796_v25  ;;  %v4563_v19 = vld [vmem:[%s12145_s3 + $0x1f0] sm:$0xff]  ;;  %v4558_v25 = vld [vmem:[%s12145_s3 + $0x1c8] sm:$0xff]  ;;  %v4501_v60 = vld [vmem:[%s12145_s3] sm:$0xff] }
 0x423   :  { %4651 = vmatprep.subr.mxu0 %v4562_v48  ;;  %4722 = vmatprep.subr.mxu1 %v4564_v61  ;;  %v4503_v48 = vld [vmem:[%s12145_s3 + $0x10] sm:$0xff]  ;;  %v4626_v61 = vld [vmem:[%s12145_s3 + $0x3e8] sm:$0xff] }
 0x424   :  { %4652 = vmatpush1.msra.mxu0 %v4561_v63  ;;  %4723 = vmatpush1.msra.mxu1 %v4563_v19  ;;  %v4628_v63 = vld [vmem:[%s12145_s3 + $0x3f8] sm:$0xff]  ;;  %v4625_v19 = vld [vmem:[%s12145_s3 + $0x3e0] sm:$0xff] }
 0x425   :  { %4653 = vmatprep.subr.mxu0 %v4558_v25  ;;  %4724 = vmatprep.subr.mxu1 %v4560_v31  ;;  %v4627_v25 = vld [vmem:[%s12145_s3 + $0x3f0] sm:$0xff]  ;;  %v4622_v31 = vld [vmem:[%s12145_s3 + $0x3c8] sm:$0xff] }
 0x426   :  { %4654 = vmatpush1.msra.mxu0 %v4557_v34  ;;  %4725 = vmatpush1.msra.mxu1 %v4559_v0  ;;  %v4624_v34 = vld [vmem:[%s12145_s3 + $0x3d8] sm:$0xff]  ;;  %v4621_v0 = vld [vmem:[%s12145_s3 + $0x3c0] sm:$0xff] }
 0x427   :  { %4655 = vmatprep.subr.mxu0 %v4554_v1  ;;  %4726 = vmatprep.subr.mxu1 %v4556_v2  ;;  %v4623_v1 = vld [vmem:[%s12145_s3 + $0x3d0] sm:$0xff]  ;;  %v4618_v2 = vld [vmem:[%s12145_s3 + $0x3a8] sm:$0xff] }
 0x428   :  { %4656 = vmatpush1.msra.mxu0 %v4553_v4  ;;  %4727 = vmatpush1.msra.mxu1 %v4555_v5  ;;  %v4620_v4 = vld [vmem:[%s12145_s3 + $0x3b8] sm:$0xff]  ;;  %v4617_v5 = vld [vmem:[%s12145_s3 + $0x3a0] sm:$0xff] }
 0x429   :  { %4657 = vmatprep.subr.mxu0 %v4550_v6  ;;  %4728 = vmatprep.subr.mxu1 %v4552_v8  ;;  %v4619_v6 = vld [vmem:[%s12145_s3 + $0x3b0] sm:$0xff]  ;;  %v4614_v8 = vld [vmem:[%s12145_s3 + $0x388] sm:$0xff] }
 0x42a   :  { %4658 = vmatpush1.msra.mxu0 %v4549_v7  ;;  %4729 = vmatpush1.msra.mxu1 %v4551_v62  ;;  %v4616_v7 = vld [vmem:[%s12145_s3 + $0x398] sm:$0xff]  ;;  %v4613_v62 = vld [vmem:[%s12145_s3 + $0x380] sm:$0xff] }
 0x42b   :  { %4659 = vmatprep.subr.mxu0 %v4546_v11  ;;  %4730 = vmatprep.subr.mxu1 %v4548_v9  ;;  %v4615_v11 = vld [vmem:[%s12145_s3 + $0x390] sm:$0xff]  ;;  %v4610_v9 = vld [vmem:[%s12145_s3 + $0x368] sm:$0xff] }
 0x42c   :  { %4660 = vmatpush1.msra.mxu0 %v4545_v10  ;;  %4731 = vmatpush1.msra.mxu1 %v4547_v3  ;;  %v4612_v10 = vld [vmem:[%s12145_s3 + $0x378] sm:$0xff]  ;;  %v4609_v3 = vld [vmem:[%s12145_s3 + $0x360] sm:$0xff] }
 0x42d   :  { %4661 = vmatprep.subr.mxu0 %v4542_v12  ;;  %4732 = vmatprep.subr.mxu1 %v4544_v13  ;;  %v4611_v12 = vld [vmem:[%s12145_s3 + $0x370] sm:$0xff]  ;;  %v4606_v13 = vld [vmem:[%s12145_s3 + $0x348] sm:$0xff] }
 0x42e   :  { %4662 = vmatpush1.msra.mxu0 %v4541_v14  ;;  %4733 = vmatpush1.msra.mxu1 %v4543_v15  ;;  %v4608_v14 = vld [vmem:[%s12145_s3 + $0x358] sm:$0xff]  ;;  %v4605_v15 = vld [vmem:[%s12145_s3 + $0x340] sm:$0xff] }
 0x42f   :  { %4663 = vmatprep.subr.mxu0 %v4538_v17  ;;  %4734 = vmatprep.subr.mxu1 %v4540_v18  ;;  %v4607_v17 = vld [vmem:[%s12145_s3 + $0x350] sm:$0xff]  ;;  %v4602_v18 = vld [vmem:[%s12145_s3 + $0x328] sm:$0xff] }
 0x430   :  { %4664 = vmatpush1.msra.mxu0 %v4537_v20  ;;  %4735 = vmatpush1.msra.mxu1 %v4539_v22  ;;  %v4604_v20 = vld [vmem:[%s12145_s3 + $0x338] sm:$0xff]  ;;  %v4601_v22 = vld [vmem:[%s12145_s3 + $0x320] sm:$0xff] }
 0x431   :  { %4665 = vmatprep.subr.mxu0 %v4534_v23  ;;  %4736 = vmatprep.subr.mxu1 %v4536_v24  ;;  %v4603_v23 = vld [vmem:[%s12145_s3 + $0x330] sm:$0xff]  ;;  %v4598_v24 = vld [vmem:[%s12145_s3 + $0x308] sm:$0xff] }
 0x432   :  { %4666 = vmatpush1.msra.mxu0 %v4533_v27  ;;  %4737 = vmatpush1.msra.mxu1 %v4535_v28  ;;  %v4600_v27 = vld [vmem:[%s12145_s3 + $0x318] sm:$0xff]  ;;  %v4597_v28 = vld [vmem:[%s12145_s3 + $0x300] sm:$0xff] }
 0x433   :  { %4667 = vmatprep.subr.mxu0 %v4530_v30  ;;  %4738 = vmatprep.subr.mxu1 %v4532_v52  ;;  %v4599_v30 = vld [vmem:[%s12145_s3 + $0x310] sm:$0xff]  ;;  %v4594_v52 = vld [vmem:[%s12145_s3 + $0x2e8] sm:$0xff] }
 0x434   :  { %4668 = vmatpush1.msra.mxu0 %v4529_v32  ;;  %4739 = vmatpush1.msra.mxu1 %v4531_v33  ;;  %v4596_v32 = vld [vmem:[%s12145_s3 + $0x2f8] sm:$0xff]  ;;  %v4593_v33 = vld [vmem:[%s12145_s3 + $0x2e0] sm:$0xff] }
 0x435   :  { %4669 = vmatprep.subr.mxu0 %v4526_v35  ;;  %4740 = vmatprep.subr.mxu1 %v4528_v36  ;;  %v4595_v35 = vld [vmem:[%s12145_s3 + $0x2f0] sm:$0xff]  ;;  %v4590_v36 = vld [vmem:[%s12145_s3 + $0x2c8] sm:$0xff] }
 0x436   :  { %4670 = vmatpush1.msra.mxu0 %v4525_v37  ;;  %4741 = vmatpush1.msra.mxu1 %v4527_v26  ;;  %v4592_v37 = vld [vmem:[%s12145_s3 + $0x2d8] sm:$0xff]  ;;  %v4589_v26 = vld [vmem:[%s12145_s3 + $0x2c0] sm:$0xff] }
 0x437   :  { %4671 = vmatprep.subr.mxu0 %v4522_v38  ;;  %4742 = vmatprep.subr.mxu1 %v4524_v16  ;;  %v4591_v38 = vld [vmem:[%s12145_s3 + $0x2d0] sm:$0xff]  ;;  %v4586_v16 = vld [vmem:[%s12145_s3 + $0x2a8] sm:$0xff] }
 0x438   :  { %4672 = vmatpush1.msra.mxu0 %v4521_v29  ;;  %4743 = vmatpush1.msra.mxu1 %v4523_v39  ;;  %v4588_v29 = vld [vmem:[%s12145_s3 + $0x2b8] sm:$0xff]  ;;  %v4585_v39 = vld [vmem:[%s12145_s3 + $0x2a0] sm:$0xff] }
 0x439   :  { %4673 = vmatprep.subr.mxu0 %v4518_v40  ;;  %4744 = vmatprep.subr.mxu1 %v4520_v21  ;;  %v4587_v40 = vld [vmem:[%s12145_s3 + $0x2b0] sm:$0xff]  ;;  %v4582_v21 = vld [vmem:[%s12145_s3 + $0x288] sm:$0xff] }
 0x43a   :  { %4674 = vmatpush1.msra.mxu0 %v4517_v42  ;;  %4745 = vmatpush1.msra.mxu1 %v4519_v44  ;;  %v4584_v42 = vld [vmem:[%s12145_s3 + $0x298] sm:$0xff]  ;;  %v4581_v44 = vld [vmem:[%s12145_s3 + $0x280] sm:$0xff] }
 0x43b   :  { %4675 = vmatprep.subr.mxu0 %v4514_v45  ;;  %4746 = vmatprep.subr.mxu1 %v4516_v46  ;;  %v4583_v45 = vld [vmem:[%s12145_s3 + $0x290] sm:$0xff]  ;;  %v4578_v46 = vld [vmem:[%s12145_s3 + $0x268] sm:$0xff] }
 0x43c   :  { %4676 = vmatpush1.msra.mxu0 %v4513_v47  ;;  %4747 = vmatpush1.msra.mxu1 %v4515_v49  ;;  %v4580_v47 = vld [vmem:[%s12145_s3 + $0x278] sm:$0xff]  ;;  %v4577_v49 = vld [vmem:[%s12145_s3 + $0x260] sm:$0xff] }
 0x43d   :  { %4677 = vmatprep.subr.mxu0 %v4510_v50  ;;  %4748 = vmatprep.subr.mxu1 %v4512_v51  ;;  %v4579_v50 = vld [vmem:[%s12145_s3 + $0x270] sm:$0xff]  ;;  %v4574_v51 = vld [vmem:[%s12145_s3 + $0x248] sm:$0xff] }
 0x43e   :  { %4678 = vmatpush1.msra.mxu0 %v4509_v53  ;;  %4749 = vmatpush1.msra.mxu1 %v4511_v55  ;;  %v4576_v53 = vld [vmem:[%s12145_s3 + $0x258] sm:$0xff]  ;;  %v4573_v55 = vld [vmem:[%s12145_s3 + $0x240] sm:$0xff] }
 0x43f   :  { %4679 = vmatprep.subr.mxu0 %v4506_v56  ;;  %4750 = vmatprep.subr.mxu1 %v4508_v54  ;;  %v4575_v56 = vld [vmem:[%s12145_s3 + $0x250] sm:$0xff]  ;;  %v4570_v54 = vld [vmem:[%s12145_s3 + $0x228] sm:$0xff] }
 0x440   :  { %4680 = vmatpush1.msra.mxu0 %v4505_v58  ;;  %4751 = vmatpush1.msra.mxu1 %v4507_v43  ;;  %v4572_v58 = vld [vmem:[%s12145_s3 + $0x238] sm:$0xff]  ;;  %v4569_v43 = vld [vmem:[%s12145_s3 + $0x220] sm:$0xff] }
 0x441   :  { %4681 = vmatprep.subr.mxu0 %v4502_v57  ;;  %4752 = vmatprep.subr.mxu1 %v4504_v59  ;;  %v4571_v57 = vld [vmem:[%s12145_s3 + $0x230] sm:$0xff]  ;;  %v4566_v59 = vld [vmem:[%s12145_s3 + $0x208] sm:$0xff] }
 0x442   :  { %4682 = vmatpush1.msra.mxu0 %v4501_v60  ;;  %4753 = vmatpush1.msra.mxu1 %v4503_v48  ;;  %v4568_v60 = vld [vmem:[%s12145_s3 + $0x218] sm:$0xff]  ;;  %v4565_v48 = vld [vmem:[%s12145_s3 + $0x200] sm:$0xff] }
 0x443   :  { %4683 = vmatprep.subr.mxu0 %v4626_v61  ;;  %4754 = vmatprep.subr.mxu1 %v4628_v63  ;;  %v4567_v61 = vld [vmem:[%s12145_s3 + $0x210] sm:$0xff]  ;;  %v12153_v63 = vmov 0.0  }
 0x444   :  { %4684 = vmatpush2.msra.mxu0 %v4625_v19  ;;  %4755 = vmatpush2.msra.mxu1 %v4627_v25  ;;  %v11870_v19 = vpop.f32.mrf.mxu0  ;;  %v11872_v25 = vpop.f32.mrf.mxu1 }
 0x445   :  { %4685 = vmatprep.subr.mxu0 %v4622_v31  ;;  %4756 = vmatprep.subr.mxu1 %v4624_v34 }
 0x446   :  { %4686 = vmatpush2.msra.mxu0 %v4621_v0  ;;  %4757 = vmatpush2.msra.mxu1 %v4623_v1  ;;  %v11874_v31 = vpop.f32.mrf.mxu0  ;;  %v11878_v0 = vpop.f32.mrf.mxu1 }
 0x447   :  { %4687 = vmatprep.subr.mxu0 %v4618_v2  ;;  %4758 = vmatprep.subr.mxu1 %v4620_v4 }
 0x448   :  { %4688 = vmatpush2.msra.mxu0 %v4617_v5  ;;  %4759 = vmatpush2.msra.mxu1 %v4619_v6  ;;  %v11876_v34 = vpop.f32.mrf.mxu0  ;;  %v11880_v1 = vpop.f32.mrf.mxu1 }
 0x449   :  { %4689 = vmatprep.subr.mxu0 %v4614_v8  ;;  %4760 = vmatprep.subr.mxu1 %v4616_v7 }
 0x44a   :  { %4690 = vmatpush2.msra.mxu0 %v4613_v62  ;;  %4761 = vmatpush2.msra.mxu1 %v4615_v11  ;;  %v11882_v2 = vpop.f32.mrf.mxu0  ;;  %v11886_v5 = vpop.f32.mrf.mxu1 }
 0x44b   :  { %4691 = vmatprep.subr.mxu0 %v4610_v9  ;;  %4762 = vmatprep.subr.mxu1 %v4612_v10 }
 0x44c   :  { %4692 = vmatpush2.msra.mxu0 %v4609_v3  ;;  %4763 = vmatpush2.msra.mxu1 %v4611_v12  ;;  %v11884_v4 = vpop.f32.mrf.mxu0  ;;  %v11888_v6 = vpop.f32.mrf.mxu1 }
 0x44d   :  { %4693 = vmatprep.subr.mxu0 %v4606_v13  ;;  %4764 = vmatprep.subr.mxu1 %v4608_v14 }
 0x44e   :  { %4694 = vmatpush2.msra.mxu0 %v4605_v15  ;;  %4765 = vmatpush2.msra.mxu1 %v4607_v17  ;;  %v11890_v8 = vpop.f32.mrf.mxu0  ;;  %v11894_v62 = vpop.f32.mrf.mxu1 }
 0x44f   :  { %4695 = vmatprep.subr.mxu0 %v4602_v18  ;;  %4766 = vmatprep.subr.mxu1 %v4604_v20 }
 0x450   :  { %4696 = vmatpush2.msra.mxu0 %v4601_v22  ;;  %4767 = vmatpush2.msra.mxu1 %v4603_v23  ;;  %v11892_v7 = vpop.f32.mrf.mxu0  ;;  %v11896_v11 = vpop.f32.mrf.mxu1 }
 0x451   :  { %4697 = vmatprep.subr.mxu0 %v4598_v24  ;;  %4768 = vmatprep.subr.mxu1 %v4600_v27  ;;  %12161 = vst [vmem:[#allocation6_spill] sm:$0xff] %v11892_v7  ;;  %12162 = vst [vmem:[#allocation7_spill] sm:$0xff] %v11896_v11 }
 0x452   :  { %4698 = vmatpush2.msra.mxu0 %v4597_v28  ;;  %4769 = vmatpush2.msra.mxu1 %v4599_v30  ;;  %v11898_v9 = vpop.f32.mrf.mxu0  ;;  %v11900_v3 = vpop.f32.mrf.mxu1 }
 0x453   :  { %4699 = vmatprep.subr.mxu0 %v4594_v52  ;;  %4770 = vmatprep.subr.mxu1 %v4596_v32  ;;  %12163 = vst [vmem:[#allocation8_spill] sm:$0xff] %v11898_v9  ;;  %12164 = vst [vmem:[#allocation9_spill] sm:$0xff] %v11900_v3 }
 0x454   :  { %4700 = vmatpush2.msra.mxu0 %v4593_v33  ;;  %4771 = vmatpush2.msra.mxu1 %v4595_v35  ;;  %v2849_v10 = vpop.f32.mrf.mxu0  ;;  %v2920_v12 = vpop.f32.mrf.mxu1 }
 0x455   :  { %4701 = vmatprep.subr.mxu0 %v4590_v36  ;;  %4772 = vmatprep.subr.mxu1 %v4592_v37 }
 0x456   :  { %4702 = vmatpush2.msra.mxu0 %v4589_v26  ;;  %4773 = vmatpush2.msra.mxu1 %v4591_v38  ;;  %v2851_v13 = vpop.f32.mrf.mxu0  ;;  %v2922_v15 = vpop.f32.mrf.mxu1 }
 0x457   :  { %4703 = vmatprep.subr.mxu0 %v4586_v16  ;;  %4774 = vmatprep.subr.mxu1 %v4588_v29 }
 0x458   :  { %4704 = vmatpush2.msra.mxu0 %v4585_v39  ;;  %4775 = vmatpush2.msra.mxu1 %v4587_v40  ;;  %v11902_v14 = vpop.f32.mrf.mxu0  ;;  %v11904_v17 = vpop.f32.mrf.mxu1 }
 0x459   :  { %4705 = vmatprep.subr.mxu0 %v4582_v21  ;;  %4776 = vmatprep.subr.mxu1 %v4584_v42  ;;  %v12152_v42 = vsub.s32 3, %v5509_v41 }
 0x45a   :  { %4706 = vmatpush2.msra.mxu0 %v4581_v44  ;;  %4777 = vmatpush2.msra.mxu1 %v4583_v45  ;;  %v2993_v18 = vpop.f32.mrf.mxu0  ;;  %v11908_v22 = vpop.f32.mrf.mxu1  ;;  %v12155_v44 = vsub.s32 2, %v5509_v41  ;;  %v2105_v45 = vsub.s32 4, %v5509_v41 }
 0x45b   :  { %4707 = vmatprep.subr.mxu0 %v4578_v46  ;;  %4778 = vmatprep.subr.mxu1 %v4580_v47  ;;  %v12156_v47 = vsub.s32 1, %v5509_v41 }
 0x45c   :  { %4708 = vmatpush2.msra.mxu0 %v4577_v49  ;;  %4779 = vmatpush2.msra.mxu1 %v4579_v50  ;;  %v11906_v20 = vpop.f32.mrf.mxu0  ;;  %v11910_v23 = vpop.f32.mrf.mxu1  ;;  %v2109_v49 = vsub.s32 5, %v5509_v41  ;;  %v2085_v50 = vld [vmem:[%s12144_s2] sm:$0xff] }
 0x45d   :  { %4709 = vmatprep.subr.mxu0 %v4574_v51  ;;  %4780 = vmatprep.subr.mxu1 %v4576_v53  ;;  %v12159_v51 = vsub.s32 0, %v5509_v41 }
 0x45e   :  { %4710 = vmatpush2.msra.mxu0 %v4573_v55  ;;  %4781 = vmatpush2.msra.mxu1 %v4575_v56  ;;  %v11912_v24 = vpop.f32.mrf.mxu0  ;;  %v11916_v28 = vpop.f32.mrf.mxu1  ;;  %v2102_v55 = vrot.slane %v2085_v50, %v12152_v42  ;;  %v2113_v56 = vsub.s32 6, %v5509_v41 }
 0x45f   :  { %4711 = vmatprep.subr.mxu0 %v4570_v54  ;;  %4782 = vmatprep.subr.mxu1 %v4572_v58  ;;  %v2098_v54 = vrot.slane %v2085_v50, %v12155_v44  ;;  %v2106_v58 = vrot.slane %v2085_v50, %v2105_v45 }
 0x460   :  { %4712 = vmatpush2.msra.mxu0 %v4569_v43  ;;  %4783 = vmatpush2.msra.mxu1 %v4571_v57  ;;  %v11914_v27 = vpop.f32.mrf.mxu0  ;;  %v11918_v30 = vpop.f32.mrf.mxu1  ;;  %v2114_v11 = vrot.slane %v2085_v50, %v2113_v56 }
 0x461   :  { %4713 = vmatprep.subr.mxu0 %v4566_v59  ;;  %4784 = vmatprep.subr.mxu1 %v4568_v60  ;;  %12165 = vst [vmem:[#allocation10_spill] sm:$0xff] %v11918_v30  ;;  %v2094_v59 = vrot.slane %v2085_v50, %v12156_v47  ;;  %v2110_v60 = vrot.slane %v2085_v50, %v2109_v49 }
 0x462   :  { %4714 = vmatpush2.msra.mxu0 %v4565_v48  ;;  %4785 = vmatpush2.msra.mxu1 %v4567_v61  ;;  %v11920_v52 = vpop.f32.mrf.mxu0  ;;  %v11922_v33 = vpop.f32.mrf.mxu1  ;;  %v2117_v48 = vsub.s32 7, %v5509_v41  ;;  %v2090_v61 = vrot.slane %v2085_v50, %v12159_v51  ;;  %v2850_v3 = vadd.f32 %v2849_v10, %v2098_v54 }
 0x463   :  { %5047 = vmatprep.subr.mxu0 %v12153_v63  ;;  %5082 = vmatprep.subr.mxu1 %v12153_v63  ;;  %12166 = vst [vmem:[#allocation11_spill] sm:$0xff] %v11922_v33  ;;  %v2852_v63 = vadd.f32 %v2851_v13, %v2102_v55  ;;  %v2284_v45 = vadd.f32 %v11874_v31, %v2094_v59 }
 0x464   :  { %v3417_v32 = vpop.f32.mrf.mxu0  ;;  %v3488_v35 = vpop.f32.mrf.mxu1  ;;  %v2118_v33 = vrot.slane %v2085_v50, %v2117_v48  ;;  %v2282_v7 = vadd.f32 %v11870_v19, %v2090_v61 }
 0x465   :  { %v3418_v30 = vadd.f32 %v3417_v32, %v2106_v58  ;;  %v2355_v13 = vadd.f32 %v11878_v0, %v2284_v45 }
 0x466   :  { %v3419_v36 = vpop.f32.mrf.mxu0  ;;  %v3490_v26 = vpop.f32.mrf.mxu1  ;;  %v2353_v56 = vadd.f32 %v11872_v25, %v2282_v7 }
 0x467   :  { %v3489_v41 = vadd.f32 %v3488_v35, %v3418_v30  ;;  %v2426_v19 = vadd.f32 %v11882_v2, %v2355_v13 }
 0x468   :  { %v3559_v37 = vpop.f32.mrf.mxu0  ;;  %v3630_v38 = vpop.f32.mrf.mxu1  ;;  %v12175_v13 = vld [vmem:[#allocation10_spill] sm:$0xff] }
 0x469   :  { %v2497_v7 = vadd.f32 %v11886_v5, %v2426_v19  ;;  %v12178_v19 = vld [vmem:[#allocation7_spill] sm:$0xff] }
 0x46a   :  { %v3561_v16 = vpop.f32.mrf.mxu0  ;;  %v3632_v39 = vpop.f32.mrf.mxu1 }
 0x46c   :  { %v11924_v29 = vpop.f32.mrf.mxu0  ;;  %v11926_v40 = vpop.f32.mrf.mxu1 }
 0x46e   :  { %v11928_v21 = vpop.f32.mrf.mxu0  ;;  %v11941_v53 = vpop.f32.mrf.mxu1 }
 0x470   :  { %v11933_v46 = vpop.f32.mrf.mxu0  ;;  %v11948_v43 = vpop.f32.mrf.mxu1 }
 0x471   :  { %12167 = vst [vmem:[#allocation12_spill] sm:$0xff] %v11933_v46  ;;  %12168 = vst [vmem:[#allocation13_spill] sm:$0xff] %v11948_v43  ;;  %v3420_v43 = vadd.f32 %v3419_v36, %v2110_v60  ;;  %v2921_v46 = vadd.f32 %v2920_v12, %v2850_v3  ;;  %v3560_v36 = vadd.f32 %v3559_v37, %v3489_v41 }
 0x472   :  { %v11950_v57 = vpop.f32.mrf.mxu0  ;;  %v11957_v44 = vpop.f32.mrf.mxu1 }
 0x473   :  { %12169 = vst [vmem:[#allocation14_spill] sm:$0xff] %v11950_v57  ;;  %v2923_v57 = vadd.f32 %v2922_v15, %v2852_v63  ;;  %v3491_v10 = vadd.f32 %v3490_v26, %v3420_v43  ;;  %v2992_v31 = vadd.f32 %v11902_v14, %v2921_v46  ;;  %v2424_v63 = vadd.f32 %v11876_v34, %v2353_v56  ;;  %v12171_v43 = vld [vmem:[#allocation8_spill] sm:$0xff] }
 0x474   :  { %v3985_v42 = vpop.f32.mrf.mxu0  ;;  %v4056_v47 = vpop.f32.mrf.mxu1  ;;  %v3631_v30 = vadd.f32 %v3630_v38, %v3560_v36 }
 0x475   :  { %v3986_v9 = vadd.f32 %v3985_v42, %v2114_v11  ;;  %v2994_v55 = vadd.f32 %v2993_v18, %v2923_v57  ;;  %v3562_v54 = vadd.f32 %v3561_v16, %v3491_v10  ;;  %v3063_v18 = vadd.f32 %v11904_v17, %v2992_v31 }
 0x476   :  { %v3987_v49 = vpop.f32.mrf.mxu0  ;;  %v4058_v50 = vpop.f32.mrf.mxu1 }
 0x477   :  { %v3988_v32 = vadd.f32 %v3987_v49, %v2118_v33  ;;  %v4057_v58 = vadd.f32 %v4056_v47, %v3986_v9  ;;  %v3065_v12 = vadd.f32 %v11908_v22, %v2994_v55  ;;  %v3633_v14 = vadd.f32 %v3632_v39, %v3562_v54 }
 0x478   :  { %v4127_v51 = vpop.f32.mrf.mxu0  ;;  %v4198_v11 = vpop.f32.mrf.mxu1  ;;  %v2495_v9 = vadd.f32 %v11880_v1, %v2424_v63  ;;  %v3134_v34 = vadd.f32 %v11906_v20, %v3063_v18  ;;  %v3702_v33 = vadd.f32 %v11924_v29, %v3631_v30  ;;  %v2568_v22 = vadd.f32 %v11890_v8, %v2497_v7  ;;  %v12170_v47 = vld [vmem:[#allocation12_spill] sm:$0xff]  ;;  %v12176_v55 = vld [vmem:[#allocation13_spill] sm:$0xff] }
 0x479   :  { %v4059_v0 = vadd.f32 %v4058_v50, %v3988_v32  ;;  %v4128_v15 = vadd.f32 %v4127_v51, %v4057_v58  ;;  %v3136_v41 = vadd.f32 %v11912_v24, %v3065_v12  ;;  %v3704_v37 = vadd.f32 %v11928_v21, %v3633_v14  ;;  %v12177_v32 = vld [vmem:[#allocation9_spill] sm:$0xff] }
 0x47a   :  { %v4129_v3 = vpop.f32.mrf.mxu0  ;;  %v4200_v35 = vpop.f32.mrf.mxu1  ;;  %v2566_v26 = vadd.f32 %v11884_v4, %v2495_v9  ;;  %v3205_v1 = vadd.f32 %v11910_v23, %v3134_v34  ;;  %v3773_v20 = vadd.f32 %v11926_v40, %v3702_v33  ;;  %v2639_v29 = vadd.f32 %v11894_v62, %v2568_v22  ;;  %v12172_v59 = vld [vmem:[#allocation14_spill] sm:$0xff]  ;;  %v4816_v34 = vld [vmem:[%s12147_s5 + $0x78] sm:$0xff] }
 0x47b   :  { %v4130_v2 = vadd.f32 %v4129_v3, %v4059_v0  ;;  %v4199_v17 = vadd.f32 %v4198_v11, %v4128_v15  ;;  %v3207_v24 = vadd.f32 %v11916_v28, %v3136_v41  ;;  %v3775_v8 = vadd.f32 %v11941_v53, %v3704_v37  ;;  %v12173_v40 = vld [vmem:[#allocation6_spill] sm:$0xff]  ;;  %v4813_v37 = vld [vmem:[%s12147_s5 + $0x60] sm:$0xff] }
 0x47c   :  { %v2637_v46 = vadd.f32 %v11888_v6, %v2566_v26  ;;  %v3276_v4 = vadd.f32 %v11914_v27, %v3205_v1  ;;  %v3844_v51 = vadd.f32 %v12170_v47, %v3773_v20  ;;  %v2710_v57 = vadd.f32 %v12171_v43, %v2639_v29  ;;  %v4815_v33 = vld [vmem:[%s12147_s5 + $0x70] sm:$0xff]  ;;  %v4814_v22 = vld [vmem:[%s12147_s5 + $0x68] sm:$0xff]  ;;  %v4805_v1 = vld [vmem:[%s12147_s5 + $0x20] sm:$0xff] }
 0x47d   :  { %v4201_v16 = vadd.f32 %v4200_v35, %v4130_v2  ;;  %v3278_v42 = vadd.f32 %v11920_v52, %v3207_v24  ;;  %v3846_v23 = vadd.f32 %v12172_v59, %v3775_v8  ;;  %v12174_v52 = vld [vmem:[#allocation11_spill] sm:$0xff]  ;;  %v12179_v35 = vmov 0.0   ;;  %v4801_v8 = vld [vmem:[%s12147_s5] sm:$0xff]  ;;  %v4904_v43 = vld [vmem:[%s12149_s7 + $0x48] sm:$0xff] }
 0x47e   :  { %v2708_v48 = vadd.f32 %v12173_v40, %v2637_v46  ;;  %v3347_v6 = vadd.f32 %v12175_v13, %v3276_v4  ;;  %v3915_v27 = vadd.f32 %v12176_v55, %v3844_v51  ;;  %v2781_v56 = vadd.f32 %v12177_v32, %v2710_v57  ;;  %v4811_v26 = vld [vmem:[%s12147_s5 + $0x50] sm:$0xff]  ;;  %v4808_v24 = vld [vmem:[%s12147_s5 + $0x38] sm:$0xff]  ;;  %v4908_v4 = vld [vmem:[%s12149_s7 + $0x68] sm:$0xff] }
 0x47f   :  { %v3349_v45 = vadd.f32 %v12174_v52, %v3278_v42  ;;  %v3917_v31 = vadd.f32 %v11957_v44, %v3846_v23  ;;  %v4804_v20 = vld [vmem:[%s12147_s5 + $0x18] sm:$0xff]  ;;  %v4803_v29 = vld [vmem:[%s12147_s5 + $0x10] sm:$0xff]  ;;  %v4802_v42 = vld [vmem:[%s12147_s5 + $0x8] sm:$0xff] }
 0x480   :  { %v2779_v54 = vadd.f32 %v12178_v19, %v2708_v48  ;;  %v4489_v12 = vmax.f32 %v3347_v6, 0.0  ;;  %v4491_v0 = vmax.f32 %v3915_v27, 0.0  ;;  %v4488_v15 = vmax.f32 %v2781_v56, 0.0  ;;  %v4909_v46 = vld [vmem:[%s12149_s7 + $0x70] sm:$0xff]  ;;  %v4907_v47 = vld [vmem:[%s12149_s7 + $0x60] sm:$0xff]  ;;  %v4906_v51 = vld [vmem:[%s12149_s7 + $0x58] sm:$0xff] }
 0x481   :  { %v4490_v63 = vmax.f32 %v3349_v45, 0.0  ;;  %v4492_v18 = vmax.f32 %v3917_v31, 0.0  ;;  %v4903_v57 = vld [vmem:[%s12149_s7 + $0x40] sm:$0xff]  ;;  %v4902_v59 = vld [vmem:[%s12149_s7 + $0x38] sm:$0xff]  ;;  %v4901_v23 = vld [vmem:[%s12149_s7 + $0x30] sm:$0xff] }
 0x482   :  { %v4899_v40 = vld [vmem:[%s12149_s7 + $0x20] sm:$0xff]  ;;  %v4898_v48 = vld [vmem:[%s12149_s7 + $0x18] sm:$0xff] }
 0x483   :  { %v4496_v41 = vmax.f32 %v4488_v15, %v4490_v63 }
 0x49f   :  { %v4269_v25 = vpop.f32.mrf.mxu0 }
 0x4a0   :  { %v4270_v39 = vadd.f32 %v4269_v25, %v4199_v17  ;;  %v4487_v25 = vmax.f32 %v2779_v54, 0.0  ;;  %v4812_v17 = vld [vmem:[%s12147_s5 + $0x58] sm:$0xff] }
 0x4a1   :  { %v4340_v38 = vpop.f32.mrf.mxu1  ;;  %v4271_v5 = vpop.f32.mrf.mxu0 }
 0x4a2   :  { %v4272_v21 = vadd.f32 %v4271_v5, %v4201_v16  ;;  %v4341_v60 = vadd.f32 %v4340_v38, %v4270_v39  ;;  %v4495_v2 = vmax.f32 %v4487_v25, %v4489_v12  ;;  %v4810_v38 = vld [vmem:[%s12147_s5 + $0x48] sm:$0xff]  ;;  %v4809_v5 = vld [vmem:[%s12147_s5 + $0x40] sm:$0xff]  ;;  %v4807_v16 = vld [vmem:[%s12147_s5 + $0x30] sm:$0xff] }
 0x4a3   :  { %v4342_v28 = vpop.f32.mrf.mxu1  ;;  %v4806_v39 = vld [vmem:[%s12147_s5 + $0x28] sm:$0xff] }
 0x4a4   :  { %v4343_v53 = vadd.f32 %v4342_v28, %v4272_v21  ;;  %v4910_v21 = vld [vmem:[%s12149_s7 + $0x78] sm:$0xff]  ;;  %v4905_v28 = vld [vmem:[%s12149_s7 + $0x50] sm:$0xff]  ;;  %v4896_v25 = vld [vmem:[%s12149_s7 + $0x8] sm:$0xff] }
 0x4e2   :  { %v4411_v62 = vpop.f32.mrf.mxu0  ;;  %v4482_v61 = vpop.f32.mrf.mxu1 }
 0x4e3   :  { %v4412_v49 = vadd.f32 %v4411_v62, %v4341_v60  ;;  %v4900_v60 = vld [vmem:[%s12149_s7 + $0x28] sm:$0xff]  ;;  %v4629_v62 = vld [vmem:[%s12146_s4] sm:$0xf] }
 0x4e4   :  { %v4413_v10 = vpop.f32.mrf.mxu0  ;;  %v4484_v58 = vpop.f32.mrf.mxu1 }
 0x4e5   :  { %v4483_v36 = vadd.f32 %v4482_v61, %v4412_v49  ;;  %v4414_v50 = vadd.f32 %v4413_v10, %v4343_v53  ;;  %v12180_v61 = vld [vmem:[#allocation5_spill] sm:$0xff] }
 0x4e6   :  { %v12181_v52 = vsub.s32 0, %v12180_v61  ;;  %v12182_v53 = vsub.s32 2, %v12180_v61  ;;  %v12183_v13 = vsub.s32 1, %v12180_v61  ;;  %v12184_v32 = vsub.s32 3, %v12180_v61 }
 0x4e7   :  { %v4493_v11 = vmax.f32 %v4483_v36, 0.0  ;;  %v4485_v3 = vadd.f32 %v4484_v58, %v4414_v50 }
 0x4e8   :  { %v4634_v45 = vrot.slane %v4629_v62, %v12181_v52  ;;  %v4642_v49 = vrot.slane %v4629_v62, %v12182_v53  ;;  %v4638_v6 = vrot.slane %v4629_v62, %v12183_v13  ;;  %v4646_v56 = vrot.slane %v4629_v62, %v12184_v32 }
 0x4e9   :  { %v4494_v30 = vmax.f32 %v4485_v3, 0.0  ;;  %v4497_v7 = vmax.f32 %v4491_v0, %v4493_v11 }
 0x4eb   :  { %v4498_v14 = vmax.f32 %v4492_v18, %v4494_v30  ;;  %v4499_v44 = vmax.f32 %v4495_v2, %v4497_v7  ;;  %v4897_v30 = vld [vmem:[%s12149_s7 + $0x10] sm:$0xff]  ;;  %v4895_v7 = vld [vmem:[%s12149_s7] sm:$0xff] }
 0x4ed   :  { %v4500_v9 = vmax.f32 %v4496_v41, %v4498_v14  ;;  %v5011_v41 = vld [vmem:[%s12148_s6] ss:$0 sm:$0xff]  ;;  %s5152_s6 = smov [#allocation2]  }
 0x4ee   :  { %s5003_s7 = sshll.u32 %s5152_s6, 4  ;;  %s5004_s7 = int_to_ptr.vmem [resolvable:$true] %s5003_s7 }
 0x4ef   :  { %4715 = vmatprep.mubr.f32.mxu0 %v4500_v9  ;;  %4786 = vmatprep.mubr.f32.mxu1 %v4500_v9  ;;  %s5127_s21 = scalar_lea.vmem %s5004_s7, 32  ;;  %p5132_p1 = scmp.lt.s32.totalorder %s5004_s7, %s5004_s7 }
 0x4f0   :  { %4716 = vmatmul.mubr.f32.vlgmr.msra.gmra.mxu0 %v4499_v44  ;;  %4787 = vmatmul.mubr.f32.vlgmr.msra.gmra.mxu1 %v4499_v44  ;;  %p5128_p0 = scmp.ne.s32.totalorder %s5004_s7, %s5127_s21  ;;  %p5133_p2 = scmp.lt.s32.totalorder %s5127_s21, %s5127_s21 }
 0x4f1   :  { %5048 = vmatpush3.msra.mxu0 %v4816_v34  ;;  %5079 = vmatprep.mubr.msk.f32.mxu0 %vm5151_vm0, %v12179_v35  ;;  %v5012_v34 = vld [vmem:[%s12150_s8] ss:$0 sm:$0xff] }
 0x4f2   :  { %5049 = vmatprep.subr.mxu0 %v12179_v35  ;;  %5114 = vmatprep.mubr.msk.f32.mxu1 %vm5151_vm0, %v12179_v35  ;;  %p5134_p3 = por %p5133_p2, %p5132_p1 }
 0x4f3   :  { %5050 = vmatpush3.msra.mxu0 %v4815_v33  ;;  %5083 = vmatpush3.msra.mxu1 %v4910_v21 }
 0x4f4   :  { %5051 = vmatprep.subr.mxu0 %v12179_v35  ;;  %5084 = vmatprep.subr.mxu1 %v12179_v35  ;;  %p5135_p4 = pnand %p5134_p3, %p5128_p0 }
 0x4f5   :  { %5052 = vmatpush3.msra.mxu0 %v4814_v22  ;;  %5085 = vmatpush3.msra.mxu1 %v4909_v46 }
 0x4f6   :  { %5053 = vmatprep.subr.mxu0 %v12179_v35  ;;  %5086 = vmatprep.subr.mxu1 %v12179_v35 }
 0x4f7   :  { %5054 = vmatpush3.msra.mxu0 %v4813_v37  ;;  %5087 = vmatpush3.msra.mxu1 %v4908_v4 }
 0x4f8   :  { %5055 = vmatprep.subr.mxu0 %v12179_v35  ;;  %5088 = vmatprep.subr.mxu1 %v12179_v35 }
 0x4f9   :  { %5056 = vmatpush3.msra.mxu0 %v4812_v17  ;;  %5089 = vmatpush3.msra.mxu1 %v4907_v47 }
 0x4fa   :  { %5057 = vmatprep.subr.mxu0 %v12179_v35  ;;  %5090 = vmatprep.subr.mxu1 %v12179_v35 }
 0x4fb   :  { %5058 = vmatpush3.msra.mxu0 %v4811_v26  ;;  %5091 = vmatpush3.msra.mxu1 %v4906_v51 }
 0x4fc   :  { %5059 = vmatprep.subr.mxu0 %v12179_v35  ;;  %5092 = vmatprep.subr.mxu1 %v12179_v35 }
 0x4fd   :  { %5060 = vmatpush3.msra.mxu0 %v4810_v38  ;;  %5093 = vmatpush3.msra.mxu1 %v4905_v28 }
 0x4fe   :  { %5061 = vmatprep.subr.mxu0 %v12179_v35  ;;  %5094 = vmatprep.subr.mxu1 %v12179_v35 }
 0x4ff   :  { %5062 = vmatpush3.msra.mxu0 %v4809_v5  ;;  %5095 = vmatpush3.msra.mxu1 %v4904_v43 }
 0x500   :  { %5063 = vmatprep.subr.mxu0 %v12179_v35  ;;  %5096 = vmatprep.subr.mxu1 %v12179_v35 }
 0x501   :  { %5064 = vmatpush3.msra.mxu0 %v4808_v24  ;;  %5097 = vmatpush3.msra.mxu1 %v4903_v57 }
 0x502   :  { %5065 = vmatprep.subr.mxu0 %v12179_v35  ;;  %5098 = vmatprep.subr.mxu1 %v12179_v35 }
 0x503   :  { %5066 = vmatpush3.msra.mxu0 %v4807_v16  ;;  %5099 = vmatpush3.msra.mxu1 %v4902_v59 }
 0x504   :  { %5067 = vmatprep.subr.mxu0 %v12179_v35  ;;  %5100 = vmatprep.subr.mxu1 %v12179_v35 }
 0x505   :  { %5068 = vmatpush3.msra.mxu0 %v4806_v39  ;;  %5101 = vmatpush3.msra.mxu1 %v4901_v23 }
 0x506   :  { %5069 = vmatprep.subr.mxu0 %v12179_v35  ;;  %5102 = vmatprep.subr.mxu1 %v12179_v35 }
 0x507   :  { %5070 = vmatpush3.msra.mxu0 %v4805_v1  ;;  %5103 = vmatpush3.msra.mxu1 %v4900_v60 }
 0x508   :  { %5071 = vmatprep.subr.mxu0 %v12179_v35  ;;  %5104 = vmatprep.subr.mxu1 %v12179_v35 }
 0x509   :  { %5072 = vmatpush3.msra.mxu0 %v4804_v20  ;;  %5105 = vmatpush3.msra.mxu1 %v4899_v40 }
 0x50a   :  { %5073 = vmatprep.subr.mxu0 %v12179_v35  ;;  %5106 = vmatprep.subr.mxu1 %v12179_v35 }
 0x50b   :  { %5074 = vmatpush3.msra.mxu0 %v4803_v29  ;;  %5107 = vmatpush3.msra.mxu1 %v4898_v48 }
 0x50c   :  { %5075 = vmatprep.subr.mxu0 %v12179_v35  ;;  %5108 = vmatprep.subr.mxu1 %v12179_v35 }
 0x50d   :  { %5076 = vmatpush3.msra.mxu0 %v4802_v42  ;;  %5109 = vmatpush3.msra.mxu1 %v4897_v30 }
 0x50e   :  { %5077 = vmatprep.subr.mxu0 %v12179_v35  ;;  %5110 = vmatprep.subr.mxu1 %v12179_v35 }
 0x50f   :  { %5078 = vmatpush3.msra.mxu0 %v4801_v8  ;;  %5111 = vmatpush3.msra.mxu1 %v4896_v25 }
 0x510   :  { %5112 = vmatprep.subr.mxu1 %v12179_v35 }
 0x511   :  { %5113 = vmatpush3.msra.mxu1 %v4895_v7 }
 0x5b0   :  { %v4717_v55 = vpop.f32.mrf.mxu0  ;;  %v4788_v27 = vpop.f32.mrf.mxu1 }
 0x5b1   :  { %v4718_v10 = vadd.f32 %v4717_v55, %v4634_v45  ;;  %v4789_v50 = vadd.f32 %v4788_v27, %v4642_v49 }
 0x5b2   :  { %v4719_v31 = vpop.f32.mrf.mxu0  ;;  %v4790_v36 = vpop.f32.mrf.mxu1 }
 0x5b3   :  { %v4720_v19 = vadd.f32 %v4719_v31, %v4638_v6  ;;  %v4793_v54 = vmax.f32 %v4718_v10, 0.0  ;;  %v4791_v63 = vadd.f32 %v4790_v36, %v4646_v56  ;;  %v4795_v11 = vmax.f32 %v4789_v50, 0.0 }
 0x5b5   :  { %v4794_v58 = vmax.f32 %v4720_v19, 0.0  ;;  %v4796_v12 = vmax.f32 %v4791_v63, 0.0 }
 0x5b7   :  { %v4797_v3 = vadd.f32 %v4794_v58, %v4793_v54 }
 0x5b9   :  { %v4798_v0 = vadd.f32 %v4797_v3, %v4795_v11 }
 0x5bb   :  { %v4799_v15 = vadd.f32 %v4798_v0, %v4796_v12 }
 0x5bd   :  { %v4800_v18 = vmul.f32 0.25, %v4799_v15 }
 0x5bf   :  { %5080 = vmatmul.mubr.f32.vlgmr.msra.gmra.mxu0 %v4800_v18 }
 0x67f   :  { %v4890_v14 = vpop.f32.mrf.mxu0 }
 0x680   :  { %v4891_v2 = vadd.f32 %v5011_v41, %v4890_v14 }
 0x681   :  { %v5081_v9 = vpop.f32.mrf.mxu0 }
 0x682   :  { %v4894_v44 = vmax.f32 %v4891_v2, 0.0 }
 0x684   :  { %5115 = vmatmul.mubr.f32.vlgmr.msra.gmra.mxu1 %v4894_v44 }
 0x744   :  { %v4984_v33 = vpop.f32.mrf.mxu1 }
 0x745   :  { %v4985_v35 = vadd.f32 %v5012_v34, %v4984_v33 }
 0x746   :  { %v5116_v22 = vpop.f32.mrf.mxu1 }
 0x747   :  { %v4988_v37 = vmul.f32 %v4985_v35, %v4985_v35 }
 0x749   :  { %v4990_v17 = vsel %vm4989_vm1, %v4988_v37, 0.0 }
 0x74a   :  { %4991 = vadd.xlane.f32.xlu0 %v4990_v17 }
 0x7d3   :  { %v4992_v26 = vpop.xlane.xlu0 %4991 }
 0x7d4   :  { %v4993_v38 = vadd.f32 1e-12, %v4992_v26 }
 0x7d6   :  { %5125 = vrsqrt.f32 %v4993_v38 }
 0x7e3   :  { %v5126_v5 = vpop.eup %5125 }
 0x7e4   :  { %v4995_v24 = vmul.f32 %v5126_v5, %v4985_v35 }
 0x7e6   :  { %4996 = vst [vmem:[#allocation2] sm:$0x3] %v4995_v24 }
 0x7e7   :  { %5138 = shalt.err (!%p5135_p4)
}
 0x7e8   :  { %5006 = dma.vmem_to_hbm [thread:$0]  %s5004_s7, 32, %s12151_s9, [#allocation3]  }
 0x7e9   :  { %5147 = dma.done.wait [#allocation3], 32  }
 0x7ea   :  { %5148 = vsyncadd [#allocation3], 4294967264 }
 0x7eb   :  { %5010 = vsyncpa [#allocation3], 1 }

</bundles_post_ra>
